<compile_context>
chip_gen: v5e
topology: v5e:2x2
jax: 0.10.0
libtpu: 0.0.40
codegen_flags: <defaults>
</compile_context>

<pallas_src>
import functools

import jax
import jax.numpy as jnp
from jax import lax
from jax.experimental import pallas as pl
from jax.experimental.pallas import tpu as pltpu


def _round_up(n, m):
    return ((n + m - 1) // m) * m


def _vmem_limit_bytes():
    """Conservative VMEM budget: ~3/4 of physical, capped (v7x: 64 MiB/TC)."""
    try:
        cap = int(pltpu.get_tpu_info().vmem_capacity_bytes)
        return min((cap * 3) // 4, 96 * 1024 * 1024)
    except Exception:
        return 48 * 1024 * 1024  # safe on every generation


# ----------------------------- Pallas kernels ------------------------------- #

def _lstm_kernel(x_ref, h0_ref, c0_ref, wih_ref, whh_ref, b_ref,
                 hn_ref, cn_ref, gx_scr,
                 *, n_layers, hp, t_chunk, t_real, mask_tail):
    """One grid step = (one batch tile) x (one chunk of time steps).

    x_ref   : (t_chunk, BT, Hp) bf16   embedded inputs for this time chunk
    h0/c0   : (L, BT, Hp)  f32         initial states for this batch tile
    wih/whh : (L, Hp, 4Hp) bf16        input / recurrent weights, gates (i,f,o,g)
    b_ref   : (L, 4Hp)     f32         combined biases (b_ih + b_hh)
    hn/cn   : (L, BT, Hp)  f32         running state; output block index is
                                       constant along the time axis, so the
                                       block stays VMEM-resident and is used as
                                       the cross-chunk carry
    gx_scr  : (t_chunk, BT, 4Hp) f32   precomputed x @ W_ih[0] + b[0]
    """
    t_idx = pl.program_id(1)
    bt = h0_ref.shape[1]

    # (re)initialize the running state at the first time chunk of a batch tile.
    # Padded lanes/rows of h0/c0 are zero, and padded weight/bias columns are
    # zero, so padded state stays exactly zero throughout.
    @pl.when(t_idx == 0)
    def _():
        hn_ref[...] = h0_ref[...]
        cn_ref[...] = c0_ref[...]

    # ---- bulk, non-recurrent work: layer-0 input projection for the whole
    # chunk in one MXU matmul (M = t_chunk * BT), layer-0 bias folded in ------
    b0 = b_ref[pl.ds(0, 1), :]                                    # (1, 4Hp) f32
    x_flat = x_ref[...].reshape(t_chunk * bt, hp)                 # bf16
    gx_scr[...] = (jnp.dot(x_flat, wih_ref[0],
                           preferred_element_type=jnp.float32)
                   + b0).reshape(t_chunk, bt, 4 * hp)

    # deeper-layer biases stay (1, 4Hp); broadcasting happens in the add
    b_rest = [b_ref[pl.ds(l, 1), :] for l in range(1, n_layers)]

    # running state enters the serial loop as a fori carry (no per-step VMEM
    # store->load on the recurrent dependency chain)
    h_in = tuple(hn_ref[l] for l in range(n_layers))
    c_in = tuple(cn_ref[l] for l in range(n_layers))

    def step(s, carry):
        hs, cs = carry
        new_h, new_c = [], []
        inp = None                                    # bf16 input to layer l>0
        for l in range(n_layers):                     # static layer loop
            h_mm = jnp.dot(hs[l].astype(jnp.bfloat16), whh_ref[l],
                           preferred_element_type=jnp.float32)
            if l == 0:
                gates = gx_scr[s] + h_mm              # x-projection precomputed
            else:
                gates = (jnp.dot(inp, wih_ref[l],
                                 preferred_element_type=jnp.float32)
                         + h_mm + b_rest[l - 1])
            # gate order (i, f, o, g): one contiguous sigmoid slice + one tanh
            sig = jax.nn.sigmoid(gates[:, :3 * hp])
            i_g = sig[:, 0 * hp:1 * hp]
            f_g = sig[:, 1 * hp:2 * hp]
            o_g = sig[:, 2 * hp:3 * hp]
            g_g = jnp.tanh(gates[:, 3 * hp:4 * hp])
            c_new = f_g * cs[l] + i_g * g_g           # f32 cell state
            h_new = o_g * jnp.tanh(c_new)
            new_h.append(h_new)
            new_c.append(c_new)
            inp = h_new.astype(jnp.bfloat16)          # feed the next layer
        if mask_tail:                                 # padded tail time steps
            valid = (t_idx * t_chunk + s) < t_real
            new_h = [jnp.where(valid, n, o) for n, o in zip(new_h, hs)]
            new_c = [jnp.where(valid, n, o) for n, o in zip(new_c, cs)]
        return tuple(new_h), tuple(new_c)

    h_out, c_out = lax.fori_loop(0, t_chunk, step, (h_in, c_in), unroll=True)

    # persist the carry across time chunks (flushed to HBM automatically when
    # the batch tile changes / the grid ends)
    for l in range(n_layers):
        hn_ref[l] = h_out[l]
        cn_ref[l] = c_out[l]


def _fc_kernel(h_ref, w_ref, b_ref, out_ref):
    out_ref[...] = (jnp.dot(h_ref[...], w_ref[...],
                            preferred_element_type=jnp.float32)
                    + b_ref[...])


# --------------------------- Param packing glue ----------------------------- #

def _pack_kernel_params(params, n_layers, n_hidden):
    """Pad H/V to lane multiples, reorder gates (i,f,g,o)->(i,f,o,g), cast MXU
    inputs (embed, W_ih, W_hh, fc_w) to bf16."""
    H = n_hidden
    Hp = _round_up(H, 128)
    V = params["fc_w"].shape[1]
    Vp = _round_up(V, 128)
    perm = [0, 1, 3, 2]  # PyTorch gate order (i,f,g,o) -> (i,f,o,g)

    def pad_gate_mat(w):                       # (H, 4H) -> (Hp, 4Hp)
        w4 = w.reshape(H, 4, H)[:, perm, :]
        w4 = jnp.pad(w4, ((0, Hp - H), (0, 0), (0, Hp - H)))
        return w4.reshape(Hp, 4 * Hp)

    def pad_gate_bias(b):                      # (4H,) -> (4Hp,)
        b4 = b.reshape(4, H)[perm, :]
        return jnp.pad(b4, ((0, 0), (0, Hp - H))).reshape(4 * Hp)

    w_ih = jnp.stack([pad_gate_mat(params["w_ih"][l])
                      for l in range(n_layers)]).astype(jnp.bfloat16)
    w_hh = jnp.stack([pad_gate_mat(params["w_hh"][l])
                      for l in range(n_layers)]).astype(jnp.bfloat16)
    bias = jnp.stack([pad_gate_bias(params["b"][l])
                      for l in range(n_layers)])                       # f32

    embed = jnp.pad(params["embed"], ((0, 0), (0, Hp - H))).astype(jnp.bfloat16)
    fc_w = jnp.pad(params["fc_w"],
                   ((0, Hp - H), (0, Vp - V))).astype(jnp.bfloat16)     # (Hp, Vp)
    fc_b = jnp.pad(params["fc_b"], ((0, 0), (0, Vp - V)))               # (1, Vp)

    return embed, w_ih, w_hh, bias, fc_w, fc_b, Hp, Vp


# ------------------------------- Wrapper ------------------------------------ #

def rnn_forward(tokens, hidden, params, *, b_tile=None, t_chunk=None, v_tile=None):
    """Equivalent of RNN.forward(x, hidden).

    tokens : int32 (B, T) token ids
    hidden : tuple (h0, c0), each float32 (L, B, H)
    returns (logits (B, V), (h_n, c_n))
    """
    h0, c0 = hidden
    L, B, H = h0.shape
    T = tokens.shape[1]
    V = params["fc_w"].shape[1]

    embed_p, w_ih, w_hh, bias, fc_w_p, fc_b_p, Hp, Vp = \
        _pack_kernel_params(params, L, H)

    # ---- tile selection -----------------------------------------------------
    if b_tile is None:
        # recurrent matmul M == BT: keep >=16 (bf16 sublane packing) and large
        # enough to use the MXU rows; capped at 128 so Bp/BT >= 2 at big batch
        b_tile = min(128, max(16, _round_up(B, 16)))
    BT = b_tile
    Bp = _round_up(B, BT)

    if t_chunk is None:
        t_chunk = min(_round_up(T, 8), 64)
    Tp = _round_up(T, t_chunk)           # tail time steps are masked in-kernel

    if v_tile is None:
        v_tile = Vp
        if Vp > 2048:                    # bound the resident FC weight tile
            v_tile = 128
            for cand in range(2048, 127, -128):
                if Vp % cand == 0:
                    v_tile = cand
                    break
    VT = v_tile

    vmem_limit = _vmem_limit_bytes()

    # ---- embedding gather: bf16 rows straight from the padded bf16 table ----
    x = embed_p[tokens.T]                                        # (T, B, Hp) bf16
    x = jnp.pad(x, ((0, Tp - T), (0, Bp - B), (0, 0)))

    h0_p = jnp.pad(h0, ((0, 0), (0, Bp - B), (0, Hp - H)))
    c0_p = jnp.pad(c0, ((0, 0), (0, Bp - B), (0, Hp - H)))

    lstm_kernel = functools.partial(
        _lstm_kernel, n_layers=L, hp=Hp, t_chunk=t_chunk,
        t_real=T, mask_tail=(Tp != T))

    grid = (Bp // BT, Tp // t_chunk)     # (batch tiles, time chunks)

    hn_p, cn_p = pl.pallas_call(
        lstm_kernel,
        out_shape=(
            jax.ShapeDtypeStruct((L, Bp, Hp), jnp.float32),      # h_n (padded)
            jax.ShapeDtypeStruct((L, Bp, Hp), jnp.float32),      # c_n (padded)
        ),
        grid_spec=pltpu.PrefetchScalarGridSpec(
            num_scalar_prefetch=0,
            grid=grid,
            in_specs=[
                pl.BlockSpec((t_chunk, BT, Hp), lambda b, t: (t, b, 0)),   # x
                pl.BlockSpec((L, BT, Hp), lambda b, t: (0, b, 0)),         # h0
                pl.BlockSpec((L, BT, Hp), lambda b, t: (0, b, 0)),         # c0
                pl.BlockSpec((L, Hp, 4 * Hp), lambda b, t: (0, 0, 0)),     # W_ih
                pl.BlockSpec((L, Hp, 4 * Hp), lambda b, t: (0, 0, 0)),     # W_hh
                pl.BlockSpec((L, 4 * Hp), lambda b, t: (0, 0)),            # bias
            ],
            out_specs=(
                pl.BlockSpec((L, BT, Hp), lambda b, t: (0, b, 0)),         # h_n
                pl.BlockSpec((L, BT, Hp), lambda b, t: (0, b, 0)),         # c_n
            ),
            scratch_shapes=[
                pltpu.VMEM((t_chunk, BT, 4 * Hp), jnp.float32),   # gates_x
            ],
        ),
        compiler_params=pltpu.CompilerParams(
            dimension_semantics=("parallel", "arbitrary"),
            vmem_limit_bytes=vmem_limit,
        ),
    )(x, h0_p, c0_p, w_ih, w_hh, bias)

    # ---- final Linear on the last layer's hidden state. Separate pallas_call
    # tiled over the vocab axis so fc_w is never resident during the LSTM. ----
    h_last = hn_p[L - 1].astype(jnp.bfloat16)                    # (Bp, Hp)
    out_p = pl.pallas_call(
        _fc_kernel,
        out_shape=jax.ShapeDtypeStruct((Bp, Vp), jnp.float32),
        grid=(Bp // BT, Vp // VT),
        in_specs=[
            pl.BlockSpec((BT, Hp), lambda i, j: (i, 0)),
            pl.BlockSpec((Hp, VT), lambda i, j: (0, j)),
            pl.BlockSpec((1, VT), lambda i, j: (0, j)),
        ],
        out_specs=pl.BlockSpec((BT, VT), lambda i, j: (i, j)),
        compiler_params=pltpu.CompilerParams(
            dimension_semantics=("parallel", "parallel"),
            vmem_limit_bytes=vmem_limit,
        ),
    )(h_last, fc_w_p, fc_b_p)

    return out_p[:B, :V], (hn_p[:, :B, :H], cn_p[:, :B, :H])


# --------------------------- Pure-JAX references ---------------------------- #

def rnn_forward_ref(tokens, hidden, params):
    """Straight f32 reference of the PyTorch module."""
    h0, c0 = hidden
    L, B, H = h0.shape
    T = tokens.shape[1]
    x = params["embed"][tokens]                      # (B, T, H)
    h = [h0[l] for l in range(L)]
    c = [c0[l] for l in range(L)]
    for t in range(T):
        inp = x[:, t]
        for l in range(L):
            gates = inp @ params["w_ih"][l] + h[l] @ params["w_hh"][l] + params["b"][l]
            i_g = jax.nn.sigmoid(gates[:, 0 * H:1 * H])
            f_g = jax.nn.sigmoid(gates[:, 1 * H:2 * H])
            g_g = jnp.tanh(gates[:, 2 * H:3 * H])
            o_g = jax.nn.sigmoid(gates[:, 3 * H:4 * H])
            c[l] = f_g * c[l] + i_g * g_g
            h[l] = o_g * jnp.tanh(c[l])
            inp = h[l]
    out = h[-1] @ params["fc_w"] + params["fc_b"][0]
    return out, (jnp.stack(h), jnp.stack(c))


def rnn_forward_mixed_ref(tokens, hidden, params):
    """Reference mirroring the kernel's mixed precision (bf16 MXU inputs,
    f32 accumulation, f32 elementwise / cell state)."""
    h0, c0 = hidden
    L, B, H = h0.shape
    T = tokens.shape[1]
    x = params["embed"][tokens].astype(jnp.bfloat16)
    w_ih = params["w_ih"].astype(jnp.bfloat16)
    w_hh = params["w_hh"].astype(jnp.bfloat16)
    fc_w = params["fc_w"].astype(jnp.bfloat16)
    h = [h0[l] for l in range(L)]
    c = [c0[l] for l in range(L)]
    for t in range(T):
        inp = x[:, t]
        for l in range(L):
            gates = (jnp.dot(inp, w_ih[l], preferred_element_type=jnp.float32)
                     + jnp.dot(h[l].astype(jnp.bfloat16), w_hh[l],
                               preferred_element_type=jnp.float32)
                     + params["b"][l])
            i_g = jax.nn.sigmoid(gates[:, 0 * H:1 * H])
            f_g = jax.nn.sigmoid(gates[:, 1 * H:2 * H])
            g_g = jnp.tanh(gates[:, 2 * H:3 * H])
            o_g = jax.nn.sigmoid(gates[:, 3 * H:4 * H])
            c[l] = f_g * c[l] + i_g * g_g
            h[l] = o_g * jnp.tanh(c[l])
            inp = h[l].astype(jnp.bfloat16)
    out = (jnp.dot(h[-1].astype(jnp.bfloat16), fc_w,
                   preferred_element_type=jnp.float32) + params["fc_b"][0])
    return out, (jnp.stack(h), jnp.stack(c))


# ------------------------------ Param init ---------------------------------- #

def init_params(key, vocab, n_hidden, n_layers):
    H = n_hidden
    keys = jax.random.split(key, 4 + 4 * n_layers)
    k = 1.0 / jnp.sqrt(jnp.float32(H))

    embed = jax.random.normal(keys[0], (vocab, H), jnp.float32)  # nn.Embedding ~ N(0,1)

    w_ih, w_hh, b = [], [], []
    for l in range(n_layers):
        kw = keys[4 + 4 * l: 4 + 4 * (l + 1)]
        # PyTorch stores (4H, in) / (4H, H); pre-transposed here to (in, 4H)/(H, 4H).
        w_ih_l = jax.random.uniform(kw[0], (4 * H, H), jnp.float32, -k, k).T
        w_hh_l = jax.random.uniform(kw[1], (4 * H, H), jnp.float32, -k, k).T
        b_ih_l = jax.random.uniform(kw[2], (4 * H,), jnp.float32, -k, k)
        b_hh_l = jax.random.uniform(kw[3], (4 * H,), jnp.float32, -k, k)
        w_ih.append(w_ih_l)
        w_hh.append(w_hh_l)
        b.append(b_ih_l + b_hh_l)

    fc_w = jax.random.uniform(keys[1], (vocab, H), jnp.float32, -k, k).T  # (H, V)
    fc_b = jax.random.uniform(keys[2], (1, vocab), jnp.float32, -k, k)    # (1, V)

    return {
        "embed": embed,
        "w_ih": jnp.stack(w_ih),   # (L, H, 4H)
        "w_hh": jnp.stack(w_hh),   # (L, H, 4H)
        "b": jnp.stack(b),         # (L, 4H)
        "fc_w": fc_w,              # (H, V)
        "fc_b": fc_b,              # (1, V)
    }


# --------------------------------- Main -------------------------------------- #

if __name__ == "__main__":
    VOCAB = 16      # len(tokens)
    H = 32          # n_hidden
    L = 2           # n_layers
    B = 2           # batch
    T = 8           # sequence length

    key = jax.random.PRNGKey(0)
    k_param, k_tok, k_tok2 = jax.random.split(key, 3)

    params = init_params(k_param, VOCAB, H, L)
    tokens = jax.random.randint(k_tok, (B, T), 0, VOCAB, dtype=jnp.int32)

    # init_hidden(batch_size): zeros of shape (n_layers, batch, n_hidden)
    h0 = jnp.zeros((L, B, H), jnp.float32)
    c0 = jnp.zeros((L, B, H), jnp.float32)

    out, (h_n, c_n) = rnn_forward(tokens, (h0, c0), params)
    out = jax.block_until_ready(out)
    h_n = jax.block_until_ready(h_n)
    c_n = jax.block_until_ready(c_n)

    # tight check against a reference that mirrors the kernel's mixed precision
    out_m, (h_m, c_m) = rnn_forward_mixed_ref(tokens, (h0, c0), params)
    assert jnp.allclose(out, out_m, rtol=2e-3, atol=2e-3), "logits mismatch (mixed ref)"
    assert jnp.allclose(h_n, h_m, rtol=2e-3, atol=2e-3), "h_n mismatch (mixed ref)"
    assert jnp.allclose(c_n, c_m, rtol=2e-3, atol=2e-3), "c_n mismatch (mixed ref)"

    # coarse sanity check against the full-f32 PyTorch-semantics reference
    out_r, (h_r, c_r) = rnn_forward_ref(tokens, (h0, c0), params)
    assert jnp.allclose(out, out_r, rtol=1e-1, atol=1e-1), "logits drift vs f32 ref"
    assert jnp.allclose(h_n, h_r, rtol=1e-1, atol=1e-1), "h_n drift vs f32 ref"
    assert jnp.allclose(c_n, c_r, rtol=1e-1, atol=1e-1), "c_n drift vs f32 ref"

    # ragged sequence length (exercises the padded-tail time-step mask)
    T2 = 5
    tokens2 = jax.random.randint(k_tok2, (B, T2), 0, VOCAB, dtype=jnp.int32)
    out2, (h_n2, c_n2) = rnn_forward(tokens2, (h0, c0), params)
    out2 = jax.block_until_ready(out2)
    out2_m, (h2_m, c2_m) = rnn_forward_mixed_ref(tokens2, (h0, c0), params)
    assert jnp.allclose(out2, out2_m, rtol=2e-3, atol=2e-3), "ragged logits mismatch"
    assert jnp.allclose(h_n2, h2_m, rtol=2e-3, atol=2e-3), "ragged h_n mismatch"
    assert jnp.allclose(c_n2, c2_m, rtol=2e-3, atol=2e-3), "ragged c_n mismatch"

    print("KERNEL_OK")
</pallas_src>

<mosaic_0001>
module attributes {stable_mosaic.version = 11 : i64} {
  func.func @_lstm_kernel(%arg0: i32, %arg1: i32, %arg2: memref<8x16x128xbf16, #tpu.memory_space<vmem>>, %arg3: memref<2x16x128xf32, #tpu.memory_space<vmem>>, %arg4: memref<2x16x128xf32, #tpu.memory_space<vmem>>, %arg5: memref<2x128x512xbf16, #tpu.memory_space<vmem>>, %arg6: memref<2x128x512xbf16, #tpu.memory_space<vmem>>, %arg7: memref<2x512xf32, #tpu.memory_space<vmem>>, %arg8: memref<2x16x128xf32, #tpu.memory_space<vmem>>, %arg9: memref<2x16x128xf32, #tpu.memory_space<vmem>>, %arg10: memref<8x16x512xf32, #tpu.memory_space<vmem>>) attributes {dimension_semantics = [#tpu.dimension_semantics<parallel>, #tpu.dimension_semantics<arbitrary>], iteration_bounds = array<i64: 1, 1>, scalar_prefetch = 0 : i64, scratch_operands = 1 : i64, tpu.core_type = #tpu.core_type<tc>, window_params = [{transform_indices = @transform_0, window_bounds = array<i64: 8, 16, 128>}, {transform_indices = @transform_1, window_bounds = array<i64: 2, 16, 128>}, {transform_indices = @transform_2, window_bounds = array<i64: 2, 16, 128>}, {pipeline_mode = #tpu.pipeline_mode<synchronous>, transform_indices = @transform_3, window_bounds = array<i64: 2, 128, 512>}, {pipeline_mode = #tpu.pipeline_mode<synchronous>, transform_indices = @transform_4, window_bounds = array<i64: 2, 128, 512>}, {pipeline_mode = #tpu.pipeline_mode<synchronous>, transform_indices = @transform_5, window_bounds = array<i64: 2, 512>}, {transform_indices = @transform_6, window_bounds = array<i64: 2, 16, 128>}, {transform_indices = @transform_7, window_bounds = array<i64: 2, 16, 128>}]} {
    %c0_i32 = arith.constant 0 : i32
    %0 = arith.cmpi eq, %arg1, %c0_i32 : i32
    %1 = arith.extui %0 : i1 to i32
    %c0_i32_0 = arith.constant 0 : i32
    %2 = arith.cmpi ne, %1, %c0_i32_0 : i32
    scf.if %2 {
      %c0_165 = arith.constant 0 : index
      %c0_166 = arith.constant 0 : index
      %c0_167 = arith.constant 0 : index
      %442 = vector.load %arg3[%c0_165, %c0_166, %c0_167] : memref<2x16x128xf32, #tpu.memory_space<vmem>>, vector<2x16x128xf32>
      %c0_168 = arith.constant 0 : index
      %c0_169 = arith.constant 0 : index
      %c0_170 = arith.constant 0 : index
      %443 = vector.load %arg8[%c0_168, %c0_169, %c0_170] : memref<2x16x128xf32, #tpu.memory_space<vmem>>, vector<2x16x128xf32>
      tpu.vector_store %arg8[%c0_168, %c0_169, %c0_170], %442 {strides = array<i32>} : memref<2x16x128xf32, #tpu.memory_space<vmem>>, vector<2x16x128xf32>,
      %c0_171 = arith.constant 0 : index
      %c0_172 = arith.constant 0 : index
      %c0_173 = arith.constant 0 : index
      %444 = vector.load %arg4[%c0_171, %c0_172, %c0_173] : memref<2x16x128xf32, #tpu.memory_space<vmem>>, vector<2x16x128xf32>
      %c0_174 = arith.constant 0 : index
      %c0_175 = arith.constant 0 : index
      %c0_176 = arith.constant 0 : index
      %445 = vector.load %arg9[%c0_174, %c0_175, %c0_176] : memref<2x16x128xf32, #tpu.memory_space<vmem>>, vector<2x16x128xf32>
      tpu.vector_store %arg9[%c0_174, %c0_175, %c0_176], %444 {strides = array<i32>} : memref<2x16x128xf32, #tpu.memory_space<vmem>>, vector<2x16x128xf32>,
    } else {
    }
    %c0 = arith.constant 0 : index
    %c0_1 = arith.constant 0 : index
    %3 = vector.load %arg7[%c0, %c0_1] : memref<2x512xf32, #tpu.memory_space<vmem>>, vector<1x512xf32>
    %c0_2 = arith.constant 0 : index
    %c0_3 = arith.constant 0 : index
    %c0_4 = arith.constant 0 : index
    %4 = vector.load %arg2[%c0_2, %c0_3, %c0_4] : memref<8x16x128xbf16, #tpu.memory_space<vmem>>, vector<8x16x128xbf16>
    %5 = vector.shape_cast %4 : vector<8x16x128xbf16> to vector<128x128xbf16>
    %c0_5 = arith.constant 0 : index
    %c0_6 = arith.constant 0 : index
    %c0_7 = arith.constant 0 : index
    %6 = vector.load %arg5[%c0_5, %c0_6, %c0_7] : memref<2x128x512xbf16, #tpu.memory_space<vmem>>, vector<1x128x512xbf16>
    %7 = vector.shape_cast %6 : vector<1x128x512xbf16> to vector<128x512xbf16>
    %cst = arith.constant dense<0.000000e+00> : vector<128x512xf32>
    %8 = tpu.matmul %5, %7, %cst {dimension_numbers = #tpu.dot_dimension_numbers<[1], [0], [0], [1], [0, 0, 1, 1], [], []>} : vector<128x128xbf16>, vector<128x512xbf16>, vector<128x512xf32> -> vector<128x512xf32>
    %9 = vector.broadcast %3 : vector<1x512xf32> to vector<128x512xf32>
    %10 = arith.addf %8, %9 : vector<128x512xf32>
    %11 = vector.shape_cast %10 : vector<128x512xf32> to vector<8x16x512xf32>
    %c0_8 = arith.constant 0 : index
    %c0_9 = arith.constant 0 : index
    %c0_10 = arith.constant 0 : index
    %12 = vector.load %arg10[%c0_8, %c0_9, %c0_10] : memref<8x16x512xf32, #tpu.memory_space<vmem>>, vector<8x16x512xf32>
    tpu.vector_store %arg10[%c0_8, %c0_9, %c0_10], %11 {strides = array<i32>} : memref<8x16x512xf32, #tpu.memory_space<vmem>>, vector<8x16x512xf32>,
    %c1 = arith.constant 1 : index
    %c0_11 = arith.constant 0 : index
    %13 = vector.load %arg7[%c1, %c0_11] : memref<2x512xf32, #tpu.memory_space<vmem>>, vector<1x512xf32>
    %c0_12 = arith.constant 0 : index
    %c0_13 = arith.constant 0 : index
    %c0_14 = arith.constant 0 : index
    %14 = vector.load %arg8[%c0_12, %c0_13, %c0_14] : memref<2x16x128xf32, #tpu.memory_space<vmem>>, vector<1x16x128xf32>
    %15 = vector.shape_cast %14 : vector<1x16x128xf32> to vector<16x128xf32>
    %c1_15 = arith.constant 1 : index
    %c0_16 = arith.constant 0 : index
    %c0_17 = arith.constant 0 : index
    %16 = vector.load %arg8[%c1_15, %c0_16, %c0_17] : memref<2x16x128xf32, #tpu.memory_space<vmem>>, vector<1x16x128xf32>
    %17 = vector.shape_cast %16 : vector<1x16x128xf32> to vector<16x128xf32>
    %c0_18 = arith.constant 0 : index
    %c0_19 = arith.constant 0 : index
    %c0_20 = arith.constant 0 : index
    %18 = vector.load %arg9[%c0_18, %c0_19, %c0_20] : memref<2x16x128xf32, #tpu.memory_space<vmem>>, vector<1x16x128xf32>
    %19 = vector.shape_cast %18 : vector<1x16x128xf32> to vector<16x128xf32>
    %c1_21 = arith.constant 1 : index
    %c0_22 = arith.constant 0 : index
    %c0_23 = arith.constant 0 : index
    %20 = vector.load %arg9[%c1_21, %c0_22, %c0_23] : memref<2x16x128xf32, #tpu.memory_space<vmem>>, vector<1x16x128xf32>
    %21 = vector.shape_cast %20 : vector<1x16x128xf32> to vector<16x128xf32>
    %c0_i32_24 = arith.constant 0 : i32
    %22 = arith.truncf %15 : vector<16x128xf32> to vector<16x128xbf16>
    %c0_25 = arith.constant 0 : index
    %c0_26 = arith.constant 0 : index
    %c0_27 = arith.constant 0 : index
    %23 = vector.load %arg6[%c0_25, %c0_26, %c0_27] : memref<2x128x512xbf16, #tpu.memory_space<vmem>>, vector<1x128x512xbf16>
    %24 = vector.shape_cast %23 : vector<1x128x512xbf16> to vector<128x512xbf16>
    %cst_28 = arith.constant dense<0.000000e+00> : vector<16x512xf32>
    %25 = tpu.matmul %22, %24, %cst_28 {dimension_numbers = #tpu.dot_dimension_numbers<[1], [0], [0], [1], [0, 0, 1, 1], [], []>} : vector<16x128xbf16>, vector<128x512xbf16>, vector<16x512xf32> -> vector<16x512xf32>
    %26 = arith.index_cast %c0_i32_24 : i32 to index
    %c0_29 = arith.constant 0 : index
    %c0_30 = arith.constant 0 : index
    %27 = vector.load %arg10[%26, %c0_29, %c0_30] : memref<8x16x512xf32, #tpu.memory_space<vmem>>, vector<1x16x512xf32>
    %28 = vector.shape_cast %27 : vector<1x16x512xf32> to vector<16x512xf32>
    %29 = arith.addf %28, %25 : vector<16x512xf32>
    %30 = vector.extract_strided_slice %29 {offsets = [0, 0], sizes = [16, 384], strides = [1, 1]} : vector<16x512xf32> to vector<16x384xf32>
    %31 = arith.negf %30 : vector<16x384xf32>
    %32 = math.exp %31 : vector<16x384xf32>
    %cst_31 = arith.constant 1.000000e+00 : f32
    %33 = vector.broadcast %cst_31 : f32 to vector<16x384xf32>
    %34 = arith.addf %33, %32 : vector<16x384xf32>
    %35 = arith.divf %33, %34 : vector<16x384xf32>
    %36 = vector.extract_strided_slice %35 {offsets = [0, 0], sizes = [16, 128], strides = [1, 1]} : vector<16x384xf32> to vector<16x128xf32>
    %37 = vector.extract_strided_slice %35 {offsets = [0, 128], sizes = [16, 128], strides = [1, 1]} : vector<16x384xf32> to vector<16x128xf32>
    %38 = vector.extract_strided_slice %35 {offsets = [0, 256], sizes = [16, 128], strides = [1, 1]} : vector<16x384xf32> to vector<16x128xf32>
    %39 = vector.extract_strided_slice %29 {offsets = [0, 384], sizes = [16, 128], strides = [1, 1]} : vector<16x512xf32> to vector<16x128xf32>
    %40 = math.tanh %39 : vector<16x128xf32>
    %41 = arith.mulf %37, %19 : vector<16x128xf32>
    %42 = arith.mulf %36, %40 : vector<16x128xf32>
    %43 = arith.addf %41, %42 : vector<16x128xf32>
    %44 = math.tanh %43 : vector<16x128xf32>
    %45 = arith.mulf %38, %44 : vector<16x128xf32>
    %46 = arith.truncf %45 : vector<16x128xf32> to vector<16x128xbf16>
    %47 = arith.truncf %17 : vector<16x128xf32> to vector<16x128xbf16>
    %c1_32 = arith.constant 1 : index
    %c0_33 = arith.constant 0 : index
    %c0_34 = arith.constant 0 : index
    %48 = vector.load %arg6[%c1_32, %c0_33, %c0_34] : memref<2x128x512xbf16, #tpu.memory_space<vmem>>, vector<1x128x512xbf16>
    %49 = vector.shape_cast %48 : vector<1x128x512xbf16> to vector<128x512xbf16>
    %cst_35 = arith.constant dense<0.000000e+00> : vector<16x512xf32>
    %50 = tpu.matmul %47, %49, %cst_35 {dimension_numbers = #tpu.dot_dimension_numbers<[1], [0], [0], [1], [0, 0, 1, 1], [], []>} : vector<16x128xbf16>, vector<128x512xbf16>, vector<16x512xf32> -> vector<16x512xf32>
    %c1_36 = arith.constant 1 : index
    %c0_37 = arith.constant 0 : index
    %c0_38 = arith.constant 0 : index
    %51 = vector.load %arg5[%c1_36, %c0_37, %c0_38] : memref<2x128x512xbf16, #tpu.memory_space<vmem>>, vector<1x128x512xbf16>
    %52 = vector.shape_cast %51 : vector<1x128x512xbf16> to vector<128x512xbf16>
    %cst_39 = arith.constant dense<0.000000e+00> : vector<16x512xf32>
    %53 = tpu.matmul %46, %52, %cst_39 {dimension_numbers = #tpu.dot_dimension_numbers<[1], [0], [0], [1], [0, 0, 1, 1], [], []>} : vector<16x128xbf16>, vector<128x512xbf16>, vector<16x512xf32> -> vector<16x512xf32>
    %54 = arith.addf %53, %50 : vector<16x512xf32>
    %55 = vector.broadcast %13 : vector<1x512xf32> to vector<16x512xf32>
    %56 = arith.addf %54, %55 : vector<16x512xf32>
    %57 = vector.extract_strided_slice %56 {offsets = [0, 0], sizes = [16, 384], strides = [1, 1]} : vector<16x512xf32> to vector<16x384xf32>
    %58 = arith.negf %57 : vector<16x384xf32>
    %59 = math.exp %58 : vector<16x384xf32>
    %cst_40 = arith.constant 1.000000e+00 : f32
    %60 = vector.broadcast %cst_40 : f32 to vector<16x384xf32>
    %61 = arith.addf %60, %59 : vector<16x384xf32>
    %62 = arith.divf %60, %61 : vector<16x384xf32>
    %63 = vector.extract_strided_slice %62 {offsets = [0, 0], sizes = [16, 128], strides = [1, 1]} : vector<16x384xf32> to vector<16x128xf32>
    %64 = vector.extract_strided_slice %62 {offsets = [0, 128], sizes = [16, 128], strides = [1, 1]} : vector<16x384xf32> to vector<16x128xf32>
    %65 = vector.extract_strided_slice %62 {offsets = [0, 256], sizes = [16, 128], strides = [1, 1]} : vector<16x384xf32> to vector<16x128xf32>
    %66 = vector.extract_strided_slice %56 {offsets = [0, 384], sizes = [16, 128], strides = [1, 1]} : vector<16x512xf32> to vector<16x128xf32>
    %67 = math.tanh %66 : vector<16x128xf32>
    %68 = arith.mulf %64, %21 : vector<16x128xf32>
    %69 = arith.mulf %63, %67 : vector<16x128xf32>
    %70 = arith.addf %68, %69 : vector<16x128xf32>
    %71 = math.tanh %70 : vector<16x128xf32>
    %72 = arith.mulf %65, %71 : vector<16x128xf32>
    %c1_i32 = arith.constant 1 : i32
    %73 = arith.truncf %45 : vector<16x128xf32> to vector<16x128xbf16>
    %c0_41 = arith.constant 0 : index
    %c0_42 = arith.constant 0 : index
    %c0_43 = arith.constant 0 : index
    %74 = vector.load %arg6[%c0_41, %c0_42, %c0_43] : memref<2x128x512xbf16, #tpu.memory_space<vmem>>, vector<1x128x512xbf16>
    %75 = vector.shape_cast %74 : vector<1x128x512xbf16> to vector<128x512xbf16>
    %cst_44 = arith.constant dense<0.000000e+00> : vector<16x512xf32>
    %76 = tpu.matmul %73, %75, %cst_44 {dimension_numbers = #tpu.dot_dimension_numbers<[1], [0], [0], [1], [0, 0, 1, 1], [], []>} : vector<16x128xbf16>, vector<128x512xbf16>, vector<16x512xf32> -> vector<16x512xf32>
    %77 = arith.index_cast %c1_i32 : i32 to index
    %c0_45 = arith.constant 0 : index
    %c0_46 = arith.constant 0 : index
    %78 = vector.load %arg10[%77, %c0_45, %c0_46] : memref<8x16x512xf32, #tpu.memory_space<vmem>>, vector<1x16x512xf32>
    %79 = vector.shape_cast %78 : vector<1x16x512xf32> to vector<16x512xf32>
    %80 = arith.addf %79, %76 : vector<16x512xf32>
    %81 = vector.extract_strided_slice %80 {offsets = [0, 0], sizes = [16, 384], strides = [1, 1]} : vector<16x512xf32> to vector<16x384xf32>
    %82 = arith.negf %81 : vector<16x384xf32>
    %83 = math.exp %82 : vector<16x384xf32>
    %cst_47 = arith.constant 1.000000e+00 : f32
    %84 = vector.broadcast %cst_47 : f32 to vector<16x384xf32>
    %85 = arith.addf %84, %83 : vector<16x384xf32>
    %86 = arith.divf %84, %85 : vector<16x384xf32>
    %87 = vector.extract_strided_slice %86 {offsets = [0, 0], sizes = [16, 128], strides = [1, 1]} : vector<16x384xf32> to vector<16x128xf32>
    %88 = vector.extract_strided_slice %86 {offsets = [0, 128], sizes = [16, 128], strides = [1, 1]} : vector<16x384xf32> to vector<16x128xf32>
    %89 = vector.extract_strided_slice %86 {offsets = [0, 256], sizes = [16, 128], strides = [1, 1]} : vector<16x384xf32> to vector<16x128xf32>
    %90 = vector.extract_strided_slice %80 {offsets = [0, 384], sizes = [16, 128], strides = [1, 1]} : vector<16x512xf32> to vector<16x128xf32>
    %91 = math.tanh %90 : vector<16x128xf32>
    %92 = arith.mulf %88, %43 : vector<16x128xf32>
    %93 = arith.mulf %87, %91 : vector<16x128xf32>
    %94 = arith.addf %92, %93 : vector<16x128xf32>
    %95 = math.tanh %94 : vector<16x128xf32>
    %96 = arith.mulf %89, %95 : vector<16x128xf32>
    %97 = arith.truncf %96 : vector<16x128xf32> to vector<16x128xbf16>
    %98 = arith.truncf %72 : vector<16x128xf32> to vector<16x128xbf16>
    %c1_48 = arith.constant 1 : index
    %c0_49 = arith.constant 0 : index
    %c0_50 = arith.constant 0 : index
    %99 = vector.load %arg6[%c1_48, %c0_49, %c0_50] : memref<2x128x512xbf16, #tpu.memory_space<vmem>>, vector<1x128x512xbf16>
    %100 = vector.shape_cast %99 : vector<1x128x512xbf16> to vector<128x512xbf16>
    %cst_51 = arith.constant dense<0.000000e+00> : vector<16x512xf32>
    %101 = tpu.matmul %98, %100, %cst_51 {dimension_numbers = #tpu.dot_dimension_numbers<[1], [0], [0], [1], [0, 0, 1, 1], [], []>} : vector<16x128xbf16>, vector<128x512xbf16>, vector<16x512xf32> -> vector<16x512xf32>
    %c1_52 = arith.constant 1 : index
    %c0_53 = arith.constant 0 : index
    %c0_54 = arith.constant 0 : index
    %102 = vector.load %arg5[%c1_52, %c0_53, %c0_54] : memref<2x128x512xbf16, #tpu.memory_space<vmem>>, vector<1x128x512xbf16>
    %103 = vector.shape_cast %102 : vector<1x128x512xbf16> to vector<128x512xbf16>
    %cst_55 = arith.constant dense<0.000000e+00> : vector<16x512xf32>
    %104 = tpu.matmul %97, %103, %cst_55 {dimension_numbers = #tpu.dot_dimension_numbers<[1], [0], [0], [1], [0, 0, 1, 1], [], []>} : vector<16x128xbf16>, vector<128x512xbf16>, vector<16x512xf32> -> vector<16x512xf32>
    %105 = arith.addf %104, %101 : vector<16x512xf32>
    %106 = vector.broadcast %13 : vector<1x512xf32> to vector<16x512xf32>
    %107 = arith.addf %105, %106 : vector<16x512xf32>
    %108 = vector.extract_strided_slice %107 {offsets = [0, 0], sizes = [16, 384], strides = [1, 1]} : vector<16x512xf32> to vector<16x384xf32>
    %109 = arith.negf %108 : vector<16x384xf32>
    %110 = math.exp %109 : vector<16x384xf32>
    %cst_56 = arith.constant 1.000000e+00 : f32
    %111 = vector.broadcast %cst_56 : f32 to vector<16x384xf32>
    %112 = arith.addf %111, %110 : vector<16x384xf32>
    %113 = arith.divf %111, %112 : vector<16x384xf32>
    %114 = vector.extract_strided_slice %113 {offsets = [0, 0], sizes = [16, 128], strides = [1, 1]} : vector<16x384xf32> to vector<16x128xf32>
    %115 = vector.extract_strided_slice %113 {offsets = [0, 128], sizes = [16, 128], strides = [1, 1]} : vector<16x384xf32> to vector<16x128xf32>
    %116 = vector.extract_strided_slice %113 {offsets = [0, 256], sizes = [16, 128], strides = [1, 1]} : vector<16x384xf32> to vector<16x128xf32>
    %117 = vector.extract_strided_slice %107 {offsets = [0, 384], sizes = [16, 128], strides = [1, 1]} : vector<16x512xf32> to vector<16x128xf32>
    %118 = math.tanh %117 : vector<16x128xf32>
    %119 = arith.mulf %115, %70 : vector<16x128xf32>
    %120 = arith.mulf %114, %118 : vector<16x128xf32>
    %121 = arith.addf %119, %120 : vector<16x128xf32>
    %122 = math.tanh %121 : vector<16x128xf32>
    %123 = arith.mulf %116, %122 : vector<16x128xf32>
    %c2_i32 = arith.constant 2 : i32
    %124 = arith.truncf %96 : vector<16x128xf32> to vector<16x128xbf16>
    %c0_57 = arith.constant 0 : index
    %c0_58 = arith.constant 0 : index
    %c0_59 = arith.constant 0 : index
    %125 = vector.load %arg6[%c0_57, %c0_58, %c0_59] : memref<2x128x512xbf16, #tpu.memory_space<vmem>>, vector<1x128x512xbf16>
    %126 = vector.shape_cast %125 : vector<1x128x512xbf16> to vector<128x512xbf16>
    %cst_60 = arith.constant dense<0.000000e+00> : vector<16x512xf32>
    %127 = tpu.matmul %124, %126, %cst_60 {dimension_numbers = #tpu.dot_dimension_numbers<[1], [0], [0], [1], [0, 0, 1, 1], [], []>} : vector<16x128xbf16>, vector<128x512xbf16>, vector<16x512xf32> -> vector<16x512xf32>
    %128 = arith.index_cast %c2_i32 : i32 to index
    %c0_61 = arith.constant 0 : index
    %c0_62 = arith.constant 0 : index
    %129 = vector.load %arg10[%128, %c0_61, %c0_62] : memref<8x16x512xf32, #tpu.memory_space<vmem>>, vector<1x16x512xf32>
    %130 = vector.shape_cast %129 : vector<1x16x512xf32> to vector<16x512xf32>
    %131 = arith.addf %130, %127 : vector<16x512xf32>
    %132 = vector.extract_strided_slice %131 {offsets = [0, 0], sizes = [16, 384], strides = [1, 1]} : vector<16x512xf32> to vector<16x384xf32>
    %133 = arith.negf %132 : vector<16x384xf32>
    %134 = math.exp %133 : vector<16x384xf32>
    %cst_63 = arith.constant 1.000000e+00 : f32
    %135 = vector.broadcast %cst_63 : f32 to vector<16x384xf32>
    %136 = arith.addf %135, %134 : vector<16x384xf32>
    %137 = arith.divf %135, %136 : vector<16x384xf32>
    %138 = vector.extract_strided_slice %137 {offsets = [0, 0], sizes = [16, 128], strides = [1, 1]} : vector<16x384xf32> to vector<16x128xf32>
    %139 = vector.extract_strided_slice %137 {offsets = [0, 128], sizes = [16, 128], strides = [1, 1]} : vector<16x384xf32> to vector<16x128xf32>
    %140 = vector.extract_strided_slice %137 {offsets = [0, 256], sizes = [16, 128], strides = [1, 1]} : vector<16x384xf32> to vector<16x128xf32>
    %141 = vector.extract_strided_slice %131 {offsets = [0, 384], sizes = [16, 128], strides = [1, 1]} : vector<16x512xf32> to vector<16x128xf32>
    %142 = math.tanh %141 : vector<16x128xf32>
    %143 = arith.mulf %139, %94 : vector<16x128xf32>
    %144 = arith.mulf %138, %142 : vector<16x128xf32>
    %145 = arith.addf %143, %144 : vector<16x128xf32>
    %146 = math.tanh %145 : vector<16x128xf32>
    %147 = arith.mulf %140, %146 : vector<16x128xf32>
    %148 = arith.truncf %147 : vector<16x128xf32> to vector<16x128xbf16>
    %149 = arith.truncf %123 : vector<16x128xf32> to vector<16x128xbf16>
    %c1_64 = arith.constant 1 : index
    %c0_65 = arith.constant 0 : index
    %c0_66 = arith.constant 0 : index
    %150 = vector.load %arg6[%c1_64, %c0_65, %c0_66] : memref<2x128x512xbf16, #tpu.memory_space<vmem>>, vector<1x128x512xbf16>
    %151 = vector.shape_cast %150 : vector<1x128x512xbf16> to vector<128x512xbf16>
    %cst_67 = arith.constant dense<0.000000e+00> : vector<16x512xf32>
    %152 = tpu.matmul %149, %151, %cst_67 {dimension_numbers = #tpu.dot_dimension_numbers<[1], [0], [0], [1], [0, 0, 1, 1], [], []>} : vector<16x128xbf16>, vector<128x512xbf16>, vector<16x512xf32> -> vector<16x512xf32>
    %c1_68 = arith.constant 1 : index
    %c0_69 = arith.constant 0 : index
    %c0_70 = arith.constant 0 : index
    %153 = vector.load %arg5[%c1_68, %c0_69, %c0_70] : memref<2x128x512xbf16, #tpu.memory_space<vmem>>, vector<1x128x512xbf16>
    %154 = vector.shape_cast %153 : vector<1x128x512xbf16> to vector<128x512xbf16>
    %cst_71 = arith.constant dense<0.000000e+00> : vector<16x512xf32>
    %155 = tpu.matmul %148, %154, %cst_71 {dimension_numbers = #tpu.dot_dimension_numbers<[1], [0], [0], [1], [0, 0, 1, 1], [], []>} : vector<16x128xbf16>, vector<128x512xbf16>, vector<16x512xf32> -> vector<16x512xf32>
    %156 = arith.addf %155, %152 : vector<16x512xf32>
    %157 = vector.broadcast %13 : vector<1x512xf32> to vector<16x512xf32>
    %158 = arith.addf %156, %157 : vector<16x512xf32>
    %159 = vector.extract_strided_slice %158 {offsets = [0, 0], sizes = [16, 384], strides = [1, 1]} : vector<16x512xf32> to vector<16x384xf32>
    %160 = arith.negf %159 : vector<16x384xf32>
    %161 = math.exp %160 : vector<16x384xf32>
    %cst_72 = arith.constant 1.000000e+00 : f32
    %162 = vector.broadcast %cst_72 : f32 to vector<16x384xf32>
    %163 = arith.addf %162, %161 : vector<16x384xf32>
    %164 = arith.divf %162, %163 : vector<16x384xf32>
    %165 = vector.extract_strided_slice %164 {offsets = [0, 0], sizes = [16, 128], strides = [1, 1]} : vector<16x384xf32> to vector<16x128xf32>
    %166 = vector.extract_strided_slice %164 {offsets = [0, 128], sizes = [16, 128], strides = [1, 1]} : vector<16x384xf32> to vector<16x128xf32>
    %167 = vector.extract_strided_slice %164 {offsets = [0, 256], sizes = [16, 128], strides = [1, 1]} : vector<16x384xf32> to vector<16x128xf32>
    %168 = vector.extract_strided_slice %158 {offsets = [0, 384], sizes = [16, 128], strides = [1, 1]} : vector<16x512xf32> to vector<16x128xf32>
    %169 = math.tanh %168 : vector<16x128xf32>
    %170 = arith.mulf %166, %121 : vector<16x128xf32>
    %171 = arith.mulf %165, %169 : vector<16x128xf32>
    %172 = arith.addf %170, %171 : vector<16x128xf32>
    %173 = math.tanh %172 : vector<16x128xf32>
    %174 = arith.mulf %167, %173 : vector<16x128xf32>
    %c3_i32 = arith.constant 3 : i32
    %175 = arith.truncf %147 : vector<16x128xf32> to vector<16x128xbf16>
    %c0_73 = arith.constant 0 : index
    %c0_74 = arith.constant 0 : index
    %c0_75 = arith.constant 0 : index
    %176 = vector.load %arg6[%c0_73, %c0_74, %c0_75] : memref<2x128x512xbf16, #tpu.memory_space<vmem>>, vector<1x128x512xbf16>
    %177 = vector.shape_cast %176 : vector<1x128x512xbf16> to vector<128x512xbf16>
    %cst_76 = arith.constant dense<0.000000e+00> : vector<16x512xf32>
    %178 = tpu.matmul %175, %177, %cst_76 {dimension_numbers = #tpu.dot_dimension_numbers<[1], [0], [0], [1], [0, 0, 1, 1], [], []>} : vector<16x128xbf16>, vector<128x512xbf16>, vector<16x512xf32> -> vector<16x512xf32>
    %179 = arith.index_cast %c3_i32 : i32 to index
    %c0_77 = arith.constant 0 : index
    %c0_78 = arith.constant 0 : index
    %180 = vector.load %arg10[%179, %c0_77, %c0_78] : memref<8x16x512xf32, #tpu.memory_space<vmem>>, vector<1x16x512xf32>
    %181 = vector.shape_cast %180 : vector<1x16x512xf32> to vector<16x512xf32>
    %182 = arith.addf %181, %178 : vector<16x512xf32>
    %183 = vector.extract_strided_slice %182 {offsets = [0, 0], sizes = [16, 384], strides = [1, 1]} : vector<16x512xf32> to vector<16x384xf32>
    %184 = arith.negf %183 : vector<16x384xf32>
    %185 = math.exp %184 : vector<16x384xf32>
    %cst_79 = arith.constant 1.000000e+00 : f32
    %186 = vector.broadcast %cst_79 : f32 to vector<16x384xf32>
    %187 = arith.addf %186, %185 : vector<16x384xf32>
    %188 = arith.divf %186, %187 : vector<16x384xf32>
    %189 = vector.extract_strided_slice %188 {offsets = [0, 0], sizes = [16, 128], strides = [1, 1]} : vector<16x384xf32> to vector<16x128xf32>
    %190 = vector.extract_strided_slice %188 {offsets = [0, 128], sizes = [16, 128], strides = [1, 1]} : vector<16x384xf32> to vector<16x128xf32>
    %191 = vector.extract_strided_slice %188 {offsets = [0, 256], sizes = [16, 128], strides = [1, 1]} : vector<16x384xf32> to vector<16x128xf32>
    %192 = vector.extract_strided_slice %182 {offsets = [0, 384], sizes = [16, 128], strides = [1, 1]} : vector<16x512xf32> to vector<16x128xf32>
    %193 = math.tanh %192 : vector<16x128xf32>
    %194 = arith.mulf %190, %145 : vector<16x128xf32>
    %195 = arith.mulf %189, %193 : vector<16x128xf32>
    %196 = arith.addf %194, %195 : vector<16x128xf32>
    %197 = math.tanh %196 : vector<16x128xf32>
    %198 = arith.mulf %191, %197 : vector<16x128xf32>
    %199 = arith.truncf %198 : vector<16x128xf32> to vector<16x128xbf16>
    %200 = arith.truncf %174 : vector<16x128xf32> to vector<16x128xbf16>
    %c1_80 = arith.constant 1 : index
    %c0_81 = arith.constant 0 : index
    %c0_82 = arith.constant 0 : index
    %201 = vector.load %arg6[%c1_80, %c0_81, %c0_82] : memref<2x128x512xbf16, #tpu.memory_space<vmem>>, vector<1x128x512xbf16>
    %202 = vector.shape_cast %201 : vector<1x128x512xbf16> to vector<128x512xbf16>
    %cst_83 = arith.constant dense<0.000000e+00> : vector<16x512xf32>
    %203 = tpu.matmul %200, %202, %cst_83 {dimension_numbers = #tpu.dot_dimension_numbers<[1], [0], [0], [1], [0, 0, 1, 1], [], []>} : vector<16x128xbf16>, vector<128x512xbf16>, vector<16x512xf32> -> vector<16x512xf32>
    %c1_84 = arith.constant 1 : index
    %c0_85 = arith.constant 0 : index
    %c0_86 = arith.constant 0 : index
    %204 = vector.load %arg5[%c1_84, %c0_85, %c0_86] : memref<2x128x512xbf16, #tpu.memory_space<vmem>>, vector<1x128x512xbf16>
    %205 = vector.shape_cast %204 : vector<1x128x512xbf16> to vector<128x512xbf16>
    %cst_87 = arith.constant dense<0.000000e+00> : vector<16x512xf32>
    %206 = tpu.matmul %199, %205, %cst_87 {dimension_numbers = #tpu.dot_dimension_numbers<[1], [0], [0], [1], [0, 0, 1, 1], [], []>} : vector<16x128xbf16>, vector<128x512xbf16>, vector<16x512xf32> -> vector<16x512xf32>
    %207 = arith.addf %206, %203 : vector<16x512xf32>
    %208 = vector.broadcast %13 : vector<1x512xf32> to vector<16x512xf32>
    %209 = arith.addf %207, %208 : vector<16x512xf32>
    %210 = vector.extract_strided_slice %209 {offsets = [0, 0], sizes = [16, 384], strides = [1, 1]} : vector<16x512xf32> to vector<16x384xf32>
    %211 = arith.negf %210 : vector<16x384xf32>
    %212 = math.exp %211 : vector<16x384xf32>
    %cst_88 = arith.constant 1.000000e+00 : f32
    %213 = vector.broadcast %cst_88 : f32 to vector<16x384xf32>
    %214 = arith.addf %213, %212 : vector<16x384xf32>
    %215 = arith.divf %213, %214 : vector<16x384xf32>
    %216 = vector.extract_strided_slice %215 {offsets = [0, 0], sizes = [16, 128], strides = [1, 1]} : vector<16x384xf32> to vector<16x128xf32>
    %217 = vector.extract_strided_slice %215 {offsets = [0, 128], sizes = [16, 128], strides = [1, 1]} : vector<16x384xf32> to vector<16x128xf32>
    %218 = vector.extract_strided_slice %215 {offsets = [0, 256], sizes = [16, 128], strides = [1, 1]} : vector<16x384xf32> to vector<16x128xf32>
    %219 = vector.extract_strided_slice %209 {offsets = [0, 384], sizes = [16, 128], strides = [1, 1]} : vector<16x512xf32> to vector<16x128xf32>
    %220 = math.tanh %219 : vector<16x128xf32>
    %221 = arith.mulf %217, %172 : vector<16x128xf32>
    %222 = arith.mulf %216, %220 : vector<16x128xf32>
    %223 = arith.addf %221, %222 : vector<16x128xf32>
    %224 = math.tanh %223 : vector<16x128xf32>
    %225 = arith.mulf %218, %224 : vector<16x128xf32>
    %c4_i32 = arith.constant 4 : i32
    %226 = arith.truncf %198 : vector<16x128xf32> to vector<16x128xbf16>
    %c0_89 = arith.constant 0 : index
    %c0_90 = arith.constant 0 : index
    %c0_91 = arith.constant 0 : index
    %227 = vector.load %arg6[%c0_89, %c0_90, %c0_91] : memref<2x128x512xbf16, #tpu.memory_space<vmem>>, vector<1x128x512xbf16>
    %228 = vector.shape_cast %227 : vector<1x128x512xbf16> to vector<128x512xbf16>
    %cst_92 = arith.constant dense<0.000000e+00> : vector<16x512xf32>
    %229 = tpu.matmul %226, %228, %cst_92 {dimension_numbers = #tpu.dot_dimension_numbers<[1], [0], [0], [1], [0, 0, 1, 1], [], []>} : vector<16x128xbf16>, vector<128x512xbf16>, vector<16x512xf32> -> vector<16x512xf32>
    %230 = arith.index_cast %c4_i32 : i32 to index
    %c0_93 = arith.constant 0 : index
    %c0_94 = arith.constant 0 : index
    %231 = vector.load %arg10[%230, %c0_93, %c0_94] : memref<8x16x512xf32, #tpu.memory_space<vmem>>, vector<1x16x512xf32>
    %232 = vector.shape_cast %231 : vector<1x16x512xf32> to vector<16x512xf32>
    %233 = arith.addf %232, %229 : vector<16x512xf32>
    %234 = vector.extract_strided_slice %233 {offsets = [0, 0], sizes = [16, 384], strides = [1, 1]} : vector<16x512xf32> to vector<16x384xf32>
    %235 = arith.negf %234 : vector<16x384xf32>
    %236 = math.exp %235 : vector<16x384xf32>
    %cst_95 = arith.constant 1.000000e+00 : f32
    %237 = vector.broadcast %cst_95 : f32 to vector<16x384xf32>
    %238 = arith.addf %237, %236 : vector<16x384xf32>
    %239 = arith.divf %237, %238 : vector<16x384xf32>
    %240 = vector.extract_strided_slice %239 {offsets = [0, 0], sizes = [16, 128], strides = [1, 1]} : vector<16x384xf32> to vector<16x128xf32>
    %241 = vector.extract_strided_slice %239 {offsets = [0, 128], sizes = [16, 128], strides = [1, 1]} : vector<16x384xf32> to vector<16x128xf32>
    %242 = vector.extract_strided_slice %239 {offsets = [0, 256], sizes = [16, 128], strides = [1, 1]} : vector<16x384xf32> to vector<16x128xf32>
    %243 = vector.extract_strided_slice %233 {offsets = [0, 384], sizes = [16, 128], strides = [1, 1]} : vector<16x512xf32> to vector<16x128xf32>
    %244 = math.tanh %243 : vector<16x128xf32>
    %245 = arith.mulf %241, %196 : vector<16x128xf32>
    %246 = arith.mulf %240, %244 : vector<16x128xf32>
    %247 = arith.addf %245, %246 : vector<16x128xf32>
    %248 = math.tanh %247 : vector<16x128xf32>
    %249 = arith.mulf %242, %248 : vector<16x128xf32>
    %250 = arith.truncf %249 : vector<16x128xf32> to vector<16x128xbf16>
    %251 = arith.truncf %225 : vector<16x128xf32> to vector<16x128xbf16>
    %c1_96 = arith.constant 1 : index
    %c0_97 = arith.constant 0 : index
    %c0_98 = arith.constant 0 : index
    %252 = vector.load %arg6[%c1_96, %c0_97, %c0_98] : memref<2x128x512xbf16, #tpu.memory_space<vmem>>, vector<1x128x512xbf16>
    %253 = vector.shape_cast %252 : vector<1x128x512xbf16> to vector<128x512xbf16>
    %cst_99 = arith.constant dense<0.000000e+00> : vector<16x512xf32>
    %254 = tpu.matmul %251, %253, %cst_99 {dimension_numbers = #tpu.dot_dimension_numbers<[1], [0], [0], [1], [0, 0, 1, 1], [], []>} : vector<16x128xbf16>, vector<128x512xbf16>, vector<16x512xf32> -> vector<16x512xf32>
    %c1_100 = arith.constant 1 : index
    %c0_101 = arith.constant 0 : index
    %c0_102 = arith.constant 0 : index
    %255 = vector.load %arg5[%c1_100, %c0_101, %c0_102] : memref<2x128x512xbf16, #tpu.memory_space<vmem>>, vector<1x128x512xbf16>
    %256 = vector.shape_cast %255 : vector<1x128x512xbf16> to vector<128x512xbf16>
    %cst_103 = arith.constant dense<0.000000e+00> : vector<16x512xf32>
    %257 = tpu.matmul %250, %256, %cst_103 {dimension_numbers = #tpu.dot_dimension_numbers<[1], [0], [0], [1], [0, 0, 1, 1], [], []>} : vector<16x128xbf16>, vector<128x512xbf16>, vector<16x512xf32> -> vector<16x512xf32>
    %258 = arith.addf %257, %254 : vector<16x512xf32>
    %259 = vector.broadcast %13 : vector<1x512xf32> to vector<16x512xf32>
    %260 = arith.addf %258, %259 : vector<16x512xf32>
    %261 = vector.extract_strided_slice %260 {offsets = [0, 0], sizes = [16, 384], strides = [1, 1]} : vector<16x512xf32> to vector<16x384xf32>
    %262 = arith.negf %261 : vector<16x384xf32>
    %263 = math.exp %262 : vector<16x384xf32>
    %cst_104 = arith.constant 1.000000e+00 : f32
    %264 = vector.broadcast %cst_104 : f32 to vector<16x384xf32>
    %265 = arith.addf %264, %263 : vector<16x384xf32>
    %266 = arith.divf %264, %265 : vector<16x384xf32>
    %267 = vector.extract_strided_slice %266 {offsets = [0, 0], sizes = [16, 128], strides = [1, 1]} : vector<16x384xf32> to vector<16x128xf32>
    %268 = vector.extract_strided_slice %266 {offsets = [0, 128], sizes = [16, 128], strides = [1, 1]} : vector<16x384xf32> to vector<16x128xf32>
    %269 = vector.extract_strided_slice %266 {offsets = [0, 256], sizes = [16, 128], strides = [1, 1]} : vector<16x384xf32> to vector<16x128xf32>
    %270 = vector.extract_strided_slice %260 {offsets = [0, 384], sizes = [16, 128], strides = [1, 1]} : vector<16x512xf32> to vector<16x128xf32>
    %271 = math.tanh %270 : vector<16x128xf32>
    %272 = arith.mulf %268, %223 : vector<16x128xf32>
    %273 = arith.mulf %267, %271 : vector<16x128xf32>
    %274 = arith.addf %272, %273 : vector<16x128xf32>
    %275 = math.tanh %274 : vector<16x128xf32>
    %276 = arith.mulf %269, %275 : vector<16x128xf32>
    %c5_i32 = arith.constant 5 : i32
    %277 = arith.truncf %249 : vector<16x128xf32> to vector<16x128xbf16>
    %c0_105 = arith.constant 0 : index
    %c0_106 = arith.constant 0 : index
    %c0_107 = arith.constant 0 : index
    %278 = vector.load %arg6[%c0_105, %c0_106, %c0_107] : memref<2x128x512xbf16, #tpu.memory_space<vmem>>, vector<1x128x512xbf16>
    %279 = vector.shape_cast %278 : vector<1x128x512xbf16> to vector<128x512xbf16>
    %cst_108 = arith.constant dense<0.000000e+00> : vector<16x512xf32>
    %280 = tpu.matmul %277, %279, %cst_108 {dimension_numbers = #tpu.dot_dimension_numbers<[1], [0], [0], [1], [0, 0, 1, 1], [], []>} : vector<16x128xbf16>, vector<128x512xbf16>, vector<16x512xf32> -> vector<16x512xf32>
    %281 = arith.index_cast %c5_i32 : i32 to index
    %c0_109 = arith.constant 0 : index
    %c0_110 = arith.constant 0 : index
    %282 = vector.load %arg10[%281, %c0_109, %c0_110] : memref<8x16x512xf32, #tpu.memory_space<vmem>>, vector<1x16x512xf32>
    %283 = vector.shape_cast %282 : vector<1x16x512xf32> to vector<16x512xf32>
    %284 = arith.addf %283, %280 : vector<16x512xf32>
    %285 = vector.extract_strided_slice %284 {offsets = [0, 0], sizes = [16, 384], strides = [1, 1]} : vector<16x512xf32> to vector<16x384xf32>
    %286 = arith.negf %285 : vector<16x384xf32>
    %287 = math.exp %286 : vector<16x384xf32>
    %cst_111 = arith.constant 1.000000e+00 : f32
    %288 = vector.broadcast %cst_111 : f32 to vector<16x384xf32>
    %289 = arith.addf %288, %287 : vector<16x384xf32>
    %290 = arith.divf %288, %289 : vector<16x384xf32>
    %291 = vector.extract_strided_slice %290 {offsets = [0, 0], sizes = [16, 128], strides = [1, 1]} : vector<16x384xf32> to vector<16x128xf32>
    %292 = vector.extract_strided_slice %290 {offsets = [0, 128], sizes = [16, 128], strides = [1, 1]} : vector<16x384xf32> to vector<16x128xf32>
    %293 = vector.extract_strided_slice %290 {offsets = [0, 256], sizes = [16, 128], strides = [1, 1]} : vector<16x384xf32> to vector<16x128xf32>
    %294 = vector.extract_strided_slice %284 {offsets = [0, 384], sizes = [16, 128], strides = [1, 1]} : vector<16x512xf32> to vector<16x128xf32>
    %295 = math.tanh %294 : vector<16x128xf32>
    %296 = arith.mulf %292, %247 : vector<16x128xf32>
    %297 = arith.mulf %291, %295 : vector<16x128xf32>
    %298 = arith.addf %296, %297 : vector<16x128xf32>
    %299 = math.tanh %298 : vector<16x128xf32>
    %300 = arith.mulf %293, %299 : vector<16x128xf32>
    %301 = arith.truncf %300 : vector<16x128xf32> to vector<16x128xbf16>
    %302 = arith.truncf %276 : vector<16x128xf32> to vector<16x128xbf16>
    %c1_112 = arith.constant 1 : index
    %c0_113 = arith.constant 0 : index
    %c0_114 = arith.constant 0 : index
    %303 = vector.load %arg6[%c1_112, %c0_113, %c0_114] : memref<2x128x512xbf16, #tpu.memory_space<vmem>>, vector<1x128x512xbf16>
    %304 = vector.shape_cast %303 : vector<1x128x512xbf16> to vector<128x512xbf16>
    %cst_115 = arith.constant dense<0.000000e+00> : vector<16x512xf32>
    %305 = tpu.matmul %302, %304, %cst_115 {dimension_numbers = #tpu.dot_dimension_numbers<[1], [0], [0], [1], [0, 0, 1, 1], [], []>} : vector<16x128xbf16>, vector<128x512xbf16>, vector<16x512xf32> -> vector<16x512xf32>
    %c1_116 = arith.constant 1 : index
    %c0_117 = arith.constant 0 : index
    %c0_118 = arith.constant 0 : index
    %306 = vector.load %arg5[%c1_116, %c0_117, %c0_118] : memref<2x128x512xbf16, #tpu.memory_space<vmem>>, vector<1x128x512xbf16>
    %307 = vector.shape_cast %306 : vector<1x128x512xbf16> to vector<128x512xbf16>
    %cst_119 = arith.constant dense<0.000000e+00> : vector<16x512xf32>
    %308 = tpu.matmul %301, %307, %cst_119 {dimension_numbers = #tpu.dot_dimension_numbers<[1], [0], [0], [1], [0, 0, 1, 1], [], []>} : vector<16x128xbf16>, vector<128x512xbf16>, vector<16x512xf32> -> vector<16x512xf32>
    %309 = arith.addf %308, %305 : vector<16x512xf32>
    %310 = vector.broadcast %13 : vector<1x512xf32> to vector<16x512xf32>
    %311 = arith.addf %309, %310 : vector<16x512xf32>
    %312 = vector.extract_strided_slice %311 {offsets = [0, 0], sizes = [16, 384], strides = [1, 1]} : vector<16x512xf32> to vector<16x384xf32>
    %313 = arith.negf %312 : vector<16x384xf32>
    %314 = math.exp %313 : vector<16x384xf32>
    %cst_120 = arith.constant 1.000000e+00 : f32
    %315 = vector.broadcast %cst_120 : f32 to vector<16x384xf32>
    %316 = arith.addf %315, %314 : vector<16x384xf32>
    %317 = arith.divf %315, %316 : vector<16x384xf32>
    %318 = vector.extract_strided_slice %317 {offsets = [0, 0], sizes = [16, 128], strides = [1, 1]} : vector<16x384xf32> to vector<16x128xf32>
    %319 = vector.extract_strided_slice %317 {offsets = [0, 128], sizes = [16, 128], strides = [1, 1]} : vector<16x384xf32> to vector<16x128xf32>
    %320 = vector.extract_strided_slice %317 {offsets = [0, 256], sizes = [16, 128], strides = [1, 1]} : vector<16x384xf32> to vector<16x128xf32>
    %321 = vector.extract_strided_slice %311 {offsets = [0, 384], sizes = [16, 128], strides = [1, 1]} : vector<16x512xf32> to vector<16x128xf32>
    %322 = math.tanh %321 : vector<16x128xf32>
    %323 = arith.mulf %319, %274 : vector<16x128xf32>
    %324 = arith.mulf %318, %322 : vector<16x128xf32>
    %325 = arith.addf %323, %324 : vector<16x128xf32>
    %326 = math.tanh %325 : vector<16x128xf32>
    %327 = arith.mulf %320, %326 : vector<16x128xf32>
    %c6_i32 = arith.constant 6 : i32
    %328 = arith.truncf %300 : vector<16x128xf32> to vector<16x128xbf16>
    %c0_121 = arith.constant 0 : index
    %c0_122 = arith.constant 0 : index
    %c0_123 = arith.constant 0 : index
    %329 = vector.load %arg6[%c0_121, %c0_122, %c0_123] : memref<2x128x512xbf16, #tpu.memory_space<vmem>>, vector<1x128x512xbf16>
    %330 = vector.shape_cast %329 : vector<1x128x512xbf16> to vector<128x512xbf16>
    %cst_124 = arith.constant dense<0.000000e+00> : vector<16x512xf32>
    %331 = tpu.matmul %328, %330, %cst_124 {dimension_numbers = #tpu.dot_dimension_numbers<[1], [0], [0], [1], [0, 0, 1, 1], [], []>} : vector<16x128xbf16>, vector<128x512xbf16>, vector<16x512xf32> -> vector<16x512xf32>
    %332 = arith.index_cast %c6_i32 : i32 to index
    %c0_125 = arith.constant 0 : index
    %c0_126 = arith.constant 0 : index
    %333 = vector.load %arg10[%332, %c0_125, %c0_126] : memref<8x16x512xf32, #tpu.memory_space<vmem>>, vector<1x16x512xf32>
    %334 = vector.shape_cast %333 : vector<1x16x512xf32> to vector<16x512xf32>
    %335 = arith.addf %334, %331 : vector<16x512xf32>
    %336 = vector.extract_strided_slice %335 {offsets = [0, 0], sizes = [16, 384], strides = [1, 1]} : vector<16x512xf32> to vector<16x384xf32>
    %337 = arith.negf %336 : vector<16x384xf32>
    %338 = math.exp %337 : vector<16x384xf32>
    %cst_127 = arith.constant 1.000000e+00 : f32
    %339 = vector.broadcast %cst_127 : f32 to vector<16x384xf32>
    %340 = arith.addf %339, %338 : vector<16x384xf32>
    %341 = arith.divf %339, %340 : vector<16x384xf32>
    %342 = vector.extract_strided_slice %341 {offsets = [0, 0], sizes = [16, 128], strides = [1, 1]} : vector<16x384xf32> to vector<16x128xf32>
    %343 = vector.extract_strided_slice %341 {offsets = [0, 128], sizes = [16, 128], strides = [1, 1]} : vector<16x384xf32> to vector<16x128xf32>
    %344 = vector.extract_strided_slice %341 {offsets = [0, 256], sizes = [16, 128], strides = [1, 1]} : vector<16x384xf32> to vector<16x128xf32>
    %345 = vector.extract_strided_slice %335 {offsets = [0, 384], sizes = [16, 128], strides = [1, 1]} : vector<16x512xf32> to vector<16x128xf32>
    %346 = math.tanh %345 : vector<16x128xf32>
    %347 = arith.mulf %343, %298 : vector<16x128xf32>
    %348 = arith.mulf %342, %346 : vector<16x128xf32>
    %349 = arith.addf %347, %348 : vector<16x128xf32>
    %350 = math.tanh %349 : vector<16x128xf32>
    %351 = arith.mulf %344, %350 : vector<16x128xf32>
    %352 = arith.truncf %351 : vector<16x128xf32> to vector<16x128xbf16>
    %353 = arith.truncf %327 : vector<16x128xf32> to vector<16x128xbf16>
    %c1_128 = arith.constant 1 : index
    %c0_129 = arith.constant 0 : index
    %c0_130 = arith.constant 0 : index
    %354 = vector.load %arg6[%c1_128, %c0_129, %c0_130] : memref<2x128x512xbf16, #tpu.memory_space<vmem>>, vector<1x128x512xbf16>
    %355 = vector.shape_cast %354 : vector<1x128x512xbf16> to vector<128x512xbf16>
    %cst_131 = arith.constant dense<0.000000e+00> : vector<16x512xf32>
    %356 = tpu.matmul %353, %355, %cst_131 {dimension_numbers = #tpu.dot_dimension_numbers<[1], [0], [0], [1], [0, 0, 1, 1], [], []>} : vector<16x128xbf16>, vector<128x512xbf16>, vector<16x512xf32> -> vector<16x512xf32>
    %c1_132 = arith.constant 1 : index
    %c0_133 = arith.constant 0 : index
    %c0_134 = arith.constant 0 : index
    %357 = vector.load %arg5[%c1_132, %c0_133, %c0_134] : memref<2x128x512xbf16, #tpu.memory_space<vmem>>, vector<1x128x512xbf16>
    %358 = vector.shape_cast %357 : vector<1x128x512xbf16> to vector<128x512xbf16>
    %cst_135 = arith.constant dense<0.000000e+00> : vector<16x512xf32>
    %359 = tpu.matmul %352, %358, %cst_135 {dimension_numbers = #tpu.dot_dimension_numbers<[1], [0], [0], [1], [0, 0, 1, 1], [], []>} : vector<16x128xbf16>, vector<128x512xbf16>, vector<16x512xf32> -> vector<16x512xf32>
    %360 = arith.addf %359, %356 : vector<16x512xf32>
    %361 = vector.broadcast %13 : vector<1x512xf32> to vector<16x512xf32>
    %362 = arith.addf %360, %361 : vector<16x512xf32>
    %363 = vector.extract_strided_slice %362 {offsets = [0, 0], sizes = [16, 384], strides = [1, 1]} : vector<16x512xf32> to vector<16x384xf32>
    %364 = arith.negf %363 : vector<16x384xf32>
    %365 = math.exp %364 : vector<16x384xf32>
    %cst_136 = arith.constant 1.000000e+00 : f32
    %366 = vector.broadcast %cst_136 : f32 to vector<16x384xf32>
    %367 = arith.addf %366, %365 : vector<16x384xf32>
    %368 = arith.divf %366, %367 : vector<16x384xf32>
    %369 = vector.extract_strided_slice %368 {offsets = [0, 0], sizes = [16, 128], strides = [1, 1]} : vector<16x384xf32> to vector<16x128xf32>
    %370 = vector.extract_strided_slice %368 {offsets = [0, 128], sizes = [16, 128], strides = [1, 1]} : vector<16x384xf32> to vector<16x128xf32>
    %371 = vector.extract_strided_slice %368 {offsets = [0, 256], sizes = [16, 128], strides = [1, 1]} : vector<16x384xf32> to vector<16x128xf32>
    %372 = vector.extract_strided_slice %362 {offsets = [0, 384], sizes = [16, 128], strides = [1, 1]} : vector<16x512xf32> to vector<16x128xf32>
    %373 = math.tanh %372 : vector<16x128xf32>
    %374 = arith.mulf %370, %325 : vector<16x128xf32>
    %375 = arith.mulf %369, %373 : vector<16x128xf32>
    %376 = arith.addf %374, %375 : vector<16x128xf32>
    %377 = math.tanh %376 : vector<16x128xf32>
    %378 = arith.mulf %371, %377 : vector<16x128xf32>
    %c7_i32 = arith.constant 7 : i32
    %379 = arith.truncf %351 : vector<16x128xf32> to vector<16x128xbf16>
    %c0_137 = arith.constant 0 : index
    %c0_138 = arith.constant 0 : index
    %c0_139 = arith.constant 0 : index
    %380 = vector.load %arg6[%c0_137, %c0_138, %c0_139] : memref<2x128x512xbf16, #tpu.memory_space<vmem>>, vector<1x128x512xbf16>
    %381 = vector.shape_cast %380 : vector<1x128x512xbf16> to vector<128x512xbf16>
    %cst_140 = arith.constant dense<0.000000e+00> : vector<16x512xf32>
    %382 = tpu.matmul %379, %381, %cst_140 {dimension_numbers = #tpu.dot_dimension_numbers<[1], [0], [0], [1], [0, 0, 1, 1], [], []>} : vector<16x128xbf16>, vector<128x512xbf16>, vector<16x512xf32> -> vector<16x512xf32>
    %383 = arith.index_cast %c7_i32 : i32 to index
    %c0_141 = arith.constant 0 : index
    %c0_142 = arith.constant 0 : index
    %384 = vector.load %arg10[%383, %c0_141, %c0_142] : memref<8x16x512xf32, #tpu.memory_space<vmem>>, vector<1x16x512xf32>
    %385 = vector.shape_cast %384 : vector<1x16x512xf32> to vector<16x512xf32>
    %386 = arith.addf %385, %382 : vector<16x512xf32>
    %387 = vector.extract_strided_slice %386 {offsets = [0, 0], sizes = [16, 384], strides = [1, 1]} : vector<16x512xf32> to vector<16x384xf32>
    %388 = arith.negf %387 : vector<16x384xf32>
    %389 = math.exp %388 : vector<16x384xf32>
    %cst_143 = arith.constant 1.000000e+00 : f32
    %390 = vector.broadcast %cst_143 : f32 to vector<16x384xf32>
    %391 = arith.addf %390, %389 : vector<16x384xf32>
    %392 = arith.divf %390, %391 : vector<16x384xf32>
    %393 = vector.extract_strided_slice %392 {offsets = [0, 0], sizes = [16, 128], strides = [1, 1]} : vector<16x384xf32> to vector<16x128xf32>
    %394 = vector.extract_strided_slice %392 {offsets = [0, 128], sizes = [16, 128], strides = [1, 1]} : vector<16x384xf32> to vector<16x128xf32>
    %395 = vector.extract_strided_slice %392 {offsets = [0, 256], sizes = [16, 128], strides = [1, 1]} : vector<16x384xf32> to vector<16x128xf32>
    %396 = vector.extract_strided_slice %386 {offsets = [0, 384], sizes = [16, 128], strides = [1, 1]} : vector<16x512xf32> to vector<16x128xf32>
    %397 = math.tanh %396 : vector<16x128xf32>
    %398 = arith.mulf %394, %349 : vector<16x128xf32>
    %399 = arith.mulf %393, %397 : vector<16x128xf32>
    %400 = arith.addf %398, %399 : vector<16x128xf32>
    %401 = math.tanh %400 : vector<16x128xf32>
    %402 = arith.mulf %395, %401 : vector<16x128xf32>
    %403 = arith.truncf %402 : vector<16x128xf32> to vector<16x128xbf16>
    %404 = arith.truncf %378 : vector<16x128xf32> to vector<16x128xbf16>
    %c1_144 = arith.constant 1 : index
    %c0_145 = arith.constant 0 : index
    %c0_146 = arith.constant 0 : index
    %405 = vector.load %arg6[%c1_144, %c0_145, %c0_146] : memref<2x128x512xbf16, #tpu.memory_space<vmem>>, vector<1x128x512xbf16>
    %406 = vector.shape_cast %405 : vector<1x128x512xbf16> to vector<128x512xbf16>
    %cst_147 = arith.constant dense<0.000000e+00> : vector<16x512xf32>
    %407 = tpu.matmul %404, %406, %cst_147 {dimension_numbers = #tpu.dot_dimension_numbers<[1], [0], [0], [1], [0, 0, 1, 1], [], []>} : vector<16x128xbf16>, vector<128x512xbf16>, vector<16x512xf32> -> vector<16x512xf32>
    %c1_148 = arith.constant 1 : index
    %c0_149 = arith.constant 0 : index
    %c0_150 = arith.constant 0 : index
    %408 = vector.load %arg5[%c1_148, %c0_149, %c0_150] : memref<2x128x512xbf16, #tpu.memory_space<vmem>>, vector<1x128x512xbf16>
    %409 = vector.shape_cast %408 : vector<1x128x512xbf16> to vector<128x512xbf16>
    %cst_151 = arith.constant dense<0.000000e+00> : vector<16x512xf32>
    %410 = tpu.matmul %403, %409, %cst_151 {dimension_numbers = #tpu.dot_dimension_numbers<[1], [0], [0], [1], [0, 0, 1, 1], [], []>} : vector<16x128xbf16>, vector<128x512xbf16>, vector<16x512xf32> -> vector<16x512xf32>
    %411 = arith.addf %410, %407 : vector<16x512xf32>
    %412 = vector.broadcast %13 : vector<1x512xf32> to vector<16x512xf32>
    %413 = arith.addf %411, %412 : vector<16x512xf32>
    %414 = vector.extract_strided_slice %413 {offsets = [0, 0], sizes = [16, 384], strides = [1, 1]} : vector<16x512xf32> to vector<16x384xf32>
    %415 = arith.negf %414 : vector<16x384xf32>
    %416 = math.exp %415 : vector<16x384xf32>
    %cst_152 = arith.constant 1.000000e+00 : f32
    %417 = vector.broadcast %cst_152 : f32 to vector<16x384xf32>
    %418 = arith.addf %417, %416 : vector<16x384xf32>
    %419 = arith.divf %417, %418 : vector<16x384xf32>
    %420 = vector.extract_strided_slice %419 {offsets = [0, 0], sizes = [16, 128], strides = [1, 1]} : vector<16x384xf32> to vector<16x128xf32>
    %421 = vector.extract_strided_slice %419 {offsets = [0, 128], sizes = [16, 128], strides = [1, 1]} : vector<16x384xf32> to vector<16x128xf32>
    %422 = vector.extract_strided_slice %419 {offsets = [0, 256], sizes = [16, 128], strides = [1, 1]} : vector<16x384xf32> to vector<16x128xf32>
    %423 = vector.extract_strided_slice %413 {offsets = [0, 384], sizes = [16, 128], strides = [1, 1]} : vector<16x512xf32> to vector<16x128xf32>
    %424 = math.tanh %423 : vector<16x128xf32>
    %425 = arith.mulf %421, %376 : vector<16x128xf32>
    %426 = arith.mulf %420, %424 : vector<16x128xf32>
    %427 = arith.addf %425, %426 : vector<16x128xf32>
    %428 = math.tanh %427 : vector<16x128xf32>
    %429 = arith.mulf %422, %428 : vector<16x128xf32>
    %c8_i32 = arith.constant 8 : i32
    %c0_153 = arith.constant 0 : index
    %c0_154 = arith.constant 0 : index
    %c0_155 = arith.constant 0 : index
    %430 = vector.load %arg8[%c0_153, %c0_154, %c0_155] : memref<2x16x128xf32, #tpu.memory_space<vmem>>, vector<1x16x128xf32>
    %431 = vector.shape_cast %430 : vector<1x16x128xf32> to vector<16x128xf32>
    %432 = vector.shape_cast %402 : vector<16x128xf32> to vector<1x16x128xf32>
    tpu.vector_store %arg8[%c0_153, %c0_154, %c0_155], %432 {strides = array<i32>} : memref<2x16x128xf32, #tpu.memory_space<vmem>>, vector<1x16x128xf32>,
    %c0_156 = arith.constant 0 : index
    %c0_157 = arith.constant 0 : index
    %c0_158 = arith.constant 0 : index
    %433 = vector.load %arg9[%c0_156, %c0_157, %c0_158] : memref<2x16x128xf32, #tpu.memory_space<vmem>>, vector<1x16x128xf32>
    %434 = vector.shape_cast %433 : vector<1x16x128xf32> to vector<16x128xf32>
    %435 = vector.shape_cast %400 : vector<16x128xf32> to vector<1x16x128xf32>
    tpu.vector_store %arg9[%c0_156, %c0_157, %c0_158], %435 {strides = array<i32>} : memref<2x16x128xf32, #tpu.memory_space<vmem>>, vector<1x16x128xf32>,
    %c1_159 = arith.constant 1 : index
    %c0_160 = arith.constant 0 : index
    %c0_161 = arith.constant 0 : index
    %436 = vector.load %arg8[%c1_159, %c0_160, %c0_161] : memref<2x16x128xf32, #tpu.memory_space<vmem>>, vector<1x16x128xf32>
    %437 = vector.shape_cast %436 : vector<1x16x128xf32> to vector<16x128xf32>
    %438 = vector.shape_cast %429 : vector<16x128xf32> to vector<1x16x128xf32>
    tpu.vector_store %arg8[%c1_159, %c0_160, %c0_161], %438 {strides = array<i32>} : memref<2x16x128xf32, #tpu.memory_space<vmem>>, vector<1x16x128xf32>,
    %c1_162 = arith.constant 1 : index
    %c0_163 = arith.constant 0 : index
    %c0_164 = arith.constant 0 : index
    %439 = vector.load %arg9[%c1_162, %c0_163, %c0_164] : memref<2x16x128xf32, #tpu.memory_space<vmem>>, vector<1x16x128xf32>
    %440 = vector.shape_cast %439 : vector<1x16x128xf32> to vector<16x128xf32>
    %441 = vector.shape_cast %427 : vector<16x128xf32> to vector<1x16x128xf32>
    tpu.vector_store %arg9[%c1_162, %c0_163, %c0_164], %441 {strides = array<i32>} : memref<2x16x128xf32, #tpu.memory_space<vmem>>, vector<1x16x128xf32>,
    return
  }
  func.func @transform_0(%arg0: i32, %arg1: i32) -> (i32, i32, i32) {
    %c0_i32 = arith.constant 0 : i32
    %c0_i32_0 = arith.constant 0 : i32
    return %arg1, %arg0, %c0_i32 : i32, i32, i32
  }
  func.func @transform_1(%arg0: i32, %arg1: i32) -> (i32, i32, i32) {
    %c0_i32 = arith.constant 0 : i32
    %c0_i32_0 = arith.constant 0 : i32
    %c0_i32_1 = arith.constant 0 : i32
    return %c0_i32, %arg0, %c0_i32_0 : i32, i32, i32
  }
  func.func @transform_2(%arg0: i32, %arg1: i32) -> (i32, i32, i32) {
    %c0_i32 = arith.constant 0 : i32
    %c0_i32_0 = arith.constant 0 : i32
    %c0_i32_1 = arith.constant 0 : i32
    return %c0_i32, %arg0, %c0_i32_0 : i32, i32, i32
  }
  func.func @transform_3(%arg0: i32, %arg1: i32) -> (i32, i32, i32) {
    %c0_i32 = arith.constant 0 : i32
    %c0_i32_0 = arith.constant 0 : i32
    %c0_i32_1 = arith.constant 0 : i32
    %c0_i32_2 = arith.constant 0 : i32
    return %c0_i32, %c0_i32_0, %c0_i32_1 : i32, i32, i32
  }
  func.func @transform_4(%arg0: i32, %arg1: i32) -> (i32, i32, i32) {
    %c0_i32 = arith.constant 0 : i32
    %c0_i32_0 = arith.constant 0 : i32
    %c0_i32_1 = arith.constant 0 : i32
    %c0_i32_2 = arith.constant 0 : i32
    return %c0_i32, %c0_i32_0, %c0_i32_1 : i32, i32, i32
  }
  func.func @transform_5(%arg0: i32, %arg1: i32) -> (i32, i32) {
    %c0_i32 = arith.constant 0 : i32
    %c0_i32_0 = arith.constant 0 : i32
    %c0_i32_1 = arith.constant 0 : i32
    return %c0_i32, %c0_i32_0 : i32, i32
  }
  func.func @transform_6(%arg0: i32, %arg1: i32) -> (i32, i32, i32) {
    %c0_i32 = arith.constant 0 : i32
    %c0_i32_0 = arith.constant 0 : i32
    %c0_i32_1 = arith.constant 0 : i32
    return %c0_i32, %arg0, %c0_i32_0 : i32, i32, i32
  }
  func.func @transform_7(%arg0: i32, %arg1: i32) -> (i32, i32, i32) {
    %c0_i32 = arith.constant 0 : i32
    %c0_i32_0 = arith.constant 0 : i32
    %c0_i32_1 = arith.constant 0 : i32
    return %c0_i32, %arg0, %c0_i32_0 : i32, i32, i32
  }
}

</mosaic_0001>

<bundles_post_ra>
// kernel: tpu_custom_call.1
= control target key start
LH: loop header
LB: loop body
LE: loop exit
PB: predicated region body
PF: predicated region fallthrough
CT: control target
= control target key end

     0   :  { %13 = vsyncpa [#allocation4], 0  ;;  %s9552_s0 = inlined_call_operand.hbm [shape: bf16[8,16,128], index: 0, kind: input, shape index: {}]   ;;  %s9553_s1 = inlined_call_operand.hbm [shape: f32[2,16,128], index: 1, kind: input, shape index: {}]   ;;  %s9554_s2 = inlined_call_operand.hbm [shape: f32[2,16,128], index: 2, kind: input, shape index: {}]   ;;  %s9555_s3 = inlined_call_operand.hbm [shape: bf16[2,128,512], index: 3, kind: input, shape index: {}]   ;;  %s9556_s4 = inlined_call_operand.hbm [shape: bf16[2,128,512], index: 4, kind: input, shape index: {}]   ;;  %s9557_s5 = inlined_call_operand.hbm [shape: f32[2,512], index: 5, kind: input, shape index: {}]   ;;  %s9558_s6 = inlined_call_operand.hbm [shape: f32[2,16,128], index: 6, kind: output, shape index: {0}]   ;;  %s9559_s7 = inlined_call_operand.hbm [shape: f32[2,16,128], index: 7, kind: output, shape index: {1}]  }
   0x1   :  { %14 = vsyncpa [#allocation7], 0 }
   0x2   :  { %15 = vsyncpa [#allocation10], 0 }
   0x3   :  { %16 = vsyncpa [#allocation13], 0 }
   0x4   :  { %17 = vsyncpa [#allocation5], 0  ;;  %s36_s26 = sshll.u32 %s9553_s1, 4  ;;  %s37_s26 = int_to_ptr.hbm [resolvable:$true] %s36_s26 }
   0x5   :  { %18 = vsyncpa [#allocation16], 0  ;;  %s6394_s27 = smov [#allocation6]   ;;  %s62_s8 = sshll.u32 %s9555_s3, 4  ;;  %s63_s8 = int_to_ptr.hbm [resolvable:$true] %s62_s8 }
   0x6   :  { %s38_s28 = sshll.u32 %s6394_s27, 4  ;;  %s6395_s9 = smov 128   ;;  %s39_s28 = int_to_ptr.vmem [resolvable:$true] %s38_s28 }
   0x7   :  { %s6396_s10 = smov 8   ;;  %s6397_s11 = smov [#allocation9]  }
   0x8   :  { %44 = dma.hbm_to_vmem [thread:$0]  %s37_s26, 512, %s39_s28, [#allocation7], %s6395_s9, %s6395_s9, %s6396_s10  }
   0x9   :  { %s64_s12 = sshll.u32 %s6397_s11, 4  ;;  %s6398_s1 = smov 256   ;;  %s65_s12 = int_to_ptr.vmem [resolvable:$true] %s64_s12 }
   0xa   :  { %s6399_s13 = smov 16   ;;  %s23_s16 = sshll.u32 %s9552_s0, 4  ;;  %s24_s16 = int_to_ptr.hbm [resolvable:$true] %s23_s16 }
   0xb   :  { %70 = dma.hbm_to_vmem [thread:$0]  %s63_s8, 8192, %s65_s12, [#allocation10], %s6398_s1, %s6398_s1, %s6399_s13  }
   0xc   :  { %s6400_s17 = smov [#allocation3]   ;;  %s49_s20 = sshll.u32 %s9554_s2, 4  ;;  %s50_s20 = int_to_ptr.hbm [resolvable:$true] %s49_s20 }
   0xd   :  { %s25_s3 = sshll.u32 %s6400_s17, 4  ;;  %s6401_s21 = smov 64   ;;  %s26_s3 = int_to_ptr.vmem [resolvable:$true] %s25_s3 }
   0xe   :  { %s6402_s22 = smov 4   ;;  %s6403_s23 = smov [#allocation8]  }
   0xf   :  { %31 = dma.hbm_to_vmem [thread:$0]  %s24_s16, 1024, %s26_s3, [#allocation4], %s6401_s21, %s6401_s21, %s6402_s22  }
  0x10   :  { %s51_s24 = sshll.u32 %s6403_s23, 4  ;;  %s75_s27 = sshll.u32 %s9556_s4, 4  ;;  %s52_s24 = int_to_ptr.vmem [resolvable:$true] %s51_s24  ;;  %s76_s27 = int_to_ptr.hbm [resolvable:$true] %s75_s27 }
  0x11   :  { %57 = dma.hbm_to_vmem [thread:$0]  %s50_s20, 512, %s52_s24, [#allocation7], %s6395_s9, %s6395_s9, %s6396_s10  }
  0x12   :  { %s89_s2 = sshll.u32 %s9557_s5, 4  ;;  %s6404_s29 = smov [#allocation11]   ;;  %s90_s2 = int_to_ptr.hbm [resolvable:$true] %s89_s2 }
  0x13   :  { %s77_s30 = sshll.u32 %s6404_s29, 4  ;;  %s6405_s8 = smov [#allocation12]   ;;  %s78_s30 = int_to_ptr.vmem [resolvable:$true] %s77_s30 }
  0x14   :  { %83 = dma.hbm_to_vmem [thread:$0]  %s76_s27, 8192, %s78_s30, [#allocation10], %s6398_s1, %s6398_s1, %s6399_s13  }
  0x15   :  { %s91_s11 = sshll.u32 %s6405_s8, 4  ;;  %s92_s11 = int_to_ptr.vmem [resolvable:$true] %s91_s11 }
  0x16   :  { %94 = dma.hbm_to_vmem [thread:$0]  %s90_s2, 128, %s92_s11, [#allocation13]  }
  0x17   :  { %6382 = dma.done.wait [#allocation4], 1024  }
  0x18   :  { %6383 = vsyncadd [#allocation4], 4294966272 }
  0x19   :  { %6384 = dma.done.wait [#allocation7], 1024  }
  0x1a   :  { %6385 = vsyncadd [#allocation7], 4294966272 }
  0x1b   :  { %6386 = dma.done.wait [#allocation10], 16384  }
  0x1c   :  { %6387 = vsyncadd [#allocation10], 4294950912 }
  0x1d   :  { %6388 = dma.done.wait [#allocation13], 128  }
  0x1e   :  { %6389 = vsyncadd [#allocation13], 4294967168  ;;  %v5034_v0 = vld [vmem:[#allocation9 + $0xe0] sm:$0xf]  ;;  %v5566_v1 = vld [vmem:[#allocation9 + $0xec] sm:$0xf0] }
  0x1f   :  { %v5564_v2 = vld [vmem:[#allocation9 + $0xe4] sm:$0xf]  ;;  %v5035_v3 = vor.u32 %v5566_v1, %v5034_v0  ;;  %v5036_v4 = vld [vmem:[#allocation9 + $0xf0] sm:$0xf0]  ;;  %v5042_v5 = vld [vmem:[#allocation9 + $0xe8] sm:$0xf] }
  0x20   :  { %v5567_v6 = vld [vmem:[#allocation9 + $0xf4] sm:$0xf0]  ;;  %v5039_v7 = vor.u32 %v5564_v2, %v5036_v4  ;;  %v5565_v9 = vld [vmem:[#allocation9 + $0xec] sm:$0xf]  ;;  %v5044_v10 = vld [vmem:[#allocation9 + $0xf8] sm:$0xf0] }
  0x21   :  { %v5043_v8 = vor.u32 %v5567_v6, %v5042_v5  ;;  %v5018_v11 = vld [vmem:[#allocation9 + $0xc0] sm:$0xf]  ;;  %405 = vmatpush.bf16.msra.mxu0 %v5035_v3  ;;  %v5047_v12 = vor.u32 %v5565_v9, %v5044_v10  ;;  %v5562_v13 = vld [vmem:[#allocation9 + $0xcc] sm:$0xf0]  ;;  %v5560_v14 = vld [vmem:[#allocation9 + $0xc4] sm:$0xf] }
  0x22   :  { %v5020_v15 = vld [vmem:[#allocation9 + $0xd0] sm:$0xf0]  ;;  %454 = vmatpush.bf16.msra.mxu1 %v5039_v7  ;;  %v5019_v16 = vor.u32 %v5562_v13, %v5018_v11  ;;  %v5026_v18 = vld [vmem:[#allocation9 + $0xc8] sm:$0xf]  ;;  %v5563_v19 = vld [vmem:[#allocation9 + $0xd4] sm:$0xf0] }
  0x23   :  { %503 = vmatpush.bf16.msra.mxu2 %v5043_v8  ;;  %v5023_v17 = vor.u32 %v5560_v14, %v5020_v15  ;;  %v5561_v20 = vld [vmem:[#allocation9 + $0xcc] sm:$0xf]  ;;  %552 = vmatpush.bf16.msra.mxu3 %v5047_v12  ;;  %v5027_v21 = vor.u32 %v5563_v19, %v5026_v18  ;;  %v5028_v22 = vld [vmem:[#allocation9 + $0xd8] sm:$0xf0]  ;;  %v5002_v23 = vld [vmem:[#allocation9 + $0xa0] sm:$0xf] }
  0x24   :  { %v5558_v24 = vld [vmem:[#allocation9 + $0xac] sm:$0xf0]  ;;  %v5031_v25 = vor.u32 %v5561_v20, %v5028_v22  ;;  %v5556_v26 = vld [vmem:[#allocation9 + $0xa4] sm:$0xf]  ;;  %v5004_v27 = vld [vmem:[#allocation9 + $0xb0] sm:$0xf0] }
  0x25   :  { %v5010_v28 = vld [vmem:[#allocation9 + $0xa8] sm:$0xf]  ;;  %406 = vmatpush.bf16.msra.mxu0 %v5019_v16  ;;  %v5003_v29 = vor.u32 %v5558_v24, %v5002_v23  ;;  %v5559_v30 = vld [vmem:[#allocation9 + $0xb4] sm:$0xf0]  ;;  %v5557_v31 = vld [vmem:[#allocation9 + $0xac] sm:$0xf]  ;;  %v5007_v33 = vor.u32 %v5556_v26, %v5004_v27 }
  0x26   :  { %v5012_v32 = vld [vmem:[#allocation9 + $0xb8] sm:$0xf0]  ;;  %455 = vmatpush.bf16.msra.mxu1 %v5023_v17  ;;  %v5011_v34 = vor.u32 %v5559_v30, %v5010_v28  ;;  %v4986_v35 = vld [vmem:[#allocation9 + $0x80] sm:$0xf]  ;;  %v5554_v36 = vld [vmem:[#allocation9 + $0x8c] sm:$0xf0] }
  0x27   :  { %504 = vmatpush.bf16.msra.mxu2 %v5027_v21  ;;  %v5552_v37 = vld [vmem:[#allocation9 + $0x84] sm:$0xf]  ;;  %553 = vmatpush.bf16.msra.mxu3 %v5031_v25  ;;  %v5015_v38 = vor.u32 %v5557_v31, %v5012_v32  ;;  %v4988_v39 = vld [vmem:[#allocation9 + $0x90] sm:$0xf0]  ;;  %v4994_v40 = vld [vmem:[#allocation9 + $0x88] sm:$0xf]  ;;  %v4987_v44 = vor.u32 %v5554_v36, %v4986_v35 }
  0x28   :  { %v5555_v41 = vld [vmem:[#allocation9 + $0x94] sm:$0xf0]  ;;  %v5553_v42 = vld [vmem:[#allocation9 + $0x8c] sm:$0xf]  ;;  %v4996_v43 = vld [vmem:[#allocation9 + $0x98] sm:$0xf0]  ;;  %v4991_v45 = vor.u32 %v5552_v37, %v4988_v39 }
  0x29   :  { %407 = vmatpush.bf16.msra.mxu0 %v5003_v29  ;;  %v4995_v46 = vor.u32 %v5555_v41, %v4994_v40  ;;  %v4970_v47 = vld [vmem:[#allocation9 + $0x60] sm:$0xf]  ;;  %v5550_v48 = vld [vmem:[#allocation9 + $0x6c] sm:$0xf0]  ;;  %v5548_v49 = vld [vmem:[#allocation9 + $0x64] sm:$0xf]  ;;  %v4999_v50 = vor.u32 %v5553_v42, %v4996_v43 }
  0x2a   :  { %456 = vmatpush.bf16.msra.mxu1 %v5007_v33  ;;  %v4972_v51 = vld [vmem:[#allocation9 + $0x70] sm:$0xf0]  ;;  %v4978_v52 = vld [vmem:[#allocation9 + $0x68] sm:$0xf]  ;;  %v5551_v53 = vld [vmem:[#allocation9 + $0x74] sm:$0xf0]  ;;  %v4971_v56 = vor.u32 %v5550_v48, %v4970_v47 }
  0x2b   :  { %505 = vmatpush.bf16.msra.mxu2 %v5011_v34  ;;  %554 = vmatpush.bf16.msra.mxu3 %v5015_v38  ;;  %v5549_v54 = vld [vmem:[#allocation9 + $0x6c] sm:$0xf]  ;;  %v4980_v55 = vld [vmem:[#allocation9 + $0x78] sm:$0xf0]  ;;  %v4975_v57 = vor.u32 %v5548_v49, %v4972_v51  ;;  %v4979_v58 = vor.u32 %v5551_v53, %v4978_v52  ;;  %v4954_v59 = vld [vmem:[#allocation9 + $0x40] sm:$0xf] }
  0x2c   :  { %v5546_v60 = vld [vmem:[#allocation9 + $0x4c] sm:$0xf0]  ;;  %v5544_v61 = vld [vmem:[#allocation9 + $0x44] sm:$0xf]  ;;  %v4983_v62 = vor.u32 %v5549_v54, %v4980_v55  ;;  %v4956_v63 = vld [vmem:[#allocation9 + $0x50] sm:$0xf0] }
  0x2d   :  { %408 = vmatpush.bf16.msra.mxu0 %v4987_v44  ;;  %v4962_v0 = vld [vmem:[#allocation9 + $0x48] sm:$0xf]  ;;  %v5547_v1 = vld [vmem:[#allocation9 + $0x54] sm:$0xf0]  ;;  %v5545_v2 = vld [vmem:[#allocation9 + $0x4c] sm:$0xf]  ;;  %v4955_v4 = vor.u32 %v5546_v60, %v4954_v59  ;;  %v4959_v5 = vor.u32 %v5544_v61, %v4956_v63 }
  0x2e   :  { %457 = vmatpush.bf16.msra.mxu1 %v4991_v45  ;;  %v4964_v3 = vld [vmem:[#allocation9 + $0x58] sm:$0xf0]  ;;  %v4963_v6 = vor.u32 %v5547_v1, %v4962_v0  ;;  %v4938_v7 = vld [vmem:[#allocation9 + $0x20] sm:$0xf]  ;;  %v5542_v8 = vld [vmem:[#allocation9 + $0x2c] sm:$0xf0] }
  0x2f   :  { %506 = vmatpush.bf16.msra.mxu2 %v4995_v46  ;;  %555 = vmatpush.bf16.msra.mxu3 %v4999_v50  ;;  %v5540_v9 = vld [vmem:[#allocation9 + $0x24] sm:$0xf]  ;;  %v4967_v10 = vor.u32 %v5545_v2, %v4964_v3  ;;  %v4940_v11 = vld [vmem:[#allocation9 + $0x30] sm:$0xf0]  ;;  %v4946_v12 = vld [vmem:[#allocation9 + $0x28] sm:$0xf]  ;;  %v4939_v16 = vor.u32 %v5542_v8, %v4938_v7 }
  0x30   :  { %v5543_v13 = vld [vmem:[#allocation9 + $0x34] sm:$0xf0]  ;;  %v5541_v14 = vld [vmem:[#allocation9 + $0x2c] sm:$0xf]  ;;  %v4948_v15 = vld [vmem:[#allocation9 + $0x38] sm:$0xf0]  ;;  %v4943_v18 = vor.u32 %v5540_v9, %v4940_v11 }
  0x31   :  { %409 = vmatpush.bf16.msra.mxu0 %v4971_v56  ;;  %v4922_v17 = vld [vmem:[#allocation9] sm:$0xf]  ;;  %v4947_v19 = vor.u32 %v5543_v13, %v4946_v12  ;;  %v5538_v20 = vld [vmem:[#allocation9 + $0xc] sm:$0xf0]  ;;  %v5536_v21 = vld [vmem:[#allocation9 + $0x4] sm:$0xf]  ;;  %v4951_v23 = vor.u32 %v5541_v14, %v4948_v15 }
  0x32   :  { %458 = vmatpush.bf16.msra.mxu1 %v4975_v57  ;;  %v4924_v22 = vld [vmem:[#allocation9 + $0x10] sm:$0xf0]  ;;  %v4930_v24 = vld [vmem:[#allocation9 + $0x8] sm:$0xf]  ;;  %v5539_v25 = vld [vmem:[#allocation9 + $0x14] sm:$0xf0]  ;;  %v4923_v30 = vor.u32 %v5538_v20, %v4922_v17 }
  0x33   :  { %507 = vmatpush.bf16.msra.mxu2 %v4979_v58  ;;  %556 = vmatpush.bf16.msra.mxu3 %v4983_v62  ;;  %v5537_v26 = vld [vmem:[#allocation9 + $0xc] sm:$0xf]  ;;  %v4932_v27 = vld [vmem:[#allocation9 + $0x18] sm:$0xf0]  ;;  %v5162_v28 = vld [vmem:[#allocation11 + $0xe0] sm:$0xf]  ;;  %v4927_v33 = vor.u32 %v5536_v21, %v4924_v22  ;;  %v4931_v34 = vor.u32 %v5539_v25, %v4930_v24 }
  0x34   :  { %v5598_v29 = vld [vmem:[#allocation11 + $0xec] sm:$0xf0]  ;;  %v5596_v31 = vld [vmem:[#allocation11 + $0xe4] sm:$0xf]  ;;  %v5164_v32 = vld [vmem:[#allocation11 + $0xf0] sm:$0xf0]  ;;  %v4935_v36 = vor.u32 %v5537_v26, %v4932_v27 }
  0x35   :  { %410 = vmatpush.bf16.msra.mxu0 %v4955_v4  ;;  %v5528_v35 = vld [vmem:[#allocation3] sm:$0xff]  ;;  %v6472_v37 = vor.u32 %v5598_v29, %v5162_v28  ;;  %v5170_v38 = vld [vmem:[#allocation11 + $0xe8] sm:$0xf]  ;;  %v5599_v39 = vld [vmem:[#allocation11 + $0xf4] sm:$0xf0]  ;;  %v6474_v41 = vor.u32 %v5596_v31, %v5164_v32  ;;  %s6406_s4 = smov [#allocation15]  }
  0x36   :  { %459 = vmatpush.bf16.msra.mxu1 %v4959_v5  ;;  %v5597_v40 = vld [vmem:[#allocation11 + $0xec] sm:$0xf]  ;;  %v5172_v42 = vld [vmem:[#allocation11 + $0xf8] sm:$0xf0]  ;;  %v5146_v43 = vld [vmem:[#allocation11 + $0xc0] sm:$0xf]  ;;  %v6476_v47 = vor.u32 %v5599_v39, %v5170_v38 }
  0x37   :  { %508 = vmatpush.bf16.msra.mxu2 %v4963_v6  ;;  %557 = vmatpush.bf16.msra.mxu3 %v4967_v10  ;;  %v5594_v44 = vld [vmem:[#allocation11 + $0xcc] sm:$0xf0]  ;;  %v5592_v45 = vld [vmem:[#allocation11 + $0xc4] sm:$0xf]  ;;  %v5148_v46 = vld [vmem:[#allocation11 + $0xd0] sm:$0xf0]  ;;  %v6479_v48 = vor.u32 %v5597_v40, %v5172_v42 }
  0x38   :  { %v6481_v49 = vor.u32 %v5594_v44, %v5146_v43  ;;  %v5154_v50 = vld [vmem:[#allocation11 + $0xc8] sm:$0xf]  ;;  %v5595_v51 = vld [vmem:[#allocation11 + $0xd4] sm:$0xf0]  ;;  %v6484_v52 = vor.u32 %v5592_v45, %v5148_v46  ;;  %v5593_v53 = vld [vmem:[#allocation11 + $0xcc] sm:$0xf] }
  0x39   :  { %411 = vmatpush.bf16.msra.mxu0 %v4939_v16  ;;  %v5156_v54 = vld [vmem:[#allocation11 + $0xd8] sm:$0xf0]  ;;  %v6487_v55 = vor.u32 %v5595_v51, %v5154_v50  ;;  %v5130_v56 = vld [vmem:[#allocation11 + $0xa0] sm:$0xf]  ;;  %v5590_v57 = vld [vmem:[#allocation11 + $0xac] sm:$0xf0] }
  0x3a   :  { %460 = vmatpush.bf16.msra.mxu1 %v4943_v18  ;;  %9766 = vst [vmem:[#allocation23_spill] sm:$0xff] %v6484_v52  ;;  %v5588_v58 = vld [vmem:[#allocation11 + $0xa4] sm:$0xf]  ;;  %v6491_v59 = vor.u32 %v5593_v53, %v5156_v54  ;;  %v6493_v60 = vor.u32 %v5590_v57, %v5130_v56  ;;  %v5132_v61 = vld [vmem:[#allocation11 + $0xb0] sm:$0xf0]  ;;  %v5529_v5 = vld [vmem:[#allocation3 + $0x8] sm:$0xff] }
  0x3b   :  { %509 = vmatpush.bf16.msra.mxu2 %v4947_v19  ;;  %558 = vmatpush.bf16.msra.mxu3 %v4951_v23  ;;  %9767 = vst [vmem:[#allocation24_spill] sm:$0xff] %v6487_v55  ;;  %v5138_v62 = vld [vmem:[#allocation11 + $0xa8] sm:$0xf]  ;;  %v5591_v63 = vld [vmem:[#allocation11 + $0xb4] sm:$0xf0]  ;;  %v6496_v0 = vor.u32 %v5588_v58, %v5132_v61  ;;  %v5530_v18 = vld [vmem:[#allocation3 + $0x10] sm:$0xff] }
  0x3c   :  { %9768 = vst [vmem:[#allocation25_spill] sm:$0xff] %v6491_v59  ;;  %v5589_v1 = vld [vmem:[#allocation11 + $0xac] sm:$0xf]  ;;  %v5140_v2 = vld [vmem:[#allocation11 + $0xb8] sm:$0xf0]  ;;  %v6499_v3 = vor.u32 %v5591_v63, %v5138_v62  ;;  %v5532_v46 = vld [vmem:[#allocation3 + $0x20] sm:$0xff] }
  0x3d   :  { %412 = vmatpush.bf16.msra.mxu0 %v4923_v30  ;;  %v6503_v4 = vor.u32 %v5589_v1, %v5140_v2  ;;  %v5114_v6 = vld [vmem:[#allocation11 + $0x80] sm:$0xf]  ;;  %v5586_v7 = vld [vmem:[#allocation11 + $0x8c] sm:$0xf0]  ;;  %v5584_v8 = vld [vmem:[#allocation11 + $0x84] sm:$0xf] }
  0x3e   :  { %461 = vmatpush.bf16.msra.mxu1 %v4927_v33  ;;  %v6508_v9 = vor.u32 %v5586_v7, %v5114_v6  ;;  %v5116_v10 = vld [vmem:[#allocation11 + $0x90] sm:$0xf0]  ;;  %v5122_v11 = vld [vmem:[#allocation11 + $0x88] sm:$0xf]  ;;  %v5587_v12 = vld [vmem:[#allocation11 + $0x94] sm:$0xf0] }
  0x3f   :  { %510 = vmatpush.bf16.msra.mxu2 %v4931_v34  ;;  %559 = vmatpush.bf16.msra.mxu3 %v4935_v36  ;;  %v6510_v13 = vor.u32 %v5584_v8, %v5116_v10  ;;  %v6512_v14 = vor.u32 %v5587_v12, %v5122_v11  ;;  %v5585_v15 = vld [vmem:[#allocation11 + $0x8c] sm:$0xf]  ;;  %v5124_v16 = vld [vmem:[#allocation11 + $0x98] sm:$0xf0]  ;;  %v5098_v19 = vld [vmem:[#allocation11 + $0x60] sm:$0xf] }
  0x40   :  { %413 = vmatmul.bf16.vlgmr.msra.gmra.mxu0 %v5528_v35  ;;  %v6515_v17 = vor.u32 %v5585_v15, %v5124_v16  ;;  %v5582_v20 = vld [vmem:[#allocation11 + $0x6c] sm:$0xf0]  ;;  %v5580_v21 = vld [vmem:[#allocation11 + $0x64] sm:$0xf]  ;;  %v5100_v23 = vld [vmem:[#allocation11 + $0x70] sm:$0xf0] }
  0x41   :  { %870 = vmatpush.bf16.msrb.mxu0 %v6472_v37  ;;  %462 = vmatmul.bf16.vlgmr.msra.gmra.mxu1 %v5528_v35  ;;  %v6520_v22 = vor.u32 %v5582_v20, %v5098_v19  ;;  %v5106_v24 = vld [vmem:[#allocation11 + $0x68] sm:$0xf]  ;;  %v5583_v25 = vld [vmem:[#allocation11 + $0x74] sm:$0xf0]  ;;  %v6522_v26 = vor.u32 %v5580_v21, %v5100_v23  ;;  %v5581_v28 = vld [vmem:[#allocation11 + $0x6c] sm:$0xf] }
  0x42   :  { %884 = vmatpush.bf16.msrb.mxu1 %v6474_v41  ;;  %511 = vmatmul.bf16.vlgmr.msra.gmra.mxu2 %v5528_v35  ;;  %v6524_v27 = vor.u32 %v5583_v25, %v5106_v24  ;;  %v5108_v29 = vld [vmem:[#allocation11 + $0x78] sm:$0xf0]  ;;  %v5082_v32 = vld [vmem:[#allocation11 + $0x40] sm:$0xf]  ;;  %v5578_v33 = vld [vmem:[#allocation11 + $0x4c] sm:$0xf0] }
  0x43   :  { %560 = vmatmul.bf16.vlgmr.msra.gmra.mxu3 %v5528_v35  ;;  %898 = vmatpush.bf16.msrb.mxu2 %v6476_v47  ;;  %v6527_v30 = vor.u32 %v5581_v28, %v5108_v29  ;;  %v5531_v31 = vld [vmem:[#allocation3 + $0x18] sm:$0xff]  ;;  %v5576_v34 = vld [vmem:[#allocation11 + $0x44] sm:$0xf]  ;;  %v6532_v35 = vor.u32 %v5578_v33, %v5082_v32  ;;  %v5084_v36 = vld [vmem:[#allocation11 + $0x50] sm:$0xf0]  ;;  %s4865_s5 = sshll.u32 %s6406_s4, 4  ;;  %s4866_s5 = int_to_ptr.vmem [resolvable:$true] %s4865_s5 }
  0x44   :  { %912 = vmatpush.bf16.msrb.mxu3 %v6479_v48  ;;  %9769 = vst [vmem:[#allocation26_spill] sm:$0xff] %v6524_v27  ;;  %v5090_v38 = vld [vmem:[#allocation11 + $0x48] sm:$0xf]  ;;  %v5579_v39 = vld [vmem:[#allocation11 + $0x54] sm:$0xf0]  ;;  %v6534_v40 = vor.u32 %v5576_v34, %v5084_v36  ;;  %v5534_v19 = vld [vmem:[#allocation3 + $0x30] sm:$0xff] }
  0x45   :  { %871 = vmatpush.bf16.msrb.mxu0 %v6481_v49  ;;  %v6536_v42 = vor.u32 %v5579_v39, %v5090_v38  ;;  %v5577_v43 = vld [vmem:[#allocation11 + $0x4c] sm:$0xf]  ;;  %v5092_v44 = vld [vmem:[#allocation11 + $0x58] sm:$0xf0]  ;;  %v5066_v50 = vld [vmem:[#allocation11 + $0x20] sm:$0xf] }
  0x46   :  { %885 = vmatpush.bf16.msrb.mxu1 %v6484_v52  ;;  %v6539_v45 = vor.u32 %v5577_v43, %v5092_v44  ;;  %v5574_v51 = vld [vmem:[#allocation11 + $0x2c] sm:$0xf0]  ;;  %v5572_v53 = vld [vmem:[#allocation11 + $0x24] sm:$0xf]  ;;  %v5068_v56 = vld [vmem:[#allocation11 + $0x30] sm:$0xf0] }
  0x47   :  { %899 = vmatpush.bf16.msrb.mxu2 %v6487_v55  ;;  %v6544_v54 = vor.u32 %v5574_v51, %v5066_v50  ;;  %v5074_v57 = vld [vmem:[#allocation11 + $0x28] sm:$0xf]  ;;  %v5575_v58 = vld [vmem:[#allocation11 + $0x34] sm:$0xf0]  ;;  %v6546_v61 = vor.u32 %v5572_v53, %v5068_v56  ;;  %v5573_v63 = vld [vmem:[#allocation11 + $0x2c] sm:$0xf] }
  0x48   :  { %913 = vmatpush.bf16.msrb.mxu3 %v6491_v59  ;;  %9770 = vst [vmem:[#allocation27_spill] sm:$0xff] %v6539_v45  ;;  %v6548_v62 = vor.u32 %v5575_v58, %v5074_v57  ;;  %v5076_v1 = vld [vmem:[#allocation11 + $0x38] sm:$0xf0]  ;;  %v5050_v6 = vld [vmem:[#allocation11] sm:$0xf]  ;;  %v124_v28 = vld [vmem:[#allocation6 + $0x8] sm:$0xff] }
  0x49   :  { %872 = vmatpush.bf16.msrb.mxu0 %v6493_v60  ;;  %9771 = vst [vmem:[#allocation28_spill] sm:$0xff] %v6544_v54  ;;  %v6551_v2 = vor.u32 %v5573_v63, %v5076_v1  ;;  %v5570_v7 = vld [vmem:[#allocation11 + $0xc] sm:$0xf0]  ;;  %v5568_v8 = vld [vmem:[#allocation11 + $0x4] sm:$0xf]  ;;  %v5535_v24 = vld [vmem:[#allocation3 + $0x38] sm:$0xff] }
  0x4a   :  { %886 = vmatpush.bf16.msrb.mxu1 %v6496_v0  ;;  %9772 = vst [vmem:[#allocation29_spill] sm:$0xff] %v6546_v61  ;;  %v6556_v10 = vor.u32 %v5570_v7, %v5050_v6  ;;  %v5052_v11 = vld [vmem:[#allocation11 + $0x10] sm:$0xf0]  ;;  %v5058_v12 = vld [vmem:[#allocation11 + $0x8] sm:$0xf]  ;;  %v123_v25 = vld [vmem:[#allocation6] sm:$0xff] }
  0x4b   :  { %900 = vmatpush.bf16.msrb.mxu2 %v6499_v3  ;;  %9773 = vst [vmem:[#allocation30_spill] sm:$0xff] %v6548_v62  ;;  %v5571_v15 = vld [vmem:[#allocation11 + $0x14] sm:$0xf0]  ;;  %v6558_v16 = vor.u32 %v5568_v8, %v5052_v11  ;;  %v5569_v20 = vld [vmem:[#allocation11 + $0xc] sm:$0xf]  ;;  %v677_v29 = vpack.c.bf16 %v124_v28, %v123_v25  ;;  %s4867_s13 = sshll.u32 %s9559_s7, 4  ;;  %s4868_s13 = int_to_ptr.hbm [resolvable:$true] %s4867_s13 }
  0x4c   :  { %914 = vmatpush.bf16.msrb.mxu3 %v6503_v4  ;;  %9774 = vst [vmem:[#allocation31_spill] sm:$0xff] %v6551_v2  ;;  %v5060_v21 = vld [vmem:[#allocation11 + $0x18] sm:$0xf0]  ;;  %s6407_s7 = smov [#allocation14]   ;;  %s4854_s17 = sshll.u32 %s9558_s6, 4  ;;  %s4855_s17 = int_to_ptr.hbm [resolvable:$true] %s4854_s17 }
  0x4d   :  { %873 = vmatpush.bf16.msrb.mxu0 %v6508_v9  ;;  %9775 = vst [vmem:[#allocation32_spill] sm:$0xff] %v6556_v10  ;;  %v6565_v23 = vor.u32 %v5569_v20, %v5060_v21  ;;  %s4852_s14 = sshll.u32 %s6407_s7, 4  ;;  %s4853_s14 = int_to_ptr.vmem [resolvable:$true] %s4852_s14 }
  0x4e   :  { %887 = vmatpush.bf16.msrb.mxu1 %v6510_v13  ;;  %9776 = vst [vmem:[#allocation33_spill] sm:$0xff] %v6558_v16 }
  0x4f   :  { %901 = vmatpush.bf16.msrb.mxu2 %v6512_v14  ;;  %9778 = vst [vmem:[#allocation35_spill] sm:$0xff] %v6565_v23 }
  0x50   :  { %418 = vmatmul.bf16.gmra.mxu0 %v5529_v5  ;;  %915 = vmatpush.bf16.msrb.mxu3 %v6515_v17 }
  0x51   :  { %467 = vmatmul.bf16.gmra.mxu1 %v5529_v5  ;;  %874 = vmatpush.bf16.msrb.mxu0 %v6520_v22 }
  0x52   :  { %516 = vmatmul.bf16.gmra.mxu2 %v5529_v5  ;;  %888 = vmatpush.bf16.msrb.mxu1 %v6522_v26 }
  0x53   :  { %565 = vmatmul.bf16.gmra.mxu3 %v5529_v5  ;;  %902 = vmatpush.bf16.msrb.mxu2 %v6524_v27  ;;  %v5533_v5 = vld [vmem:[#allocation3 + $0x28] sm:$0xff] }
  0x54   :  { %916 = vmatpush.bf16.msrb.mxu3 %v6527_v30 }
  0x55   :  { %875 = vmatpush.bf16.msrb.mxu0 %v6532_v35 }
  0x56   :  { %889 = vmatpush.bf16.msrb.mxu1 %v6534_v40 }
  0x57   :  { %903 = vmatpush.bf16.msrb.mxu2 %v6536_v42 }
  0x58   :  { %917 = vmatpush.bf16.msrb.mxu3 %v6539_v45 }
  0x59   :  { %876 = vmatpush.bf16.msrb.mxu0 %v6544_v54 }
  0x5a   :  { %890 = vmatpush.bf16.msrb.mxu1 %v6546_v61 }
  0x5b   :  { %904 = vmatpush.bf16.msrb.mxu2 %v6548_v62 }
  0x5c   :  { %918 = vmatpush.bf16.msrb.mxu3 %v6551_v2 }
  0x5d   :  { %877 = vmatpush.bf16.msrb.mxu0 %v6556_v10 }
  0x5e   :  { %891 = vmatpush.bf16.msrb.mxu1 %v6558_v16 }
  0x60   :  { %423 = vmatmul.bf16.gmra.mxu0 %v5530_v18  ;;  %919 = vmatpush.bf16.msrb.mxu3 %v6565_v23 }
  0x61   :  { %472 = vmatmul.bf16.gmra.mxu1 %v5530_v18 }
  0x62   :  { %521 = vmatmul.bf16.gmra.mxu2 %v5530_v18 }
  0x63   :  { %570 = vmatmul.bf16.gmra.mxu3 %v5530_v18  ;;  %v6560_v18 = vor.u32 %v5571_v15, %v5058_v12 }
  0x65   :  { %9777 = vst [vmem:[#allocation34_spill] sm:$0xff] %v6560_v18  ;;  %905 = vmatpush.bf16.msrb.mxu2 %v6560_v18 }
  0x70   :  { %428 = vmatmul.bf16.gmra.mxu0 %v5531_v31 }
  0x71   :  { %477 = vmatmul.bf16.gmra.mxu1 %v5531_v31 }
  0x72   :  { %526 = vmatmul.bf16.gmra.mxu2 %v5531_v31 }
  0x73   :  { %575 = vmatmul.bf16.gmra.mxu3 %v5531_v31 }
  0x80   :  { %433 = vmatmul.bf16.gmra.mxu0 %v5532_v46 }
  0x81   :  { %482 = vmatmul.bf16.gmra.mxu1 %v5532_v46 }
  0x82   :  { %531 = vmatmul.bf16.gmra.mxu2 %v5532_v46 }
  0x83   :  { %580 = vmatmul.bf16.gmra.mxu3 %v5532_v46 }
  0x90   :  { %438 = vmatmul.bf16.gmra.mxu0 %v5533_v5 }
  0x91   :  { %487 = vmatmul.bf16.gmra.mxu1 %v5533_v5 }
  0x92   :  { %536 = vmatmul.bf16.gmra.mxu2 %v5533_v5 }
  0x93   :  { %585 = vmatmul.bf16.gmra.mxu3 %v5533_v5 }
  0xa0   :  { %443 = vmatmul.bf16.gmra.mxu0 %v5534_v19 }
  0xa1   :  { %492 = vmatmul.bf16.gmra.mxu1 %v5534_v19 }
  0xa2   :  { %541 = vmatmul.bf16.gmra.mxu2 %v5534_v19 }
  0xa3   :  { %590 = vmatmul.bf16.gmra.mxu3 %v5534_v19 }
  0xb0   :  { %448 = vmatmul.bf16.gmra.mxu0 %v5535_v24 }
  0xb1   :  { %497 = vmatmul.bf16.gmra.mxu1 %v5535_v24 }
  0xb2   :  { %546 = vmatmul.bf16.gmra.mxu2 %v5535_v24 }
  0xb3   :  { %595 = vmatmul.bf16.gmra.mxu3 %v5535_v24 }
  0xbd   :  { %v6568_v31 = vpop.f32.mrf.mxu0 }
  0xbe   :  { %v6570_v32 = vpop.f32.mrf.mxu1 }
  0xc0   :  { %878 = vmatmul.bf16.vlgmr.msrb.gmra.mxu0 %v677_v29 }
  0xc1   :  { %892 = vmatmul.bf16.vlgmr.msrb.gmra.mxu1 %v677_v29 }
  0xc2   :  { %906 = vmatmul.bf16.vlgmr.msrb.gmra.mxu2 %v677_v29 }
  0xc3   :  { %920 = vmatmul.bf16.vlgmr.msrb.gmra.mxu3 %v677_v29 }
  0xc5   :  { %v6572_v33 = vpop.f32.mrf.mxu2  ;;  %v6576_v36 = vpop.f32.mrf.mxu0 }
  0xc6   :  { %v6574_v34 = vpop.f32.mrf.mxu3  ;;  %v6578_v38 = vpop.f32.mrf.mxu1 }
  0xcd   :  { %v6580_v39 = vpop.f32.mrf.mxu2  ;;  %v6584_v44 = vpop.f32.mrf.mxu0 }
  0xce   :  { %v6582_v43 = vpop.f32.mrf.mxu3  ;;  %9779 = vst [vmem:[#allocation36_spill] sm:$0xff] %v6584_v44  ;;  %v6586_v46 = vpop.f32.mrf.mxu1  ;;  %v5258_v44 = vld [vmem:[#allocation11 + $0x198] sm:$0xf0] }
  0xcf   :  { %9780 = vst [vmem:[#allocation37_spill] sm:$0xff] %v6586_v46 }
  0xd5   :  { %v6588_v50 = vpop.f32.mrf.mxu2  ;;  %v6592_v53 = vpop.f32.mrf.mxu0 }
  0xd6   :  { %9781 = vst [vmem:[#allocation38_spill] sm:$0xff] %v6588_v50  ;;  %v6590_v51 = vpop.f32.mrf.mxu3  ;;  %v6594_v56 = vpop.f32.mrf.mxu1 }
  0xd7   :  { %9782 = vst [vmem:[#allocation39_spill] sm:$0xff] %v6590_v51  ;;  %v5290_v51 = vld [vmem:[#allocation11 + $0x1d8] sm:$0xf0] }
  0xd8   :  { %9783 = vst [vmem:[#allocation40_spill] sm:$0xff] %v6592_v53  ;;  %v5266_v53 = vld [vmem:[#allocation11 + $0x1b0] sm:$0xf0] }
  0xd9   :  { %9784 = vst [vmem:[#allocation41_spill] sm:$0xff] %v6594_v56  ;;  %v5620_v56 = vld [vmem:[#allocation11 + $0x1a4] sm:$0xf] }
  0xdd   :  { %v6596_v57 = vpop.f32.mrf.mxu2  ;;  %v6600_v63 = vpop.f32.mrf.mxu0 }
  0xde   :  { %9785 = vst [vmem:[#allocation42_spill] sm:$0xff] %v6596_v57  ;;  %v6598_v58 = vpop.f32.mrf.mxu3  ;;  %v6602_v1 = vpop.f32.mrf.mxu1  ;;  %v5264_v57 = vld [vmem:[#allocation11 + $0x1a0] sm:$0xf] }
  0xdf   :  { %9786 = vst [vmem:[#allocation43_spill] sm:$0xff] %v6598_v58 }
  0xe0   :  { %9787 = vst [vmem:[#allocation44_spill] sm:$0xff] %v6600_v63 }
  0xe1   :  { %9788 = vst [vmem:[#allocation45_spill] sm:$0xff] %v6602_v1  ;;  %v5627_v1 = vld [vmem:[#allocation11 + $0x1d4] sm:$0xf0] }
  0xe5   :  { %v6604_v5 = vpop.f32.mrf.mxu2  ;;  %v6608_v7 = vpop.f32.mrf.mxu0 }
  0xe6   :  { %9789 = vst [vmem:[#allocation46_spill] sm:$0xff] %v6604_v5  ;;  %v6606_v6 = vpop.f32.mrf.mxu3  ;;  %v6610_v8 = vpop.f32.mrf.mxu1 }
  0xe7   :  { %9790 = vst [vmem:[#allocation47_spill] sm:$0xff] %v6606_v6 }
  0xe8   :  { %9791 = vst [vmem:[#allocation48_spill] sm:$0xff] %v6608_v7  ;;  %v5304_v7 = vld [vmem:[#allocation11 + $0x1e8] sm:$0xf] }
  0xe9   :  { %9792 = vst [vmem:[#allocation49_spill] sm:$0xff] %v6610_v8  ;;  %v5628_v8 = vld [vmem:[#allocation11 + $0x1e4] sm:$0xf] }
  0xed   :  { %v6612_v11 = vpop.f32.mrf.mxu2  ;;  %v6616_v15 = vpop.f32.mrf.mxu0 }
  0xee   :  { %9793 = vst [vmem:[#allocation50_spill] sm:$0xff] %v6612_v11  ;;  %v6614_v12 = vpop.f32.mrf.mxu3  ;;  %v6618_v19 = vpop.f32.mrf.mxu1 }
  0xef   :  { %9794 = vst [vmem:[#allocation51_spill] sm:$0xff] %v6614_v12 }
  0xf0   :  { %9795 = vst [vmem:[#allocation52_spill] sm:$0xff] %v6616_v15 }
  0xf1   :  { %9796 = vst [vmem:[#allocation53_spill] sm:$0xff] %v6618_v19 }
  0xf5   :  { %v6620_v20 = vpop.f32.mrf.mxu2  ;;  %v6624_v24 = vpop.f32.mrf.mxu0 }
  0xf6   :  { %9797 = vst [vmem:[#allocation54_spill] sm:$0xff] %v6620_v20  ;;  %v6622_v21 = vpop.f32.mrf.mxu3  ;;  %v6626_v25 = vpop.f32.mrf.mxu1 }
  0xf7   :  { %9798 = vst [vmem:[#allocation55_spill] sm:$0xff] %v6622_v21  ;;  %v5296_v21 = vld [vmem:[#allocation11 + $0x1e0] sm:$0xf] }
  0xf8   :  { %9799 = vst [vmem:[#allocation56_spill] sm:$0xff] %v6624_v24  ;;  %v5630_v24 = vld [vmem:[#allocation11 + $0x1ec] sm:$0xf0] }
  0xf9   :  { %9800 = vst [vmem:[#allocation57_spill] sm:$0xff] %v6626_v25  ;;  %v6644_v25 = vor.u32 %v5630_v24, %v5296_v21  ;;  %v5626_v24 = vld [vmem:[#allocation11 + $0x1cc] sm:$0xf0] }
  0xfb   :  { %9809 = vst [vmem:[#allocation66_spill] sm:$0xff] %v6644_v25  ;;  %1263 = vmatpush.bf16.msra.mxu0 %v6644_v25 }
  0xfd   :  { %v6628_v28 = vpop.f32.mrf.mxu2  ;;  %v6632_v6 = vpop.f32.mrf.mxu0 }
  0xfe   :  { %9801 = vst [vmem:[#allocation58_spill] sm:$0xff] %v6628_v28  ;;  %v6630_v29 = vpop.f32.mrf.mxu3  ;;  %v6634_v11 = vpop.f32.mrf.mxu1  ;;  %v5298_v28 = vld [vmem:[#allocation11 + $0x1f0] sm:$0xf0] }
  0xff   :  { %9802 = vst [vmem:[#allocation59_spill] sm:$0xff] %v6630_v29  ;;  %v5631_v29 = vld [vmem:[#allocation11 + $0x1f4] sm:$0xf0]  ;;  %v6646_v5 = vor.u32 %v5628_v8, %v5298_v28  ;;  %v5624_v28 = vld [vmem:[#allocation11 + $0x1c4] sm:$0xf] }
 0x100   :  { %9803 = vst [vmem:[#allocation60_spill] sm:$0xff] %v6632_v6  ;;  %v6648_v6 = vor.u32 %v5631_v29, %v5304_v7  ;;  %v5280_v7 = vld [vmem:[#allocation11 + $0x1c0] sm:$0xf] }
 0x101   :  { %9804 = vst [vmem:[#allocation61_spill] sm:$0xff] %v6634_v11  ;;  %v5629_v11 = vld [vmem:[#allocation11 + $0x1ec] sm:$0xf]  ;;  %1277 = vmatpush.bf16.msra.mxu1 %v6646_v5 }
 0x102   :  { %9810 = vst [vmem:[#allocation67_spill] sm:$0xff] %v6646_v5  ;;  %1291 = vmatpush.bf16.msra.mxu2 %v6648_v6 }
 0x103   :  { %9811 = vst [vmem:[#allocation68_spill] sm:$0xff] %v6648_v6 }
 0x105   :  { %v6636_v12 = vpop.f32.mrf.mxu2  ;;  %v6640_v19 = vpop.f32.mrf.mxu0 }
 0x106   :  { %9805 = vst [vmem:[#allocation62_spill] sm:$0xff] %v6636_v12  ;;  %v6638_v15 = vpop.f32.mrf.mxu3  ;;  %v6642_v20 = vpop.f32.mrf.mxu1  ;;  %v5306_v12 = vld [vmem:[#allocation11 + $0x1f8] sm:$0xf0] }
 0x107   :  { %9806 = vst [vmem:[#allocation63_spill] sm:$0xff] %v6638_v15  ;;  %v6651_v15 = vor.u32 %v5629_v11, %v5306_v12  ;;  %v5282_v11 = vld [vmem:[#allocation11 + $0x1d0] sm:$0xf0]  ;;  %v5288_v12 = vld [vmem:[#allocation11 + $0x1c8] sm:$0xf] }
 0x108   :  { %9807 = vst [vmem:[#allocation64_spill] sm:$0xff] %v6640_v19  ;;  %v6664_v19 = vor.u32 %v5626_v24, %v5280_v7  ;;  %v6666_v63 = vor.u32 %v5624_v28, %v5282_v11  ;;  %v6668_v58 = vor.u32 %v5627_v1, %v5288_v12  ;;  %v6677_v24 = vor.u32 %v5620_v56, %v5266_v53  ;;  %v5272_v1 = vld [vmem:[#allocation11 + $0x1a8] sm:$0xf]  ;;  %v5623_v28 = vld [vmem:[#allocation11 + $0x1b4] sm:$0xf0] }
 0x109   :  { %9808 = vst [vmem:[#allocation65_spill] sm:$0xff] %v6642_v20  ;;  %1305 = vmatpush.bf16.msra.mxu3 %v6651_v15  ;;  %v5621_v11 = vld [vmem:[#allocation11 + $0x1ac] sm:$0xf]  ;;  %v6680_v12 = vor.u32 %v5623_v28, %v5272_v1  ;;  %v5248_v53 = vld [vmem:[#allocation11 + $0x180] sm:$0xf] }
 0x10a   :  { %9812 = vst [vmem:[#allocation69_spill] sm:$0xff] %v6651_v15  ;;  %1264 = vmatpush.bf16.msra.mxu0 %v6664_v19  ;;  %1278 = vmatpush.bf16.msra.mxu1 %v6666_v63  ;;  %v5618_v56 = vld [vmem:[#allocation11 + $0x18c] sm:$0xf0]  ;;  %v5370_v15 = vld [vmem:[#allocation9 + $0x178] sm:$0xf0] }
 0x10b   :  { %9817 = vst [vmem:[#allocation74_spill] sm:$0xff] %v6664_v19  ;;  %1292 = vmatpush.bf16.msra.mxu2 %v6668_v58  ;;  %v6696_v28 = vor.u32 %v5618_v56, %v5248_v53  ;;  %v5645_v19 = vld [vmem:[#allocation9 + $0x16c] sm:$0xf] }
 0x10c   :  { %9818 = vst [vmem:[#allocation75_spill] sm:$0xff] %v6666_v63  ;;  %v5647_v63 = vld [vmem:[#allocation9 + $0x174] sm:$0xf0] }
 0x10d   :  { %v6655_v20 = vpop.f32.mrf.mxu2  ;;  %v6660_v8 = vpop.f32.mrf.mxu0  ;;  %9819 = vst [vmem:[#allocation76_spill] sm:$0xff] %v6668_v58 }
 0x10e   :  { %9813 = vst [vmem:[#allocation70_spill] sm:$0xff] %v6655_v20  ;;  %v6658_v21 = vpop.f32.mrf.mxu3  ;;  %v6662_v29 = vpop.f32.mrf.mxu1  ;;  %v5625_v20 = vld [vmem:[#allocation11 + $0x1cc] sm:$0xf]  ;;  %1279 = vmatpush.bf16.msra.mxu1 %v6677_v24 }
 0x10f   :  { %9814 = vst [vmem:[#allocation71_spill] sm:$0xff] %v6658_v21  ;;  %v5622_v21 = vld [vmem:[#allocation11 + $0x1ac] sm:$0xf0]  ;;  %1293 = vmatpush.bf16.msra.mxu2 %v6680_v12 }
 0x110   :  { %9815 = vst [vmem:[#allocation72_spill] sm:$0xff] %v6660_v8  ;;  %v6671_v8 = vor.u32 %v5625_v20, %v5290_v51  ;;  %v6675_v7 = vor.u32 %v5622_v21, %v5264_v57  ;;  %v5274_v51 = vld [vmem:[#allocation11 + $0x1b8] sm:$0xf0]  ;;  %v5616_v21 = vld [vmem:[#allocation11 + $0x184] sm:$0xf] }
 0x111   :  { %9816 = vst [vmem:[#allocation73_spill] sm:$0xff] %v6662_v29  ;;  %v6682_v20 = vor.u32 %v5621_v11, %v5274_v51  ;;  %v5250_v11 = vld [vmem:[#allocation11 + $0x190] sm:$0xf0]  ;;  %v5256_v51 = vld [vmem:[#allocation11 + $0x188] sm:$0xf] }
 0x112   :  { %9820 = vst [vmem:[#allocation77_spill] sm:$0xff] %v6671_v8  ;;  %1306 = vmatpush.bf16.msra.mxu3 %v6671_v8  ;;  %1265 = vmatpush.bf16.msra.mxu0 %v6675_v7  ;;  %v6698_v46 = vor.u32 %v5616_v21, %v5250_v11  ;;  %v5234_v8 = vld [vmem:[#allocation11 + $0x170] sm:$0xf0]  ;;  %v5615_v21 = vld [vmem:[#allocation11 + $0x174] sm:$0xf0] }
 0x113   :  { %9821 = vst [vmem:[#allocation78_spill] sm:$0xff] %v6675_v7  ;;  %v5614_v7 = vld [vmem:[#allocation11 + $0x16c] sm:$0xf0]  ;;  %v5613_v11 = vld [vmem:[#allocation11 + $0x16c] sm:$0xf] }
 0x114   :  { %9822 = vst [vmem:[#allocation79_spill] sm:$0xff] %v6677_v24  ;;  %v5232_v24 = vld [vmem:[#allocation11 + $0x160] sm:$0xf]  ;;  %1280 = vmatpush.bf16.msra.mxu1 %v6698_v46 }
 0x115   :  { %9823 = vst [vmem:[#allocation80_spill] sm:$0xff] %v6680_v12  ;;  %v6684_v29 = vpop.f32.mrf.mxu2  ;;  %v6689_v57 = vpop.f32.mrf.mxu0  ;;  %v6707_v53 = vor.u32 %v5614_v7, %v5232_v24  ;;  %v5610_v24 = vld [vmem:[#allocation11 + $0x14c] sm:$0xf0] }
 0x116   :  { %9824 = vst [vmem:[#allocation81_spill] sm:$0xff] %v6682_v20  ;;  %v6687_v50 = vpop.f32.mrf.mxu3  ;;  %v6693_v1 = vpop.f32.mrf.mxu1  ;;  %1307 = vmatpush.bf16.msra.mxu3 %v6682_v20  ;;  %1266 = vmatpush.bf16.msra.mxu0 %v6696_v28 }
 0x117   :  { %9825 = vst [vmem:[#allocation82_spill] sm:$0xff] %v6684_v29  ;;  %v5619_v29 = vld [vmem:[#allocation11 + $0x194] sm:$0xf0] }
 0x118   :  { %9826 = vst [vmem:[#allocation83_spill] sm:$0xff] %v6687_v50  ;;  %v6700_v50 = vor.u32 %v5619_v29, %v5256_v51  ;;  %v5240_v29 = vld [vmem:[#allocation11 + $0x168] sm:$0xf] }
 0x119   :  { %9827 = vst [vmem:[#allocation84_spill] sm:$0xff] %v6689_v57  ;;  %v5617_v57 = vld [vmem:[#allocation11 + $0x18c] sm:$0xf]  ;;  %v6712_v51 = vor.u32 %v5615_v21, %v5240_v29 }
 0x11a   :  { %9828 = vst [vmem:[#allocation85_spill] sm:$0xff] %v6693_v1  ;;  %v6703_v12 = vor.u32 %v5617_v57, %v5258_v44  ;;  %v5612_v1 = vld [vmem:[#allocation11 + $0x164] sm:$0xf]  ;;  %1294 = vmatpush.bf16.msra.mxu2 %v6700_v50  ;;  %v5242_v44 = vld [vmem:[#allocation11 + $0x178] sm:$0xf0]  ;;  %1267 = vmatpush.bf16.msra.mxu0 %v6707_v53 }
 0x11b   :  { %9829 = vst [vmem:[#allocation86_spill] sm:$0xff] %v6696_v28  ;;  %v6709_v56 = vor.u32 %v5612_v1, %v5234_v8  ;;  %v6714_v57 = vor.u32 %v5613_v11, %v5242_v44  ;;  %v5216_v8 = vld [vmem:[#allocation11 + $0x140] sm:$0xf]  ;;  %v5608_v1 = vld [vmem:[#allocation11 + $0x144] sm:$0xf] }
 0x11c   :  { %9830 = vst [vmem:[#allocation87_spill] sm:$0xff] %v6698_v46  ;;  %1308 = vmatpush.bf16.msra.mxu3 %v6703_v12  ;;  %v6728_v21 = vor.u32 %v5610_v24, %v5216_v8  ;;  %v5218_v11 = vld [vmem:[#allocation11 + $0x150] sm:$0xf0]  ;;  %v5224_v44 = vld [vmem:[#allocation11 + $0x148] sm:$0xf] }
 0x11d   :  { %9831 = vst [vmem:[#allocation88_spill] sm:$0xff] %v6700_v50  ;;  %v6716_v28 = vpop.f32.mrf.mxu2  ;;  %v6721_v7 = vpop.f32.mrf.mxu0  ;;  %1281 = vmatpush.bf16.msra.mxu1 %v6709_v56  ;;  %v5606_v8 = vld [vmem:[#allocation11 + $0x12c] sm:$0xf0]  ;;  %v5604_v24 = vld [vmem:[#allocation11 + $0x124] sm:$0xf] }
 0x11e   :  { %9832 = vst [vmem:[#allocation89_spill] sm:$0xff] %v6703_v12  ;;  %v6719_v46 = vpop.f32.mrf.mxu3  ;;  %1295 = vmatpush.bf16.msra.mxu2 %v6712_v51  ;;  %v6725_v29 = vpop.f32.mrf.mxu1  ;;  %1268 = vmatpush.bf16.msra.mxu0 %v6728_v21  ;;  %v5426_v50 = vld [vmem:[#allocation9 + $0x1f0] sm:$0xf0] }
 0x11f   :  { %9833 = vst [vmem:[#allocation90_spill] sm:$0xff] %v6707_v53  ;;  %v6730_v53 = vor.u32 %v5608_v1, %v5218_v11  ;;  %v5202_v1 = vld [vmem:[#allocation11 + $0x130] sm:$0xf0]  ;;  %v5607_v11 = vld [vmem:[#allocation11 + $0x134] sm:$0xf0] }
 0x120   :  { %9834 = vst [vmem:[#allocation91_spill] sm:$0xff] %v6709_v56  ;;  %1309 = vmatpush.bf16.msra.mxu3 %v6714_v57  ;;  %v5226_v56 = vld [vmem:[#allocation11 + $0x158] sm:$0xf0] }
 0x121   :  { %9835 = vst [vmem:[#allocation92_spill] sm:$0xff] %v6712_v51  ;;  %1282 = vmatpush.bf16.msra.mxu1 %v6730_v53 }
 0x122   :  { %9836 = vst [vmem:[#allocation93_spill] sm:$0xff] %v6714_v57 }
 0x123   :  { %9837 = vst [vmem:[#allocation94_spill] sm:$0xff] %v6716_v28  ;;  %v5611_v28 = vld [vmem:[#allocation11 + $0x154] sm:$0xf0] }
 0x124   :  { %9838 = vst [vmem:[#allocation95_spill] sm:$0xff] %v6719_v46  ;;  %v6732_v46 = vor.u32 %v5611_v28, %v5224_v44  ;;  %v5208_v28 = vld [vmem:[#allocation11 + $0x128] sm:$0xf]  ;;  %v6742_v44 = vor.u32 %v5604_v24, %v5202_v1  ;;  %v5602_v24 = vld [vmem:[#allocation11 + $0x10c] sm:$0xf0] }
 0x125   :  { %9839 = vst [vmem:[#allocation96_spill] sm:$0xff] %v6721_v7  ;;  %v5609_v7 = vld [vmem:[#allocation11 + $0x14c] sm:$0xf]  ;;  %v6744_v12 = vor.u32 %v5607_v11, %v5208_v28  ;;  %v5600_v1 = vld [vmem:[#allocation11 + $0x104] sm:$0xf] }
 0x126   :  { %9840 = vst [vmem:[#allocation97_spill] sm:$0xff] %v6725_v29  ;;  %v6735_v51 = vor.u32 %v5609_v7, %v5226_v56  ;;  %1296 = vmatpush.bf16.msra.mxu2 %v6732_v46  ;;  %v5200_v29 = vld [vmem:[#allocation11 + $0x120] sm:$0xf]  ;;  %v5605_v56 = vld [vmem:[#allocation11 + $0x12c] sm:$0xf]  ;;  %1283 = vmatpush.bf16.msra.mxu1 %v6742_v44 }
 0x127   :  { %9841 = vst [vmem:[#allocation98_spill] sm:$0xff] %v6728_v21  ;;  %v6740_v57 = vor.u32 %v5606_v8, %v5200_v29  ;;  %v5210_v7 = vld [vmem:[#allocation11 + $0x138] sm:$0xf0]  ;;  %v6746_v21 = vpop.f32.mrf.mxu2  ;;  %v6757_v29 = vpop.f32.mrf.mxu1  ;;  %v5184_v8 = vld [vmem:[#allocation11 + $0x100] sm:$0xf] }
 0x128   :  { %9842 = vst [vmem:[#allocation99_spill] sm:$0xff] %v6730_v53  ;;  %1310 = vmatpush.bf16.msra.mxu3 %v6735_v51  ;;  %v6751_v53 = vpop.f32.mrf.mxu3  ;;  %v6760_v28 = vor.u32 %v5602_v24, %v5184_v8  ;;  %v5186_v11 = vld [vmem:[#allocation11 + $0x110] sm:$0xf0] }
 0x129   :  { %9843 = vst [vmem:[#allocation100_spill] sm:$0xff] %v6732_v46  ;;  %1269 = vmatpush.bf16.msra.mxu0 %v6740_v57  ;;  %v6749_v46 = vor.u32 %v5605_v56, %v5210_v7  ;;  %v5192_v56 = vld [vmem:[#allocation11 + $0x108] sm:$0xf]  ;;  %v5603_v7 = vld [vmem:[#allocation11 + $0x114] sm:$0xf0] }
 0x12a   :  { %9844 = vst [vmem:[#allocation101_spill] sm:$0xff] %v6735_v51  ;;  %v6753_v51 = vpop.f32.mrf.mxu0  ;;  %1297 = vmatpush.bf16.msra.mxu2 %v6744_v12 }
 0x12b   :  { %9845 = vst [vmem:[#allocation102_spill] sm:$0xff] %v6740_v57  ;;  %v5424_v57 = vld [vmem:[#allocation9 + $0x1e0] sm:$0xf] }
 0x12c   :  { %9846 = vst [vmem:[#allocation103_spill] sm:$0xff] %v6742_v44  ;;  %1311 = vmatpush.bf16.msra.mxu3 %v6749_v46  ;;  %v5194_v44 = vld [vmem:[#allocation11 + $0x118] sm:$0xf0] }
 0x12d   :  { %9847 = vst [vmem:[#allocation104_spill] sm:$0xff] %v6744_v12  ;;  %1270 = vmatpush.bf16.msra.mxu0 %v6760_v28  ;;  %v5660_v12 = vld [vmem:[#allocation9 + $0x1e4] sm:$0xf] }
 0x12e   :  { %9848 = vst [vmem:[#allocation105_spill] sm:$0xff] %v6746_v21  ;;  %v6762_v21 = vor.u32 %v5600_v1, %v5186_v11  ;;  %v6773_v24 = vor.u32 %v5660_v12, %v5426_v50  ;;  %v5432_v1 = vld [vmem:[#allocation9 + $0x1e8] sm:$0xf]  ;;  %v5663_v11 = vld [vmem:[#allocation9 + $0x1f4] sm:$0xf0] }
 0x12f   :  { %9849 = vst [vmem:[#allocation106_spill] sm:$0xff] %v6749_v46  ;;  %v5662_v46 = vld [vmem:[#allocation9 + $0x1ec] sm:$0xf0]  ;;  %v6788_v50 = vpop.f32.mrf.mxu1  ;;  %v5408_v12 = vld [vmem:[#allocation9 + $0x1c0] sm:$0xf] }
 0x130   :  { %9850 = vst [vmem:[#allocation107_spill] sm:$0xff] %v6751_v53  ;;  %v6764_v53 = vor.u32 %v5603_v7, %v5192_v56  ;;  %1284 = vmatpush.bf16.msra.mxu1 %v6762_v21  ;;  %v6771_v8 = vor.u32 %v5662_v46, %v5424_v57  ;;  %v5661_v56 = vld [vmem:[#allocation9 + $0x1ec] sm:$0xf]  ;;  %v6775_v7 = vpop.f32.mrf.mxu2  ;;  %v5658_v57 = vld [vmem:[#allocation9 + $0x1cc] sm:$0xf0] }
 0x131   :  { %9851 = vst [vmem:[#allocation108_spill] sm:$0xff] %v6753_v51  ;;  %v5601_v51 = vld [vmem:[#allocation11 + $0x10c] sm:$0xf] }
 0x132   :  { %9852 = vst [vmem:[#allocation109_spill] sm:$0xff] %v6757_v29  ;;  %v6767_v29 = vor.u32 %v5601_v51, %v5194_v44  ;;  %1298 = vmatpush.bf16.msra.mxu2 %v6764_v53  ;;  %v6778_v51 = vor.u32 %v5663_v11, %v5432_v1  ;;  %v5434_v44 = vld [vmem:[#allocation9 + $0x1f8] sm:$0xf0]  ;;  %v6782_v20 = vpop.f32.mrf.mxu0  ;;  %1512 = vmatpush.bf16.msrb.mxu0 %v6771_v8  ;;  %v5656_v1 = vld [vmem:[#allocation9 + $0x1c4] sm:$0xf] }
 0x133   :  { %9853 = vst [vmem:[#allocation110_spill] sm:$0xff] %v6760_v28  ;;  %v6780_v28 = vpop.f32.mrf.mxu3  ;;  %v6786_v46 = vor.u32 %v5661_v56, %v5434_v44  ;;  %v6792_v11 = vor.u32 %v5658_v57, %v5408_v12  ;;  %v5657_v56 = vld [vmem:[#allocation9 + $0x1cc] sm:$0xf]  ;;  %v5418_v44 = vld [vmem:[#allocation9 + $0x1d8] sm:$0xf0] }
 0x134   :  { %9854 = vst [vmem:[#allocation111_spill] sm:$0xff] %v6762_v21  ;;  %1312 = vmatpush.bf16.msra.mxu3 %v6767_v29  ;;  %1526 = vmatpush.bf16.msrb.mxu1 %v6773_v24  ;;  %v5654_v12 = vld [vmem:[#allocation9 + $0x1ac] sm:$0xf0] }
 0x135   :  { %9855 = vst [vmem:[#allocation112_spill] sm:$0xff] %v6764_v53 }
 0x136   :  { %9856 = vst [vmem:[#allocation113_spill] sm:$0xff] %v6767_v29  ;;  %1540 = vmatpush.bf16.msrb.mxu2 %v6778_v51  ;;  %1513 = vmatpush.bf16.msrb.mxu0 %v6792_v11 }
 0x137   :  { %9857 = vst [vmem:[#allocation114_spill] sm:$0xff] %v6771_v8 }
 0x138   :  { %9858 = vst [vmem:[#allocation115_spill] sm:$0xff] %v6773_v24  ;;  %1554 = vmatpush.bf16.msrb.mxu3 %v6786_v46  ;;  %v6798_v24 = vld [vmem:[#allocation12] ss:$2 sm:$0xf] }
 0x139   :  { %9859 = vst [vmem:[#allocation116_spill] sm:$0xff] %v6775_v7  ;;  %v5416_v7 = vld [vmem:[#allocation9 + $0x1c8] sm:$0xf]  ;;  %v6821_v53 = vperm.slane %v6798_v24, 0 }
 0x13a   :  { %9860 = vst [vmem:[#allocation117_spill] sm:$0xff] %v6778_v51  ;;  %v6805_v51 = vpop.f32.mrf.mxu0 }
 0x13b   :  { %9861 = vst [vmem:[#allocation118_spill] sm:$0xff] %v6780_v28  ;;  %v5410_v28 = vld [vmem:[#allocation9 + $0x1d0] sm:$0xf0] }
 0x13c   :  { %9862 = vst [vmem:[#allocation119_spill] sm:$0xff] %v6782_v20  ;;  %v5659_v20 = vld [vmem:[#allocation9 + $0x1d4] sm:$0xf0]  ;;  %v6794_v29 = vor.u32 %v5656_v1, %v5410_v28  ;;  %v5392_v28 = vld [vmem:[#allocation9 + $0x1a0] sm:$0xf] }
 0x13d   :  { %9863 = vst [vmem:[#allocation120_spill] sm:$0xff] %v6786_v46  ;;  %v6796_v8 = vor.u32 %v5659_v20, %v5416_v7  ;;  %v6803_v46 = vor.u32 %v5657_v56, %v5418_v44  ;;  %v5652_v20 = vld [vmem:[#allocation9 + $0x1a4] sm:$0xf]  ;;  %v6809_v7 = vpop.f32.mrf.mxu1  ;;  %v6812_v57 = vor.u32 %v5654_v12, %v5392_v28  ;;  %v5394_v1 = vld [vmem:[#allocation9 + $0x1b0] sm:$0xf0]  ;;  %v6814_v56 = vpop.f32.mrf.mxu3 }
 0x13e   :  { %9864 = vst [vmem:[#allocation121_spill] sm:$0xff] %v6788_v50  ;;  %v6800_v50 = vpop.f32.mrf.mxu2  ;;  %1527 = vmatpush.bf16.msrb.mxu1 %v6794_v29  ;;  %v6816_v44 = vor.u32 %v5652_v20, %v5394_v1  ;;  %v5376_v12 = vld [vmem:[#allocation9 + $0x180] sm:$0xf]  ;;  %v5650_v20 = vld [vmem:[#allocation9 + $0x18c] sm:$0xf0] }
 0x13f   :  { %9865 = vst [vmem:[#allocation122_spill] sm:$0xff] %v6792_v11  ;;  %1541 = vmatpush.bf16.msrb.mxu2 %v6796_v8  ;;  %1555 = vmatpush.bf16.msrb.mxu3 %v6803_v46  ;;  %v5655_v11 = vld [vmem:[#allocation9 + $0x1b4] sm:$0xf0]  ;;  %v5378_v1 = vld [vmem:[#allocation9 + $0x190] sm:$0xf0] }
 0x140   :  { %9866 = vst [vmem:[#allocation123_spill] sm:$0xff] %v6794_v29  ;;  %v5653_v29 = vld [vmem:[#allocation9 + $0x1ac] sm:$0xf]  ;;  %1514 = vmatpush.bf16.msrb.mxu0 %v6812_v57 }
 0x141   :  { %9867 = vst [vmem:[#allocation124_spill] sm:$0xff] %v6796_v8  ;;  %v5402_v8 = vld [vmem:[#allocation9 + $0x1b8] sm:$0xf0] }
 0x142   :  { %9868 = vst [vmem:[#allocation125_spill] sm:$0xff] %v6800_v50  ;;  %v5400_v50 = vld [vmem:[#allocation9 + $0x1a8] sm:$0xf]  ;;  %v6827_v28 = vor.u32 %v5653_v29, %v5402_v8  ;;  %1528 = vmatpush.bf16.msrb.mxu1 %v6816_v44  ;;  %v5649_v29 = vld [vmem:[#allocation9 + $0x18c] sm:$0xf] }
 0x143   :  { %9869 = vst [vmem:[#allocation126_spill] sm:$0xff] %v6803_v46  ;;  %v5651_v46 = vld [vmem:[#allocation9 + $0x194] sm:$0xf0]  ;;  %v5386_v8 = vld [vmem:[#allocation9 + $0x198] sm:$0xf0] }
 0x144   :  { %9870 = vst [vmem:[#allocation127_spill] sm:$0xff] %v6805_v51  ;;  %v6818_v51 = vor.u32 %v5655_v11, %v5400_v50  ;;  %v5648_v50 = vld [vmem:[#allocation9 + $0x184] sm:$0xf]  ;;  %1556 = vmatpush.bf16.msrb.mxu3 %v6827_v28  ;;  %v6832_v11 = vor.u32 %v5650_v20, %v5376_v12  ;;  %v6848_v20 = vperm.slane %v6798_v24, 2 }
 0x145   :  { %9871 = vst [vmem:[#allocation128_spill] sm:$0xff] %v6809_v7  ;;  %v6824_v7 = vperm.slane %v6798_v24, 1  ;;  %v6834_v21 = vor.u32 %v5648_v50, %v5378_v1  ;;  %v879_v50 = vpop.f32.mrf.mxu0  ;;  %v893_v1 = vpop.f32.mrf.mxu1 }
 0x146   :  { %9872 = vst [vmem:[#allocation129_spill] sm:$0xff] %v6812_v57  ;;  %1542 = vmatpush.bf16.msrb.mxu2 %v6818_v51  ;;  %1515 = vmatpush.bf16.msrb.mxu0 %v6832_v11  ;;  %v6843_v57 = vor.u32 %v5649_v29, %v5386_v8  ;;  %v5644_v29 = vld [vmem:[#allocation9 + $0x164] sm:$0xf]  ;;  %v5362_v8 = vld [vmem:[#allocation9 + $0x170] sm:$0xf0] }
 0x147   :  { %9873 = vst [vmem:[#allocation130_spill] sm:$0xff] %v6814_v56  ;;  %v5384_v56 = vld [vmem:[#allocation9 + $0x188] sm:$0xf]  ;;  %v464_v12 = vadd.f32 %v6570_v32, %v6824_v7  ;;  %1529 = vmatpush.bf16.msrb.mxu1 %v6834_v21 }
 0x148   :  { %9874 = vst [vmem:[#allocation131_spill] sm:$0xff] %v6816_v44  ;;  %v6836_v58 = vor.u32 %v5651_v46, %v5384_v56  ;;  %v415_v44 = vadd.f32 %v6568_v31, %v6821_v53  ;;  %v5360_v46 = vld [vmem:[#allocation9 + $0x160] sm:$0xf]  ;;  %v5646_v56 = vld [vmem:[#allocation9 + $0x16c] sm:$0xf0]  ;;  %1557 = vmatpush.bf16.msrb.mxu3 %v6843_v57 }
 0x149   :  { %9875 = vst [vmem:[#allocation132_spill] sm:$0xff] %v6818_v51  ;;  %v6840_v51 = vpop.f32.mrf.mxu2  ;;  %v935_v32 = vadd.f32 %v893_v1, %v464_v12  ;;  %v5344_v12 = vld [vmem:[#allocation9 + $0x140] sm:$0xf]  ;;  %v5642_v1 = vld [vmem:[#allocation9 + $0x14c] sm:$0xf0] }
 0x14a   :  { %9876 = vst [vmem:[#allocation133_spill] sm:$0xff] %v6821_v53  ;;  %1543 = vmatpush.bf16.msrb.mxu2 %v6836_v58  ;;  %v934_v31 = vadd.f32 %v879_v50, %v415_v44  ;;  %v6860_v44 = vor.u32 %v5645_v19, %v5370_v15  ;;  %v6862_v50 = vpop.f32.mrf.mxu3  ;;  %v513_v15 = vadd.f32 %v6572_v33, %v6848_v20 }
 0x14b   :  { %9877 = vst [vmem:[#allocation134_spill] sm:$0xff] %v6824_v7  ;;  %v6869_v19 = vor.u32 %v5642_v1, %v5344_v12  ;;  %v466_v33 = vadd.f32 %v6578_v38, %v6824_v7  ;;  %v5639_v38 = vld [vmem:[#allocation9 + $0x134] sm:$0xf0] }
 0x14c   :  { %9878 = vst [vmem:[#allocation135_spill] sm:$0xff] %v6827_v28  ;;  %v6855_v28 = vor.u32 %v5644_v29, %v5362_v8  ;;  %1558 = vmatpush.bf16.msrb.mxu3 %v6860_v44  ;;  %v5640_v29 = vld [vmem:[#allocation9 + $0x144] sm:$0xf]  ;;  %v5352_v8 = vld [vmem:[#allocation9 + $0x148] sm:$0xf] }
 0x14d   :  { %9879 = vst [vmem:[#allocation136_spill] sm:$0xff] %v6832_v11  ;;  %v5368_v11 = vld [vmem:[#allocation9 + $0x168] sm:$0xf]  ;;  %v881_v12 = vpop.f32.mrf.mxu0 }
 0x14e   :  { %9880 = vst [vmem:[#allocation137_spill] sm:$0xff] %v6834_v21  ;;  %v5176_v21 = vmul.f32 -1.442695, %v934_v31  ;;  %1530 = vmatpush.bf16.msrb.mxu1 %v6855_v28 }
 0x14f   :  { %9881 = vst [vmem:[#allocation138_spill] sm:$0xff] %v6836_v58  ;;  %v6858_v58 = vor.u32 %v5647_v63, %v5368_v11  ;;  %v5346_v63 = vld [vmem:[#allocation9 + $0x150] sm:$0xf0] }
 0x150   :  { %9882 = vst [vmem:[#allocation139_spill] sm:$0xff] %v6840_v51  ;;  %v6853_v51 = vor.u32 %v5646_v56, %v5360_v46  ;;  %v5177_v46 = vmul.f32 -1.442695, %v935_v32  ;;  %v125_v56 = vld [vmem:[#allocation6 + $0x10] sm:$0xff]  ;;  %5678 = vpow2.f32 %v5176_v21  ;;  %v6871_v11 = vor.u32 %v5640_v29, %v5346_v63  ;;  %v5643_v32 = vld [vmem:[#allocation9 + $0x154] sm:$0xf0] }
 0x151   :  { %9883 = vst [vmem:[#allocation140_spill] sm:$0xff] %v6843_v57  ;;  %v126_v57 = vld [vmem:[#allocation6 + $0x18] sm:$0xff]  ;;  %1544 = vmatpush.bf16.msrb.mxu2 %v6858_v58  ;;  %v417_v21 = vadd.f32 %v6576_v36, %v6821_v53  ;;  %v5328_v29 = vld [vmem:[#allocation9 + $0x120] sm:$0xf]  ;;  %v5638_v63 = vld [vmem:[#allocation9 + $0x12c] sm:$0xf0] }
 0x152   :  { %9884 = vst [vmem:[#allocation141_spill] sm:$0xff] %v6848_v20  ;;  %1516 = vmatpush.bf16.msrb.mxu0 %v6853_v51  ;;  %v1069_v31 = vpack.c.bf16 %v126_v57, %v125_v56  ;;  %5680 = vpow2.f32 %v5177_v46  ;;  %v6875_v57 = vor.u32 %v5643_v32, %v5352_v8  ;;  %v5354_v56 = vld [vmem:[#allocation9 + $0x158] sm:$0xf0]  ;;  %1531 = vmatpush.bf16.msrb.mxu1 %v6871_v11  ;;  %v5636_v36 = vld [vmem:[#allocation9 + $0x124] sm:$0xf] }
 0x153   :  { %9885 = vst [vmem:[#allocation142_spill] sm:$0xff] %v6853_v51  ;;  %v938_v53 = vadd.f32 %v881_v12, %v417_v21  ;;  %v6884_v8 = vor.u32 %v5638_v63, %v5328_v29  ;;  %v5330_v32 = vld [vmem:[#allocation9 + $0x130] sm:$0xf0]  ;;  %v6892_v12 = vperm.slane %v6798_v24, 3  ;;  %v5338_v63 = vld [vmem:[#allocation9 + $0x138] sm:$0xf0]  ;;  %v921_v24 = vpop.f32.mrf.mxu3 }
 0x154   :  { %9886 = vst [vmem:[#allocation143_spill] sm:$0xff] %v6855_v28  ;;  %1271 = vmatmul.bf16.vlgmr.msra.gmra.mxu0 %v1069_v31  ;;  %1285 = vmatmul.bf16.vlgmr.msra.gmra.mxu1 %v1069_v31  ;;  %v5336_v28 = vld [vmem:[#allocation9 + $0x128] sm:$0xf]  ;;  %v6887_v7 = vor.u32 %v5636_v36, %v5330_v32  ;;  %v5632_v32 = vld [vmem:[#allocation9 + $0x104] sm:$0xf] }
 0x155   :  { %9887 = vst [vmem:[#allocation144_spill] sm:$0xff] %v6858_v58  ;;  %v907_v58 = vpop.f32.mrf.mxu2  ;;  %1545 = vmatpush.bf16.msrb.mxu2 %v6875_v57  ;;  %1313 = vmatmul.bf16.vlgmr.msra.gmra.mxu3 %v1069_v31  ;;  %v5179_v29 = vmul.f32 -1.442695, %v938_v53  ;;  %v515_v53 = vadd.f32 %v6580_v39, %v6848_v20  ;;  %v562_v36 = vadd.f32 %v6574_v34, %v6892_v12  ;;  %v5633_v39 = vld [vmem:[#allocation9 + $0x10c] sm:$0xf] }
 0x156   :  { %9888 = vst [vmem:[#allocation145_spill] sm:$0xff] %v6860_v44  ;;  %v936_v46 = vadd.f32 %v907_v58, %v513_v15  ;;  %1517 = vmatpush.bf16.msrb.mxu0 %v6869_v19  ;;  %v895_v44 = vpop.f32.mrf.mxu1  ;;  %1299 = vmatmul.bf16.vlgmr.msra.gmra.mxu2 %v1069_v31  ;;  %v5679_v21 = vpop.eup %5678  ;;  %v5312_v31 = vld [vmem:[#allocation9 + $0x100] sm:$0xf] }
 0x157   :  { %9889 = vst [vmem:[#allocation146_spill] sm:$0xff] %v6862_v50  ;;  %v5641_v50 = vld [vmem:[#allocation9 + $0x14c] sm:$0xf]  ;;  %v939_v15 = vadd.f32 %v895_v44, %v466_v33  ;;  %1532 = vmatpush.bf16.msrb.mxu1 %v6887_v7  ;;  %v5634_v33 = vld [vmem:[#allocation9 + $0x10c] sm:$0xf0] }
 0x158   :  { %9890 = vst [vmem:[#allocation147_spill] sm:$0xff] %v6869_v19  ;;  %v6881_v1 = vor.u32 %v5641_v50, %v5354_v56  ;;  %v5178_v58 = vmul.f32 -1.442695, %v936_v46  ;;  %v6889_v50 = vor.u32 %v5639_v38, %v5336_v28  ;;  %v5637_v56 = vld [vmem:[#allocation9 + $0x12c] sm:$0xf] }
 0x159   :  { %9891 = vst [vmem:[#allocation148_spill] sm:$0xff] %v6871_v11  ;;  %v6894_v11 = vadd.f32 1.0, %v5679_v21  ;;  %v5180_v46 = vmul.f32 -1.442695, %v939_v15  ;;  %v6898_v44 = vor.u32 %v5637_v56, %v5338_v63  ;;  %v5314_v38 = vld [vmem:[#allocation9 + $0x110] sm:$0xf0]  ;;  %v937_v21 = vadd.f32 %v921_v24, %v562_v36 }
 0x15a   :  { %9892 = vst [vmem:[#allocation149_spill] sm:$0xff] %v6875_v57  ;;  %1559 = vmatpush.bf16.msrb.mxu3 %v6881_v1  ;;  %v5681_v57 = vpop.eup %5680  ;;  %5682 = vpow2.f32 %v5178_v58  ;;  %1518 = vmatpush.bf16.msrb.mxu0 %v6884_v8  ;;  %v5320_v58 = vld [vmem:[#allocation9 + $0x108] sm:$0xf]  ;;  %v5635_v56 = vld [vmem:[#allocation9 + $0x114] sm:$0xf0] }
 0x15b   :  { %9893 = vst [vmem:[#allocation150_spill] sm:$0xff] %v6881_v1  ;;  %v6900_v28 = vadd.f32 1.0, %v5681_v57  ;;  %5684 = vpow2.f32 %v5179_v29  ;;  %1546 = vmatpush.bf16.msrb.mxu2 %v6889_v50  ;;  %v6910_v29 = vor.u32 %v5634_v33, %v5312_v31  ;;  %v5322_v63 = vld [vmem:[#allocation9 + $0x118] sm:$0xf0]  ;;  %vm971_vm2 = vweird.f32 %v6894_v11 }
 0x15c   :  { %9894 = vst [vmem:[#allocation151_spill] sm:$0xff] %v6884_v8  ;;  %5686 = vrcp.f32 %v6894_v11  ;;  %v6916_v34 = vor.u32 %v5633_v39, %v5322_v63  ;;  %v564_v63 = vadd.f32 %v6582_v43, %v6892_v12 }
 0x15d   :  { %9895 = vst [vmem:[#allocation152_spill] sm:$0xff] %v6887_v7  ;;  %5688 = vrcp.f32 %v6900_v28  ;;  %v909_v57 = vpop.f32.mrf.mxu2  ;;  %v6914_v7 = vor.u32 %v5635_v56, %v5320_v58  ;;  %v990_v39 = vand.u32 2147483647, %v6900_v28  ;;  %vm986_vm3 = vweird.f32 %v6900_v28 }
 0x15e   :  { %9896 = vst [vmem:[#allocation153_spill] sm:$0xff] %v6889_v50  ;;  %1560 = vmatpush.bf16.msrb.mxu3 %v6898_v44  ;;  %5690 = vpow2.f32 %v5180_v46  ;;  %v940_v15 = vadd.f32 %v909_v57, %v515_v53  ;;  %v6912_v50 = vor.u32 %v5632_v32, %v5314_v38  ;;  %1519 = vmatpush.bf16.msrb.mxu0 %v6910_v29  ;;  %v975_v57 = vand.u32 2147483647, %v6894_v11 }
 0x15f   :  { %9897 = vst [vmem:[#allocation154_spill] sm:$0xff] %v6898_v44  ;;  %1547 = vmatpush.bf16.msrb.mxu2 %v6914_v7  ;;  %v977_v32 = vand.u32 2147483648, %v6894_v11  ;;  %v992_v38 = vand.u32 2147483648, %v6900_v28  ;;  %vm991_vm7 = vcmp.eq.f32.partialorder %v990_v39, 8.507059e+37 }
 0x160   :  { %9898 = vst [vmem:[#allocation155_spill] sm:$0xff] %v6910_v29  ;;  %v5683_v20 = vpop.eup %5682  ;;  %v5181_v44 = vmul.f32 -1.442695, %v940_v15  ;;  %1533 = vmatpush.bf16.msrb.mxu1 %v6912_v50  ;;  %vm976_vm5 = vcmp.eq.f32.partialorder %v975_v57, 8.507059e+37 }
 0x161   :  { %9899 = vst [vmem:[#allocation156_spill] sm:$0xff] %v6912_v50  ;;  %v5685_v8 = vpop.eup %5684  ;;  %v6919_v46 = vadd.f32 1.0, %v5683_v20  ;;  %v993_v43 = vor.u32 1.1754944e-38, %v992_v38 }
 0x162   :  { %9900 = vst [vmem:[#allocation157_spill] sm:$0xff] %v6914_v7  ;;  %v5687_v1 = vpop.eup %5686  ;;  %v6921_v53 = vadd.f32 1.0, %v5685_v8  ;;  %5692 = vpow2.f32 %v5181_v44  ;;  %1561 = vmatpush.bf16.msrb.mxu3 %v6916_v34  ;;  %1711 = vmatpush.bf16.msra.mxu0 %v6472_v37 }
 0x163   :  { %9901 = vst [vmem:[#allocation158_spill] sm:$0xff] %v6916_v34  ;;  %v5689_v24 = vpop.eup %5688  ;;  %v967_v31 = vmul.f32 %v5687_v1, %v6894_v11  ;;  %5694 = vtanh.f32 %v937_v21  ;;  %1739 = vmatpush.bf16.msra.mxu2 %v6476_v47  ;;  %vm972_vm0 = vweird.f32 %v5687_v1  ;;  %v923_v21 = vpop.f32.mrf.mxu3  ;;  %v131_v11 = vld [vmem:[#allocation8] sm:$0xff] }
 0x164   :  { %v5691_v33 = vpop.eup %5690  ;;  %v982_v36 = vmul.f32 %v5689_v24, %v6900_v28  ;;  %1725 = vmatpush.bf16.msra.mxu1 %v6474_v41  ;;  %5696 = vrcp.f32 %v6921_v53  ;;  %vm987_vm1 = vweird.f32 %v5689_v24  ;;  %vm973_vm4 = vmor %vm971_vm2, %vm972_vm0  ;;  %vm1016_vm10 = vweird.f32 %v6921_v53 }
 0x165   :  { %v968_v20 = vsub.f32 1.0, %v967_v31  ;;  %v6932_v8 = vadd.f32 1.0, %v5691_v33  ;;  %5698 = vrcp.f32 %v6919_v46  ;;  %vm6953_vm6 = vmor %vm986_vm3, %vm987_vm1  ;;  %vm1001_vm2 = vweird.f32 %v6919_v46 }
 0x166   :  { %1753 = vmatpush.bf16.msra.mxu3 %v6479_v48  ;;  %v983_v44 = vsub.f32 1.0, %v982_v36  ;;  %1712 = vmatpush.bf16.msra.mxu0 %v6481_v49 }
 0x167   :  { %v969_v58 = vmul.f32 %v5687_v1, %v968_v20  ;;  %5700 = vrcp.f32 %v6932_v8  ;;  %1740 = vmatpush.bf16.msra.mxu2 %v6487_v55  ;;  %v978_v20 = vor.u32 1.1754944e-38, %v977_v32  ;;  %vm1031_vm11 = vweird.f32 %v6932_v8 }
 0x168   :  { %v5693_v15 = vpop.eup %5692  ;;  %v984_v56 = vmul.f32 %v5689_v24, %v983_v44  ;;  %1726 = vmatpush.bf16.msra.mxu1 %v6484_v52 }
 0x169   :  { %v970_v31 = vadd.f32 %v5687_v1, %v969_v58  ;;  %v6947_v33 = vadd.f32 1.0, %v5693_v15  ;;  %v5695_v36 = vpop.eup %5694  ;;  %v941_v15 = vadd.f32 %v923_v21, %v564_v63 }
 0x16a   :  { %1754 = vmatpush.bf16.msra.mxu3 %v6491_v59  ;;  %v985_v44 = vadd.f32 %v5689_v24, %v984_v56  ;;  %v5697_v52 = vpop.eup %5696  ;;  %1713 = vmatpush.bf16.msra.mxu0 %v6493_v60 }
 0x16b   :  { %v974_v58 = vsel %vm973_vm4, %v5687_v1, %v970_v31  ;;  %5702 = vrcp.f32 %v6947_v33  ;;  %v6959_v28 = vpop.eup %5698  ;;  %v1012_v32 = vmul.f32 %v5697_v52, %v6921_v53  ;;  %1741 = vmatpush.bf16.msra.mxu2 %v6499_v3  ;;  %vm1017_vm8 = vweird.f32 %v5697_v52 }
 0x16c   :  { %v979_v59 = vsel %vm976_vm5, %v978_v20, %v974_v58  ;;  %v989_v57 = vsel %vm6953_vm6, %v5689_v24, %v985_v44  ;;  %1727 = vmatpush.bf16.msra.mxu1 %v6496_v0  ;;  %v997_v55 = vmul.f32 %v6959_v28, %v6919_v46  ;;  %5704 = vtanh.f32 %v941_v15  ;;  %vm1018_vm12 = vmor %vm1016_vm10, %vm1017_vm8 }
 0x16d   :  { %v5701_v38 = vpop.eup %5700  ;;  %v994_v1 = vsel %vm991_vm7, %v993_v43, %v989_v57  ;;  %v1060_v56 = vmul.f32 %v5695_v36, %v979_v59  ;;  %v1013_v63 = vsub.f32 1.0, %v1012_v32  ;;  %v1022_v44 = vand.u32 2147483648, %v6921_v53 }
 0x16e   :  { %1755 = vmatpush.bf16.msra.mxu3 %v6503_v4  ;;  %v1058_v21 = vmul.f32 %v994_v1, %v131_v11  ;;  %v1027_v31 = vmul.f32 %v5701_v38, %v6932_v8  ;;  %1714 = vmatpush.bf16.msra.mxu0 %v6508_v9  ;;  %v1037_v36 = vand.u32 2147483648, %v6932_v8  ;;  %v1020_v43 = vand.u32 2147483647, %v6921_v53 }
 0x16f   :  { %v1014_v20 = vmul.f32 %v5697_v52, %v1013_v63  ;;  %1742 = vmatpush.bf16.msra.mxu2 %v6512_v14  ;;  %vm1032_vm9 = vweird.f32 %v5701_v38  ;;  %v1035_v15 = vand.u32 2147483647, %v6932_v8  ;;  %v998_v57 = vsub.f32 1.0, %v997_v55  ;;  %v132_v55 = vld [vmem:[#allocation8 + $0x8] sm:$0xff] }
 0x170   :  { %v6971_v24 = vadd.f32 %v1060_v56, %v1058_v21  ;;  %v1028_v39 = vsub.f32 1.0, %v1027_v31  ;;  %1728 = vmatpush.bf16.msra.mxu1 %v6510_v13  ;;  %v1023_v56 = vor.u32 1.1754944e-38, %v1022_v44  ;;  %vm1033_vm13 = vmor %vm1031_vm11, %vm1032_vm9  ;;  %v1038_v31 = vor.u32 1.1754944e-38, %v1037_v36 }
 0x171   :  { %v6976_v59 = vpop.eup %5702  ;;  %v1015_v32 = vadd.f32 %v5697_v52, %v1014_v20  ;;  %vm1021_vm14 = vcmp.eq.f32.partialorder %v1020_v43, 8.507059e+37  ;;  %vm1036_vm15 = vcmp.eq.f32.partialorder %v1035_v15, 8.507059e+37  ;;  %v999_v8 = vmul.f32 %v6959_v28, %v998_v57 }
 0x172   :  { %1756 = vmatpush.bf16.msra.mxu3 %v6515_v17  ;;  %v1029_v11 = vmul.f32 %v5701_v38, %v1028_v39  ;;  %v1042_v58 = vmul.f32 %v6976_v59, %v6947_v33  ;;  %1715 = vmatpush.bf16.msra.mxu0 %v6520_v22  ;;  %v5705_v63 = vpop.eup %5704  ;;  %vm1002_vm0 = vweird.f32 %v6959_v28  ;;  %5706 = vtanh.f32 %v6971_v24 }
 0x173   :  { %1743 = vmatpush.bf16.msra.mxu2 %v6524_v27  ;;  %v1019_v39 = vsel %vm1018_vm12, %v5697_v52, %v1015_v32  ;;  %vm1047_vm1 = vweird.f32 %v6976_v59  ;;  %v1007_v43 = vand.u32 2147483648, %v6919_v46  ;;  %v1052_v15 = vand.u32 2147483648, %v6947_v33  ;;  %vm7011_vm3 = vmor %vm1001_vm2, %vm1002_vm0 }
 0x174   :  { %v1043_v1 = vsub.f32 1.0, %v1042_v58  ;;  %v1030_v21 = vadd.f32 %v5701_v38, %v1029_v11  ;;  %1729 = vmatpush.bf16.msra.mxu1 %v6522_v26  ;;  %v1024_v53 = vsel %vm1021_vm14, %v1023_v56, %v1019_v39  ;;  %v1005_v57 = vand.u32 2147483647, %v6919_v46 }
 0x175   :  { %v1061_v58 = vmul.f32 %v5705_v63, %v1024_v53  ;;  %vm1046_vm4 = vweird.f32 %v6947_v33  ;;  %v1050_v32 = vand.u32 2147483647, %v6947_v33  ;;  %v1008_v63 = vor.u32 1.1754944e-38, %v1007_v43  ;;  %v9914_v43 = vld [vmem:[#allocation81_spill] sm:$0xff] }
 0x176   :  { %1757 = vmatpush.bf16.msra.mxu3 %v6527_v30  ;;  %v1034_v20 = vsel %vm1033_vm13, %v5701_v38, %v1030_v21  ;;  %v1044_v44 = vmul.f32 %v6976_v59, %v1043_v1  ;;  %1716 = vmatpush.bf16.msra.mxu0 %v6532_v35  ;;  %v1000_v38 = vadd.f32 %v6959_v28, %v999_v8  ;;  %vm1048_vm5 = vmor %vm1046_vm4, %vm1047_vm1  ;;  %vm1006_vm6 = vcmp.eq.f32.partialorder %v1005_v57, 8.507059e+37  ;;  %v9908_v8 = vld [vmem:[#allocation75_spill] sm:$0xff]  ;;  %v9917_v57 = vld [vmem:[#allocation88_spill] sm:$0xff] }
 0x177   :  { %v1039_v11 = vsel %vm1036_vm15, %v1038_v31, %v1034_v20  ;;  %1744 = vmatpush.bf16.msra.mxu2 %v6536_v42  ;;  %v1053_v31 = vor.u32 1.1754944e-38, %v1052_v15  ;;  %vm1051_vm7 = vcmp.eq.f32.partialorder %v1050_v32, 8.507059e+37  ;;  %v9907_v20 = vld [vmem:[#allocation74_spill] sm:$0xff]  ;;  %v9918_v32 = vld [vmem:[#allocation89_spill] sm:$0xff] }
 0x178   :  { %v1059_v27 = vmul.f32 %v1039_v11, %v132_v55  ;;  %1730 = vmatpush.bf16.msra.mxu1 %v6534_v40  ;;  %v1045_v36 = vadd.f32 %v6976_v59, %v1044_v44  ;;  %v1004_v1 = vsel %vm7011_vm3, %v6959_v28, %v1000_v38  ;;  %v5707_v21 = vpop.eup %5706  ;;  %v9909_v44 = vld [vmem:[#allocation76_spill] sm:$0xff]  ;;  %v9910_v11 = vld [vmem:[#allocation77_spill] sm:$0xff]  ;;  %v9912_v38 = vld [vmem:[#allocation79_spill] sm:$0xff] }
 0x179   :  { %v1009_v33 = vsel %vm1006_vm6, %v1008_v63, %v1004_v1  ;;  %v9915_v15 = vld [vmem:[#allocation86_spill] sm:$0xff]  ;;  %v9922_v63 = vld [vmem:[#allocation93_spill] sm:$0xff] }
 0x17a   :  { %1758 = vmatpush.bf16.msra.mxu3 %v6539_v45  ;;  %v6999_v52 = vadd.f32 %v1061_v58, %v1059_v27  ;;  %1717 = vmatpush.bf16.msra.mxu0 %v6544_v54  ;;  %v1049_v56 = vsel %vm1048_vm5, %v6976_v59, %v1045_v36  ;;  %v1066_v39 = vmul.f32 %v5707_v21, %v1009_v33  ;;  %v9906_v59 = vld [vmem:[#allocation69_spill] sm:$0xff]  ;;  %v9911_v58 = vld [vmem:[#allocation78_spill] sm:$0xff]  ;;  %v9913_v36 = vld [vmem:[#allocation80_spill] sm:$0xff] }
 0x17b   :  { %1745 = vmatpush.bf16.msra.mxu2 %v6548_v62  ;;  %v1054_v55 = vsel %vm1051_vm7, %v1053_v31, %v1049_v56  ;;  %v9916_v27 = vld [vmem:[#allocation87_spill] sm:$0xff]  ;;  %v9919_v1 = vld [vmem:[#allocation90_spill] sm:$0xff]  ;;  %v9921_v21 = vld [vmem:[#allocation92_spill] sm:$0xff] }
 0x17c   :  { %5708 = vtanh.f32 %v6999_v52  ;;  %1731 = vmatpush.bf16.msra.mxu1 %v6546_v61  ;;  %v9920_v56 = vld [vmem:[#allocation91_spill] sm:$0xff]  ;;  %v9923_v31 = vld [vmem:[#allocation98_spill] sm:$0xff]  ;;  %v9925_v33 = vld [vmem:[#allocation100_spill] sm:$0xff] }
 0x17e   :  { %1759 = vmatpush.bf16.msra.mxu3 %v6551_v2  ;;  %1718 = vmatpush.bf16.msra.mxu0 %v6556_v10 }
 0x17f   :  { %1746 = vmatpush.bf16.msra.mxu2 %v6560_v18 }
 0x180   :  { %1732 = vmatpush.bf16.msra.mxu1 %v6558_v16 }
 0x182   :  { %1760 = vmatpush.bf16.msra.mxu3 %v6565_v23  ;;  %v5709_v46 = vpop.eup %5708 }
 0x183   :  { %v1067_v28 = vmul.f32 %v5709_v46, %v1054_v55  ;;  %v9924_v46 = vld [vmem:[#allocation99_spill] sm:$0xff]  ;;  %v9926_v55 = vld [vmem:[#allocation101_spill] sm:$0xff] }
 0x185   :  { %v1068_v53 = vpack.c.bf16 %v1067_v28, %v1066_v39  ;;  %v9927_v39 = vld [vmem:[#allocation102_spill] sm:$0xff]  ;;  %v9928_v28 = vld [vmem:[#allocation103_spill] sm:$0xff] }
 0x187   :  { %1520 = vmatmul.bf16.vlgmr.msrb.gmra.mxu0 %v1068_v53  ;;  %1534 = vmatmul.bf16.vlgmr.msrb.gmra.mxu1 %v1068_v53 }
 0x188   :  { %1548 = vmatmul.bf16.vlgmr.msrb.gmra.mxu2 %v1068_v53  ;;  %1562 = vmatmul.bf16.vlgmr.msrb.gmra.mxu3 %v1068_v53 }
 0x189   :  { %1912 = vmatpush.bf16.msrb.mxu0 %v6644_v25  ;;  %1926 = vmatpush.bf16.msrb.mxu1 %v6646_v5 }
 0x18a   :  { %1940 = vmatpush.bf16.msrb.mxu2 %v6648_v6  ;;  %1954 = vmatpush.bf16.msrb.mxu3 %v9906_v59 }
 0x18d   :  { %1913 = vmatpush.bf16.msrb.mxu0 %v9907_v20  ;;  %1927 = vmatpush.bf16.msrb.mxu1 %v9908_v8 }
 0x18e   :  { %1941 = vmatpush.bf16.msrb.mxu2 %v9909_v44  ;;  %1955 = vmatpush.bf16.msrb.mxu3 %v9910_v11 }
 0x191   :  { %1914 = vmatpush.bf16.msrb.mxu0 %v9911_v58  ;;  %1928 = vmatpush.bf16.msrb.mxu1 %v9912_v38 }
 0x192   :  { %1942 = vmatpush.bf16.msrb.mxu2 %v9913_v36  ;;  %1956 = vmatpush.bf16.msrb.mxu3 %v9914_v43 }
 0x195   :  { %1915 = vmatpush.bf16.msrb.mxu0 %v9915_v15  ;;  %1929 = vmatpush.bf16.msrb.mxu1 %v9916_v27 }
 0x196   :  { %1943 = vmatpush.bf16.msrb.mxu2 %v9917_v57  ;;  %1957 = vmatpush.bf16.msrb.mxu3 %v9918_v32 }
 0x197   :  { %1719 = vmatmul.bf16.vlgmr.msra.gmra.mxu0 %v1068_v53  ;;  %1733 = vmatmul.bf16.vlgmr.msra.gmra.mxu1 %v1068_v53 }
 0x198   :  { %1747 = vmatmul.bf16.vlgmr.msra.gmra.mxu2 %v1068_v53  ;;  %1761 = vmatmul.bf16.vlgmr.msra.gmra.mxu3 %v1068_v53  ;;  %v9929_v53 = vld [vmem:[#allocation104_spill] sm:$0xff] }
 0x199   :  { %1916 = vmatpush.bf16.msrb.mxu0 %v9919_v1  ;;  %1930 = vmatpush.bf16.msrb.mxu1 %v9920_v56  ;;  %v9930_v1 = vld [vmem:[#allocation106_spill] sm:$0xff] }
 0x19a   :  { %1944 = vmatpush.bf16.msrb.mxu2 %v9921_v21  ;;  %1958 = vmatpush.bf16.msrb.mxu3 %v9922_v63  ;;  %v9931_v56 = vld [vmem:[#allocation110_spill] sm:$0xff]  ;;  %v9932_v21 = vld [vmem:[#allocation111_spill] sm:$0xff]  ;;  %v9933_v63 = vld [vmem:[#allocation112_spill] sm:$0xff] }
 0x19d   :  { %1917 = vmatpush.bf16.msrb.mxu0 %v9923_v31  ;;  %1931 = vmatpush.bf16.msrb.mxu1 %v9924_v46  ;;  %v9934_v31 = vld [vmem:[#allocation113_spill] sm:$0xff]  ;;  %v9935_v46 = vld [vmem:[#allocation114_spill] sm:$0xff] }
 0x19e   :  { %1945 = vmatpush.bf16.msrb.mxu2 %v9925_v33  ;;  %1959 = vmatpush.bf16.msrb.mxu3 %v9926_v55  ;;  %v9936_v33 = vld [vmem:[#allocation115_spill] sm:$0xff]  ;;  %v9937_v55 = vld [vmem:[#allocation117_spill] sm:$0xff] }
 0x1a1   :  { %1918 = vmatpush.bf16.msrb.mxu0 %v9927_v39  ;;  %1932 = vmatpush.bf16.msrb.mxu1 %v9928_v28  ;;  %v9938_v39 = vld [vmem:[#allocation120_spill] sm:$0xff]  ;;  %v9939_v28 = vld [vmem:[#allocation122_spill] sm:$0xff] }
 0x1a2   :  { %1946 = vmatpush.bf16.msrb.mxu2 %v9929_v53  ;;  %1960 = vmatpush.bf16.msrb.mxu3 %v9930_v1  ;;  %v9940_v53 = vld [vmem:[#allocation123_spill] sm:$0xff]  ;;  %v9941_v1 = vld [vmem:[#allocation124_spill] sm:$0xff] }
 0x1a5   :  { %1919 = vmatpush.bf16.msrb.mxu0 %v9931_v56  ;;  %1933 = vmatpush.bf16.msrb.mxu1 %v9932_v21  ;;  %v9942_v56 = vld [vmem:[#allocation126_spill] sm:$0xff]  ;;  %v9943_v21 = vld [vmem:[#allocation129_spill] sm:$0xff] }
 0x1a6   :  { %1947 = vmatpush.bf16.msrb.mxu2 %v9933_v63  ;;  %1961 = vmatpush.bf16.msrb.mxu3 %v9934_v31  ;;  %v9944_v63 = vld [vmem:[#allocation131_spill] sm:$0xff]  ;;  %v9945_v31 = vld [vmem:[#allocation132_spill] sm:$0xff] }
 0x1a9   :  { %1968 = vmatpush.bf16.msra.mxu0 %v9935_v46  ;;  %1982 = vmatpush.bf16.msra.mxu1 %v9936_v33  ;;  %v9946_v46 = vld [vmem:[#allocation135_spill] sm:$0xff]  ;;  %v9947_v33 = vld [vmem:[#allocation136_spill] sm:$0xff] }
 0x1aa   :  { %1996 = vmatpush.bf16.msra.mxu2 %v9937_v55  ;;  %2010 = vmatpush.bf16.msra.mxu3 %v9938_v39  ;;  %v9948_v55 = vld [vmem:[#allocation137_spill] sm:$0xff]  ;;  %v9949_v39 = vld [vmem:[#allocation138_spill] sm:$0xff] }
 0x1ad   :  { %1969 = vmatpush.bf16.msra.mxu0 %v9939_v28  ;;  %1983 = vmatpush.bf16.msra.mxu1 %v9940_v53  ;;  %v9950_v28 = vld [vmem:[#allocation140_spill] sm:$0xff] }
 0x1ae   :  { %1997 = vmatpush.bf16.msra.mxu2 %v9941_v1  ;;  %2011 = vmatpush.bf16.msra.mxu3 %v9942_v56  ;;  %v9951_v1 = vld [vmem:[#allocation143_spill] sm:$0xff]  ;;  %v9952_v56 = vld [vmem:[#allocation144_spill] sm:$0xff] }
 0x1b1   :  { %1970 = vmatpush.bf16.msra.mxu0 %v9943_v21  ;;  %1984 = vmatpush.bf16.msra.mxu1 %v9944_v63  ;;  %v9953_v21 = vld [vmem:[#allocation145_spill] sm:$0xff] }
 0x1b2   :  { %1998 = vmatpush.bf16.msra.mxu2 %v9945_v31  ;;  %2012 = vmatpush.bf16.msra.mxu3 %v9946_v46  ;;  %v9954_v31 = vld [vmem:[#allocation148_spill] sm:$0xff]  ;;  %v9955_v46 = vld [vmem:[#allocation149_spill] sm:$0xff] }
 0x1b5   :  { %1971 = vmatpush.bf16.msra.mxu0 %v9947_v33  ;;  %1985 = vmatpush.bf16.msra.mxu1 %v9948_v55  ;;  %v9956_v33 = vld [vmem:[#allocation150_spill] sm:$0xff]  ;;  %v9957_v55 = vld [vmem:[#allocation151_spill] sm:$0xff] }
 0x1b6   :  { %1999 = vmatpush.bf16.msra.mxu2 %v9949_v39  ;;  %2013 = vmatpush.bf16.msra.mxu3 %v9950_v28  ;;  %v9958_v39 = vld [vmem:[#allocation152_spill] sm:$0xff]  ;;  %v9959_v28 = vld [vmem:[#allocation153_spill] sm:$0xff] }
 0x1b9   :  { %1972 = vmatpush.bf16.msra.mxu0 %v6853_v51  ;;  %1986 = vmatpush.bf16.msra.mxu1 %v9951_v1  ;;  %v9960_v51 = vld [vmem:[#allocation154_spill] sm:$0xff] }
 0x1ba   :  { %2000 = vmatpush.bf16.msra.mxu2 %v9952_v56  ;;  %2014 = vmatpush.bf16.msra.mxu3 %v9953_v21  ;;  %v666_v56 = vld [vmem:[#allocation12 + $0x1] ss:$2 sm:$0xf] }
 0x1bb   :  { %v7091_v1 = vperm.slane %v666_v56, 0  ;;  %v7099_v27 = vperm.slane %v666_v56, 2 }
 0x1bd   :  { %1973 = vmatpush.bf16.msra.mxu0 %v6869_v19  ;;  %1987 = vmatpush.bf16.msra.mxu1 %v9954_v31  ;;  %9961 = vst [vmem:[#allocation159_spill] sm:$0xff] %v7091_v1 }
 0x1be   :  { %2001 = vmatpush.bf16.msra.mxu2 %v9955_v46  ;;  %2015 = vmatpush.bf16.msra.mxu3 %v9956_v33  ;;  %9963 = vst [vmem:[#allocation161_spill] sm:$0xff] %v7099_v27 }
 0x1c1   :  { %1974 = vmatpush.bf16.msra.mxu0 %v9957_v55  ;;  %1988 = vmatpush.bf16.msra.mxu1 %v9958_v39 }
 0x1c2   :  { %2002 = vmatpush.bf16.msra.mxu2 %v9959_v28  ;;  %2016 = vmatpush.bf16.msra.mxu3 %v9960_v51  ;;  %v7093_v28 = vperm.slane %v666_v56, 1 }
 0x1c4   :  { %9962 = vst [vmem:[#allocation160_spill] sm:$0xff] %v7093_v28 }
 0x1c5   :  { %1975 = vmatpush.bf16.msra.mxu0 %v6910_v29  ;;  %1989 = vmatpush.bf16.msra.mxu1 %v6912_v50 }
 0x1c6   :  { %2003 = vmatpush.bf16.msra.mxu2 %v6914_v7  ;;  %2017 = vmatpush.bf16.msra.mxu3 %v6916_v34 }
 0x1d1   :  { %v1272_v31 = vpop.f32.mrf.mxu0  ;;  %v1286_v46 = vpop.f32.mrf.mxu1 }
 0x1d8   :  { %v1314_v55 = vpop.f32.mrf.mxu3 }
 0x1d9   :  { %v1300_v19 = vpop.f32.mrf.mxu2  ;;  %v1274_v33 = vpop.f32.mrf.mxu0 }
 0x1da   :  { %v1288_v21 = vpop.f32.mrf.mxu1 }
 0x1e0   :  { %v7095_v53 = vpop.f32.mrf.mxu3 }
 0x1e1   :  { %v1302_v39 = vpop.f32.mrf.mxu2 }
 0x204   :  { %v1521_v51 = vpop.f32.mrf.mxu0  ;;  %v1535_v29 = vpop.f32.mrf.mxu1 }
 0x205   :  { %v1522_v63 = vadd.f32 %v1521_v51, %v1272_v31  ;;  %v1536_v50 = vadd.f32 %v1535_v29, %v1286_v46 }
 0x207   :  { %v1577_v34 = vadd.f32 %v7091_v1, %v1522_v63  ;;  %v1578_v7 = vadd.f32 %v7093_v28, %v1536_v50 }
 0x209   :  { %v5438_v32 = vmul.f32 -1.442695, %v1577_v34  ;;  %v5439_v57 = vmul.f32 -1.442695, %v1578_v7 }
 0x20b   :  { %5710 = vpow2.f32 %v5438_v32  ;;  %v1549_v15 = vpop.f32.mrf.mxu2  ;;  %v1563_v50 = vpop.f32.mrf.mxu3 }
 0x20c   :  { %5712 = vpow2.f32 %v5439_v57  ;;  %v1550_v43 = vadd.f32 %v1549_v15, %v1300_v19  ;;  %v1523_v36 = vpop.f32.mrf.mxu0  ;;  %v1537_v38 = vpop.f32.mrf.mxu1  ;;  %v1564_v15 = vadd.f32 %v1563_v50, %v1314_v55  ;;  %v9969_v50 = vld [vmem:[#allocation141_spill] sm:$0xff] }
 0x20d   :  { %v1524_v58 = vadd.f32 %v1523_v36, %v1274_v33  ;;  %v1538_v11 = vadd.f32 %v1537_v38, %v1288_v21  ;;  %v7108_v36 = vperm.slane %v666_v56, 3  ;;  %v9967_v56 = vld [vmem:[#allocation134_spill] sm:$0xff] }
 0x20e   :  { %v1579_v51 = vadd.f32 %v7099_v27, %v1550_v43 }
 0x20f   :  { %v1581_v29 = vadd.f32 %v7091_v1, %v1524_v58  ;;  %v1582_v63 = vadd.f32 %v7093_v28, %v1538_v11  ;;  %9964 = vst [vmem:[#allocation162_spill] sm:$0xff] %v7108_v36  ;;  %v1580_v58 = vadd.f32 %v7108_v36, %v1564_v15  ;;  %v9972_v15 = vld [vmem:[#allocation41_spill] sm:$0xff] }
 0x210   :  { %v5440_v31 = vmul.f32 -1.442695, %v1579_v51  ;;  %v9965_v51 = vld [vmem:[#allocation133_spill] sm:$0xff] }
 0x211   :  { %v5711_v34 = vpop.eup %5710  ;;  %v5441_v7 = vmul.f32 -1.442695, %v1581_v29  ;;  %v5442_v57 = vmul.f32 -1.442695, %v1582_v63  ;;  %v9966_v29 = vld [vmem:[#allocation36_spill] sm:$0xff]  ;;  %v9968_v63 = vld [vmem:[#allocation37_spill] sm:$0xff] }
 0x212   :  { %v5713_v46 = vpop.eup %5712  ;;  %v7104_v44 = vadd.f32 1.0, %v5711_v34  ;;  %5714 = vpow2.f32 %v5440_v31  ;;  %v420_v55 = vadd.f32 %v9966_v29, %v9965_v51  ;;  %v469_v31 = vadd.f32 %v9968_v63, %v9967_v56  ;;  %v9970_v34 = vld [vmem:[#allocation38_spill] sm:$0xff] }
 0x213   :  { %v7106_v19 = vadd.f32 1.0, %v5713_v46  ;;  %5716 = vpow2.f32 %v5441_v7  ;;  %v1551_v38 = vpop.f32.mrf.mxu2  ;;  %v518_v7 = vadd.f32 %v9970_v34, %v9969_v50  ;;  %v9973_v63 = vld [vmem:[#allocation42_spill] sm:$0xff] }
 0x214   :  { %5718 = vrcp.f32 %v7104_v44  ;;  %v1552_v11 = vadd.f32 %v1551_v38, %v1302_v39  ;;  %v1720_v21 = vpop.f32.mrf.mxu0  ;;  %v9971_v39 = vld [vmem:[#allocation40_spill] sm:$0xff]  ;;  %v7128_v38 = vadd.f32 %v9972_v15, %v9967_v56  ;;  %v1734_v29 = vpop.f32.mrf.mxu1  ;;  %v7136_v1 = vadd.f32 %v9973_v63, %v9969_v50 }
 0x215   :  { %5720 = vrcp.f32 %v7106_v19  ;;  %v1565_v63 = vpop.f32.mrf.mxu3  ;;  %v1777_v50 = vadd.f32 %v1734_v29, %v469_v31  ;;  %vm1614_vm8 = vweird.f32 %v7104_v44  ;;  %v1633_v59 = vand.u32 2147483647, %v7106_v19 }
 0x216   :  { %5722 = vpow2.f32 %v5442_v57  ;;  %v1583_v32 = vadd.f32 %v7099_v27, %v1552_v11  ;;  %v7124_v57 = vadd.f32 %v9971_v39, %v9965_v51  ;;  %v1776_v39 = vadd.f32 %v1720_v21, %v420_v55 }
 0x217   :  { %5724 = vtanh.f32 %v1580_v58  ;;  %v1635_v58 = vand.u32 2147483648, %v7106_v19  ;;  %vm1629_vm9 = vweird.f32 %v7106_v19  ;;  %vm7168_vm13 = vcmp.eq.f32.partialorder %v1633_v59, 8.507059e+37 }
 0x218   :  { %v5715_v43 = vpop.eup %5714  ;;  %v5443_v27 = vmul.f32 -1.442695, %v1583_v32  ;;  %v1620_v32 = vand.u32 2147483648, %v7104_v44  ;;  %v5444_v6 = vmul.f32 -1.442695, %v1776_v39 }
 0x219   :  { %v5717_v33 = vpop.eup %5716  ;;  %v7148_v21 = vadd.f32 1.0, %v5715_v43  ;;  %v1566_v43 = vadd.f32 %v1565_v63, %v7095_v53 }
 0x21a   :  { %v7120_v46 = vpop.eup %5718  ;;  %v7130_v11 = vadd.f32 1.0, %v5717_v33  ;;  %v1618_v33 = vand.u32 2147483647, %v7104_v44 }
 0x21b   :  { %v7132_v28 = vpop.eup %5720  ;;  %v1610_v34 = vmul.f32 %v7120_v46, %v7104_v44  ;;  %vm1615_vm11 = vweird.f32 %v7120_v46 }
 0x21c   :  { %v5723_v51 = vpop.eup %5722  ;;  %v1625_v15 = vmul.f32 %v7132_v28, %v7106_v19  ;;  %5726 = vrcp.f32 %v7130_v11  ;;  %vm7156_vm10 = vcmp.eq.f32.partialorder %v1618_v33, 8.507059e+37  ;;  %vm1630_vm12 = vweird.f32 %v7132_v28  ;;  %vm7177_vm14 = vmor %vm1614_vm8, %vm1615_vm11  ;;  %v1722_v23 = vpop.f32.mrf.mxu0 }
 0x21d   :  { %v1611_v56 = vsub.f32 1.0, %v1610_v34  ;;  %v7145_v8 = vadd.f32 1.0, %v5723_v51  ;;  %5728 = vpow2.f32 %v5443_v27  ;;  %v5725_v31 = vpop.eup %5724  ;;  %v5445_v34 = vmul.f32 -1.442695, %v1777_v50  ;;  %vm7190_vm0 = vmor %vm1629_vm9, %vm1630_vm12 }
 0x21e   :  { %v1626_v20 = vsub.f32 1.0, %v1625_v15  ;;  %v1748_v15 = vpop.f32.mrf.mxu2  ;;  %v1663_v50 = vand.u32 2147483647, %v7130_v11  ;;  %vm1659_vm15 = vweird.f32 %v7130_v11  ;;  %v1665_v59 = vand.u32 2147483648, %v7130_v11 }
 0x21f   :  { %v1612_v55 = vmul.f32 %v7120_v46, %v1611_v56  ;;  %5730 = vrcp.f32 %v7145_v8  ;;  %v1621_v56 = vor.u32 1.1754944e-38, %v1620_v32  ;;  %vm1674_vm1 = vweird.f32 %v7145_v8  ;;  %v133_v32 = vld [vmem:[#allocation8 + $0x10] sm:$0xff] }
 0x220   :  { %v1627_v51 = vmul.f32 %v7132_v28, %v1626_v20  ;;  %v1636_v20 = vor.u32 1.1754944e-38, %v1635_v58  ;;  %5732 = vrcp.f32 %v7148_v21  ;;  %v1680_v19 = vand.u32 2147483648, %v7145_v8 }
 0x221   :  { %v1613_v29 = vadd.f32 %v7120_v46, %v1612_v55  ;;  %5734 = vpow2.f32 %v5444_v6  ;;  %v1584_v55 = vadd.f32 %v7108_v36, %v1566_v43  ;;  %v1778_v43 = vadd.f32 %v1748_v15, %v518_v7 }
 0x222   :  { %v7163_v5 = vpop.eup %5726  ;;  %v1628_v39 = vadd.f32 %v7132_v28, %v1627_v51  ;;  %5736 = vpow2.f32 %v5445_v34  ;;  %vm7206_vm3 = vcmp.eq.f32.partialorder %v1663_v50, 8.507059e+37  ;;  %v1666_v34 = vor.u32 1.1754944e-38, %v1665_v59 }
 0x223   :  { %v5729_v33 = vpop.eup %5728  ;;  %v1655_v63 = vmul.f32 %v7163_v5, %v7130_v11  ;;  %v1617_v44 = vsel %vm7177_vm14, %v7120_v46, %v1613_v29  ;;  %vm1660_vm2 = vweird.f32 %v7163_v5  ;;  %v1678_v15 = vand.u32 2147483647, %v7145_v8 }
 0x224   :  { %v7181_v58 = vadd.f32 1.0, %v5729_v33  ;;  %v1632_v36 = vsel %vm7190_vm0, %v7132_v28, %v1628_v39  ;;  %v1622_v28 = vsel %vm7156_vm10, %v1621_v56, %v1617_v44  ;;  %v1736_v39 = vpop.f32.mrf.mxu1  ;;  %v1780_v16 = vadd.f32 %v1722_v23, %v7124_v57  ;;  %vm7223_vm5 = vmor %vm1659_vm15, %vm1660_vm2 }
 0x225   :  { %v5731_v51 = vpop.eup %5730  ;;  %v1656_v33 = vsub.f32 1.0, %v1655_v63  ;;  %v1637_v6 = vsel %vm7168_vm13, %v1636_v20, %v1632_v36  ;;  %v1703_v36 = vmul.f32 %v5725_v31, %v1622_v28  ;;  %v1781_v57 = vadd.f32 %v1736_v39, %v7128_v38 }
 0x226   :  { %v1670_v25 = vmul.f32 %v5731_v51, %v7145_v8  ;;  %5738 = vrcp.f32 %v7181_v58  ;;  %v7210_v7 = vpop.eup %5732  ;;  %vm1675_vm4 = vweird.f32 %v5731_v51  ;;  %v1750_v20 = vpop.f32.mrf.mxu2  ;;  %v1701_v11 = vmul.f32 %v1637_v6, %v133_v32 }
 0x227   :  { %v1657_v18 = vmul.f32 %v7163_v5, %v1656_v33  ;;  %v5735_v63 = vpop.eup %5734  ;;  %v5446_v33 = vmul.f32 -1.442695, %v1778_v43  ;;  %5740 = vtanh.f32 %v1584_v55  ;;  %vm1676_vm6 = vmor %vm1674_vm1, %vm1675_vm4  ;;  %v1681_v31 = vor.u32 1.1754944e-38, %v1680_v19 }
 0x228   :  { %v1671_v29 = vsub.f32 1.0, %v1670_v25  ;;  %v7227_v27 = vadd.f32 1.0, %v5735_v63  ;;  %v5737_v56 = vpop.eup %5736  ;;  %vm1679_vm7 = vcmp.eq.f32.partialorder %v1678_v15, 8.507059e+37  ;;  %v5447_v44 = vmul.f32 -1.442695, %v1780_v16 }
 0x229   :  { %v1658_v50 = vadd.f32 %v7163_v5, %v1657_v18  ;;  %v1640_v18 = vmul.f32 %v7210_v7, %v7148_v21  ;;  %v7236_v59 = vadd.f32 1.0, %v5737_v56  ;;  %v1782_v28 = vadd.f32 %v1750_v20, %v7136_v1 }
 0x22a   :  { %v1672_v10 = vmul.f32 %v5731_v51, %v1671_v29  ;;  %5742 = vrcp.f32 %v7227_v27  ;;  %v9986_v29 = vld [vmem:[#allocation39_spill] sm:$0xff]  ;;  %v5448_v32 = vmul.f32 -1.442695, %v1781_v57  ;;  %v7249_v15 = vadd.f32 %v1703_v36, %v1701_v11 }
 0x22b   :  { %v1662_v23 = vsel %vm7223_vm5, %v7163_v5, %v1658_v50  ;;  %5744 = vpow2.f32 %v5446_v33  ;;  %v134_v5 = vld [vmem:[#allocation8 + $0x18] sm:$0xff]  ;;  %v567_v39 = vadd.f32 %v9986_v29, %v6892_v12  ;;  %v1641_v63 = vsub.f32 1.0, %v1640_v18  ;;  %v9987_v50 = vld [vmem:[#allocation43_spill] sm:$0xff] }
 0x22c   :  { %v1673_v53 = vadd.f32 %v5731_v51, %v1672_v10  ;;  %v7238_v55 = vpop.eup %5738  ;;  %v1667_v38 = vsel %vm7206_vm3, %v1666_v34, %v1662_v23  ;;  %5746 = vrcp.f32 %v7236_v59  ;;  %v1762_v10 = vpop.f32.mrf.mxu3  ;;  %v569_v1 = vadd.f32 %v9987_v50, %v6892_v12 }
 0x22d   :  { %v5741_v19 = vpop.eup %5740  ;;  %v1685_v16 = vmul.f32 %v7238_v55, %v7181_v58  ;;  %5748 = vpow2.f32 %v5447_v44  ;;  %v5449_v33 = vmul.f32 -1.442695, %v1782_v28  ;;  %v1642_v56 = vmul.f32 %v7210_v7, %v1641_v63 }
 0x22e   :  { %v1677_v43 = vsel %vm1676_vm6, %v5731_v51, %v1673_v53  ;;  %v1704_v34 = vmul.f32 %v5741_v19, %v1667_v38  ;;  %v1779_v51 = vadd.f32 %v1762_v10, %v567_v39  ;;  %v1650_v18 = vand.u32 2147483648, %v7148_v21 }
 0x22f   :  { %v1682_v8 = vsel %vm1679_vm7, %v1681_v31, %v1677_v43  ;;  %5750 = vpow2.f32 %v5448_v32  ;;  %vm1645_vm8 = vweird.f32 %v7210_v7  ;;  %v1686_v57 = vsub.f32 1.0, %v1685_v16 }
 0x230   :  { %v1702_v46 = vmul.f32 %v1682_v8, %v134_v5  ;;  %v5743_v6 = vpop.eup %5742  ;;  %5752 = vtanh.f32 %v7249_v15  ;;  %v1695_v20 = vand.u32 2147483648, %v7181_v58  ;;  %vm1813_vm9 = vweird.f32 %v7227_v27 }
 0x231   :  { %v5745_v25 = vpop.eup %5744  ;;  %v1809_v36 = vmul.f32 %v5743_v6, %v7227_v27  ;;  %5754 = vtanh.f32 %v1779_v51  ;;  %vm1644_vm10 = vweird.f32 %v7148_v21  ;;  %v1834_v44 = vand.u32 2147483648, %v7236_v59 }
 0x232   :  { %v5747_v23 = vpop.eup %5746  ;;  %v7262_v11 = vadd.f32 %v1704_v34, %v1702_v46  ;;  %v1817_v5 = vand.u32 2147483647, %v7227_v27  ;;  %v1819_v38 = vand.u32 2147483648, %v7227_v27  ;;  %5756 = vpow2.f32 %v5449_v33  ;;  %vm7297_vm3 = vmor %vm1644_vm10, %vm1645_vm8 }
 0x233   :  { %v1810_v53 = vsub.f32 1.0, %v1809_v36  ;;  %v1824_v31 = vmul.f32 %v5747_v23, %v7236_v59  ;;  %v5749_v43 = vpop.eup %5748  ;;  %v7269_v28 = vadd.f32 1.0, %v5745_v25  ;;  %vm1814_vm11 = vweird.f32 %v5743_v6 }
 0x234   :  { %v1687_v39 = vmul.f32 %v7238_v55, %v1686_v57  ;;  %vm1828_vm12 = vweird.f32 %v7236_v59  ;;  %v1832_v63 = vand.u32 2147483647, %v7236_v59  ;;  %v7274_v8 = vadd.f32 1.0, %v5749_v43  ;;  %vm1815_vm14 = vmor %vm1813_vm9, %vm1814_vm11  ;;  %v1764_v57 = vpop.f32.mrf.mxu3 }
 0x235   :  { %v1825_v10 = vsub.f32 1.0, %v1824_v31  ;;  %v1811_v29 = vmul.f32 %v5743_v6, %v1810_v53  ;;  %v5751_v32 = vpop.eup %5750  ;;  %5758 = vtanh.f32 %v7262_v11  ;;  %vm1829_vm13 = vweird.f32 %v5747_v23 }
 0x236   :  { %v5753_v46 = vpop.eup %5752  ;;  %vm1818_vm15 = vcmp.eq.f32.partialorder %v1817_v5, 8.507059e+37  ;;  %v1820_v34 = vor.u32 1.1754944e-38, %v1819_v38  ;;  %5760 = vrcp.f32 %v7274_v8  ;;  %v7280_v51 = vadd.f32 1.0, %v5751_v32  ;;  %vm1830_vm0 = vmor %vm1828_vm12, %vm1829_vm13 }
 0x237   :  { %v1826_v19 = vmul.f32 %v5747_v23, %v1825_v10  ;;  %v1812_v16 = vadd.f32 %v5743_v6, %v1811_v29  ;;  %v5755_v50 = vpop.eup %5754  ;;  %v1835_v33 = vor.u32 1.1754944e-38, %v1834_v44  ;;  %5762 = vrcp.f32 %v7269_v28 }
 0x238   :  { %v5757_v53 = vpop.eup %5756  ;;  %vm1833_vm1 = vcmp.eq.f32.partialorder %v1832_v63, 8.507059e+37  ;;  %5764 = vrcp.f32 %v7280_v51  ;;  %v1643_v31 = vadd.f32 %v7210_v7, %v1642_v56  ;;  %v1688_v44 = vadd.f32 %v7238_v55, %v1687_v39 }
 0x239   :  { %v1816_v25 = vsel %vm1815_vm14, %v5743_v6, %v1812_v16  ;;  %v1827_v36 = vadd.f32 %v5747_v23, %v1826_v19  ;;  %vm1690_vm2 = vweird.f32 %v7238_v55  ;;  %v7290_v43 = vadd.f32 1.0, %v5757_v53 }
 0x23a   :  { %v1821_v27 = vsel %vm1818_vm15, %v1820_v34, %v1816_v25  ;;  %v1783_v10 = vadd.f32 %v1764_v57, %v569_v1  ;;  %v1648_v29 = vand.u32 2147483647, %v7148_v21  ;;  %vm1689_vm4 = vweird.f32 %v7181_v58 }
 0x23b   :  { %v1831_v5 = vsel %vm1830_vm0, %v5747_v23, %v1827_v36  ;;  %v1902_v38 = vmul.f32 %v5755_v50, %v1821_v27  ;;  %v5759_v59 = vpop.eup %5758  ;;  %v1693_v23 = vand.u32 2147483647, %v7181_v58  ;;  %5766 = vrcp.f32 %v7290_v43  ;;  %vm7308_vm5 = vmor %vm1689_vm4, %vm1690_vm2 }
 0x23c   :  { %v1836_v6 = vsel %vm1833_vm1, %v1835_v33, %v1831_v5  ;;  %v5761_v39 = vpop.eup %5760  ;;  %v1647_v1 = vsel %vm7297_vm3, %v7210_v7, %v1643_v31  ;;  %v1651_v16 = vor.u32 1.1754944e-38, %v1650_v18  ;;  %v1692_v50 = vsel %vm7308_vm5, %v7238_v55, %v1688_v44 }
 0x23d   :  { %v1900_v56 = vmul.f32 %v1836_v6, %v6971_v24  ;;  %v7312_v19 = vpop.eup %5762  ;;  %v1854_v24 = vmul.f32 %v5761_v39, %v7274_v8  ;;  %5768 = vtanh.f32 %v1783_v10  ;;  %vm1649_vm6 = vcmp.eq.f32.partialorder %v1648_v29, 8.507059e+37 }
 0x23e   :  { %v5765_v33 = vpop.eup %5764  ;;  %v1696_v7 = vor.u32 1.1754944e-38, %v1695_v20  ;;  %v1652_v57 = vsel %vm1649_vm6, %v1651_v16, %v1647_v1  ;;  %vm1694_vm7 = vcmp.eq.f32.partialorder %v1693_v23, 8.507059e+37  ;;  %v1839_v21 = vmul.f32 %v7312_v19, %v7269_v28 }
 0x23f   :  { %v7316_v34 = vadd.f32 %v1902_v38, %v1900_v56  ;;  %v1855_v25 = vsub.f32 1.0, %v1854_v24  ;;  %v1869_v36 = vmul.f32 %v5765_v33, %v7280_v51  ;;  %v1862_v18 = vand.u32 2147483647, %v7274_v8 }
 0x240   :  { %v1864_v53 = vand.u32 2147483648, %v7274_v8  ;;  %v1697_v27 = vsel %vm1694_vm7, %v1696_v7, %v1692_v50  ;;  %vm1859_vm8 = vweird.f32 %v5761_v39  ;;  %v1879_v58 = vand.u32 2147483648, %v7280_v51 }
 0x241   :  { %v1870_v55 = vsub.f32 1.0, %v1869_v36  ;;  %v1856_v31 = vmul.f32 %v5761_v39, %v1855_v25  ;;  %v1710_v5 = vmul.f32 %v5759_v59, %v1697_v27  ;;  %v7329_v38 = vpop.eup %5766  ;;  %vm1858_vm9 = vweird.f32 %v7274_v8  ;;  %v9994_v27 = vld [vmem:[#allocation25_spill] sm:$0xff] }
 0x242   :  { %v1877_v20 = vand.u32 2147483647, %v7280_v51  ;;  %v1709_v44 = vmul.f32 %v5753_v46, %v1652_v57  ;;  %vm1874_vm10 = vweird.f32 %v5765_v33  ;;  %v1884_v10 = vmul.f32 %v7329_v38, %v7290_v43  ;;  %vm1860_vm12 = vmor %vm1858_vm9, %vm1859_vm8 }
 0x243   :  { %v1871_v6 = vmul.f32 %v5765_v33, %v1870_v55  ;;  %v1857_v29 = vadd.f32 %v5761_v39, %v1856_v31  ;;  %v5769_v63 = vpop.eup %5768  ;;  %v1840_v56 = vsub.f32 1.0, %v1839_v21  ;;  %vm1873_vm11 = vweird.f32 %v7280_v51  ;;  %v9992_v21 = vld [vmem:[#allocation23_spill] sm:$0xff] }
 0x244   :  { %v1865_v59 = vor.u32 1.1754944e-38, %v1864_v53  ;;  %v1911_v23 = vpack.c.bf16 %v1710_v5, %v1709_v44  ;;  %v1885_v1 = vsub.f32 1.0, %v1884_v10  ;;  %vm1863_vm13 = vcmp.eq.f32.partialorder %v1862_v18, 8.507059e+37  ;;  %vm1875_vm14 = vmor %vm1873_vm11, %vm1874_vm10  ;;  %v9993_v53 = vld [vmem:[#allocation24_spill] sm:$0xff]  ;;  %v10015_v55 = vld [vmem:[#allocation87_spill] sm:$0xff] }
 0x245   :  { %v1861_v32 = vsel %vm1860_vm12, %v5761_v39, %v1857_v29  ;;  %v1872_v8 = vadd.f32 %v5765_v33, %v1871_v6  ;;  %v1880_v16 = vor.u32 1.1754944e-38, %v1879_v58  ;;  %vm1878_vm15 = vcmp.eq.f32.partialorder %v1877_v20, 8.507059e+37 }
 0x246   :  { %v1866_v46 = vsel %vm1863_vm13, %v1865_v59, %v1861_v32  ;;  %1920 = vmatmul.bf16.vlgmr.msrb.gmra.mxu0 %v1911_v23  ;;  %1934 = vmatmul.bf16.vlgmr.msrb.gmra.mxu1 %v1911_v23  ;;  %v1841_v7 = vmul.f32 %v7312_v19, %v1840_v56  ;;  %v1886_v51 = vmul.f32 %v7329_v38, %v1885_v1  ;;  %vm1844_vm0 = vweird.f32 %v7312_v19  ;;  %v9997_v56 = vld [vmem:[#allocation26_spill] sm:$0xff]  ;;  %v9998_v59 = vld [vmem:[#allocation32_spill] sm:$0xff]  ;;  %v10001_v32 = vld [vmem:[#allocation35_spill] sm:$0xff] }
 0x247   :  { %v1876_v24 = vsel %vm1875_vm14, %v5765_v33, %v1872_v8  ;;  %v1903_v50 = vmul.f32 %v5769_v63, %v1866_v46  ;;  %1948 = vmatmul.bf16.vlgmr.msrb.gmra.mxu2 %v1911_v23  ;;  %1962 = vmatmul.bf16.vlgmr.msrb.gmra.mxu3 %v1911_v23  ;;  %5770 = vtanh.f32 %v7316_v34  ;;  %vm1889_vm1 = vweird.f32 %v7329_v38  ;;  %v9999_v23 = vld [vmem:[#allocation33_spill] sm:$0xff]  ;;  %v10000_v1 = vld [vmem:[#allocation34_spill] sm:$0xff]  ;;  %v10004_v46 = vld [vmem:[#allocation68_spill] sm:$0xff] }
 0x248   :  { %v1881_v25 = vsel %vm1878_vm15, %v1880_v16, %v1876_v24  ;;  %2158 = vmatpush.bf16.msrb.mxu0 %v6472_v37  ;;  %2172 = vmatpush.bf16.msrb.mxu1 %v6474_v41  ;;  %v1842_v36 = vadd.f32 %v7312_v19, %v1841_v7  ;;  %v1887_v57 = vadd.f32 %v7329_v38, %v1886_v51  ;;  %vm1843_vm2 = vweird.f32 %v7269_v28  ;;  %v10002_v8 = vld [vmem:[#allocation66_spill] sm:$0xff]  ;;  %v10003_v16 = vld [vmem:[#allocation67_spill] sm:$0xff]  ;;  %v10005_v24 = vld [vmem:[#allocation69_spill] sm:$0xff] }
 0x249   :  { %v1901_v39 = vmul.f32 %v1881_v25, %v6999_v52  ;;  %2186 = vmatpush.bf16.msrb.mxu2 %v6476_v47  ;;  %2200 = vmatpush.bf16.msrb.mxu3 %v6479_v48  ;;  %v1849_v52 = vand.u32 2147483648, %v7269_v28  ;;  %v1894_v18 = vand.u32 2147483648, %v7290_v43  ;;  %vm7359_vm3 = vmor %vm1843_vm2, %vm1844_vm0  ;;  %v1847_v31 = vand.u32 2147483647, %v7269_v28  ;;  %v10007_v7 = vld [vmem:[#allocation75_spill] sm:$0xff]  ;;  %v10008_v51 = vld [vmem:[#allocation76_spill] sm:$0xff] }
 0x24a   :  { %vm1888_vm4 = vweird.f32 %v7290_v43  ;;  %v1892_v5 = vand.u32 2147483647, %v7290_v43  ;;  %v1846_v58 = vsel %vm7359_vm3, %v7312_v19, %v1842_v36  ;;  %v10009_v25 = vld [vmem:[#allocation77_spill] sm:$0xff]  ;;  %v10011_v36 = vld [vmem:[#allocation79_spill] sm:$0xff] }
 0x24b   :  { %v7346_v33 = vadd.f32 %v1903_v50, %v1901_v39  ;;  %vm1890_vm5 = vmor %vm1888_vm4, %vm1889_vm1  ;;  %v1850_v6 = vor.u32 1.1754944e-38, %v1849_v52  ;;  %v1895_v10 = vor.u32 1.1754944e-38, %v1894_v18  ;;  %vm1848_vm6 = vcmp.eq.f32.partialorder %v1847_v31, 8.507059e+37  ;;  %v10006_v50 = vld [vmem:[#allocation74_spill] sm:$0xff]  ;;  %v10013_v52 = vld [vmem:[#allocation81_spill] sm:$0xff] }
 0x24c   :  { %2159 = vmatpush.bf16.msrb.mxu0 %v6481_v49  ;;  %2173 = vmatpush.bf16.msrb.mxu1 %v9992_v21  ;;  %v1891_v20 = vsel %vm1890_vm5, %v7329_v38, %v1887_v57  ;;  %vm1893_vm7 = vcmp.eq.f32.partialorder %v1892_v5, 8.507059e+37  ;;  %v10010_v39 = vld [vmem:[#allocation78_spill] sm:$0xff]  ;;  %v10012_v57 = vld [vmem:[#allocation80_spill] sm:$0xff]  ;;  %v10017_v5 = vld [vmem:[#allocation89_spill] sm:$0xff] }
 0x24d   :  { %5772 = vtanh.f32 %v7346_v33  ;;  %2187 = vmatpush.bf16.msrb.mxu2 %v9993_v53  ;;  %2201 = vmatpush.bf16.msrb.mxu3 %v9994_v27  ;;  %v5771_v44 = vpop.eup %5770  ;;  %v1851_v43 = vsel %vm1848_vm6, %v1850_v6, %v1846_v58  ;;  %v1896_v29 = vsel %vm1893_vm7, %v1895_v10, %v1891_v20  ;;  %v10014_v18 = vld [vmem:[#allocation86_spill] sm:$0xff]  ;;  %v10016_v31 = vld [vmem:[#allocation88_spill] sm:$0xff]  ;;  %v10019_v20 = vld [vmem:[#allocation91_spill] sm:$0xff] }
 0x24e   :  { %v1908_v63 = vmul.f32 %v5771_v44, %v1851_v43  ;;  %v10018_v58 = vld [vmem:[#allocation90_spill] sm:$0xff]  ;;  %v10020_v44 = vld [vmem:[#allocation92_spill] sm:$0xff]  ;;  %v10021_v6 = vld [vmem:[#allocation93_spill] sm:$0xff] }
 0x24f   :  { %v10022_v10 = vld [vmem:[#allocation98_spill] sm:$0xff]  ;;  %v10024_v43 = vld [vmem:[#allocation100_spill] sm:$0xff] }
 0x250   :  { %2160 = vmatpush.bf16.msrb.mxu0 %v6493_v60  ;;  %2174 = vmatpush.bf16.msrb.mxu1 %v6496_v0 }
 0x251   :  { %2188 = vmatpush.bf16.msrb.mxu2 %v6499_v3  ;;  %2202 = vmatpush.bf16.msrb.mxu3 %v6503_v4 }
 0x253   :  { %v5773_v28 = vpop.eup %5772 }
 0x254   :  { %v1909_v19 = vmul.f32 %v5773_v28, %v1896_v29  ;;  %2161 = vmatpush.bf16.msrb.mxu0 %v6508_v9  ;;  %2175 = vmatpush.bf16.msrb.mxu1 %v6510_v13  ;;  %v10023_v28 = vld [vmem:[#allocation99_spill] sm:$0xff]  ;;  %v10025_v29 = vld [vmem:[#allocation101_spill] sm:$0xff] }
 0x255   :  { %2189 = vmatpush.bf16.msrb.mxu2 %v6512_v14  ;;  %2203 = vmatpush.bf16.msrb.mxu3 %v6515_v17 }
 0x256   :  { %v1910_v38 = vpack.c.bf16 %v1909_v19, %v1908_v63  ;;  %v10026_v63 = vld [vmem:[#allocation102_spill] sm:$0xff]  ;;  %v10027_v19 = vld [vmem:[#allocation103_spill] sm:$0xff] }
 0x258   :  { %1976 = vmatmul.bf16.vlgmr.msra.gmra.mxu0 %v1910_v38  ;;  %1990 = vmatmul.bf16.vlgmr.msra.gmra.mxu1 %v1910_v38 }
 0x259   :  { %2004 = vmatmul.bf16.vlgmr.msra.gmra.mxu2 %v1910_v38  ;;  %2018 = vmatmul.bf16.vlgmr.msra.gmra.mxu3 %v1910_v38 }
 0x25a   :  { %2162 = vmatpush.bf16.msrb.mxu0 %v6520_v22  ;;  %2176 = vmatpush.bf16.msrb.mxu1 %v6522_v26 }
 0x25b   :  { %2190 = vmatpush.bf16.msrb.mxu2 %v9997_v56  ;;  %2204 = vmatpush.bf16.msrb.mxu3 %v6527_v30 }
 0x25e   :  { %2163 = vmatpush.bf16.msrb.mxu0 %v6532_v35  ;;  %2177 = vmatpush.bf16.msrb.mxu1 %v6534_v40 }
 0x25f   :  { %2191 = vmatpush.bf16.msrb.mxu2 %v6536_v42  ;;  %2205 = vmatpush.bf16.msrb.mxu3 %v6539_v45 }
 0x262   :  { %2164 = vmatpush.bf16.msrb.mxu0 %v6544_v54  ;;  %2178 = vmatpush.bf16.msrb.mxu1 %v6546_v61 }
 0x263   :  { %2192 = vmatpush.bf16.msrb.mxu2 %v6548_v62  ;;  %2206 = vmatpush.bf16.msrb.mxu3 %v6551_v2 }
 0x266   :  { %2165 = vmatpush.bf16.msrb.mxu0 %v9998_v59  ;;  %2179 = vmatpush.bf16.msrb.mxu1 %v9999_v23 }
 0x267   :  { %2193 = vmatpush.bf16.msrb.mxu2 %v10000_v1  ;;  %2207 = vmatpush.bf16.msrb.mxu3 %v10001_v32 }
 0x269   :  { %2166 = vmatmul.bf16.vlgmr.msrb.gmra.mxu0 %v1910_v38  ;;  %2180 = vmatmul.bf16.vlgmr.msrb.gmra.mxu1 %v1910_v38 }
 0x26a   :  { %2359 = vmatpush.bf16.msra.mxu0 %v10002_v8  ;;  %2373 = vmatpush.bf16.msra.mxu1 %v10003_v16 }
 0x26b   :  { %2194 = vmatmul.bf16.vlgmr.msrb.gmra.mxu2 %v1910_v38  ;;  %2208 = vmatmul.bf16.vlgmr.msrb.gmra.mxu3 %v1910_v38  ;;  %v10028_v38 = vld [vmem:[#allocation104_spill] sm:$0xff] }
 0x26c   :  { %2387 = vmatpush.bf16.msra.mxu2 %v10004_v46  ;;  %2401 = vmatpush.bf16.msra.mxu3 %v10005_v24  ;;  %v10068_v46 = vld [vmem:[#allocation161_spill] sm:$0xff] }
 0x26e   :  { %2360 = vmatpush.bf16.msra.mxu0 %v10006_v50  ;;  %2374 = vmatpush.bf16.msra.mxu1 %v10007_v7 }
 0x270   :  { %2388 = vmatpush.bf16.msra.mxu2 %v10008_v51  ;;  %2402 = vmatpush.bf16.msra.mxu3 %v10009_v25 }
 0x272   :  { %2361 = vmatpush.bf16.msra.mxu0 %v10010_v39  ;;  %2375 = vmatpush.bf16.msra.mxu1 %v10011_v36 }
 0x274   :  { %2389 = vmatpush.bf16.msra.mxu2 %v10012_v57  ;;  %2403 = vmatpush.bf16.msra.mxu3 %v10013_v52 }
 0x276   :  { %2362 = vmatpush.bf16.msra.mxu0 %v10014_v18  ;;  %2376 = vmatpush.bf16.msra.mxu1 %v10015_v55 }
 0x278   :  { %2390 = vmatpush.bf16.msra.mxu2 %v10016_v31  ;;  %2404 = vmatpush.bf16.msra.mxu3 %v10017_v5 }
 0x27a   :  { %2363 = vmatpush.bf16.msra.mxu0 %v10018_v58  ;;  %2377 = vmatpush.bf16.msra.mxu1 %v10019_v20  ;;  %v10029_v58 = vld [vmem:[#allocation106_spill] sm:$0xff] }
 0x27b   :  { %v10030_v20 = vld [vmem:[#allocation110_spill] sm:$0xff] }
 0x27c   :  { %2391 = vmatpush.bf16.msra.mxu2 %v10020_v44  ;;  %2405 = vmatpush.bf16.msra.mxu3 %v10021_v6  ;;  %v10031_v44 = vld [vmem:[#allocation111_spill] sm:$0xff]  ;;  %v10032_v6 = vld [vmem:[#allocation114_spill] sm:$0xff] }
 0x27e   :  { %2364 = vmatpush.bf16.msra.mxu0 %v10022_v10  ;;  %2378 = vmatpush.bf16.msra.mxu1 %v10023_v28  ;;  %v10033_v10 = vld [vmem:[#allocation115_spill] sm:$0xff]  ;;  %v10034_v28 = vld [vmem:[#allocation112_spill] sm:$0xff] }
 0x280   :  { %2392 = vmatpush.bf16.msra.mxu2 %v10024_v43  ;;  %2406 = vmatpush.bf16.msra.mxu3 %v10025_v29  ;;  %v10035_v43 = vld [vmem:[#allocation113_spill] sm:$0xff] }
 0x281   :  { %v10036_v29 = vld [vmem:[#allocation117_spill] sm:$0xff] }
 0x282   :  { %2365 = vmatpush.bf16.msra.mxu0 %v10026_v63  ;;  %2379 = vmatpush.bf16.msra.mxu1 %v10027_v19  ;;  %v10037_v63 = vld [vmem:[#allocation120_spill] sm:$0xff]  ;;  %v10038_v19 = vld [vmem:[#allocation122_spill] sm:$0xff] }
 0x284   :  { %2393 = vmatpush.bf16.msra.mxu2 %v10028_v38  ;;  %2407 = vmatpush.bf16.msra.mxu3 %v10029_v58  ;;  %v10039_v38 = vld [vmem:[#allocation123_spill] sm:$0xff]  ;;  %v10040_v58 = vld [vmem:[#allocation124_spill] sm:$0xff] }
 0x286   :  { %2366 = vmatpush.bf16.msra.mxu0 %v10030_v20  ;;  %2380 = vmatpush.bf16.msra.mxu1 %v10031_v44  ;;  %v10041_v20 = vld [vmem:[#allocation126_spill] sm:$0xff]  ;;  %v10042_v44 = vld [vmem:[#allocation129_spill] sm:$0xff] }
 0x288   :  { %2394 = vmatpush.bf16.msra.mxu2 %v10034_v28  ;;  %2408 = vmatpush.bf16.msra.mxu3 %v10035_v43  ;;  %v10045_v28 = vld [vmem:[#allocation135_spill] sm:$0xff]  ;;  %v10046_v43 = vld [vmem:[#allocation136_spill] sm:$0xff] }
 0x28a   :  { %2415 = vmatpush.bf16.msrb.mxu0 %v10032_v6  ;;  %2429 = vmatpush.bf16.msrb.mxu1 %v10033_v10  ;;  %v10043_v6 = vld [vmem:[#allocation131_spill] sm:$0xff]  ;;  %v10044_v10 = vld [vmem:[#allocation132_spill] sm:$0xff] }
 0x28c   :  { %2443 = vmatpush.bf16.msrb.mxu2 %v10036_v29  ;;  %2457 = vmatpush.bf16.msrb.mxu3 %v10037_v63  ;;  %v10047_v29 = vld [vmem:[#allocation137_spill] sm:$0xff]  ;;  %v10048_v63 = vld [vmem:[#allocation138_spill] sm:$0xff] }
 0x28e   :  { %2416 = vmatpush.bf16.msrb.mxu0 %v10038_v19  ;;  %2430 = vmatpush.bf16.msrb.mxu1 %v10039_v38  ;;  %v10049_v19 = vld [vmem:[#allocation140_spill] sm:$0xff]  ;;  %v10050_v38 = vld [vmem:[#allocation142_spill] sm:$0xff] }
 0x290   :  { %2444 = vmatpush.bf16.msrb.mxu2 %v10040_v58  ;;  %2458 = vmatpush.bf16.msrb.mxu3 %v10041_v20  ;;  %v10051_v58 = vld [vmem:[#allocation143_spill] sm:$0xff]  ;;  %v10052_v20 = vld [vmem:[#allocation144_spill] sm:$0xff] }
 0x292   :  { %2417 = vmatpush.bf16.msrb.mxu0 %v10042_v44  ;;  %2431 = vmatpush.bf16.msrb.mxu1 %v10043_v6  ;;  %v10053_v44 = vld [vmem:[#allocation145_spill] sm:$0xff]  ;;  %v10054_v6 = vld [vmem:[#allocation147_spill] sm:$0xff] }
 0x294   :  { %2445 = vmatpush.bf16.msrb.mxu2 %v10044_v10  ;;  %2459 = vmatpush.bf16.msrb.mxu3 %v10045_v28  ;;  %v10055_v10 = vld [vmem:[#allocation148_spill] sm:$0xff]  ;;  %v10056_v28 = vld [vmem:[#allocation149_spill] sm:$0xff] }
 0x296   :  { %2418 = vmatpush.bf16.msrb.mxu0 %v10046_v43  ;;  %2432 = vmatpush.bf16.msrb.mxu1 %v10047_v29  ;;  %v10057_v43 = vld [vmem:[#allocation150_spill] sm:$0xff]  ;;  %v10058_v29 = vld [vmem:[#allocation151_spill] sm:$0xff] }
 0x298   :  { %2446 = vmatpush.bf16.msrb.mxu2 %v10048_v63  ;;  %2460 = vmatpush.bf16.msrb.mxu3 %v10049_v19  ;;  %v10059_v63 = vld [vmem:[#allocation152_spill] sm:$0xff]  ;;  %v10060_v19 = vld [vmem:[#allocation153_spill] sm:$0xff] }
 0x29a   :  { %2419 = vmatpush.bf16.msrb.mxu0 %v10050_v38  ;;  %2433 = vmatpush.bf16.msrb.mxu1 %v10051_v58  ;;  %v10061_v38 = vld [vmem:[#allocation154_spill] sm:$0xff]  ;;  %v10062_v58 = vld [vmem:[#allocation155_spill] sm:$0xff] }
 0x29c   :  { %2447 = vmatpush.bf16.msrb.mxu2 %v10052_v20  ;;  %2461 = vmatpush.bf16.msrb.mxu3 %v10053_v44  ;;  %v10063_v20 = vld [vmem:[#allocation156_spill] sm:$0xff]  ;;  %v10064_v44 = vld [vmem:[#allocation157_spill] sm:$0xff] }
 0x29e   :  { %2420 = vmatpush.bf16.msrb.mxu0 %v10054_v6  ;;  %2434 = vmatpush.bf16.msrb.mxu1 %v10055_v10  ;;  %v10065_v6 = vld [vmem:[#allocation158_spill] sm:$0xff] }
 0x2a0   :  { %2448 = vmatpush.bf16.msrb.mxu2 %v10056_v28  ;;  %2462 = vmatpush.bf16.msrb.mxu3 %v10057_v43 }
 0x2a2   :  { %2421 = vmatpush.bf16.msrb.mxu0 %v10058_v29  ;;  %2435 = vmatpush.bf16.msrb.mxu1 %v10059_v63 }
 0x2a4   :  { %2449 = vmatpush.bf16.msrb.mxu2 %v10060_v19  ;;  %2463 = vmatpush.bf16.msrb.mxu3 %v10061_v38 }
 0x2a6   :  { %2422 = vmatpush.bf16.msrb.mxu0 %v10062_v58  ;;  %2436 = vmatpush.bf16.msrb.mxu1 %v10063_v20  ;;  %v10066_v58 = vld [vmem:[#allocation159_spill] sm:$0xff]  ;;  %v10067_v20 = vld [vmem:[#allocation160_spill] sm:$0xff] }
 0x2a8   :  { %2450 = vmatpush.bf16.msrb.mxu2 %v10064_v44  ;;  %2464 = vmatpush.bf16.msrb.mxu3 %v10065_v6 }
 0x2c3   :  { %v1921_v10 = vpop.f32.mrf.mxu0  ;;  %v1935_v28 = vpop.f32.mrf.mxu1 }
 0x2ca   :  { %v1949_v5 = vpop.f32.mrf.mxu2  ;;  %v1963_v29 = vpop.f32.mrf.mxu3 }
 0x2cb   :  { %v1923_v43 = vpop.f32.mrf.mxu0  ;;  %v1937_v31 = vpop.f32.mrf.mxu1 }
 0x2d2   :  { %v1951_v55 = vpop.f32.mrf.mxu2  ;;  %v7458_v38 = vpop.f32.mrf.mxu3 }
 0x2d5   :  { %v1977_v63 = vpop.f32.mrf.mxu0  ;;  %v1991_v18 = vpop.f32.mrf.mxu1 }
 0x2d6   :  { %v1978_v19 = vadd.f32 %v1977_v63, %v1921_v10  ;;  %v1992_v52 = vadd.f32 %v1991_v18, %v1935_v28 }
 0x2d8   :  { %v2024_v57 = vadd.f32 %v1978_v19, %v10066_v58  ;;  %v2025_v36 = vadd.f32 %v1992_v52, %v10067_v20 }
 0x2da   :  { %v5450_v44 = vmul.f32 -1.442695, %v2024_v57  ;;  %v5451_v39 = vmul.f32 -1.442695, %v2025_v36 }
 0x2dc   :  { %5774 = vpow2.f32 %v5450_v44  ;;  %v2005_v6 = vpop.f32.mrf.mxu2  ;;  %v2019_v63 = vpop.f32.mrf.mxu3 }
 0x2dd   :  { %5776 = vpow2.f32 %v5451_v39  ;;  %v2006_v25 = vadd.f32 %v2005_v6, %v1949_v5  ;;  %v1979_v51 = vpop.f32.mrf.mxu0  ;;  %v1993_v7 = vpop.f32.mrf.mxu1  ;;  %v2020_v44 = vadd.f32 %v2019_v63, %v1963_v29  ;;  %v10073_v29 = vld [vmem:[#allocation45_spill] sm:$0xff] }
 0x2de   :  { %v1980_v50 = vadd.f32 %v1979_v51, %v1923_v43  ;;  %v1994_v24 = vadd.f32 %v1993_v7, %v1937_v31  ;;  %v10070_v43 = vld [vmem:[#allocation133_spill] sm:$0xff] }
 0x2df   :  { %v2026_v16 = vadd.f32 %v2006_v25, %v10068_v46 }
 0x2e0   :  { %v2028_v18 = vadd.f32 %v1980_v50, %v10066_v58  ;;  %v2029_v10 = vadd.f32 %v1994_v24, %v10067_v20 }
 0x2e1   :  { %v5452_v28 = vmul.f32 -1.442695, %v2026_v16  ;;  %v10069_v16 = vld [vmem:[#allocation162_spill] sm:$0xff] }
 0x2e2   :  { %v5775_v19 = vpop.eup %5774  ;;  %v5453_v52 = vmul.f32 -1.442695, %v2028_v18  ;;  %v5454_v39 = vmul.f32 -1.442695, %v2029_v10  ;;  %v2027_v50 = vadd.f32 %v2020_v44, %v10069_v16  ;;  %v10071_v18 = vld [vmem:[#allocation44_spill] sm:$0xff]  ;;  %v10077_v44 = vld [vmem:[#allocation49_spill] sm:$0xff] }
 0x2e3   :  { %v5777_v57 = vpop.eup %5776  ;;  %v7465_v36 = vadd.f32 1.0, %v5775_v19  ;;  %5778 = vpow2.f32 %v5452_v28  ;;  %v425_v10 = vadd.f32 %v10071_v18, %v10070_v43  ;;  %v10072_v28 = vld [vmem:[#allocation134_spill] sm:$0xff]  ;;  %v10074_v19 = vld [vmem:[#allocation141_spill] sm:$0xff] }
 0x2e4   :  { %v7467_v5 = vadd.f32 1.0, %v5777_v57  ;;  %5780 = vpow2.f32 %v5453_v52  ;;  %v2007_v7 = vpop.f32.mrf.mxu2  ;;  %v474_v63 = vadd.f32 %v10073_v29, %v10072_v28  ;;  %v10075_v52 = vld [vmem:[#allocation46_spill] sm:$0xff] }
 0x2e5   :  { %5782 = vrcp.f32 %v7465_v36  ;;  %v2008_v24 = vadd.f32 %v2007_v7, %v1951_v55  ;;  %v523_v57 = vadd.f32 %v10075_v52, %v10074_v19  ;;  %v10076_v55 = vld [vmem:[#allocation48_spill] sm:$0xff]  ;;  %v7487_v7 = vadd.f32 %v10077_v44, %v10072_v28  ;;  %v10078_v29 = vld [vmem:[#allocation50_spill] sm:$0xff] }
 0x2e6   :  { %5784 = vrcp.f32 %v7467_v5  ;;  %v2167_v31 = vpop.f32.mrf.mxu0  ;;  %v2181_v18 = vpop.f32.mrf.mxu1  ;;  %v7495_v8 = vadd.f32 %v10078_v29, %v10074_v19  ;;  %vm2061_vm8 = vweird.f32 %v7465_v36  ;;  %v2080_v23 = vand.u32 2147483647, %v7467_v5 }
 0x2e7   :  { %5786 = vpow2.f32 %v5454_v39  ;;  %v2030_v25 = vadd.f32 %v2008_v24, %v10068_v46  ;;  %v7483_v39 = vadd.f32 %v10076_v55, %v10070_v43  ;;  %v2223_v55 = vadd.f32 %v2167_v31, %v425_v10  ;;  %v2021_v29 = vpop.f32.mrf.mxu3 }
 0x2e8   :  { %5788 = vtanh.f32 %v2027_v50  ;;  %v2224_v19 = vadd.f32 %v2181_v18, %v474_v63  ;;  %v2082_v50 = vand.u32 2147483648, %v7467_v5  ;;  %vm2076_vm9 = vweird.f32 %v7467_v5 }
 0x2e9   :  { %v5779_v51 = vpop.eup %5778  ;;  %v5455_v46 = vmul.f32 -1.442695, %v2030_v25  ;;  %v2067_v25 = vand.u32 2147483648, %v7465_v36  ;;  %v5456_v59 = vmul.f32 -1.442695, %v2223_v55  ;;  %vm7527_vm13 = vcmp.eq.f32.partialorder %v2080_v23, 8.507059e+37 }
 0x2ea   :  { %v5781_v6 = vpop.eup %5780  ;;  %v7507_v31 = vadd.f32 1.0, %v5779_v51  ;;  %v2022_v51 = vadd.f32 %v2021_v29, %v7458_v38 }
 0x2eb   :  { %v7479_v20 = vpop.eup %5782  ;;  %v7489_v24 = vadd.f32 1.0, %v5781_v6  ;;  %v2065_v6 = vand.u32 2147483647, %v7465_v36 }
 0x2ec   :  { %v7491_v58 = vpop.eup %5784  ;;  %v2057_v52 = vmul.f32 %v7479_v20, %v7465_v36  ;;  %vm2062_vm11 = vweird.f32 %v7479_v20 }
 0x2ed   :  { %v5787_v43 = vpop.eup %5786  ;;  %v2072_v44 = vmul.f32 %v7491_v58, %v7467_v5  ;;  %5790 = vrcp.f32 %v7489_v24  ;;  %vm7515_vm10 = vcmp.eq.f32.partialorder %v2065_v6, 8.507059e+37  ;;  %vm2077_vm12 = vweird.f32 %v7491_v58  ;;  %vm7536_vm14 = vmor %vm2061_vm8, %vm2062_vm11 }
 0x2ee   :  { %v2058_v28 = vsub.f32 1.0, %v2057_v52  ;;  %v7504_v32 = vadd.f32 1.0, %v5787_v43  ;;  %5792 = vpow2.f32 %v5455_v46  ;;  %v5789_v63 = vpop.eup %5788  ;;  %v5457_v52 = vmul.f32 -1.442695, %v2224_v19  ;;  %vm7549_vm0 = vmor %vm2076_vm9, %vm2077_vm12  ;;  %v2169_v61 = vpop.f32.mrf.mxu0 }
 0x2ef   :  { %v2073_v1 = vsub.f32 1.0, %v2072_v44  ;;  %v2195_v44 = vpop.f32.mrf.mxu2  ;;  %v2110_v19 = vand.u32 2147483647, %v7489_v24  ;;  %vm2106_vm15 = vweird.f32 %v7489_v24  ;;  %v2112_v23 = vand.u32 2147483648, %v7489_v24 }
 0x2f0   :  { %v2059_v10 = vmul.f32 %v7479_v20, %v2058_v28  ;;  %5794 = vrcp.f32 %v7504_v32  ;;  %v2068_v28 = vor.u32 1.1754944e-38, %v2067_v25  ;;  %vm2121_vm1 = vweird.f32 %v7504_v32 }
 0x2f1   :  { %v2074_v43 = vmul.f32 %v7491_v58, %v2073_v1  ;;  %v2083_v1 = vor.u32 1.1754944e-38, %v2082_v50  ;;  %5796 = vrcp.f32 %v7507_v31  ;;  %v2127_v5 = vand.u32 2147483648, %v7504_v32 }
 0x2f2   :  { %v2060_v18 = vadd.f32 %v7479_v20, %v2059_v10  ;;  %5798 = vpow2.f32 %v5456_v59  ;;  %v2031_v10 = vadd.f32 %v2022_v51, %v10069_v16  ;;  %v2225_v51 = vadd.f32 %v2195_v44, %v523_v57 }
 0x2f3   :  { %v7522_v2 = vpop.eup %5790  ;;  %v2075_v55 = vadd.f32 %v7491_v58, %v2074_v43  ;;  %5800 = vpow2.f32 %v5457_v52  ;;  %vm7565_vm3 = vcmp.eq.f32.partialorder %v2110_v19, 8.507059e+37  ;;  %v2113_v52 = vor.u32 1.1754944e-38, %v2112_v23 }
 0x2f4   :  { %v5793_v6 = vpop.eup %5792  ;;  %v2102_v29 = vmul.f32 %v7522_v2, %v7489_v24  ;;  %v2064_v36 = vsel %vm7536_vm14, %v7479_v20, %v2060_v18  ;;  %vm2107_vm2 = vweird.f32 %v7522_v2  ;;  %v2125_v44 = vand.u32 2147483647, %v7504_v32 }
 0x2f5   :  { %v7540_v50 = vadd.f32 1.0, %v5793_v6  ;;  %v2079_v16 = vsel %vm7549_vm0, %v7491_v58, %v2075_v55  ;;  %v2069_v58 = vsel %vm7515_vm10, %v2068_v28, %v2064_v36  ;;  %v2183_v55 = vpop.f32.mrf.mxu1  ;;  %v5458_v19 = vmul.f32 -1.442695, %v2225_v51  ;;  %vm7582_vm5 = vmor %vm2106_vm15, %vm2107_vm2  ;;  %v10091_v51 = vld [vmem:[#allocation47_spill] sm:$0xff] }
 0x2f6   :  { %v5795_v43 = vpop.eup %5794  ;;  %v2103_v6 = vsub.f32 1.0, %v2102_v29  ;;  %v2084_v25 = vsel %vm7527_vm13, %v2083_v1, %v2079_v16  ;;  %v2150_v16 = vmul.f32 %v5789_v63, %v2069_v58  ;;  %v2128_v63 = vor.u32 1.1754944e-38, %v2127_v5 }
 0x2f7   :  { %v2117_v62 = vmul.f32 %v5795_v43, %v7504_v32  ;;  %5802 = vrcp.f32 %v7540_v50  ;;  %v7569_v57 = vpop.eup %5796  ;;  %vm2122_vm4 = vweird.f32 %v5795_v43  ;;  %v2197_v1 = vpop.f32.mrf.mxu2  ;;  %v2148_v24 = vmul.f32 %v2084_v25, %v7249_v15 }
 0x2f8   :  { %v2104_v54 = vmul.f32 %v7522_v2, %v2103_v6  ;;  %v5799_v29 = vpop.eup %5798  ;;  %v2227_v6 = vadd.f32 %v2169_v61, %v7483_v39  ;;  %5804 = vtanh.f32 %v2031_v10  ;;  %v2228_v39 = vadd.f32 %v2183_v55, %v7487_v7  ;;  %vm2123_vm6 = vmor %vm2121_vm1, %vm2122_vm4 }
 0x2f9   :  { %v2118_v18 = vsub.f32 1.0, %v2117_v62  ;;  %v7586_v46 = vadd.f32 1.0, %v5799_v29  ;;  %v5801_v28 = vpop.eup %5800  ;;  %vm2126_vm7 = vcmp.eq.f32.partialorder %v2125_v44, 8.507059e+37  ;;  %v2229_v15 = vadd.f32 %v2197_v1, %v7495_v8  ;;  %v10092_v8 = vld [vmem:[#allocation51_spill] sm:$0xff] }
 0x2fa   :  { %v2105_v59 = vadd.f32 %v7522_v2, %v2104_v54  ;;  %v2087_v54 = vmul.f32 %v7569_v57, %v7507_v31  ;;  %v7596_v10 = vadd.f32 1.0, %v5801_v28  ;;  %v572_v58 = vadd.f32 %v10091_v51, %v6892_v12 }
 0x2fb   :  { %v2119_v45 = vmul.f32 %v5795_v43, %v2118_v18  ;;  %5806 = vrcp.f32 %v7586_v46  ;;  %v5460_v32 = vmul.f32 -1.442695, %v2228_v39  ;;  %v7609_v5 = vadd.f32 %v2150_v16, %v2148_v24 }
 0x2fc   :  { %v2109_v61 = vsel %vm7582_vm5, %v7522_v2, %v2105_v59  ;;  %5808 = vpow2.f32 %v5458_v19  ;;  %v5459_v2 = vmul.f32 -1.442695, %v2227_v6  ;;  %v2088_v18 = vsub.f32 1.0, %v2087_v54 }
 0x2fd   :  { %v2120_v38 = vadd.f32 %v5795_v43, %v2119_v45  ;;  %v7598_v23 = vpop.eup %5802  ;;  %v2114_v7 = vsel %vm7565_vm3, %v2113_v52, %v2109_v61  ;;  %5810 = vrcp.f32 %v7596_v10  ;;  %v2209_v45 = vpop.f32.mrf.mxu3  ;;  %v574_v59 = vadd.f32 %v10092_v8, %v6892_v12 }
 0x2fe   :  { %v5805_v29 = vpop.eup %5804  ;;  %v2132_v44 = vmul.f32 %v7598_v23, %v7540_v50  ;;  %v2226_v52 = vadd.f32 %v2209_v45, %v572_v58  ;;  %5812 = vpow2.f32 %v5459_v2  ;;  %v5461_v19 = vmul.f32 -1.442695, %v2229_v15 }
 0x2ff   :  { %v2124_v36 = vsel %vm2123_vm6, %v5795_v43, %v2120_v38  ;;  %v2151_v43 = vmul.f32 %v5805_v29, %v2114_v7  ;;  %v2089_v62 = vmul.f32 %v7569_v57, %v2088_v18  ;;  %v2097_v28 = vand.u32 2147483648, %v7507_v31 }
 0x300   :  { %v2129_v55 = vsel %vm2126_vm7, %v2128_v63, %v2124_v36  ;;  %5814 = vpow2.f32 %v5460_v32  ;;  %vm2092_vm8 = vweird.f32 %v7569_v57  ;;  %v2142_v61 = vand.u32 2147483648, %v7540_v50 }
 0x301   :  { %v2149_v20 = vmul.f32 %v2129_v55, %v7262_v11  ;;  %v5807_v25 = vpop.eup %5806  ;;  %5816 = vtanh.f32 %v7609_v5  ;;  %v2133_v11 = vsub.f32 1.0, %v2132_v44  ;;  %vm2260_vm9 = vweird.f32 %v7586_v46 }
 0x302   :  { %v5809_v6 = vpop.eup %5808  ;;  %v2256_v54 = vmul.f32 %v5807_v25, %v7586_v46  ;;  %5818 = vtanh.f32 %v2226_v52  ;;  %vm2091_vm10 = vweird.f32 %v7507_v31  ;;  %v2281_v38 = vand.u32 2147483648, %v7596_v10 }
 0x303   :  { %v5811_v16 = vpop.eup %5810  ;;  %v7623_v39 = vadd.f32 %v2151_v43, %v2149_v20  ;;  %v2264_v63 = vand.u32 2147483647, %v7586_v46  ;;  %v2266_v2 = vand.u32 2147483648, %v7586_v46  ;;  %5820 = vpow2.f32 %v5461_v19  ;;  %vm7658_vm3 = vmor %vm2091_vm10, %vm2092_vm8 }
 0x304   :  { %v2257_v1 = vsub.f32 1.0, %v2256_v54  ;;  %v2271_v24 = vmul.f32 %v5811_v16, %v7596_v10  ;;  %v5813_v7 = vpop.eup %5812  ;;  %v7630_v45 = vadd.f32 1.0, %v5809_v6  ;;  %vm2261_vm11 = vweird.f32 %v5807_v25 }
 0x305   :  { %v2134_v51 = vmul.f32 %v7598_v23, %v2133_v11  ;;  %vm2275_vm12 = vweird.f32 %v7596_v10  ;;  %v2279_v58 = vand.u32 2147483647, %v7596_v10  ;;  %v7635_v18 = vadd.f32 1.0, %v5813_v7  ;;  %vm2262_vm14 = vmor %vm2260_vm9, %vm2261_vm11  ;;  %v2211_v54 = vpop.f32.mrf.mxu3 }
 0x306   :  { %v2272_v36 = vsub.f32 1.0, %v2271_v24  ;;  %v2258_v15 = vmul.f32 %v5807_v25, %v2257_v1  ;;  %v5815_v55 = vpop.eup %5814  ;;  %5822 = vtanh.f32 %v7623_v39  ;;  %vm2276_vm13 = vweird.f32 %v5811_v16 }
 0x307   :  { %v5817_v44 = vpop.eup %5816  ;;  %vm2265_vm15 = vcmp.eq.f32.partialorder %v2264_v63, 8.507059e+37  ;;  %v2267_v20 = vor.u32 1.1754944e-38, %v2266_v2  ;;  %5824 = vrcp.f32 %v7635_v18  ;;  %v7641_v43 = vadd.f32 1.0, %v5815_v55  ;;  %vm2277_vm0 = vmor %vm2275_vm12, %vm2276_vm13 }
 0x308   :  { %v2273_v32 = vmul.f32 %v5811_v16, %v2272_v36  ;;  %v2259_v29 = vadd.f32 %v5807_v25, %v2258_v15  ;;  %v5819_v52 = vpop.eup %5818  ;;  %v2282_v8 = vor.u32 1.1754944e-38, %v2281_v38  ;;  %5826 = vrcp.f32 %v7630_v45 }
 0x309   :  { %v5821_v11 = vpop.eup %5820  ;;  %vm2280_vm1 = vcmp.eq.f32.partialorder %v2279_v58, 8.507059e+37  ;;  %5828 = vrcp.f32 %v7641_v43  ;;  %v2090_v1 = vadd.f32 %v7569_v57, %v2089_v62  ;;  %v2135_v38 = vadd.f32 %v7598_v23, %v2134_v51 }
 0x30a   :  { %v2263_v19 = vsel %vm2262_vm14, %v5807_v25, %v2259_v29  ;;  %v2274_v6 = vadd.f32 %v5811_v16, %v2273_v32  ;;  %vm2137_vm2 = vweird.f32 %v7598_v23  ;;  %v7651_v2 = vadd.f32 1.0, %v5821_v11 }
 0x30b   :  { %v2268_v46 = vsel %vm2265_vm15, %v2267_v20, %v2263_v19  ;;  %v2230_v7 = vadd.f32 %v2211_v54, %v574_v59  ;;  %v2095_v36 = vand.u32 2147483647, %v7507_v31  ;;  %vm2136_vm4 = vweird.f32 %v7540_v50 }
 0x30c   :  { %v2278_v24 = vsel %vm2277_vm0, %v5811_v16, %v2274_v6  ;;  %v2349_v63 = vmul.f32 %v5819_v52, %v2268_v46  ;;  %v5823_v10 = vpop.eup %5822  ;;  %v2140_v16 = vand.u32 2147483647, %v7540_v50  ;;  %5830 = vrcp.f32 %v7651_v2  ;;  %vm7669_vm5 = vmor %vm2136_vm4, %vm2137_vm2 }
 0x30d   :  { %v2283_v25 = vsel %vm2280_vm1, %v2282_v8, %v2278_v24  ;;  %v5825_v51 = vpop.eup %5824  ;;  %v2094_v59 = vsel %vm7658_vm3, %v7569_v57, %v2090_v1  ;;  %v2098_v32 = vor.u32 1.1754944e-38, %v2097_v28  ;;  %v2139_v20 = vsel %vm7669_vm5, %v7598_v23, %v2135_v38 }
 0x30e   :  { %v2347_v62 = vmul.f32 %v2283_v25, %v7316_v34  ;;  %v7673_v55 = vpop.eup %5826  ;;  %v2301_v34 = vmul.f32 %v5825_v51, %v7635_v18  ;;  %5832 = vtanh.f32 %v2230_v7  ;;  %vm2096_vm6 = vcmp.eq.f32.partialorder %v2095_v36, 8.507059e+37 }
 0x30f   :  { %v5829_v52 = vpop.eup %5828  ;;  %v2143_v57 = vor.u32 1.1754944e-38, %v2142_v61  ;;  %v2099_v6 = vsel %vm2096_vm6, %v2098_v32, %v2094_v59  ;;  %vm2141_vm7 = vcmp.eq.f32.partialorder %v2140_v16, 8.507059e+37  ;;  %v2286_v31 = vmul.f32 %v7673_v55, %v7630_v45 }
 0x310   :  { %v7677_v29 = vadd.f32 %v2349_v63, %v2347_v62  ;;  %v2302_v8 = vsub.f32 1.0, %v2301_v34  ;;  %v2316_v19 = vmul.f32 %v5829_v52, %v7641_v43  ;;  %v2309_v28 = vand.u32 2147483647, %v7635_v18 }
 0x311   :  { %v2311_v54 = vand.u32 2147483648, %v7635_v18  ;;  %v2144_v11 = vsel %vm2141_vm7, %v2143_v57, %v2139_v20  ;;  %vm2306_vm8 = vweird.f32 %v5825_v51  ;;  %v2326_v50 = vand.u32 2147483648, %v7641_v43 }
 0x312   :  { %v2317_v23 = vsub.f32 1.0, %v2316_v19  ;;  %v2303_v46 = vmul.f32 %v5825_v51, %v2302_v8  ;;  %v2157_v1 = vmul.f32 %v5823_v10, %v2144_v11  ;;  %v7690_v24 = vpop.eup %5830  ;;  %vm2305_vm9 = vweird.f32 %v7635_v18 }
 0x313   :  { %v2324_v61 = vand.u32 2147483647, %v7641_v43  ;;  %v2156_v63 = vmul.f32 %v5817_v44, %v2099_v6  ;;  %vm2321_vm10 = vweird.f32 %v5829_v52  ;;  %v2331_v25 = vmul.f32 %v7690_v24, %v7651_v2  ;;  %vm2307_vm12 = vmor %vm2305_vm9, %vm2306_vm8 }
 0x314   :  { %v2318_v38 = vmul.f32 %v5829_v52, %v2317_v23  ;;  %v2304_v7 = vadd.f32 %v5825_v51, %v2303_v46  ;;  %v5833_v36 = vpop.eup %5832  ;;  %v2287_v15 = vsub.f32 1.0, %v2286_v31  ;;  %vm2320_vm11 = vweird.f32 %v7641_v43  ;;  %v10121_v31 = vld [vmem:[#allocation87_spill] sm:$0xff] }
 0x315   :  { %v2312_v10 = vor.u32 1.1754944e-38, %v2311_v54  ;;  %v2358_v62 = vpack.c.bf16 %v2157_v1, %v2156_v63  ;;  %v2332_v16 = vsub.f32 1.0, %v2331_v25  ;;  %vm2310_vm13 = vcmp.eq.f32.partialorder %v2309_v28, 8.507059e+37  ;;  %vm2322_vm14 = vmor %vm2320_vm11, %vm2321_vm10  ;;  %v10100_v25 = vld [vmem:[#allocation28_spill] sm:$0xff] }
 0x316   :  { %v2308_v59 = vsel %vm2307_vm12, %v5825_v51, %v2304_v7  ;;  %v2319_v18 = vadd.f32 %v5829_v52, %v2318_v38  ;;  %v2327_v58 = vor.u32 1.1754944e-38, %v2326_v50  ;;  %vm2325_vm15 = vcmp.eq.f32.partialorder %v2324_v61, 8.507059e+37  ;;  %v10099_v38 = vld [vmem:[#allocation27_spill] sm:$0xff]  ;;  %v10101_v7 = vld [vmem:[#allocation29_spill] sm:$0xff] }
 0x317   :  { %v2313_v44 = vsel %vm2310_vm13, %v2312_v10, %v2308_v59  ;;  %2367 = vmatmul.bf16.vlgmr.msra.gmra.mxu0 %v2358_v62  ;;  %2381 = vmatmul.bf16.vlgmr.msra.gmra.mxu1 %v2358_v62  ;;  %v2288_v20 = vmul.f32 %v7673_v55, %v2287_v15  ;;  %v2333_v43 = vmul.f32 %v7690_v24, %v2332_v16  ;;  %vm2291_vm0 = vweird.f32 %v7673_v55  ;;  %v10103_v15 = vld [vmem:[#allocation31_spill] sm:$0xff]  ;;  %v10104_v10 = vld [vmem:[#allocation32_spill] sm:$0xff]  ;;  %v10106_v16 = vld [vmem:[#allocation34_spill] sm:$0xff] }
 0x318   :  { %v2323_v32 = vsel %vm2322_vm14, %v5829_v52, %v2319_v18  ;;  %v2350_v34 = vmul.f32 %v5833_v36, %v2313_v44  ;;  %2395 = vmatmul.bf16.vlgmr.msra.gmra.mxu2 %v2358_v62  ;;  %2409 = vmatmul.bf16.vlgmr.msra.gmra.mxu3 %v2358_v62  ;;  %5834 = vtanh.f32 %v7677_v29  ;;  %vm2336_vm1 = vweird.f32 %v7690_v24  ;;  %v10102_v36 = vld [vmem:[#allocation30_spill] sm:$0xff]  ;;  %v10105_v62 = vld [vmem:[#allocation33_spill] sm:$0xff]  ;;  %v10107_v59 = vld [vmem:[#allocation35_spill] sm:$0xff] }
 0x319   :  { %v2328_v57 = vsel %vm2325_vm15, %v2327_v58, %v2323_v32  ;;  %2605 = vmatpush.bf16.msra.mxu0 %v6472_v37  ;;  %2619 = vmatpush.bf16.msra.mxu1 %v6474_v41  ;;  %v2289_v8 = vadd.f32 %v7673_v55, %v2288_v20  ;;  %v2334_v19 = vadd.f32 %v7690_v24, %v2333_v43  ;;  %vm2290_vm2 = vweird.f32 %v7630_v45  ;;  %v10108_v18 = vld [vmem:[#allocation66_spill] sm:$0xff]  ;;  %v10109_v58 = vld [vmem:[#allocation67_spill] sm:$0xff]  ;;  %v10110_v44 = vld [vmem:[#allocation68_spill] sm:$0xff] }
 0x31a   :  { %v2348_v51 = vmul.f32 %v2328_v57, %v7346_v33  ;;  %2633 = vmatpush.bf16.msra.mxu2 %v6476_v47  ;;  %2647 = vmatpush.bf16.msra.mxu3 %v6479_v48  ;;  %v2296_v33 = vand.u32 2147483648, %v7630_v45  ;;  %v2341_v6 = vand.u32 2147483648, %v7651_v2  ;;  %vm7720_vm3 = vmor %vm2290_vm2, %vm2291_vm0  ;;  %v2294_v28 = vand.u32 2147483647, %v7630_v45  ;;  %v10111_v32 = vld [vmem:[#allocation69_spill] sm:$0xff]  ;;  %v10113_v20 = vld [vmem:[#allocation75_spill] sm:$0xff] }
 0x31b   :  { %vm2335_vm4 = vweird.f32 %v7651_v2  ;;  %v2339_v54 = vand.u32 2147483647, %v7651_v2  ;;  %v2293_v11 = vsel %vm7720_vm3, %v7673_v55, %v2289_v8  ;;  %v10114_v43 = vld [vmem:[#allocation76_spill] sm:$0xff]  ;;  %v10115_v57 = vld [vmem:[#allocation77_spill] sm:$0xff]  ;;  %v10117_v8 = vld [vmem:[#allocation79_spill] sm:$0xff] }
 0x31c   :  { %v7707_v52 = vadd.f32 %v2350_v34, %v2348_v51  ;;  %vm2337_vm5 = vmor %vm2335_vm4, %vm2336_vm1  ;;  %v2297_v1 = vor.u32 1.1754944e-38, %v2296_v33  ;;  %v2342_v50 = vor.u32 1.1754944e-38, %v2341_v6  ;;  %vm2295_vm6 = vcmp.eq.f32.partialorder %v2294_v28, 8.507059e+37  ;;  %v10112_v34 = vld [vmem:[#allocation74_spill] sm:$0xff]  ;;  %v10119_v33 = vld [vmem:[#allocation81_spill] sm:$0xff] }
 0x31d   :  { %2606 = vmatpush.bf16.msra.mxu0 %v6481_v49  ;;  %2620 = vmatpush.bf16.msra.mxu1 %v9992_v21  ;;  %v2338_v23 = vsel %vm2337_vm5, %v7690_v24, %v2334_v19  ;;  %vm2340_vm7 = vcmp.eq.f32.partialorder %v2339_v54, 8.507059e+37  ;;  %v10116_v51 = vld [vmem:[#allocation78_spill] sm:$0xff]  ;;  %v10118_v19 = vld [vmem:[#allocation80_spill] sm:$0xff]  ;;  %v10123_v54 = vld [vmem:[#allocation89_spill] sm:$0xff] }
 0x31e   :  { %5836 = vtanh.f32 %v7707_v52  ;;  %2634 = vmatpush.bf16.msra.mxu2 %v9993_v53  ;;  %2648 = vmatpush.bf16.msra.mxu3 %v9994_v27  ;;  %v5835_v46 = vpop.eup %5834  ;;  %v2298_v2 = vsel %vm2295_vm6, %v2297_v1, %v2293_v11  ;;  %v2343_v61 = vsel %vm2340_vm7, %v2342_v50, %v2338_v23  ;;  %v10120_v6 = vld [vmem:[#allocation86_spill] sm:$0xff]  ;;  %v10122_v28 = vld [vmem:[#allocation88_spill] sm:$0xff]  ;;  %v10125_v23 = vld [vmem:[#allocation91_spill] sm:$0xff] }
 0x31f   :  { %v2355_v63 = vmul.f32 %v5835_v46, %v2298_v2  ;;  %v10124_v11 = vld [vmem:[#allocation90_spill] sm:$0xff]  ;;  %v10126_v46 = vld [vmem:[#allocation92_spill] sm:$0xff]  ;;  %v10127_v1 = vld [vmem:[#allocation93_spill] sm:$0xff] }
 0x320   :  { %v10128_v50 = vld [vmem:[#allocation98_spill] sm:$0xff]  ;;  %v10130_v2 = vld [vmem:[#allocation100_spill] sm:$0xff] }
 0x321   :  { %2607 = vmatpush.bf16.msra.mxu0 %v6493_v60  ;;  %2621 = vmatpush.bf16.msra.mxu1 %v6496_v0 }
 0x322   :  { %2635 = vmatpush.bf16.msra.mxu2 %v6499_v3  ;;  %2649 = vmatpush.bf16.msra.mxu3 %v6503_v4 }
 0x324   :  { %v5837_v45 = vpop.eup %5836 }
 0x325   :  { %v2356_v55 = vmul.f32 %v5837_v45, %v2343_v61  ;;  %2608 = vmatpush.bf16.msra.mxu0 %v6508_v9  ;;  %2622 = vmatpush.bf16.msra.mxu1 %v6510_v13  ;;  %v10129_v45 = vld [vmem:[#allocation99_spill] sm:$0xff]  ;;  %v10131_v61 = vld [vmem:[#allocation101_spill] sm:$0xff] }
 0x326   :  { %2636 = vmatpush.bf16.msra.mxu2 %v6512_v14  ;;  %2650 = vmatpush.bf16.msra.mxu3 %v6515_v17 }
 0x327   :  { %v2357_v24 = vpack.c.bf16 %v2356_v55, %v2355_v63  ;;  %v10132_v63 = vld [vmem:[#allocation102_spill] sm:$0xff]  ;;  %v10133_v55 = vld [vmem:[#allocation103_spill] sm:$0xff] }
 0x329   :  { %2423 = vmatmul.bf16.vlgmr.msrb.gmra.mxu0 %v2357_v24  ;;  %2437 = vmatmul.bf16.vlgmr.msrb.gmra.mxu1 %v2357_v24 }
 0x32a   :  { %2451 = vmatmul.bf16.vlgmr.msrb.gmra.mxu2 %v2357_v24  ;;  %2465 = vmatmul.bf16.vlgmr.msrb.gmra.mxu3 %v2357_v24 }
 0x32b   :  { %2609 = vmatpush.bf16.msra.mxu0 %v6520_v22  ;;  %2623 = vmatpush.bf16.msra.mxu1 %v6522_v26 }
 0x32c   :  { %2637 = vmatpush.bf16.msra.mxu2 %v9997_v56  ;;  %2651 = vmatpush.bf16.msra.mxu3 %v6527_v30 }
 0x32f   :  { %2610 = vmatpush.bf16.msra.mxu0 %v6532_v35  ;;  %2624 = vmatpush.bf16.msra.mxu1 %v6534_v40 }
 0x330   :  { %2638 = vmatpush.bf16.msra.mxu2 %v6536_v42  ;;  %2652 = vmatpush.bf16.msra.mxu3 %v10099_v38 }
 0x333   :  { %2611 = vmatpush.bf16.msra.mxu0 %v10100_v25  ;;  %2625 = vmatpush.bf16.msra.mxu1 %v10101_v7 }
 0x334   :  { %2639 = vmatpush.bf16.msra.mxu2 %v10102_v36  ;;  %2653 = vmatpush.bf16.msra.mxu3 %v10103_v15 }
 0x337   :  { %2612 = vmatpush.bf16.msra.mxu0 %v10104_v10  ;;  %2626 = vmatpush.bf16.msra.mxu1 %v10105_v62 }
 0x338   :  { %2640 = vmatpush.bf16.msra.mxu2 %v10106_v16  ;;  %2654 = vmatpush.bf16.msra.mxu3 %v10107_v59 }
 0x33a   :  { %2613 = vmatmul.bf16.vlgmr.msra.gmra.mxu0 %v2357_v24  ;;  %2627 = vmatmul.bf16.vlgmr.msra.gmra.mxu1 %v2357_v24 }
 0x33b   :  { %2806 = vmatpush.bf16.msrb.mxu0 %v10108_v18  ;;  %2820 = vmatpush.bf16.msrb.mxu1 %v10109_v58 }
 0x33c   :  { %2641 = vmatmul.bf16.vlgmr.msra.gmra.mxu2 %v2357_v24  ;;  %2655 = vmatmul.bf16.vlgmr.msra.gmra.mxu3 %v2357_v24  ;;  %v10134_v24 = vld [vmem:[#allocation104_spill] sm:$0xff] }
 0x33d   :  { %2834 = vmatpush.bf16.msrb.mxu2 %v10110_v44  ;;  %2848 = vmatpush.bf16.msrb.mxu3 %v10111_v32  ;;  %v10174_v44 = vld [vmem:[#allocation161_spill] sm:$0xff] }
 0x33f   :  { %2807 = vmatpush.bf16.msrb.mxu0 %v10112_v34  ;;  %2821 = vmatpush.bf16.msrb.mxu1 %v10113_v20 }
 0x341   :  { %2835 = vmatpush.bf16.msrb.mxu2 %v10114_v43  ;;  %2849 = vmatpush.bf16.msrb.mxu3 %v10115_v57 }
 0x343   :  { %2808 = vmatpush.bf16.msrb.mxu0 %v10116_v51  ;;  %2822 = vmatpush.bf16.msrb.mxu1 %v10117_v8 }
 0x345   :  { %2836 = vmatpush.bf16.msrb.mxu2 %v10118_v19  ;;  %2850 = vmatpush.bf16.msrb.mxu3 %v10119_v33 }
 0x347   :  { %2809 = vmatpush.bf16.msrb.mxu0 %v10120_v6  ;;  %2823 = vmatpush.bf16.msrb.mxu1 %v10121_v31 }
 0x349   :  { %2837 = vmatpush.bf16.msrb.mxu2 %v10122_v28  ;;  %2851 = vmatpush.bf16.msrb.mxu3 %v10123_v54 }
 0x34b   :  { %2810 = vmatpush.bf16.msrb.mxu0 %v10124_v11  ;;  %2824 = vmatpush.bf16.msrb.mxu1 %v10125_v23  ;;  %v10135_v11 = vld [vmem:[#allocation106_spill] sm:$0xff] }
 0x34c   :  { %v10136_v23 = vld [vmem:[#allocation110_spill] sm:$0xff] }
 0x34d   :  { %2838 = vmatpush.bf16.msrb.mxu2 %v10126_v46  ;;  %2852 = vmatpush.bf16.msrb.mxu3 %v10127_v1  ;;  %v10137_v46 = vld [vmem:[#allocation111_spill] sm:$0xff]  ;;  %v10138_v1 = vld [vmem:[#allocation114_spill] sm:$0xff] }
 0x34f   :  { %2811 = vmatpush.bf16.msrb.mxu0 %v10128_v50  ;;  %2825 = vmatpush.bf16.msrb.mxu1 %v10129_v45  ;;  %v10139_v50 = vld [vmem:[#allocation115_spill] sm:$0xff]  ;;  %v10140_v45 = vld [vmem:[#allocation112_spill] sm:$0xff] }
 0x351   :  { %2839 = vmatpush.bf16.msrb.mxu2 %v10130_v2  ;;  %2853 = vmatpush.bf16.msrb.mxu3 %v10131_v61  ;;  %v10141_v2 = vld [vmem:[#allocation113_spill] sm:$0xff] }
 0x352   :  { %v10142_v61 = vld [vmem:[#allocation117_spill] sm:$0xff] }
 0x353   :  { %2812 = vmatpush.bf16.msrb.mxu0 %v10132_v63  ;;  %2826 = vmatpush.bf16.msrb.mxu1 %v10133_v55  ;;  %v10143_v63 = vld [vmem:[#allocation120_spill] sm:$0xff]  ;;  %v10144_v55 = vld [vmem:[#allocation122_spill] sm:$0xff] }
 0x355   :  { %2840 = vmatpush.bf16.msrb.mxu2 %v10134_v24  ;;  %2854 = vmatpush.bf16.msrb.mxu3 %v10135_v11  ;;  %v10145_v24 = vld [vmem:[#allocation123_spill] sm:$0xff]  ;;  %v10146_v11 = vld [vmem:[#allocation124_spill] sm:$0xff] }
 0x357   :  { %2813 = vmatpush.bf16.msrb.mxu0 %v10136_v23  ;;  %2827 = vmatpush.bf16.msrb.mxu1 %v10137_v46  ;;  %v10147_v23 = vld [vmem:[#allocation126_spill] sm:$0xff]  ;;  %v10148_v46 = vld [vmem:[#allocation129_spill] sm:$0xff] }
 0x359   :  { %2841 = vmatpush.bf16.msrb.mxu2 %v10140_v45  ;;  %2855 = vmatpush.bf16.msrb.mxu3 %v10141_v2  ;;  %v10151_v45 = vld [vmem:[#allocation135_spill] sm:$0xff]  ;;  %v10152_v2 = vld [vmem:[#allocation136_spill] sm:$0xff] }
 0x35b   :  { %2862 = vmatpush.bf16.msra.mxu0 %v10138_v1  ;;  %2876 = vmatpush.bf16.msra.mxu1 %v10139_v50  ;;  %v10149_v1 = vld [vmem:[#allocation131_spill] sm:$0xff]  ;;  %v10150_v50 = vld [vmem:[#allocation132_spill] sm:$0xff] }
 0x35d   :  { %2890 = vmatpush.bf16.msra.mxu2 %v10142_v61  ;;  %2904 = vmatpush.bf16.msra.mxu3 %v10143_v63  ;;  %v10153_v61 = vld [vmem:[#allocation137_spill] sm:$0xff]  ;;  %v10154_v63 = vld [vmem:[#allocation138_spill] sm:$0xff] }
 0x35f   :  { %2863 = vmatpush.bf16.msra.mxu0 %v10144_v55  ;;  %2877 = vmatpush.bf16.msra.mxu1 %v10145_v24  ;;  %v10155_v55 = vld [vmem:[#allocation140_spill] sm:$0xff]  ;;  %v10156_v24 = vld [vmem:[#allocation142_spill] sm:$0xff] }
 0x361   :  { %2891 = vmatpush.bf16.msra.mxu2 %v10146_v11  ;;  %2905 = vmatpush.bf16.msra.mxu3 %v10147_v23  ;;  %v10157_v11 = vld [vmem:[#allocation143_spill] sm:$0xff]  ;;  %v10158_v23 = vld [vmem:[#allocation144_spill] sm:$0xff] }
 0x363   :  { %2864 = vmatpush.bf16.msra.mxu0 %v10148_v46  ;;  %2878 = vmatpush.bf16.msra.mxu1 %v10149_v1  ;;  %v10159_v46 = vld [vmem:[#allocation145_spill] sm:$0xff]  ;;  %v10160_v1 = vld [vmem:[#allocation147_spill] sm:$0xff] }
 0x365   :  { %2892 = vmatpush.bf16.msra.mxu2 %v10150_v50  ;;  %2906 = vmatpush.bf16.msra.mxu3 %v10151_v45  ;;  %v10161_v50 = vld [vmem:[#allocation148_spill] sm:$0xff]  ;;  %v10162_v45 = vld [vmem:[#allocation149_spill] sm:$0xff] }
 0x367   :  { %2865 = vmatpush.bf16.msra.mxu0 %v10152_v2  ;;  %2879 = vmatpush.bf16.msra.mxu1 %v10153_v61  ;;  %v10163_v2 = vld [vmem:[#allocation150_spill] sm:$0xff]  ;;  %v10164_v61 = vld [vmem:[#allocation151_spill] sm:$0xff] }
 0x369   :  { %2893 = vmatpush.bf16.msra.mxu2 %v10154_v63  ;;  %2907 = vmatpush.bf16.msra.mxu3 %v10155_v55  ;;  %v10165_v63 = vld [vmem:[#allocation152_spill] sm:$0xff]  ;;  %v10166_v55 = vld [vmem:[#allocation153_spill] sm:$0xff] }
 0x36b   :  { %2866 = vmatpush.bf16.msra.mxu0 %v10156_v24  ;;  %2880 = vmatpush.bf16.msra.mxu1 %v10157_v11  ;;  %v10167_v24 = vld [vmem:[#allocation154_spill] sm:$0xff]  ;;  %v10168_v11 = vld [vmem:[#allocation155_spill] sm:$0xff] }
 0x36d   :  { %2894 = vmatpush.bf16.msra.mxu2 %v10158_v23  ;;  %2908 = vmatpush.bf16.msra.mxu3 %v10159_v46  ;;  %v10169_v23 = vld [vmem:[#allocation156_spill] sm:$0xff]  ;;  %v10170_v46 = vld [vmem:[#allocation157_spill] sm:$0xff] }
 0x36f   :  { %2867 = vmatpush.bf16.msra.mxu0 %v10160_v1  ;;  %2881 = vmatpush.bf16.msra.mxu1 %v10161_v50  ;;  %v10171_v1 = vld [vmem:[#allocation158_spill] sm:$0xff] }
 0x371   :  { %2895 = vmatpush.bf16.msra.mxu2 %v10162_v45  ;;  %2909 = vmatpush.bf16.msra.mxu3 %v10163_v2 }
 0x373   :  { %2868 = vmatpush.bf16.msra.mxu0 %v10164_v61  ;;  %2882 = vmatpush.bf16.msra.mxu1 %v10165_v63 }
 0x375   :  { %2896 = vmatpush.bf16.msra.mxu2 %v10166_v55  ;;  %2910 = vmatpush.bf16.msra.mxu3 %v10167_v24 }
 0x377   :  { %2869 = vmatpush.bf16.msra.mxu0 %v10168_v11  ;;  %2883 = vmatpush.bf16.msra.mxu1 %v10169_v23  ;;  %v10172_v11 = vld [vmem:[#allocation159_spill] sm:$0xff]  ;;  %v10173_v23 = vld [vmem:[#allocation160_spill] sm:$0xff] }
 0x379   :  { %2897 = vmatpush.bf16.msra.mxu2 %v10170_v46  ;;  %2911 = vmatpush.bf16.msra.mxu3 %v10171_v1 }
 0x394   :  { %v2368_v50 = vpop.f32.mrf.mxu0  ;;  %v2382_v45 = vpop.f32.mrf.mxu1 }
 0x39b   :  { %v2396_v54 = vpop.f32.mrf.mxu2  ;;  %v2410_v61 = vpop.f32.mrf.mxu3 }
 0x39c   :  { %v2370_v2 = vpop.f32.mrf.mxu0  ;;  %v2384_v28 = vpop.f32.mrf.mxu1 }
 0x3a3   :  { %v2398_v31 = vpop.f32.mrf.mxu2  ;;  %v7819_v24 = vpop.f32.mrf.mxu3 }
 0x3a6   :  { %v2424_v63 = vpop.f32.mrf.mxu0  ;;  %v2438_v6 = vpop.f32.mrf.mxu1 }
 0x3a7   :  { %v2425_v55 = vadd.f32 %v2424_v63, %v2368_v50  ;;  %v2439_v33 = vadd.f32 %v2438_v6, %v2382_v45 }
 0x3a9   :  { %v2471_v19 = vadd.f32 %v2425_v55, %v10172_v11  ;;  %v2472_v8 = vadd.f32 %v2439_v33, %v10173_v23 }
 0x3ab   :  { %v5462_v46 = vmul.f32 -1.442695, %v2471_v19  ;;  %v5463_v51 = vmul.f32 -1.442695, %v2472_v8 }
 0x3ad   :  { %5838 = vpow2.f32 %v5462_v46  ;;  %v2452_v1 = vpop.f32.mrf.mxu2  ;;  %v2466_v63 = vpop.f32.mrf.mxu3 }
 0x3ae   :  { %5840 = vpow2.f32 %v5463_v51  ;;  %v2453_v57 = vadd.f32 %v2452_v1, %v2396_v54  ;;  %v2426_v43 = vpop.f32.mrf.mxu0  ;;  %v2440_v20 = vpop.f32.mrf.mxu1  ;;  %v2467_v46 = vadd.f32 %v2466_v63, %v2410_v61  ;;  %v10179_v61 = vld [vmem:[#allocation53_spill] sm:$0xff] }
 0x3af   :  { %v2427_v34 = vadd.f32 %v2426_v43, %v2370_v2  ;;  %v2441_v32 = vadd.f32 %v2440_v20, %v2384_v28  ;;  %v10176_v2 = vld [vmem:[#allocation133_spill] sm:$0xff] }
 0x3b0   :  { %v2473_v58 = vadd.f32 %v2453_v57, %v10174_v44 }
 0x3b1   :  { %v2475_v6 = vadd.f32 %v2427_v34, %v10172_v11  ;;  %v2476_v50 = vadd.f32 %v2441_v32, %v10173_v23 }
 0x3b2   :  { %v5464_v45 = vmul.f32 -1.442695, %v2473_v58  ;;  %v10175_v58 = vld [vmem:[#allocation162_spill] sm:$0xff] }
 0x3b3   :  { %v5839_v55 = vpop.eup %5838  ;;  %v5465_v33 = vmul.f32 -1.442695, %v2475_v6  ;;  %v5466_v51 = vmul.f32 -1.442695, %v2476_v50  ;;  %v2474_v34 = vadd.f32 %v2467_v46, %v10175_v58  ;;  %v10177_v6 = vld [vmem:[#allocation52_spill] sm:$0xff]  ;;  %v10183_v46 = vld [vmem:[#allocation57_spill] sm:$0xff] }
 0x3b4   :  { %v5841_v19 = vpop.eup %5840  ;;  %v7826_v8 = vadd.f32 1.0, %v5839_v55  ;;  %5842 = vpow2.f32 %v5464_v45  ;;  %v430_v50 = vadd.f32 %v10177_v6, %v10176_v2  ;;  %v10178_v45 = vld [vmem:[#allocation134_spill] sm:$0xff]  ;;  %v10180_v55 = vld [vmem:[#allocation141_spill] sm:$0xff] }
 0x3b5   :  { %v7828_v54 = vadd.f32 1.0, %v5841_v19  ;;  %5844 = vpow2.f32 %v5465_v33  ;;  %v2454_v20 = vpop.f32.mrf.mxu2  ;;  %v479_v63 = vadd.f32 %v10179_v61, %v10178_v45  ;;  %v10181_v33 = vld [vmem:[#allocation54_spill] sm:$0xff] }
 0x3b6   :  { %5846 = vrcp.f32 %v7826_v8  ;;  %v2455_v32 = vadd.f32 %v2454_v20, %v2398_v31  ;;  %v528_v19 = vadd.f32 %v10181_v33, %v10180_v55  ;;  %v10182_v31 = vld [vmem:[#allocation56_spill] sm:$0xff]  ;;  %v7848_v20 = vadd.f32 %v10183_v46, %v10178_v45  ;;  %v10184_v61 = vld [vmem:[#allocation58_spill] sm:$0xff] }
 0x3b7   :  { %5848 = vrcp.f32 %v7828_v54  ;;  %v2614_v28 = vpop.f32.mrf.mxu0  ;;  %v2628_v6 = vpop.f32.mrf.mxu1  ;;  %v7856_v18 = vadd.f32 %v10184_v61, %v10180_v55  ;;  %vm2508_vm8 = vweird.f32 %v7826_v8  ;;  %v2527_v62 = vand.u32 2147483647, %v7828_v54 }
 0x3b8   :  { %5850 = vpow2.f32 %v5466_v51  ;;  %v2477_v57 = vadd.f32 %v2455_v32, %v10174_v44  ;;  %v7844_v51 = vadd.f32 %v10182_v31, %v10176_v2  ;;  %v2670_v31 = vadd.f32 %v2614_v28, %v430_v50  ;;  %v2468_v61 = vpop.f32.mrf.mxu3 }
 0x3b9   :  { %5852 = vtanh.f32 %v2474_v34  ;;  %v2671_v55 = vadd.f32 %v2628_v6, %v479_v63  ;;  %v2529_v34 = vand.u32 2147483648, %v7828_v54  ;;  %vm2523_vm9 = vweird.f32 %v7828_v54 }
 0x3ba   :  { %v5843_v43 = vpop.eup %5842  ;;  %v5467_v44 = vmul.f32 -1.442695, %v2477_v57  ;;  %v2514_v57 = vand.u32 2147483648, %v7826_v8  ;;  %v5468_v10 = vmul.f32 -1.442695, %v2670_v31  ;;  %vm7888_vm13 = vcmp.eq.f32.partialorder %v2527_v62, 8.507059e+37 }
 0x3bb   :  { %v5845_v1 = vpop.eup %5844  ;;  %v7868_v28 = vadd.f32 1.0, %v5843_v43  ;;  %v2469_v43 = vadd.f32 %v2468_v61, %v7819_v24 }
 0x3bc   :  { %v7840_v23 = vpop.eup %5846  ;;  %v7850_v32 = vadd.f32 1.0, %v5845_v1  ;;  %v2512_v1 = vand.u32 2147483647, %v7826_v8 }
 0x3bd   :  { %v7852_v11 = vpop.eup %5848  ;;  %v2504_v33 = vmul.f32 %v7840_v23, %v7826_v8  ;;  %vm2509_vm11 = vweird.f32 %v7840_v23 }
 0x3be   :  { %v5851_v2 = vpop.eup %5850  ;;  %v2519_v46 = vmul.f32 %v7852_v11, %v7828_v54  ;;  %5854 = vrcp.f32 %v7850_v32  ;;  %vm7876_vm10 = vcmp.eq.f32.partialorder %v2512_v1, 8.507059e+37  ;;  %vm2524_vm12 = vweird.f32 %v7852_v11  ;;  %vm7897_vm14 = vmor %vm2508_vm8, %vm2509_vm11 }
 0x3bf   :  { %v2505_v45 = vsub.f32 1.0, %v2504_v33  ;;  %v7865_v59 = vadd.f32 1.0, %v5851_v2  ;;  %5856 = vpow2.f32 %v5467_v44  ;;  %v5853_v63 = vpop.eup %5852  ;;  %v5469_v33 = vmul.f32 -1.442695, %v2671_v55  ;;  %vm7910_vm0 = vmor %vm2523_vm9, %vm2524_vm12  ;;  %v2616_v7 = vpop.f32.mrf.mxu0 }
 0x3c0   :  { %v2520_v16 = vsub.f32 1.0, %v2519_v46  ;;  %v2642_v46 = vpop.f32.mrf.mxu2  ;;  %v2557_v55 = vand.u32 2147483647, %v7850_v32  ;;  %vm2553_vm15 = vweird.f32 %v7850_v32  ;;  %v2559_v62 = vand.u32 2147483648, %v7850_v32 }
 0x3c1   :  { %v2506_v50 = vmul.f32 %v7840_v23, %v2505_v45  ;;  %5858 = vrcp.f32 %v7865_v59  ;;  %v2515_v45 = vor.u32 1.1754944e-38, %v2514_v57  ;;  %vm2568_vm1 = vweird.f32 %v7865_v59 }
 0x3c2   :  { %v2521_v2 = vmul.f32 %v7852_v11, %v2520_v16  ;;  %v2530_v16 = vor.u32 1.1754944e-38, %v2529_v34  ;;  %5860 = vrcp.f32 %v7868_v28  ;;  %v2574_v54 = vand.u32 2147483648, %v7865_v59 }
 0x3c3   :  { %v2507_v6 = vadd.f32 %v7840_v23, %v2506_v50  ;;  %5862 = vpow2.f32 %v5468_v10  ;;  %v2478_v50 = vadd.f32 %v2469_v43, %v10175_v58  ;;  %v2672_v43 = vadd.f32 %v2642_v46, %v528_v19 }
 0x3c4   :  { %v7883_v15 = vpop.eup %5854  ;;  %v2522_v31 = vadd.f32 %v7852_v11, %v2521_v2  ;;  %5864 = vpow2.f32 %v5469_v33  ;;  %vm7926_vm3 = vcmp.eq.f32.partialorder %v2557_v55, 8.507059e+37  ;;  %v2560_v33 = vor.u32 1.1754944e-38, %v2559_v62 }
 0x3c5   :  { %v5857_v1 = vpop.eup %5856  ;;  %v2549_v61 = vmul.f32 %v7883_v15, %v7850_v32  ;;  %v2511_v8 = vsel %vm7897_vm14, %v7840_v23, %v2507_v6  ;;  %vm2554_vm2 = vweird.f32 %v7883_v15  ;;  %v2572_v46 = vand.u32 2147483647, %v7865_v59 }
 0x3c6   :  { %v7901_v34 = vadd.f32 1.0, %v5857_v1  ;;  %v2526_v58 = vsel %vm7910_vm0, %v7852_v11, %v2522_v31  ;;  %v2516_v11 = vsel %vm7876_vm10, %v2515_v45, %v2511_v8  ;;  %v2630_v31 = vpop.f32.mrf.mxu1  ;;  %v5470_v55 = vmul.f32 -1.442695, %v2672_v43  ;;  %vm7943_vm5 = vmor %vm2553_vm15, %vm2554_vm2  ;;  %v10197_v43 = vld [vmem:[#allocation55_spill] sm:$0xff] }
 0x3c7   :  { %v5859_v2 = vpop.eup %5858  ;;  %v2550_v1 = vsub.f32 1.0, %v2549_v61  ;;  %v2531_v57 = vsel %vm7888_vm13, %v2530_v16, %v2526_v58  ;;  %v2597_v58 = vmul.f32 %v5853_v63, %v2516_v11  ;;  %v2575_v63 = vor.u32 1.1754944e-38, %v2574_v54 }
 0x3c8   :  { %v2564_v36 = vmul.f32 %v5859_v2, %v7865_v59  ;;  %5866 = vrcp.f32 %v7901_v34  ;;  %v7930_v19 = vpop.eup %5860  ;;  %vm2569_vm4 = vweird.f32 %v5859_v2  ;;  %v2644_v16 = vpop.f32.mrf.mxu2  ;;  %v2595_v32 = vmul.f32 %v2531_v57, %v7609_v5 }
 0x3c9   :  { %v2551_v25 = vmul.f32 %v7883_v15, %v2550_v1  ;;  %v5863_v61 = vpop.eup %5862  ;;  %v2674_v1 = vadd.f32 %v2616_v7, %v7844_v51  ;;  %5868 = vtanh.f32 %v2478_v50  ;;  %v2675_v51 = vadd.f32 %v2630_v31, %v7848_v20  ;;  %vm2570_vm6 = vmor %vm2568_vm1, %vm2569_vm4  ;;  %v2656_v5 = vpop.f32.mrf.mxu3 }
 0x3ca   :  { %v2565_v6 = vsub.f32 1.0, %v2564_v36  ;;  %v7947_v44 = vadd.f32 1.0, %v5863_v61  ;;  %v5865_v45 = vpop.eup %5864  ;;  %vm2573_vm7 = vcmp.eq.f32.partialorder %v2572_v46, 8.507059e+37  ;;  %v577_v11 = vadd.f32 %v10197_v43, %v6892_v12 }
 0x3cb   :  { %v2552_v10 = vadd.f32 %v7883_v15, %v2551_v25  ;;  %v2534_v25 = vmul.f32 %v7930_v19, %v7868_v28  ;;  %v7957_v50 = vadd.f32 1.0, %v5865_v45  ;;  %v5472_v59 = vmul.f32 -1.442695, %v2675_v51 }
 0x3cc   :  { %v2566_v38 = vmul.f32 %v5859_v2, %v2565_v6  ;;  %5870 = vrcp.f32 %v7947_v44  ;;  %v7970_v54 = vadd.f32 %v2597_v58, %v2595_v32  ;;  %v2544_v45 = vand.u32 2147483648, %v7868_v28 }
 0x3cd   :  { %v2556_v7 = vsel %vm7943_vm5, %v7883_v15, %v2552_v10  ;;  %5872 = vpow2.f32 %v5470_v55  ;;  %v5471_v15 = vmul.f32 -1.442695, %v2674_v1  ;;  %v2535_v6 = vsub.f32 1.0, %v2534_v25 }
 0x3ce   :  { %v2567_v24 = vadd.f32 %v5859_v2, %v2566_v38  ;;  %v7959_v62 = vpop.eup %5866  ;;  %v2561_v20 = vsel %vm7926_vm3, %v2560_v33, %v2556_v7  ;;  %5874 = vrcp.f32 %v7957_v50  ;;  %v2676_v38 = vadd.f32 %v2644_v16, %v7856_v18  ;;  %v10198_v18 = vld [vmem:[#allocation59_spill] sm:$0xff] }
 0x3cf   :  { %v5869_v61 = vpop.eup %5868  ;;  %v2579_v46 = vmul.f32 %v7959_v62, %v7901_v34  ;;  %v2673_v33 = vadd.f32 %v2656_v5, %v577_v11  ;;  %5876 = vpow2.f32 %v5471_v15  ;;  %v579_v10 = vadd.f32 %v10198_v18, %v6892_v12 }
 0x3d0   :  { %v2571_v8 = vsel %vm2570_vm6, %v5859_v2, %v2567_v24  ;;  %v2598_v2 = vmul.f32 %v5869_v61, %v2561_v20  ;;  %v5473_v55 = vmul.f32 -1.442695, %v2676_v38  ;;  %v2536_v36 = vmul.f32 %v7930_v19, %v2535_v6 }
 0x3d1   :  { %v2576_v31 = vsel %vm2573_vm7, %v2575_v63, %v2571_v8  ;;  %5878 = vpow2.f32 %v5472_v59  ;;  %vm2539_vm8 = vweird.f32 %v7930_v19  ;;  %v2589_v7 = vand.u32 2147483648, %v7901_v34 }
 0x3d2   :  { %v2596_v23 = vmul.f32 %v2576_v31, %v7623_v39  ;;  %v5871_v57 = vpop.eup %5870  ;;  %5880 = vtanh.f32 %v7970_v54  ;;  %v2580_v39 = vsub.f32 1.0, %v2579_v46  ;;  %vm2707_vm9 = vweird.f32 %v7947_v44 }
 0x3d3   :  { %v5873_v1 = vpop.eup %5872  ;;  %v2703_v25 = vmul.f32 %v5871_v57, %v7947_v44  ;;  %5882 = vtanh.f32 %v2673_v33  ;;  %vm2538_vm10 = vweird.f32 %v7868_v28  ;;  %v2728_v24 = vand.u32 2147483648, %v7957_v50 }
 0x3d4   :  { %v5875_v58 = vpop.eup %5874  ;;  %v7984_v51 = vadd.f32 %v2598_v2, %v2596_v23  ;;  %v2711_v63 = vand.u32 2147483647, %v7947_v44  ;;  %v2713_v15 = vand.u32 2147483648, %v7947_v44  ;;  %5884 = vpow2.f32 %v5473_v55  ;;  %vm8019_vm3 = vmor %vm2538_vm10, %vm2539_vm8 }
 0x3d5   :  { %v2704_v16 = vsub.f32 1.0, %v2703_v25  ;;  %v2718_v32 = vmul.f32 %v5875_v58, %v7957_v50  ;;  %v5877_v20 = vpop.eup %5876  ;;  %v7991_v5 = vadd.f32 1.0, %v5873_v1  ;;  %vm2708_vm11 = vweird.f32 %v5871_v57  ;;  %v2658_v25 = vpop.f32.mrf.mxu3 }
 0x3d6   :  { %v2581_v43 = vmul.f32 %v7959_v62, %v2580_v39  ;;  %vm2722_vm12 = vweird.f32 %v7957_v50  ;;  %v2726_v11 = vand.u32 2147483647, %v7957_v50  ;;  %v7996_v6 = vadd.f32 1.0, %v5877_v20  ;;  %vm2709_vm14 = vmor %vm2707_vm9, %vm2708_vm11 }
 0x3d7   :  { %v2719_v8 = vsub.f32 1.0, %v2718_v32  ;;  %v2705_v38 = vmul.f32 %v5871_v57, %v2704_v16  ;;  %v5879_v31 = vpop.eup %5878  ;;  %5886 = vtanh.f32 %v7984_v51  ;;  %vm2723_vm13 = vweird.f32 %v5875_v58 }
 0x3d8   :  { %v5881_v46 = vpop.eup %5880  ;;  %vm2712_vm15 = vcmp.eq.f32.partialorder %v2711_v63, 8.507059e+37  ;;  %v2714_v23 = vor.u32 1.1754944e-38, %v2713_v15  ;;  %5888 = vrcp.f32 %v7996_v6  ;;  %v8002_v2 = vadd.f32 1.0, %v5879_v31  ;;  %vm2724_vm0 = vmor %vm2722_vm12, %vm2723_vm13 }
 0x3d9   :  { %v2720_v59 = vmul.f32 %v5875_v58, %v2719_v8  ;;  %v2706_v61 = vadd.f32 %v5871_v57, %v2705_v38  ;;  %v5883_v33 = vpop.eup %5882  ;;  %v2729_v18 = vor.u32 1.1754944e-38, %v2728_v24  ;;  %5890 = vrcp.f32 %v7991_v5 }
 0x3da   :  { %v5885_v39 = vpop.eup %5884  ;;  %vm2727_vm1 = vcmp.eq.f32.partialorder %v2726_v11, 8.507059e+37  ;;  %5892 = vrcp.f32 %v8002_v2  ;;  %v2537_v16 = vadd.f32 %v7930_v19, %v2536_v36  ;;  %v2582_v24 = vadd.f32 %v7959_v62, %v2581_v43 }
 0x3db   :  { %v2710_v55 = vsel %vm2709_vm14, %v5871_v57, %v2706_v61  ;;  %v2721_v1 = vadd.f32 %v5875_v58, %v2720_v59  ;;  %vm2584_vm2 = vweird.f32 %v7959_v62  ;;  %v8012_v15 = vadd.f32 1.0, %v5885_v39 }
 0x3dc   :  { %v2715_v44 = vsel %vm2712_vm15, %v2714_v23, %v2710_v55  ;;  %v2677_v20 = vadd.f32 %v2658_v25, %v579_v10  ;;  %v2542_v8 = vand.u32 2147483647, %v7868_v28  ;;  %vm2583_vm4 = vweird.f32 %v7901_v34 }
 0x3dd   :  { %v2725_v32 = vsel %vm2724_vm0, %v5875_v58, %v2721_v1  ;;  %v2796_v63 = vmul.f32 %v5883_v33, %v2715_v44  ;;  %v5887_v50 = vpop.eup %5886  ;;  %v2587_v58 = vand.u32 2147483647, %v7901_v34  ;;  %5894 = vrcp.f32 %v8012_v15  ;;  %vm8030_vm5 = vmor %vm2583_vm4, %vm2584_vm2 }
 0x3de   :  { %v2730_v57 = vsel %vm2727_vm1, %v2729_v18, %v2725_v32  ;;  %v5889_v43 = vpop.eup %5888  ;;  %v2541_v10 = vsel %vm8019_vm3, %v7930_v19, %v2537_v16  ;;  %v2545_v59 = vor.u32 1.1754944e-38, %v2544_v45  ;;  %v2586_v23 = vsel %vm8030_vm5, %v7959_v62, %v2582_v24 }
 0x3df   :  { %v2794_v36 = vmul.f32 %v2730_v57, %v7677_v29  ;;  %v8034_v31 = vpop.eup %5890  ;;  %v2748_v29 = vmul.f32 %v5889_v43, %v7996_v6  ;;  %5896 = vtanh.f32 %v2677_v20  ;;  %vm2543_vm6 = vcmp.eq.f32.partialorder %v2542_v8, 8.507059e+37 }
 0x3e0   :  { %v5893_v33 = vpop.eup %5892  ;;  %v2590_v19 = vor.u32 1.1754944e-38, %v2589_v7  ;;  %v2546_v1 = vsel %vm2543_vm6, %v2545_v59, %v2541_v10  ;;  %vm2588_vm7 = vcmp.eq.f32.partialorder %v2587_v58, 8.507059e+37  ;;  %v2733_v28 = vmul.f32 %v8034_v31, %v7991_v5 }
 0x3e1   :  { %v8038_v61 = vadd.f32 %v2796_v63, %v2794_v36  ;;  %v2749_v18 = vsub.f32 1.0, %v2748_v29  ;;  %v2763_v55 = vmul.f32 %v5893_v33, %v8002_v2  ;;  %v2756_v45 = vand.u32 2147483647, %v7996_v6 }
 0x3e2   :  { %v2758_v25 = vand.u32 2147483648, %v7996_v6  ;;  %v2591_v39 = vsel %vm2588_vm7, %v2590_v19, %v2586_v23  ;;  %vm2753_vm8 = vweird.f32 %v5889_v43  ;;  %v2773_v34 = vand.u32 2147483648, %v8002_v2 }
 0x3e3   :  { %v2764_v62 = vsub.f32 1.0, %v2763_v55  ;;  %v2750_v44 = vmul.f32 %v5889_v43, %v2749_v18  ;;  %v2604_v16 = vmul.f32 %v5887_v50, %v2591_v39  ;;  %v8051_v32 = vpop.eup %5894  ;;  %vm2752_vm9 = vweird.f32 %v7996_v6 }
 0x3e4   :  { %v2771_v7 = vand.u32 2147483647, %v8002_v2  ;;  %v2603_v63 = vmul.f32 %v5881_v46, %v2546_v1  ;;  %vm2768_vm10 = vweird.f32 %v5893_v33  ;;  %v2778_v57 = vmul.f32 %v8051_v32, %v8012_v15  ;;  %vm2754_vm12 = vmor %vm2752_vm9, %vm2753_vm8 }
 0x3e5   :  { %v2765_v24 = vmul.f32 %v5893_v33, %v2764_v62  ;;  %v2751_v20 = vadd.f32 %v5889_v43, %v2750_v44  ;;  %v5897_v8 = vpop.eup %5896  ;;  %v2734_v38 = vsub.f32 1.0, %v2733_v28  ;;  %vm2767_vm11 = vweird.f32 %v8002_v2  ;;  %v10227_v28 = vld [vmem:[#allocation87_spill] sm:$0xff] }
 0x3e6   :  { %v2759_v50 = vor.u32 1.1754944e-38, %v2758_v25  ;;  %v2805_v36 = vpack.c.bf16 %v2604_v16, %v2603_v63  ;;  %v2779_v58 = vsub.f32 1.0, %v2778_v57  ;;  %vm2757_vm13 = vcmp.eq.f32.partialorder %v2756_v45, 8.507059e+37  ;;  %vm2769_vm14 = vmor %vm2767_vm11, %vm2768_vm10  ;;  %v10206_v57 = vld [vmem:[#allocation28_spill] sm:$0xff] }
 0x3e7   :  { %v2755_v10 = vsel %vm2754_vm12, %v5889_v43, %v2751_v20  ;;  %v2766_v6 = vadd.f32 %v5893_v33, %v2765_v24  ;;  %v2774_v11 = vor.u32 1.1754944e-38, %v2773_v34  ;;  %vm2772_vm15 = vcmp.eq.f32.partialorder %v2771_v7, 8.507059e+37  ;;  %v10205_v24 = vld [vmem:[#allocation27_spill] sm:$0xff]  ;;  %v10207_v20 = vld [vmem:[#allocation29_spill] sm:$0xff] }
 0x3e8   :  { %v2760_v46 = vsel %vm2757_vm13, %v2759_v50, %v2755_v10  ;;  %2814 = vmatmul.bf16.vlgmr.msrb.gmra.mxu0 %v2805_v36  ;;  %2828 = vmatmul.bf16.vlgmr.msrb.gmra.mxu1 %v2805_v36  ;;  %v2735_v23 = vmul.f32 %v8034_v31, %v2734_v38  ;;  %v2780_v2 = vmul.f32 %v8051_v32, %v2779_v58  ;;  %vm2738_vm0 = vweird.f32 %v8034_v31  ;;  %v10209_v38 = vld [vmem:[#allocation31_spill] sm:$0xff]  ;;  %v10210_v50 = vld [vmem:[#allocation32_spill] sm:$0xff]  ;;  %v10212_v58 = vld [vmem:[#allocation34_spill] sm:$0xff] }
 0x3e9   :  { %v2770_v59 = vsel %vm2769_vm14, %v5893_v33, %v2766_v6  ;;  %v2797_v29 = vmul.f32 %v5897_v8, %v2760_v46  ;;  %2842 = vmatmul.bf16.vlgmr.msrb.gmra.mxu2 %v2805_v36  ;;  %2856 = vmatmul.bf16.vlgmr.msrb.gmra.mxu3 %v2805_v36  ;;  %5898 = vtanh.f32 %v8038_v61  ;;  %vm2783_vm1 = vweird.f32 %v8051_v32  ;;  %v10208_v8 = vld [vmem:[#allocation30_spill] sm:$0xff]  ;;  %v10211_v36 = vld [vmem:[#allocation33_spill] sm:$0xff]  ;;  %v10213_v10 = vld [vmem:[#allocation35_spill] sm:$0xff] }
 0x3ea   :  { %v2775_v19 = vsel %vm2772_vm15, %v2774_v11, %v2770_v59  ;;  %3052 = vmatpush.bf16.msrb.mxu0 %v6472_v37  ;;  %3066 = vmatpush.bf16.msrb.mxu1 %v6474_v41  ;;  %v2736_v18 = vadd.f32 %v8034_v31, %v2735_v23  ;;  %v2781_v55 = vadd.f32 %v8051_v32, %v2780_v2  ;;  %vm2737_vm2 = vweird.f32 %v7991_v5  ;;  %v10214_v6 = vld [vmem:[#allocation66_spill] sm:$0xff]  ;;  %v10215_v11 = vld [vmem:[#allocation67_spill] sm:$0xff]  ;;  %v10216_v46 = vld [vmem:[#allocation68_spill] sm:$0xff] }
 0x3eb   :  { %v2795_v43 = vmul.f32 %v2775_v19, %v7707_v52  ;;  %3080 = vmatpush.bf16.msrb.mxu2 %v6476_v47  ;;  %3094 = vmatpush.bf16.msrb.mxu3 %v6479_v48  ;;  %v2743_v52 = vand.u32 2147483648, %v7991_v5  ;;  %v2788_v1 = vand.u32 2147483648, %v8012_v15  ;;  %vm8081_vm3 = vmor %vm2737_vm2, %vm2738_vm0  ;;  %v2741_v45 = vand.u32 2147483647, %v7991_v5  ;;  %v10217_v59 = vld [vmem:[#allocation69_spill] sm:$0xff]  ;;  %v10219_v23 = vld [vmem:[#allocation75_spill] sm:$0xff] }
 0x3ec   :  { %vm2782_vm4 = vweird.f32 %v8012_v15  ;;  %v2786_v25 = vand.u32 2147483647, %v8012_v15  ;;  %v2740_v39 = vsel %vm8081_vm3, %v8034_v31, %v2736_v18  ;;  %v10220_v2 = vld [vmem:[#allocation76_spill] sm:$0xff]  ;;  %v10221_v19 = vld [vmem:[#allocation77_spill] sm:$0xff]  ;;  %v10223_v18 = vld [vmem:[#allocation79_spill] sm:$0xff] }
 0x3ed   :  { %v8068_v33 = vadd.f32 %v2797_v29, %v2795_v43  ;;  %vm2784_vm5 = vmor %vm2782_vm4, %vm2783_vm1  ;;  %v2744_v16 = vor.u32 1.1754944e-38, %v2743_v52  ;;  %v2789_v34 = vor.u32 1.1754944e-38, %v2788_v1  ;;  %vm2742_vm6 = vcmp.eq.f32.partialorder %v2741_v45, 8.507059e+37  ;;  %v10218_v29 = vld [vmem:[#allocation74_spill] sm:$0xff]  ;;  %v10225_v52 = vld [vmem:[#allocation81_spill] sm:$0xff] }
 0x3ee   :  { %3053 = vmatpush.bf16.msrb.mxu0 %v6481_v49  ;;  %3067 = vmatpush.bf16.msrb.mxu1 %v9992_v21  ;;  %v2785_v62 = vsel %vm2784_vm5, %v8051_v32, %v2781_v55  ;;  %vm2787_vm7 = vcmp.eq.f32.partialorder %v2786_v25, 8.507059e+37  ;;  %v10222_v43 = vld [vmem:[#allocation78_spill] sm:$0xff]  ;;  %v10224_v55 = vld [vmem:[#allocation80_spill] sm:$0xff]  ;;  %v10229_v25 = vld [vmem:[#allocation89_spill] sm:$0xff] }
 0x3ef   :  { %5900 = vtanh.f32 %v8068_v33  ;;  %3081 = vmatpush.bf16.msrb.mxu2 %v9993_v53  ;;  %3095 = vmatpush.bf16.msrb.mxu3 %v9994_v27  ;;  %v5899_v44 = vpop.eup %5898  ;;  %v2745_v15 = vsel %vm2742_vm6, %v2744_v16, %v2740_v39  ;;  %v2790_v7 = vsel %vm2787_vm7, %v2789_v34, %v2785_v62  ;;  %v10226_v1 = vld [vmem:[#allocation86_spill] sm:$0xff]  ;;  %v10228_v45 = vld [vmem:[#allocation88_spill] sm:$0xff]  ;;  %v10231_v62 = vld [vmem:[#allocation91_spill] sm:$0xff] }
 0x3f0   :  { %v2802_v63 = vmul.f32 %v5899_v44, %v2745_v15  ;;  %v10230_v39 = vld [vmem:[#allocation90_spill] sm:$0xff]  ;;  %v10232_v44 = vld [vmem:[#allocation92_spill] sm:$0xff]  ;;  %v10233_v16 = vld [vmem:[#allocation93_spill] sm:$0xff] }
 0x3f1   :  { %v10234_v34 = vld [vmem:[#allocation98_spill] sm:$0xff]  ;;  %v10236_v15 = vld [vmem:[#allocation100_spill] sm:$0xff] }
 0x3f2   :  { %3054 = vmatpush.bf16.msrb.mxu0 %v6493_v60  ;;  %3068 = vmatpush.bf16.msrb.mxu1 %v6496_v0 }
 0x3f3   :  { %3082 = vmatpush.bf16.msrb.mxu2 %v6499_v3  ;;  %3096 = vmatpush.bf16.msrb.mxu3 %v6503_v4 }
 0x3f5   :  { %v5901_v5 = vpop.eup %5900 }
 0x3f6   :  { %v2803_v31 = vmul.f32 %v5901_v5, %v2790_v7  ;;  %3055 = vmatpush.bf16.msrb.mxu0 %v6508_v9  ;;  %3069 = vmatpush.bf16.msrb.mxu1 %v6510_v13  ;;  %v10235_v5 = vld [vmem:[#allocation99_spill] sm:$0xff]  ;;  %v10237_v7 = vld [vmem:[#allocation101_spill] sm:$0xff] }
 0x3f7   :  { %3083 = vmatpush.bf16.msrb.mxu2 %v6512_v14  ;;  %3097 = vmatpush.bf16.msrb.mxu3 %v6515_v17 }
 0x3f8   :  { %v2804_v32 = vpack.c.bf16 %v2803_v31, %v2802_v63  ;;  %v10238_v63 = vld [vmem:[#allocation102_spill] sm:$0xff]  ;;  %v10239_v31 = vld [vmem:[#allocation103_spill] sm:$0xff] }
 0x3fa   :  { %2870 = vmatmul.bf16.vlgmr.msra.gmra.mxu0 %v2804_v32  ;;  %2884 = vmatmul.bf16.vlgmr.msra.gmra.mxu1 %v2804_v32 }
 0x3fb   :  { %2898 = vmatmul.bf16.vlgmr.msra.gmra.mxu2 %v2804_v32  ;;  %2912 = vmatmul.bf16.vlgmr.msra.gmra.mxu3 %v2804_v32 }
 0x3fc   :  { %3056 = vmatpush.bf16.msrb.mxu0 %v6520_v22  ;;  %3070 = vmatpush.bf16.msrb.mxu1 %v6522_v26 }
 0x3fd   :  { %3084 = vmatpush.bf16.msrb.mxu2 %v9997_v56  ;;  %3098 = vmatpush.bf16.msrb.mxu3 %v6527_v30 }
 0x400   :  { %3057 = vmatpush.bf16.msrb.mxu0 %v6532_v35  ;;  %3071 = vmatpush.bf16.msrb.mxu1 %v6534_v40 }
 0x401   :  { %3085 = vmatpush.bf16.msrb.mxu2 %v6536_v42  ;;  %3099 = vmatpush.bf16.msrb.mxu3 %v10205_v24 }
 0x404   :  { %3058 = vmatpush.bf16.msrb.mxu0 %v10206_v57  ;;  %3072 = vmatpush.bf16.msrb.mxu1 %v10207_v20 }
 0x405   :  { %3086 = vmatpush.bf16.msrb.mxu2 %v10208_v8  ;;  %3100 = vmatpush.bf16.msrb.mxu3 %v10209_v38 }
 0x408   :  { %3059 = vmatpush.bf16.msrb.mxu0 %v10210_v50  ;;  %3073 = vmatpush.bf16.msrb.mxu1 %v10211_v36 }
 0x409   :  { %3087 = vmatpush.bf16.msrb.mxu2 %v10212_v58  ;;  %3101 = vmatpush.bf16.msrb.mxu3 %v10213_v10 }
 0x40b   :  { %3060 = vmatmul.bf16.vlgmr.msrb.gmra.mxu0 %v2804_v32  ;;  %3074 = vmatmul.bf16.vlgmr.msrb.gmra.mxu1 %v2804_v32 }
 0x40c   :  { %3253 = vmatpush.bf16.msra.mxu0 %v10214_v6  ;;  %3267 = vmatpush.bf16.msra.mxu1 %v10215_v11 }
 0x40d   :  { %3088 = vmatmul.bf16.vlgmr.msrb.gmra.mxu2 %v2804_v32  ;;  %3102 = vmatmul.bf16.vlgmr.msrb.gmra.mxu3 %v2804_v32  ;;  %v10240_v32 = vld [vmem:[#allocation104_spill] sm:$0xff] }
 0x40e   :  { %3281 = vmatpush.bf16.msra.mxu2 %v10216_v46  ;;  %3295 = vmatpush.bf16.msra.mxu3 %v10217_v59  ;;  %v10280_v46 = vld [vmem:[#allocation161_spill] sm:$0xff] }
 0x410   :  { %3254 = vmatpush.bf16.msra.mxu0 %v10218_v29  ;;  %3268 = vmatpush.bf16.msra.mxu1 %v10219_v23 }
 0x412   :  { %3282 = vmatpush.bf16.msra.mxu2 %v10220_v2  ;;  %3296 = vmatpush.bf16.msra.mxu3 %v10221_v19 }
 0x414   :  { %3255 = vmatpush.bf16.msra.mxu0 %v10222_v43  ;;  %3269 = vmatpush.bf16.msra.mxu1 %v10223_v18 }
 0x416   :  { %3283 = vmatpush.bf16.msra.mxu2 %v10224_v55  ;;  %3297 = vmatpush.bf16.msra.mxu3 %v10225_v52 }
 0x418   :  { %3256 = vmatpush.bf16.msra.mxu0 %v10226_v1  ;;  %3270 = vmatpush.bf16.msra.mxu1 %v10227_v28 }
 0x41a   :  { %3284 = vmatpush.bf16.msra.mxu2 %v10228_v45  ;;  %3298 = vmatpush.bf16.msra.mxu3 %v10229_v25 }
 0x41c   :  { %3257 = vmatpush.bf16.msra.mxu0 %v10230_v39  ;;  %3271 = vmatpush.bf16.msra.mxu1 %v10231_v62  ;;  %v10241_v39 = vld [vmem:[#allocation106_spill] sm:$0xff] }
 0x41d   :  { %v10242_v62 = vld [vmem:[#allocation110_spill] sm:$0xff] }
 0x41e   :  { %3285 = vmatpush.bf16.msra.mxu2 %v10232_v44  ;;  %3299 = vmatpush.bf16.msra.mxu3 %v10233_v16  ;;  %v10243_v44 = vld [vmem:[#allocation111_spill] sm:$0xff]  ;;  %v10244_v16 = vld [vmem:[#allocation114_spill] sm:$0xff] }
 0x420   :  { %3258 = vmatpush.bf16.msra.mxu0 %v10234_v34  ;;  %3272 = vmatpush.bf16.msra.mxu1 %v10235_v5  ;;  %v10245_v34 = vld [vmem:[#allocation115_spill] sm:$0xff]  ;;  %v10246_v5 = vld [vmem:[#allocation112_spill] sm:$0xff] }
 0x422   :  { %3286 = vmatpush.bf16.msra.mxu2 %v10236_v15  ;;  %3300 = vmatpush.bf16.msra.mxu3 %v10237_v7  ;;  %v10247_v15 = vld [vmem:[#allocation113_spill] sm:$0xff] }
 0x423   :  { %v10248_v7 = vld [vmem:[#allocation117_spill] sm:$0xff] }
 0x424   :  { %3259 = vmatpush.bf16.msra.mxu0 %v10238_v63  ;;  %3273 = vmatpush.bf16.msra.mxu1 %v10239_v31  ;;  %v10249_v63 = vld [vmem:[#allocation120_spill] sm:$0xff]  ;;  %v10250_v31 = vld [vmem:[#allocation122_spill] sm:$0xff] }
 0x426   :  { %3287 = vmatpush.bf16.msra.mxu2 %v10240_v32  ;;  %3301 = vmatpush.bf16.msra.mxu3 %v10241_v39  ;;  %v10251_v32 = vld [vmem:[#allocation123_spill] sm:$0xff]  ;;  %v10252_v39 = vld [vmem:[#allocation124_spill] sm:$0xff] }
 0x428   :  { %3260 = vmatpush.bf16.msra.mxu0 %v10242_v62  ;;  %3274 = vmatpush.bf16.msra.mxu1 %v10243_v44  ;;  %v10253_v62 = vld [vmem:[#allocation126_spill] sm:$0xff]  ;;  %v10254_v44 = vld [vmem:[#allocation129_spill] sm:$0xff] }
 0x42a   :  { %3288 = vmatpush.bf16.msra.mxu2 %v10246_v5  ;;  %3302 = vmatpush.bf16.msra.mxu3 %v10247_v15  ;;  %v10257_v5 = vld [vmem:[#allocation135_spill] sm:$0xff]  ;;  %v10258_v15 = vld [vmem:[#allocation136_spill] sm:$0xff] }
 0x42c   :  { %3309 = vmatpush.bf16.msrb.mxu0 %v10244_v16  ;;  %3323 = vmatpush.bf16.msrb.mxu1 %v10245_v34  ;;  %v10255_v16 = vld [vmem:[#allocation131_spill] sm:$0xff]  ;;  %v10256_v34 = vld [vmem:[#allocation132_spill] sm:$0xff] }
 0x42e   :  { %3337 = vmatpush.bf16.msrb.mxu2 %v10248_v7  ;;  %3351 = vmatpush.bf16.msrb.mxu3 %v10249_v63  ;;  %v10259_v7 = vld [vmem:[#allocation137_spill] sm:$0xff]  ;;  %v10260_v63 = vld [vmem:[#allocation138_spill] sm:$0xff] }
 0x430   :  { %3310 = vmatpush.bf16.msrb.mxu0 %v10250_v31  ;;  %3324 = vmatpush.bf16.msrb.mxu1 %v10251_v32  ;;  %v10261_v31 = vld [vmem:[#allocation140_spill] sm:$0xff]  ;;  %v10262_v32 = vld [vmem:[#allocation142_spill] sm:$0xff] }
 0x432   :  { %3338 = vmatpush.bf16.msrb.mxu2 %v10252_v39  ;;  %3352 = vmatpush.bf16.msrb.mxu3 %v10253_v62  ;;  %v10263_v39 = vld [vmem:[#allocation143_spill] sm:$0xff]  ;;  %v10264_v62 = vld [vmem:[#allocation144_spill] sm:$0xff] }
 0x434   :  { %3311 = vmatpush.bf16.msrb.mxu0 %v10254_v44  ;;  %3325 = vmatpush.bf16.msrb.mxu1 %v10255_v16  ;;  %v10265_v44 = vld [vmem:[#allocation145_spill] sm:$0xff]  ;;  %v10266_v16 = vld [vmem:[#allocation147_spill] sm:$0xff] }
 0x436   :  { %3339 = vmatpush.bf16.msrb.mxu2 %v10256_v34  ;;  %3353 = vmatpush.bf16.msrb.mxu3 %v10257_v5  ;;  %v10267_v34 = vld [vmem:[#allocation148_spill] sm:$0xff]  ;;  %v10268_v5 = vld [vmem:[#allocation149_spill] sm:$0xff] }
 0x438   :  { %3312 = vmatpush.bf16.msrb.mxu0 %v10258_v15  ;;  %3326 = vmatpush.bf16.msrb.mxu1 %v10259_v7  ;;  %v10269_v15 = vld [vmem:[#allocation150_spill] sm:$0xff]  ;;  %v10270_v7 = vld [vmem:[#allocation151_spill] sm:$0xff] }
 0x43a   :  { %3340 = vmatpush.bf16.msrb.mxu2 %v10260_v63  ;;  %3354 = vmatpush.bf16.msrb.mxu3 %v10261_v31  ;;  %v10271_v63 = vld [vmem:[#allocation152_spill] sm:$0xff]  ;;  %v10272_v31 = vld [vmem:[#allocation153_spill] sm:$0xff] }
 0x43c   :  { %3313 = vmatpush.bf16.msrb.mxu0 %v10262_v32  ;;  %3327 = vmatpush.bf16.msrb.mxu1 %v10263_v39  ;;  %v10273_v32 = vld [vmem:[#allocation154_spill] sm:$0xff]  ;;  %v10274_v39 = vld [vmem:[#allocation155_spill] sm:$0xff] }
 0x43e   :  { %3341 = vmatpush.bf16.msrb.mxu2 %v10264_v62  ;;  %3355 = vmatpush.bf16.msrb.mxu3 %v10265_v44  ;;  %v10275_v62 = vld [vmem:[#allocation156_spill] sm:$0xff]  ;;  %v10276_v44 = vld [vmem:[#allocation157_spill] sm:$0xff] }
 0x440   :  { %3314 = vmatpush.bf16.msrb.mxu0 %v10266_v16  ;;  %3328 = vmatpush.bf16.msrb.mxu1 %v10267_v34  ;;  %v10277_v16 = vld [vmem:[#allocation158_spill] sm:$0xff] }
 0x442   :  { %3342 = vmatpush.bf16.msrb.mxu2 %v10268_v5  ;;  %3356 = vmatpush.bf16.msrb.mxu3 %v10269_v15 }
 0x444   :  { %3315 = vmatpush.bf16.msrb.mxu0 %v10270_v7  ;;  %3329 = vmatpush.bf16.msrb.mxu1 %v10271_v63 }
 0x446   :  { %3343 = vmatpush.bf16.msrb.mxu2 %v10272_v31  ;;  %3357 = vmatpush.bf16.msrb.mxu3 %v10273_v32 }
 0x448   :  { %3316 = vmatpush.bf16.msrb.mxu0 %v10274_v39  ;;  %3330 = vmatpush.bf16.msrb.mxu1 %v10275_v62  ;;  %v10278_v39 = vld [vmem:[#allocation159_spill] sm:$0xff]  ;;  %v10279_v62 = vld [vmem:[#allocation160_spill] sm:$0xff] }
 0x44a   :  { %3344 = vmatpush.bf16.msrb.mxu2 %v10276_v44  ;;  %3358 = vmatpush.bf16.msrb.mxu3 %v10277_v16 }
 0x465   :  { %v2815_v34 = vpop.f32.mrf.mxu0  ;;  %v2829_v5 = vpop.f32.mrf.mxu1 }
 0x46c   :  { %v2843_v25 = vpop.f32.mrf.mxu2  ;;  %v2857_v7 = vpop.f32.mrf.mxu3 }
 0x46d   :  { %v2817_v15 = vpop.f32.mrf.mxu0  ;;  %v2831_v45 = vpop.f32.mrf.mxu1 }
 0x474   :  { %v2845_v28 = vpop.f32.mrf.mxu2  ;;  %v8180_v32 = vpop.f32.mrf.mxu3 }
 0x477   :  { %v2871_v63 = vpop.f32.mrf.mxu0  ;;  %v2885_v1 = vpop.f32.mrf.mxu1 }
 0x478   :  { %v2872_v31 = vadd.f32 %v2871_v63, %v2815_v34  ;;  %v2886_v52 = vadd.f32 %v2885_v1, %v2829_v5 }
 0x47a   :  { %v2918_v55 = vadd.f32 %v2872_v31, %v10278_v39  ;;  %v2919_v18 = vadd.f32 %v2886_v52, %v10279_v62 }
 0x47c   :  { %v5474_v44 = vmul.f32 -1.442695, %v2918_v55  ;;  %v5475_v43 = vmul.f32 -1.442695, %v2919_v18 }
 0x47e   :  { %5902 = vpow2.f32 %v5474_v44  ;;  %v2899_v16 = vpop.f32.mrf.mxu2  ;;  %v2913_v63 = vpop.f32.mrf.mxu3 }
 0x47f   :  { %5904 = vpow2.f32 %v5475_v43  ;;  %v2900_v19 = vadd.f32 %v2899_v16, %v2843_v25  ;;  %v2873_v2 = vpop.f32.mrf.mxu0  ;;  %v2887_v23 = vpop.f32.mrf.mxu1  ;;  %v2914_v44 = vadd.f32 %v2913_v63, %v2857_v7  ;;  %v10285_v7 = vld [vmem:[#allocation61_spill] sm:$0xff] }
 0x480   :  { %v2874_v29 = vadd.f32 %v2873_v2, %v2817_v15  ;;  %v2888_v59 = vadd.f32 %v2887_v23, %v2831_v45  ;;  %v10282_v15 = vld [vmem:[#allocation133_spill] sm:$0xff] }
 0x481   :  { %v2920_v11 = vadd.f32 %v2900_v19, %v10280_v46 }
 0x482   :  { %v2922_v1 = vadd.f32 %v2874_v29, %v10278_v39  ;;  %v2923_v34 = vadd.f32 %v2888_v59, %v10279_v62 }
 0x483   :  { %v5476_v5 = vmul.f32 -1.442695, %v2920_v11  ;;  %v10281_v11 = vld [vmem:[#allocation162_spill] sm:$0xff] }
 0x484   :  { %v5903_v31 = vpop.eup %5902  ;;  %v5477_v52 = vmul.f32 -1.442695, %v2922_v1  ;;  %v5478_v43 = vmul.f32 -1.442695, %v2923_v34  ;;  %v2921_v29 = vadd.f32 %v2914_v44, %v10281_v11  ;;  %v10283_v1 = vld [vmem:[#allocation60_spill] sm:$0xff]  ;;  %v10289_v44 = vld [vmem:[#allocation65_spill] sm:$0xff] }
 0x485   :  { %v5905_v55 = vpop.eup %5904  ;;  %v8187_v18 = vadd.f32 1.0, %v5903_v31  ;;  %5906 = vpow2.f32 %v5476_v5  ;;  %v435_v34 = vadd.f32 %v10283_v1, %v10282_v15  ;;  %v10284_v5 = vld [vmem:[#allocation134_spill] sm:$0xff]  ;;  %v10286_v31 = vld [vmem:[#allocation141_spill] sm:$0xff] }
 0x486   :  { %v8189_v25 = vadd.f32 1.0, %v5905_v55  ;;  %5908 = vpow2.f32 %v5477_v52  ;;  %v2901_v23 = vpop.f32.mrf.mxu2  ;;  %v484_v63 = vadd.f32 %v10285_v7, %v10284_v5  ;;  %v10287_v52 = vld [vmem:[#allocation62_spill] sm:$0xff] }
 0x487   :  { %5910 = vrcp.f32 %v8187_v18  ;;  %v2902_v59 = vadd.f32 %v2901_v23, %v2845_v28  ;;  %v533_v55 = vadd.f32 %v10287_v52, %v10286_v31  ;;  %v10288_v28 = vld [vmem:[#allocation64_spill] sm:$0xff]  ;;  %v8209_v23 = vadd.f32 %v10289_v44, %v10284_v5  ;;  %v10290_v7 = vld [vmem:[#allocation70_spill] sm:$0xff] }
 0x488   :  { %5912 = vrcp.f32 %v8189_v25  ;;  %v3061_v45 = vpop.f32.mrf.mxu0  ;;  %v3075_v1 = vpop.f32.mrf.mxu1  ;;  %v8217_v6 = vadd.f32 %v10290_v7, %v10286_v31  ;;  %vm2955_vm8 = vweird.f32 %v8187_v18  ;;  %v2974_v36 = vand.u32 2147483647, %v8189_v25 }
 0x489   :  { %5914 = vpow2.f32 %v5478_v43  ;;  %v2924_v19 = vadd.f32 %v2902_v59, %v10280_v46  ;;  %v8205_v43 = vadd.f32 %v10288_v28, %v10282_v15  ;;  %v3117_v28 = vadd.f32 %v3061_v45, %v435_v34  ;;  %v2915_v7 = vpop.f32.mrf.mxu3 }
 0x48a   :  { %5916 = vtanh.f32 %v2921_v29  ;;  %v3118_v31 = vadd.f32 %v3075_v1, %v484_v63  ;;  %v2976_v29 = vand.u32 2147483648, %v8189_v25  ;;  %vm2970_vm9 = vweird.f32 %v8189_v25 }
 0x48b   :  { %v5907_v2 = vpop.eup %5906  ;;  %v5479_v46 = vmul.f32 -1.442695, %v2924_v19  ;;  %v2961_v19 = vand.u32 2147483648, %v8187_v18  ;;  %v5480_v50 = vmul.f32 -1.442695, %v3117_v28  ;;  %vm8249_vm13 = vcmp.eq.f32.partialorder %v2974_v36, 8.507059e+37 }
 0x48c   :  { %v5909_v16 = vpop.eup %5908  ;;  %v8229_v45 = vadd.f32 1.0, %v5907_v2  ;;  %v2916_v2 = vadd.f32 %v2915_v7, %v8180_v32 }
 0x48d   :  { %v8201_v62 = vpop.eup %5910  ;;  %v8211_v59 = vadd.f32 1.0, %v5909_v16  ;;  %v2959_v16 = vand.u32 2147483647, %v8187_v18 }
 0x48e   :  { %v8213_v39 = vpop.eup %5912  ;;  %v2951_v52 = vmul.f32 %v8201_v62, %v8187_v18  ;;  %vm2956_vm11 = vweird.f32 %v8201_v62 }
 0x48f   :  { %v5915_v15 = vpop.eup %5914  ;;  %v2966_v44 = vmul.f32 %v8213_v39, %v8189_v25  ;;  %5918 = vrcp.f32 %v8211_v59  ;;  %vm8237_vm10 = vcmp.eq.f32.partialorder %v2959_v16, 8.507059e+37  ;;  %vm2971_vm12 = vweird.f32 %v8213_v39  ;;  %vm8258_vm14 = vmor %vm2955_vm8, %vm2956_vm11 }
 0x490   :  { %v2952_v5 = vsub.f32 1.0, %v2951_v52  ;;  %v8226_v10 = vadd.f32 1.0, %v5915_v15  ;;  %5920 = vpow2.f32 %v5479_v46  ;;  %v5917_v63 = vpop.eup %5916  ;;  %v5481_v52 = vmul.f32 -1.442695, %v3118_v31  ;;  %vm8271_vm0 = vmor %vm2970_vm9, %vm2971_vm12  ;;  %v3063_v20 = vpop.f32.mrf.mxu0 }
 0x491   :  { %v2967_v58 = vsub.f32 1.0, %v2966_v44  ;;  %v3089_v44 = vpop.f32.mrf.mxu2  ;;  %v3004_v31 = vand.u32 2147483647, %v8211_v59  ;;  %vm3000_vm15 = vweird.f32 %v8211_v59  ;;  %v3006_v36 = vand.u32 2147483648, %v8211_v59 }
 0x492   :  { %v2953_v34 = vmul.f32 %v8201_v62, %v2952_v5  ;;  %5922 = vrcp.f32 %v8226_v10  ;;  %v2962_v5 = vor.u32 1.1754944e-38, %v2961_v19  ;;  %vm3015_vm1 = vweird.f32 %v8226_v10 }
 0x493   :  { %v2968_v15 = vmul.f32 %v8213_v39, %v2967_v58  ;;  %v2977_v58 = vor.u32 1.1754944e-38, %v2976_v29  ;;  %5924 = vrcp.f32 %v8229_v45  ;;  %v3021_v25 = vand.u32 2147483648, %v8226_v10 }
 0x494   :  { %v2954_v1 = vadd.f32 %v8201_v62, %v2953_v34  ;;  %5926 = vpow2.f32 %v5480_v50  ;;  %v2925_v34 = vadd.f32 %v2916_v2, %v10281_v11  ;;  %v3119_v2 = vadd.f32 %v3089_v44, %v533_v55 }
 0x495   :  { %v8244_v38 = vpop.eup %5918  ;;  %v2969_v28 = vadd.f32 %v8213_v39, %v2968_v15  ;;  %5928 = vpow2.f32 %v5481_v52  ;;  %vm8287_vm3 = vcmp.eq.f32.partialorder %v3004_v31, 8.507059e+37  ;;  %v3007_v52 = vor.u32 1.1754944e-38, %v3006_v36 }
 0x496   :  { %v5921_v16 = vpop.eup %5920  ;;  %v2996_v7 = vmul.f32 %v8244_v38, %v8211_v59  ;;  %v2958_v18 = vsel %vm8258_vm14, %v8201_v62, %v2954_v1  ;;  %vm3001_vm2 = vweird.f32 %v8244_v38  ;;  %v3019_v44 = vand.u32 2147483647, %v8226_v10 }
 0x497   :  { %v8262_v29 = vadd.f32 1.0, %v5921_v16  ;;  %v2973_v11 = vsel %vm8271_vm0, %v8213_v39, %v2969_v28  ;;  %v2963_v39 = vsel %vm8237_vm10, %v2962_v5, %v2958_v18  ;;  %v3077_v28 = vpop.f32.mrf.mxu1  ;;  %v5482_v31 = vmul.f32 -1.442695, %v3119_v2  ;;  %vm8304_vm5 = vmor %vm3000_vm15, %vm3001_vm2  ;;  %v10303_v2 = vld [vmem:[#allocation63_spill] sm:$0xff] }
 0x498   :  { %v5923_v15 = vpop.eup %5922  ;;  %v2997_v16 = vsub.f32 1.0, %v2996_v7  ;;  %v2978_v19 = vsel %vm8249_vm13, %v2977_v58, %v2973_v11  ;;  %v3044_v11 = vmul.f32 %v5917_v63, %v2963_v39  ;;  %v3022_v63 = vor.u32 1.1754944e-38, %v3021_v25 }
 0x499   :  { %v3011_v8 = vmul.f32 %v5923_v15, %v8226_v10  ;;  %5930 = vrcp.f32 %v8262_v29  ;;  %v8291_v55 = vpop.eup %5924  ;;  %vm3016_vm4 = vweird.f32 %v5923_v15  ;;  %v3091_v58 = vpop.f32.mrf.mxu2  ;;  %v3042_v59 = vmul.f32 %v2978_v19, %v7970_v54 }
 0x49a   :  { %v2998_v57 = vmul.f32 %v8244_v38, %v2997_v16  ;;  %v5927_v7 = vpop.eup %5926  ;;  %v3121_v16 = vadd.f32 %v3063_v20, %v8205_v43  ;;  %5932 = vtanh.f32 %v2925_v34  ;;  %v3122_v43 = vadd.f32 %v3077_v28, %v8209_v23  ;;  %vm3017_vm6 = vmor %vm3015_vm1, %vm3016_vm4  ;;  %v3103_v54 = vpop.f32.mrf.mxu3 }
 0x49b   :  { %v3012_v1 = vsub.f32 1.0, %v3011_v8  ;;  %v8308_v46 = vadd.f32 1.0, %v5927_v7  ;;  %v5929_v5 = vpop.eup %5928  ;;  %vm3020_vm7 = vcmp.eq.f32.partialorder %v3019_v44, 8.507059e+37  ;;  %v582_v39 = vadd.f32 %v10303_v2, %v6892_v12 }
 0x49c   :  { %v2999_v50 = vadd.f32 %v8244_v38, %v2998_v57  ;;  %v2981_v57 = vmul.f32 %v8291_v55, %v8229_v45  ;;  %v8318_v34 = vadd.f32 1.0, %v5929_v5  ;;  %v5484_v10 = vmul.f32 -1.442695, %v3122_v43 }
 0x49d   :  { %v3013_v24 = vmul.f32 %v5923_v15, %v3012_v1  ;;  %5934 = vrcp.f32 %v8308_v46  ;;  %v8331_v25 = vadd.f32 %v3044_v11, %v3042_v59  ;;  %v2991_v5 = vand.u32 2147483648, %v8229_v45 }
 0x49e   :  { %v3003_v20 = vsel %vm8304_vm5, %v8244_v38, %v2999_v50  ;;  %5936 = vpow2.f32 %v5482_v31  ;;  %v5483_v38 = vmul.f32 -1.442695, %v3121_v16  ;;  %v2982_v1 = vsub.f32 1.0, %v2981_v57 }
 0x49f   :  { %v3014_v32 = vadd.f32 %v5923_v15, %v3013_v24  ;;  %v8320_v36 = vpop.eup %5930  ;;  %v3008_v23 = vsel %vm8287_vm3, %v3007_v52, %v3003_v20  ;;  %5938 = vrcp.f32 %v8318_v34  ;;  %v3123_v24 = vadd.f32 %v3091_v58, %v8217_v6  ;;  %v10304_v6 = vld [vmem:[#allocation71_spill] sm:$0xff] }
 0x4a0   :  { %v5933_v7 = vpop.eup %5932  ;;  %v3026_v44 = vmul.f32 %v8320_v36, %v8262_v29  ;;  %v3120_v52 = vadd.f32 %v3103_v54, %v582_v39  ;;  %5940 = vpow2.f32 %v5483_v38  ;;  %v584_v50 = vadd.f32 %v10304_v6, %v6892_v12 }
 0x4a1   :  { %v3018_v18 = vsel %vm3017_vm6, %v5923_v15, %v3014_v32  ;;  %v3045_v15 = vmul.f32 %v5933_v7, %v3008_v23  ;;  %v5485_v31 = vmul.f32 -1.442695, %v3123_v24  ;;  %v2983_v8 = vmul.f32 %v8291_v55, %v2982_v1 }
 0x4a2   :  { %v3023_v28 = vsel %vm3020_vm7, %v3022_v63, %v3018_v18  ;;  %5942 = vpow2.f32 %v5484_v10  ;;  %vm2986_vm8 = vweird.f32 %v8291_v55  ;;  %v3036_v20 = vand.u32 2147483648, %v8262_v29 }
 0x4a3   :  { %v3043_v62 = vmul.f32 %v3023_v28, %v7984_v51  ;;  %v5935_v19 = vpop.eup %5934  ;;  %5944 = vtanh.f32 %v8331_v25  ;;  %v3027_v51 = vsub.f32 1.0, %v3026_v44  ;;  %vm3154_vm9 = vweird.f32 %v8308_v46 }
 0x4a4   :  { %v5937_v16 = vpop.eup %5936  ;;  %v3150_v57 = vmul.f32 %v5935_v19, %v8308_v46  ;;  %5946 = vtanh.f32 %v3120_v52  ;;  %vm2985_vm10 = vweird.f32 %v8229_v45  ;;  %v3175_v32 = vand.u32 2147483648, %v8318_v34 }
 0x4a5   :  { %v5939_v11 = vpop.eup %5938  ;;  %v8345_v43 = vadd.f32 %v3045_v15, %v3043_v62  ;;  %v3158_v63 = vand.u32 2147483647, %v8308_v46  ;;  %v3160_v38 = vand.u32 2147483648, %v8308_v46  ;;  %5948 = vpow2.f32 %v5485_v31  ;;  %vm8380_vm3 = vmor %vm2985_vm10, %vm2986_vm8 }
 0x4a6   :  { %v3151_v58 = vsub.f32 1.0, %v3150_v57  ;;  %v3165_v59 = vmul.f32 %v5939_v11, %v8318_v34  ;;  %v5941_v23 = vpop.eup %5940  ;;  %v8352_v54 = vadd.f32 1.0, %v5937_v16  ;;  %vm3155_vm11 = vweird.f32 %v5935_v19  ;;  %v3105_v57 = vpop.f32.mrf.mxu3 }
 0x4a7   :  { %v3028_v2 = vmul.f32 %v8320_v36, %v3027_v51  ;;  %vm3169_vm12 = vweird.f32 %v8318_v34  ;;  %v3173_v39 = vand.u32 2147483647, %v8318_v34  ;;  %v8357_v1 = vadd.f32 1.0, %v5941_v23  ;;  %vm3156_vm14 = vmor %vm3154_vm9, %vm3155_vm11 }
 0x4a8   :  { %v3166_v18 = vsub.f32 1.0, %v3165_v59  ;;  %v3152_v24 = vmul.f32 %v5935_v19, %v3151_v58  ;;  %v5943_v28 = vpop.eup %5942  ;;  %5950 = vtanh.f32 %v8345_v43  ;;  %vm3170_vm13 = vweird.f32 %v5939_v11 }
 0x4a9   :  { %v5945_v44 = vpop.eup %5944  ;;  %vm3159_vm15 = vcmp.eq.f32.partialorder %v3158_v63, 8.507059e+37  ;;  %v3161_v62 = vor.u32 1.1754944e-38, %v3160_v38  ;;  %5952 = vrcp.f32 %v8357_v1  ;;  %v8363_v15 = vadd.f32 1.0, %v5943_v28  ;;  %vm3171_vm0 = vmor %vm3169_vm12, %vm3170_vm13 }
 0x4aa   :  { %v3167_v10 = vmul.f32 %v5939_v11, %v3166_v18  ;;  %v3153_v7 = vadd.f32 %v5935_v19, %v3152_v24  ;;  %v5947_v52 = vpop.eup %5946  ;;  %v3176_v6 = vor.u32 1.1754944e-38, %v3175_v32  ;;  %5954 = vrcp.f32 %v8352_v54 }
 0x4ab   :  { %v5949_v51 = vpop.eup %5948  ;;  %vm3174_vm1 = vcmp.eq.f32.partialorder %v3173_v39, 8.507059e+37  ;;  %5956 = vrcp.f32 %v8363_v15  ;;  %v2984_v58 = vadd.f32 %v8291_v55, %v2983_v8  ;;  %v3029_v32 = vadd.f32 %v8320_v36, %v3028_v2 }
 0x4ac   :  { %v3157_v31 = vsel %vm3156_vm14, %v5935_v19, %v3153_v7  ;;  %v3168_v16 = vadd.f32 %v5939_v11, %v3167_v10  ;;  %vm3031_vm2 = vweird.f32 %v8320_v36  ;;  %v8373_v38 = vadd.f32 1.0, %v5949_v51 }
 0x4ad   :  { %v3162_v46 = vsel %vm3159_vm15, %v3161_v62, %v3157_v31  ;;  %v3124_v23 = vadd.f32 %v3105_v57, %v584_v50  ;;  %v2989_v18 = vand.u32 2147483647, %v8229_v45  ;;  %vm3030_vm4 = vweird.f32 %v8262_v29 }
 0x4ae   :  { %v3172_v59 = vsel %vm3171_vm0, %v5939_v11, %v3168_v16  ;;  %v3243_v63 = vmul.f32 %v5947_v52, %v3162_v46  ;;  %v5951_v34 = vpop.eup %5950  ;;  %v3034_v11 = vand.u32 2147483647, %v8262_v29  ;;  %5958 = vrcp.f32 %v8373_v38  ;;  %vm8391_vm5 = vmor %vm3030_vm4, %vm3031_vm2 }
 0x4af   :  { %v3177_v19 = vsel %vm3174_vm1, %v3176_v6, %v3172_v59  ;;  %v5953_v2 = vpop.eup %5952  ;;  %v2988_v50 = vsel %vm8380_vm3, %v8291_v55, %v2984_v58  ;;  %v2992_v10 = vor.u32 1.1754944e-38, %v2991_v5  ;;  %v3033_v62 = vsel %vm8391_vm5, %v8320_v36, %v3029_v32 }
 0x4b0   :  { %v3241_v8 = vmul.f32 %v3177_v19, %v8038_v61  ;;  %v8395_v28 = vpop.eup %5954  ;;  %v3195_v61 = vmul.f32 %v5953_v2, %v8357_v1  ;;  %5960 = vtanh.f32 %v3124_v23  ;;  %vm2990_vm6 = vcmp.eq.f32.partialorder %v2989_v18, 8.507059e+37 }
 0x4b1   :  { %v5957_v52 = vpop.eup %5956  ;;  %v3037_v55 = vor.u32 1.1754944e-38, %v3036_v20  ;;  %v2993_v16 = vsel %vm2990_vm6, %v2992_v10, %v2988_v50  ;;  %vm3035_vm7 = vcmp.eq.f32.partialorder %v3034_v11, 8.507059e+37  ;;  %v3180_v45 = vmul.f32 %v8395_v28, %v8352_v54 }
 0x4b2   :  { %v8399_v7 = vadd.f32 %v3243_v63, %v3241_v8  ;;  %v3196_v6 = vsub.f32 1.0, %v3195_v61  ;;  %v3210_v31 = vmul.f32 %v5957_v52, %v8363_v15  ;;  %v3203_v5 = vand.u32 2147483647, %v8357_v1 }
 0x4b3   :  { %v3205_v57 = vand.u32 2147483648, %v8357_v1  ;;  %v3038_v51 = vsel %vm3035_vm7, %v3037_v55, %v3033_v62  ;;  %vm3200_vm8 = vweird.f32 %v5953_v2  ;;  %v3220_v29 = vand.u32 2147483648, %v8363_v15 }
 0x4b4   :  { %v3211_v36 = vsub.f32 1.0, %v3210_v31  ;;  %v3197_v46 = vmul.f32 %v5953_v2, %v3196_v6  ;;  %v3051_v58 = vmul.f32 %v5951_v34, %v3038_v51  ;;  %v8412_v59 = vpop.eup %5958  ;;  %vm3199_vm9 = vweird.f32 %v8357_v1 }
 0x4b5   :  { %v3218_v20 = vand.u32 2147483647, %v8363_v15  ;;  %v3050_v63 = vmul.f32 %v5945_v44, %v2993_v16  ;;  %vm3215_vm10 = vweird.f32 %v5957_v52  ;;  %v3225_v19 = vmul.f32 %v8412_v59, %v8373_v38  ;;  %vm3201_vm12 = vmor %vm3199_vm9, %vm3200_vm8 }
 0x4b6   :  { %v3212_v32 = vmul.f32 %v5957_v52, %v3211_v36  ;;  %v3198_v23 = vadd.f32 %v5953_v2, %v3197_v46  ;;  %v5961_v18 = vpop.eup %5960  ;;  %v3181_v24 = vsub.f32 1.0, %v3180_v45  ;;  %vm3214_vm11 = vweird.f32 %v8363_v15  ;;  %v10333_v45 = vld [vmem:[#allocation87_spill] sm:$0xff] }
 0x4b7   :  { %v3206_v34 = vor.u32 1.1754944e-38, %v3205_v57  ;;  %v3252_v8 = vpack.c.bf16 %v3051_v58, %v3050_v63  ;;  %v3226_v11 = vsub.f32 1.0, %v3225_v19  ;;  %vm3204_vm13 = vcmp.eq.f32.partialorder %v3203_v5, 8.507059e+37  ;;  %vm3216_vm14 = vmor %vm3214_vm11, %vm3215_vm10  ;;  %v10312_v19 = vld [vmem:[#allocation28_spill] sm:$0xff] }
 0x4b8   :  { %v3202_v50 = vsel %vm3201_vm12, %v5953_v2, %v3198_v23  ;;  %v3213_v1 = vadd.f32 %v5957_v52, %v3212_v32  ;;  %v3221_v39 = vor.u32 1.1754944e-38, %v3220_v29  ;;  %vm3219_vm15 = vcmp.eq.f32.partialorder %v3218_v20, 8.507059e+37  ;;  %v10311_v32 = vld [vmem:[#allocation27_spill] sm:$0xff]  ;;  %v10313_v23 = vld [vmem:[#allocation29_spill] sm:$0xff] }
 0x4b9   :  { %v3207_v44 = vsel %vm3204_vm13, %v3206_v34, %v3202_v50  ;;  %3261 = vmatmul.bf16.vlgmr.msra.gmra.mxu0 %v3252_v8  ;;  %3275 = vmatmul.bf16.vlgmr.msra.gmra.mxu1 %v3252_v8  ;;  %v3182_v62 = vmul.f32 %v8395_v28, %v3181_v24  ;;  %v3227_v15 = vmul.f32 %v8412_v59, %v3226_v11  ;;  %vm3185_vm0 = vweird.f32 %v8395_v28  ;;  %v10315_v24 = vld [vmem:[#allocation31_spill] sm:$0xff]  ;;  %v10316_v34 = vld [vmem:[#allocation32_spill] sm:$0xff]  ;;  %v10318_v11 = vld [vmem:[#allocation34_spill] sm:$0xff] }
 0x4ba   :  { %v3217_v10 = vsel %vm3216_vm14, %v5957_v52, %v3213_v1  ;;  %v3244_v61 = vmul.f32 %v5961_v18, %v3207_v44  ;;  %3289 = vmatmul.bf16.vlgmr.msra.gmra.mxu2 %v3252_v8  ;;  %3303 = vmatmul.bf16.vlgmr.msra.gmra.mxu3 %v3252_v8  ;;  %5962 = vtanh.f32 %v8399_v7  ;;  %vm3230_vm1 = vweird.f32 %v8412_v59  ;;  %v10314_v18 = vld [vmem:[#allocation30_spill] sm:$0xff]  ;;  %v10317_v8 = vld [vmem:[#allocation33_spill] sm:$0xff]  ;;  %v10319_v50 = vld [vmem:[#allocation35_spill] sm:$0xff] }
 0x4bb   :  { %v3222_v55 = vsel %vm3219_vm15, %v3221_v39, %v3217_v10  ;;  %3499 = vmatpush.bf16.msra.mxu0 %v6472_v37  ;;  %3513 = vmatpush.bf16.msra.mxu1 %v6474_v41  ;;  %v3183_v6 = vadd.f32 %v8395_v28, %v3182_v62  ;;  %v3228_v31 = vadd.f32 %v8412_v59, %v3227_v15  ;;  %vm3184_vm2 = vweird.f32 %v8352_v54  ;;  %v10320_v1 = vld [vmem:[#allocation66_spill] sm:$0xff]  ;;  %v10321_v39 = vld [vmem:[#allocation67_spill] sm:$0xff]  ;;  %v10322_v44 = vld [vmem:[#allocation68_spill] sm:$0xff] }
 0x4bc   :  { %v3242_v2 = vmul.f32 %v3222_v55, %v8068_v33  ;;  %3527 = vmatpush.bf16.msra.mxu2 %v6476_v47  ;;  %3541 = vmatpush.bf16.msra.mxu3 %v6479_v48  ;;  %v3190_v33 = vand.u32 2147483648, %v8352_v54  ;;  %v3235_v16 = vand.u32 2147483648, %v8373_v38  ;;  %vm8442_vm3 = vmor %vm3184_vm2, %vm3185_vm0  ;;  %v3188_v5 = vand.u32 2147483647, %v8352_v54  ;;  %v10323_v10 = vld [vmem:[#allocation69_spill] sm:$0xff]  ;;  %v10325_v62 = vld [vmem:[#allocation75_spill] sm:$0xff] }
 0x4bd   :  { %vm3229_vm4 = vweird.f32 %v8373_v38  ;;  %v3233_v57 = vand.u32 2147483647, %v8373_v38  ;;  %v3187_v51 = vsel %vm8442_vm3, %v8395_v28, %v3183_v6  ;;  %v10326_v15 = vld [vmem:[#allocation76_spill] sm:$0xff]  ;;  %v10327_v55 = vld [vmem:[#allocation77_spill] sm:$0xff]  ;;  %v10329_v6 = vld [vmem:[#allocation79_spill] sm:$0xff] }
 0x4be   :  { %v8429_v52 = vadd.f32 %v3244_v61, %v3242_v2  ;;  %vm3231_vm5 = vmor %vm3229_vm4, %vm3230_vm1  ;;  %v3191_v58 = vor.u32 1.1754944e-38, %v3190_v33  ;;  %v3236_v29 = vor.u32 1.1754944e-38, %v3235_v16  ;;  %vm3189_vm6 = vcmp.eq.f32.partialorder %v3188_v5, 8.507059e+37  ;;  %v10324_v61 = vld [vmem:[#allocation74_spill] sm:$0xff]  ;;  %v10331_v33 = vld [vmem:[#allocation81_spill] sm:$0xff] }
 0x4bf   :  { %3500 = vmatpush.bf16.msra.mxu0 %v6481_v49  ;;  %3514 = vmatpush.bf16.msra.mxu1 %v9992_v21  ;;  %v3232_v36 = vsel %vm3231_vm5, %v8412_v59, %v3228_v31  ;;  %vm3234_vm7 = vcmp.eq.f32.partialorder %v3233_v57, 8.507059e+37  ;;  %v10328_v2 = vld [vmem:[#allocation78_spill] sm:$0xff]  ;;  %v10330_v31 = vld [vmem:[#allocation80_spill] sm:$0xff]  ;;  %v10335_v57 = vld [vmem:[#allocation89_spill] sm:$0xff] }
 0x4c0   :  { %5964 = vtanh.f32 %v8429_v52  ;;  %3528 = vmatpush.bf16.msra.mxu2 %v9993_v53  ;;  %3542 = vmatpush.bf16.msra.mxu3 %v9994_v27  ;;  %v5963_v46 = vpop.eup %5962  ;;  %v3192_v38 = vsel %vm3189_vm6, %v3191_v58, %v3187_v51  ;;  %v3237_v20 = vsel %vm3234_vm7, %v3236_v29, %v3232_v36  ;;  %v10332_v16 = vld [vmem:[#allocation86_spill] sm:$0xff]  ;;  %v10334_v5 = vld [vmem:[#allocation88_spill] sm:$0xff]  ;;  %v10337_v36 = vld [vmem:[#allocation91_spill] sm:$0xff] }
 0x4c1   :  { %v3249_v63 = vmul.f32 %v5963_v46, %v3192_v38  ;;  %v10336_v51 = vld [vmem:[#allocation90_spill] sm:$0xff]  ;;  %v10338_v46 = vld [vmem:[#allocation92_spill] sm:$0xff]  ;;  %v10339_v58 = vld [vmem:[#allocation93_spill] sm:$0xff] }
 0x4c2   :  { %v10340_v29 = vld [vmem:[#allocation98_spill] sm:$0xff]  ;;  %v10342_v38 = vld [vmem:[#allocation100_spill] sm:$0xff] }
 0x4c3   :  { %3501 = vmatpush.bf16.msra.mxu0 %v6493_v60  ;;  %3515 = vmatpush.bf16.msra.mxu1 %v6496_v0 }
 0x4c4   :  { %3529 = vmatpush.bf16.msra.mxu2 %v6499_v3  ;;  %3543 = vmatpush.bf16.msra.mxu3 %v6503_v4 }
 0x4c6   :  { %v5965_v54 = vpop.eup %5964 }
 0x4c7   :  { %v3250_v28 = vmul.f32 %v5965_v54, %v3237_v20  ;;  %3502 = vmatpush.bf16.msra.mxu0 %v6508_v9  ;;  %3516 = vmatpush.bf16.msra.mxu1 %v6510_v13  ;;  %v10341_v54 = vld [vmem:[#allocation99_spill] sm:$0xff]  ;;  %v10343_v20 = vld [vmem:[#allocation101_spill] sm:$0xff] }
 0x4c8   :  { %3530 = vmatpush.bf16.msra.mxu2 %v6512_v14  ;;  %3544 = vmatpush.bf16.msra.mxu3 %v6515_v17 }
 0x4c9   :  { %v3251_v59 = vpack.c.bf16 %v3250_v28, %v3249_v63  ;;  %v10344_v63 = vld [vmem:[#allocation102_spill] sm:$0xff]  ;;  %v10345_v28 = vld [vmem:[#allocation103_spill] sm:$0xff] }
 0x4cb   :  { %3317 = vmatmul.bf16.vlgmr.msrb.gmra.mxu0 %v3251_v59  ;;  %3331 = vmatmul.bf16.vlgmr.msrb.gmra.mxu1 %v3251_v59 }
 0x4cc   :  { %3345 = vmatmul.bf16.vlgmr.msrb.gmra.mxu2 %v3251_v59  ;;  %3359 = vmatmul.bf16.vlgmr.msrb.gmra.mxu3 %v3251_v59 }
 0x4cd   :  { %3503 = vmatpush.bf16.msra.mxu0 %v6520_v22  ;;  %3517 = vmatpush.bf16.msra.mxu1 %v6522_v26 }
 0x4ce   :  { %3531 = vmatpush.bf16.msra.mxu2 %v9997_v56  ;;  %3545 = vmatpush.bf16.msra.mxu3 %v6527_v30 }
 0x4d1   :  { %3504 = vmatpush.bf16.msra.mxu0 %v6532_v35  ;;  %3518 = vmatpush.bf16.msra.mxu1 %v6534_v40 }
 0x4d2   :  { %3532 = vmatpush.bf16.msra.mxu2 %v6536_v42  ;;  %3546 = vmatpush.bf16.msra.mxu3 %v10311_v32 }
 0x4d5   :  { %3505 = vmatpush.bf16.msra.mxu0 %v10312_v19  ;;  %3519 = vmatpush.bf16.msra.mxu1 %v10313_v23 }
 0x4d6   :  { %3533 = vmatpush.bf16.msra.mxu2 %v10314_v18  ;;  %3547 = vmatpush.bf16.msra.mxu3 %v10315_v24 }
 0x4d9   :  { %3506 = vmatpush.bf16.msra.mxu0 %v10316_v34  ;;  %3520 = vmatpush.bf16.msra.mxu1 %v10317_v8 }
 0x4da   :  { %3534 = vmatpush.bf16.msra.mxu2 %v10318_v11  ;;  %3548 = vmatpush.bf16.msra.mxu3 %v10319_v50 }
 0x4dc   :  { %3507 = vmatmul.bf16.vlgmr.msra.gmra.mxu0 %v3251_v59  ;;  %3521 = vmatmul.bf16.vlgmr.msra.gmra.mxu1 %v3251_v59 }
 0x4dd   :  { %3700 = vmatpush.bf16.msrb.mxu0 %v10320_v1  ;;  %3714 = vmatpush.bf16.msrb.mxu1 %v10321_v39 }
 0x4de   :  { %3535 = vmatmul.bf16.vlgmr.msra.gmra.mxu2 %v3251_v59  ;;  %3549 = vmatmul.bf16.vlgmr.msra.gmra.mxu3 %v3251_v59  ;;  %v10346_v59 = vld [vmem:[#allocation104_spill] sm:$0xff] }
 0x4df   :  { %3728 = vmatpush.bf16.msrb.mxu2 %v10322_v44  ;;  %3742 = vmatpush.bf16.msrb.mxu3 %v10323_v10  ;;  %v10386_v44 = vld [vmem:[#allocation161_spill] sm:$0xff] }
 0x4e1   :  { %3701 = vmatpush.bf16.msrb.mxu0 %v10324_v61  ;;  %3715 = vmatpush.bf16.msrb.mxu1 %v10325_v62 }
 0x4e3   :  { %3729 = vmatpush.bf16.msrb.mxu2 %v10326_v15  ;;  %3743 = vmatpush.bf16.msrb.mxu3 %v10327_v55 }
 0x4e5   :  { %3702 = vmatpush.bf16.msrb.mxu0 %v10328_v2  ;;  %3716 = vmatpush.bf16.msrb.mxu1 %v10329_v6 }
 0x4e7   :  { %3730 = vmatpush.bf16.msrb.mxu2 %v10330_v31  ;;  %3744 = vmatpush.bf16.msrb.mxu3 %v10331_v33 }
 0x4e9   :  { %3703 = vmatpush.bf16.msrb.mxu0 %v10332_v16  ;;  %3717 = vmatpush.bf16.msrb.mxu1 %v10333_v45 }
 0x4eb   :  { %3731 = vmatpush.bf16.msrb.mxu2 %v10334_v5  ;;  %3745 = vmatpush.bf16.msrb.mxu3 %v10335_v57 }
 0x4ed   :  { %3704 = vmatpush.bf16.msrb.mxu0 %v10336_v51  ;;  %3718 = vmatpush.bf16.msrb.mxu1 %v10337_v36  ;;  %v10347_v51 = vld [vmem:[#allocation106_spill] sm:$0xff] }
 0x4ee   :  { %v10348_v36 = vld [vmem:[#allocation110_spill] sm:$0xff] }
 0x4ef   :  { %3732 = vmatpush.bf16.msrb.mxu2 %v10338_v46  ;;  %3746 = vmatpush.bf16.msrb.mxu3 %v10339_v58  ;;  %v10349_v46 = vld [vmem:[#allocation111_spill] sm:$0xff]  ;;  %v10350_v58 = vld [vmem:[#allocation114_spill] sm:$0xff] }
 0x4f1   :  { %3705 = vmatpush.bf16.msrb.mxu0 %v10340_v29  ;;  %3719 = vmatpush.bf16.msrb.mxu1 %v10341_v54  ;;  %v10351_v29 = vld [vmem:[#allocation115_spill] sm:$0xff]  ;;  %v10352_v54 = vld [vmem:[#allocation112_spill] sm:$0xff] }
 0x4f3   :  { %3733 = vmatpush.bf16.msrb.mxu2 %v10342_v38  ;;  %3747 = vmatpush.bf16.msrb.mxu3 %v10343_v20  ;;  %v10353_v38 = vld [vmem:[#allocation113_spill] sm:$0xff] }
 0x4f4   :  { %v10354_v20 = vld [vmem:[#allocation117_spill] sm:$0xff] }
 0x4f5   :  { %3706 = vmatpush.bf16.msrb.mxu0 %v10344_v63  ;;  %3720 = vmatpush.bf16.msrb.mxu1 %v10345_v28  ;;  %v10355_v63 = vld [vmem:[#allocation120_spill] sm:$0xff]  ;;  %v10356_v28 = vld [vmem:[#allocation122_spill] sm:$0xff] }
 0x4f7   :  { %3734 = vmatpush.bf16.msrb.mxu2 %v10346_v59  ;;  %3748 = vmatpush.bf16.msrb.mxu3 %v10347_v51  ;;  %v10357_v59 = vld [vmem:[#allocation123_spill] sm:$0xff]  ;;  %v10358_v51 = vld [vmem:[#allocation124_spill] sm:$0xff] }
 0x4f9   :  { %3707 = vmatpush.bf16.msrb.mxu0 %v10348_v36  ;;  %3721 = vmatpush.bf16.msrb.mxu1 %v10349_v46  ;;  %v10359_v36 = vld [vmem:[#allocation126_spill] sm:$0xff]  ;;  %v10360_v46 = vld [vmem:[#allocation129_spill] sm:$0xff] }
 0x4fb   :  { %3735 = vmatpush.bf16.msrb.mxu2 %v10352_v54  ;;  %3749 = vmatpush.bf16.msrb.mxu3 %v10353_v38  ;;  %v10363_v54 = vld [vmem:[#allocation135_spill] sm:$0xff]  ;;  %v10364_v38 = vld [vmem:[#allocation136_spill] sm:$0xff] }
 0x4fd   :  { %3756 = vmatpush.bf16.msra.mxu0 %v10350_v58  ;;  %3770 = vmatpush.bf16.msra.mxu1 %v10351_v29  ;;  %v10361_v58 = vld [vmem:[#allocation131_spill] sm:$0xff]  ;;  %v10362_v29 = vld [vmem:[#allocation132_spill] sm:$0xff] }
 0x4ff   :  { %3784 = vmatpush.bf16.msra.mxu2 %v10354_v20  ;;  %3798 = vmatpush.bf16.msra.mxu3 %v10355_v63  ;;  %v10365_v20 = vld [vmem:[#allocation137_spill] sm:$0xff]  ;;  %v10366_v63 = vld [vmem:[#allocation138_spill] sm:$0xff] }
 0x501   :  { %3757 = vmatpush.bf16.msra.mxu0 %v10356_v28  ;;  %3771 = vmatpush.bf16.msra.mxu1 %v10357_v59  ;;  %v10367_v28 = vld [vmem:[#allocation140_spill] sm:$0xff]  ;;  %v10368_v59 = vld [vmem:[#allocation142_spill] sm:$0xff] }
 0x503   :  { %3785 = vmatpush.bf16.msra.mxu2 %v10358_v51  ;;  %3799 = vmatpush.bf16.msra.mxu3 %v10359_v36  ;;  %v10369_v51 = vld [vmem:[#allocation143_spill] sm:$0xff]  ;;  %v10370_v36 = vld [vmem:[#allocation144_spill] sm:$0xff] }
 0x505   :  { %3758 = vmatpush.bf16.msra.mxu0 %v10360_v46  ;;  %3772 = vmatpush.bf16.msra.mxu1 %v10361_v58  ;;  %v10371_v46 = vld [vmem:[#allocation145_spill] sm:$0xff]  ;;  %v10372_v58 = vld [vmem:[#allocation147_spill] sm:$0xff] }
 0x507   :  { %3786 = vmatpush.bf16.msra.mxu2 %v10362_v29  ;;  %3800 = vmatpush.bf16.msra.mxu3 %v10363_v54  ;;  %v10373_v29 = vld [vmem:[#allocation148_spill] sm:$0xff]  ;;  %v10374_v54 = vld [vmem:[#allocation149_spill] sm:$0xff] }
 0x509   :  { %3759 = vmatpush.bf16.msra.mxu0 %v10364_v38  ;;  %3773 = vmatpush.bf16.msra.mxu1 %v10365_v20  ;;  %v10375_v38 = vld [vmem:[#allocation150_spill] sm:$0xff]  ;;  %v10376_v20 = vld [vmem:[#allocation151_spill] sm:$0xff] }
 0x50b   :  { %3787 = vmatpush.bf16.msra.mxu2 %v10366_v63  ;;  %3801 = vmatpush.bf16.msra.mxu3 %v10367_v28  ;;  %v10377_v63 = vld [vmem:[#allocation152_spill] sm:$0xff]  ;;  %v10378_v28 = vld [vmem:[#allocation153_spill] sm:$0xff] }
 0x50d   :  { %3760 = vmatpush.bf16.msra.mxu0 %v10368_v59  ;;  %3774 = vmatpush.bf16.msra.mxu1 %v10369_v51  ;;  %v10379_v59 = vld [vmem:[#allocation154_spill] sm:$0xff]  ;;  %v10380_v51 = vld [vmem:[#allocation155_spill] sm:$0xff] }
 0x50f   :  { %3788 = vmatpush.bf16.msra.mxu2 %v10370_v36  ;;  %3802 = vmatpush.bf16.msra.mxu3 %v10371_v46  ;;  %v10381_v36 = vld [vmem:[#allocation156_spill] sm:$0xff]  ;;  %v10382_v46 = vld [vmem:[#allocation157_spill] sm:$0xff] }
 0x511   :  { %3761 = vmatpush.bf16.msra.mxu0 %v10372_v58  ;;  %3775 = vmatpush.bf16.msra.mxu1 %v10373_v29  ;;  %v10383_v58 = vld [vmem:[#allocation158_spill] sm:$0xff] }
 0x513   :  { %3789 = vmatpush.bf16.msra.mxu2 %v10374_v54  ;;  %3803 = vmatpush.bf16.msra.mxu3 %v10375_v38 }
 0x515   :  { %3762 = vmatpush.bf16.msra.mxu0 %v10376_v20  ;;  %3776 = vmatpush.bf16.msra.mxu1 %v10377_v63 }
 0x517   :  { %3790 = vmatpush.bf16.msra.mxu2 %v10378_v28  ;;  %3804 = vmatpush.bf16.msra.mxu3 %v10379_v59  ;;  %v10384_v59 = vld [vmem:[#allocation159_spill] sm:$0xff] }
 0x519   :  { %3763 = vmatpush.bf16.msra.mxu0 %v10380_v51  ;;  %3777 = vmatpush.bf16.msra.mxu1 %v10381_v36  ;;  %v10385_v51 = vld [vmem:[#allocation160_spill] sm:$0xff] }
 0x51b   :  { %3791 = vmatpush.bf16.msra.mxu2 %v10382_v46  ;;  %3805 = vmatpush.bf16.msra.mxu3 %v10383_v58 }
 0x536   :  { %v3262_v29 = vpop.f32.mrf.mxu0  ;;  %v3276_v54 = vpop.f32.mrf.mxu1 }
 0x53d   :  { %v3290_v57 = vpop.f32.mrf.mxu2  ;;  %v3304_v20 = vpop.f32.mrf.mxu3 }
 0x53e   :  { %v3264_v38 = vpop.f32.mrf.mxu0  ;;  %v3278_v5 = vpop.f32.mrf.mxu1 }
 0x545   :  { %v3292_v45 = vpop.f32.mrf.mxu2  ;;  %v8543_v36 = vpop.f32.mrf.mxu3 }
 0x548   :  { %v3318_v63 = vpop.f32.mrf.mxu0  ;;  %v3332_v16 = vpop.f32.mrf.mxu1 }
 0x549   :  { %v3319_v28 = vadd.f32 %v3318_v63, %v3262_v29  ;;  %v3333_v33 = vadd.f32 %v3332_v16, %v3276_v54 }
 0x54b   :  { %v3365_v31 = vadd.f32 %v3319_v28, %v10384_v59  ;;  %v3366_v6 = vadd.f32 %v3333_v33, %v10385_v51 }
 0x54d   :  { %v5486_v46 = vmul.f32 -1.442695, %v3365_v31  ;;  %v5487_v2 = vmul.f32 -1.442695, %v3366_v6 }
 0x54f   :  { %5966 = vpow2.f32 %v5486_v46  ;;  %v3346_v58 = vpop.f32.mrf.mxu2  ;;  %v10388_v46 = vld [vmem:[#allocation72_spill] sm:$0xff] }
 0x550   :  { %5968 = vpow2.f32 %v5487_v2  ;;  %v3347_v55 = vadd.f32 %v3346_v58, %v3290_v57  ;;  %v3320_v15 = vpop.f32.mrf.mxu0  ;;  %v3334_v62 = vpop.f32.mrf.mxu1 }
 0x551   :  { %v3321_v61 = vadd.f32 %v3320_v15, %v3264_v38  ;;  %v3335_v10 = vadd.f32 %v3334_v62, %v3278_v5  ;;  %v3360_v57 = vpop.f32.mrf.mxu3  ;;  %v10387_v5 = vld [vmem:[#allocation133_spill] sm:$0xff]  ;;  %v10389_v38 = vld [vmem:[#allocation134_spill] sm:$0xff] }
 0x552   :  { %v3367_v50 = vadd.f32 %v3347_v55, %v10386_v44  ;;  %v440_v58 = vadd.f32 %v10388_v46, %v10387_v5  ;;  %v10394_v46 = vld [vmem:[#allocation84_spill] sm:$0xff] }
 0x553   :  { %v3369_v16 = vadd.f32 %v3321_v61, %v10384_v59  ;;  %v3370_v29 = vadd.f32 %v3335_v10, %v10385_v51 }
 0x554   :  { %v5488_v54 = vmul.f32 -1.442695, %v3367_v50 }
 0x555   :  { %v5967_v33 = vpop.eup %5966  ;;  %v5489_v63 = vmul.f32 -1.442695, %v3369_v16  ;;  %v5490_v6 = vmul.f32 -1.442695, %v3370_v29  ;;  %v10390_v16 = vld [vmem:[#allocation73_spill] sm:$0xff] }
 0x556   :  { %v5969_v28 = vpop.eup %5968  ;;  %v8548_v31 = vadd.f32 1.0, %v5967_v33  ;;  %5970 = vpow2.f32 %v5488_v54  ;;  %v489_v29 = vadd.f32 %v10390_v16, %v10389_v38  ;;  %v10391_v54 = vld [vmem:[#allocation141_spill] sm:$0xff]  ;;  %v10392_v33 = vld [vmem:[#allocation82_spill] sm:$0xff]  ;;  %v8575_v16 = vadd.f32 %v10394_v46, %v10387_v5 }
 0x557   :  { %v8550_v2 = vadd.f32 1.0, %v5969_v28  ;;  %5972 = vpow2.f32 %v5489_v63  ;;  %v3348_v15 = vpop.f32.mrf.mxu2  ;;  %v8561_v63 = vadd.f32 %v10392_v33, %v10391_v54  ;;  %v10395_v33 = vld [vmem:[#allocation85_spill] sm:$0xff] }
 0x558   :  { %5974 = vrcp.f32 %v8548_v31  ;;  %v3349_v61 = vadd.f32 %v3348_v15, %v3292_v45  ;;  %v10393_v45 = vld [vmem:[#allocation83_spill] sm:$0xff]  ;;  %v3361_v15 = vadd.f32 %v3360_v57, %v3304_v20  ;;  %v8579_v11 = vadd.f32 %v10395_v33, %v10389_v38  ;;  %v10396_v20 = vld [vmem:[#allocation94_spill] sm:$0xff] }
 0x559   :  { %5976 = vrcp.f32 %v8550_v2  ;;  %v3508_v62 = vpop.f32.mrf.mxu0  ;;  %v3522_v28 = vpop.f32.mrf.mxu1  ;;  %v8585_v57 = vadd.f32 %v10396_v20, %v10391_v54  ;;  %v3406_v34 = vand.u32 2147483647, %v8548_v31  ;;  %v3408_v20 = vand.u32 2147483648, %v8548_v31 }
 0x55a   :  { %5978 = vpow2.f32 %v5490_v6  ;;  %v3371_v50 = vadd.f32 %v3349_v61, %v10386_v44  ;;  %v8567_v6 = vadd.f32 %v10393_v45, %v6892_v12  ;;  %v3564_v1 = vadd.f32 %v3508_v62, %v440_v58  ;;  %v3362_v38 = vpop.f32.mrf.mxu3  ;;  %v10397_v62 = vld [vmem:[#allocation162_spill] sm:$0xff] }
 0x55b   :  { %v3368_v58 = vadd.f32 %v3361_v15, %v10397_v62  ;;  %v3423_v54 = vand.u32 2147483648, %v8550_v2  ;;  %vm3417_vm10 = vweird.f32 %v8550_v2  ;;  %vm3402_vm11 = vweird.f32 %v8548_v31 }
 0x55c   :  { %v5971_v10 = vpop.eup %5970  ;;  %v5491_v44 = vmul.f32 -1.442695, %v3371_v50  ;;  %vm8616_vm13 = vcmp.eq.f32.partialorder %v3406_v34, 8.507059e+37 }
 0x55d   :  { %v5973_v55 = vpop.eup %5972  ;;  %v8590_v5 = vadd.f32 1.0, %v5971_v10 }
 0x55e   :  { %v8563_v51 = vpop.eup %5974  ;;  %v8569_v61 = vadd.f32 1.0, %v5973_v55  ;;  %v3565_v55 = vadd.f32 %v3522_v28, %v489_v29  ;;  %v3363_v29 = vadd.f32 %v3362_v38, %v8543_v36  ;;  %v3409_v38 = vor.u32 1.1754944e-38, %v3408_v20 }
 0x55f   :  { %v8571_v59 = vpop.eup %5976  ;;  %v3398_v39 = vmul.f32 %v8563_v51, %v8548_v31  ;;  %vm3403_vm9 = vweird.f32 %v8563_v51 }
 0x560   :  { %v5979_v45 = vpop.eup %5978  ;;  %v3413_v50 = vmul.f32 %v8571_v59, %v8550_v2  ;;  %5980 = vrcp.f32 %v8569_v61  ;;  %vm3418_vm8 = vweird.f32 %v8571_v59  ;;  %v5493_v15 = vmul.f32 -1.442695, %v3565_v55  ;;  %vm8624_vm14 = vmor %vm3402_vm11, %vm3403_vm9 }
 0x561   :  { %v3399_v46 = vsub.f32 1.0, %v3398_v39  ;;  %v8592_v33 = vadd.f32 1.0, %v5979_v45  ;;  %5982 = vpow2.f32 %v5491_v44  ;;  %v5492_v39 = vmul.f32 -1.442695, %v3564_v1  ;;  %v3536_v1 = vpop.f32.mrf.mxu2  ;;  %vm8612_vm12 = vmor %vm3417_vm10, %vm3418_vm8 }
 0x562   :  { %v3414_v8 = vsub.f32 1.0, %v3413_v50  ;;  %v3421_v44 = vand.u32 2147483647, %v8550_v2  ;;  %v3424_v2 = vor.u32 1.1754944e-38, %v3423_v54  ;;  %vm3447_vm0 = vweird.f32 %v8569_v61 }
 0x563   :  { %v3400_v24 = vmul.f32 %v8563_v51, %v3399_v46  ;;  %5984 = vrcp.f32 %v8592_v33  ;;  %v3453_v18 = vand.u32 2147483648, %v8569_v61  ;;  %vm3462_vm1 = vweird.f32 %v8592_v33 }
 0x564   :  { %v3415_v10 = vmul.f32 %v8571_v59, %v3414_v8  ;;  %5986 = vrcp.f32 %v8590_v5  ;;  %vm8628_vm15 = vcmp.eq.f32.partialorder %v3421_v44, 8.507059e+37  ;;  %vm3432_vm9 = vweird.f32 %v8590_v5 }
 0x565   :  { %v3401_v28 = vadd.f32 %v8563_v51, %v3400_v24  ;;  %5988 = vtanh.f32 %v3368_v58  ;;  %v3372_v58 = vadd.f32 %v3363_v29, %v10397_v62  ;;  %v3468_v62 = vand.u32 2147483648, %v8592_v33 }
 0x566   :  { %v8607_v45 = vpop.eup %5980  ;;  %v3416_v8 = vadd.f32 %v8571_v59, %v3415_v10  ;;  %5990 = vpow2.f32 %v5492_v39 }
 0x567   :  { %v5983_v50 = vpop.eup %5982  ;;  %v3443_v55 = vmul.f32 %v8607_v45, %v8569_v61  ;;  %v3405_v39 = vsel %vm8624_vm14, %v8563_v51, %v3401_v28  ;;  %5992 = vpow2.f32 %v5493_v15  ;;  %vm3448_vm2 = vweird.f32 %v8607_v45 }
 0x568   :  { %v8632_v34 = vadd.f32 1.0, %v5983_v50  ;;  %v3420_v54 = vsel %vm8612_vm12, %v8571_v59, %v3416_v8  ;;  %v3451_v50 = vand.u32 2147483647, %v8569_v61  ;;  %v3566_v59 = vadd.f32 %v3536_v1, %v8561_v63  ;;  %vm8666_vm4 = vmor %vm3447_vm0, %vm3448_vm2 }
 0x569   :  { %v5985_v20 = vpop.eup %5984  ;;  %v3444_v10 = vsub.f32 1.0, %v3443_v55  ;;  %v3410_v15 = vsel %vm8616_vm13, %v3409_v38, %v3405_v39  ;;  %v3425_v8 = vsel %vm8628_vm15, %v3424_v2, %v3420_v54  ;;  %v3510_v55 = vpop.f32.mrf.mxu0  ;;  %v3469_v61 = vor.u32 1.1754944e-38, %v3468_v62 }
 0x56a   :  { %v3458_v44 = vmul.f32 %v5985_v20, %v8592_v33  ;;  %v8645_v29 = vpop.eup %5986  ;;  %5994 = vrcp.f32 %v8632_v34  ;;  %vm3463_vm3 = vweird.f32 %v5985_v20  ;;  %v3489_v2 = vmul.f32 %v3425_v8, %v8331_v25  ;;  %v3538_v25 = vpop.f32.mrf.mxu2 }
 0x56b   :  { %v3445_v51 = vmul.f32 %v8607_v45, %v3444_v10  ;;  %v5989_v28 = vpop.eup %5988  ;;  %v3466_v10 = vand.u32 2147483647, %v8592_v33  ;;  %5996 = vtanh.f32 %v3372_v58  ;;  %v3428_v63 = vmul.f32 %v8645_v29, %v8590_v5  ;;  %vm3464_vm5 = vmor %vm3462_vm1, %vm3463_vm3 }
 0x56c   :  { %v3459_v36 = vsub.f32 1.0, %v3458_v44  ;;  %v5991_v31 = vpop.eup %5990  ;;  %v3491_v46 = vmul.f32 %v5989_v28, %v3410_v15  ;;  %v5494_v54 = vmul.f32 -1.442695, %v3566_v59  ;;  %v3568_v58 = vadd.f32 %v3510_v55, %v8575_v16  ;;  %v3524_v44 = vpop.f32.mrf.mxu1 }
 0x56d   :  { %v3446_v23 = vadd.f32 %v8607_v45, %v3445_v51  ;;  %v8661_v24 = vadd.f32 1.0, %v5991_v31  ;;  %v5993_v38 = vpop.eup %5992  ;;  %vm3452_vm6 = vcmp.eq.f32.partialorder %v3451_v50, 8.507059e+37  ;;  %v3454_v16 = vor.u32 1.1754944e-38, %v3453_v18 }
 0x56e   :  { %v3460_v1 = vmul.f32 %v5985_v20, %v3459_v36  ;;  %v8675_v31 = vadd.f32 1.0, %v5993_v38  ;;  %vm3467_vm7 = vcmp.eq.f32.partialorder %v3466_v10, 8.507059e+37  ;;  %v3429_v59 = vsub.f32 1.0, %v3428_v63 }
 0x56f   :  { %v3450_v51 = vsel %vm8666_vm4, %v8607_v45, %v3446_v23  ;;  %5998 = vrcp.f32 %v8661_v24  ;;  %v3550_v23 = vpop.f32.mrf.mxu3  ;;  %v3569_v45 = vadd.f32 %v3524_v44, %v8579_v11  ;;  %v5495_v38 = vmul.f32 -1.442695, %v3568_v58 }
 0x570   :  { %v3461_v36 = vadd.f32 %v5985_v20, %v3460_v1  ;;  %v8677_v28 = vpop.eup %5994  ;;  %6000 = vrcp.f32 %v8675_v31  ;;  %v3455_v55 = vsel %vm3452_vm6, %v3454_v16, %v3450_v51  ;;  %v3570_v39 = vadd.f32 %v3538_v25, %v8585_v57 }
 0x571   :  { %v5997_v8 = vpop.eup %5996  ;;  %v8685_v19 = vadd.f32 %v3491_v46, %v3489_v2  ;;  %v3473_v33 = vmul.f32 %v8677_v28, %v8632_v34  ;;  %6002 = vpow2.f32 %v5494_v54  ;;  %v3567_v18 = vadd.f32 %v3550_v23, %v8567_v6 }
 0x572   :  { %v3465_v15 = vsel %vm3464_vm5, %v5985_v20, %v3461_v36  ;;  %v3438_v20 = vand.u32 2147483648, %v8590_v5  ;;  %v3492_v11 = vmul.f32 %v5997_v8, %v3455_v55  ;;  %v5496_v10 = vmul.f32 -1.442695, %v3569_v45 }
 0x573   :  { %v3470_v1 = vsel %vm3467_vm7, %v3469_v61, %v3465_v15  ;;  %v3430_v63 = vmul.f32 %v8645_v29, %v3429_v59  ;;  %vm3433_vm8 = vweird.f32 %v8645_v29  ;;  %6004 = vpow2.f32 %v5495_v38 }
 0x574   :  { %v3490_v50 = vmul.f32 %v3470_v1, %v8345_v43  ;;  %v5497_v2 = vmul.f32 -1.442695, %v3570_v39  ;;  %6006 = vtanh.f32 %v8685_v19  ;;  %v3474_v54 = vsub.f32 1.0, %v3473_v33  ;;  %vm8728_vm4 = vmor %vm3432_vm9, %vm3433_vm8 }
 0x575   :  { %v5999_v62 = vpop.eup %5998  ;;  %v3483_v6 = vand.u32 2147483648, %v8632_v34  ;;  %v3605_v58 = vand.u32 2147483647, %v8661_v24  ;;  %v3607_v51 = vand.u32 2147483648, %v8661_v24  ;;  %6008 = vtanh.f32 %v3567_v18 }
 0x576   :  { %v3597_v57 = vmul.f32 %v5999_v62, %v8661_v24  ;;  %v6001_v46 = vpop.eup %6000  ;;  %vm3477_vm10 = vweird.f32 %v8632_v34  ;;  %v8702_v25 = vadd.f32 %v3492_v11, %v3490_v50  ;;  %v3622_v61 = vand.u32 2147483648, %v8675_v31 }
 0x577   :  { %v3612_v44 = vmul.f32 %v6001_v46, %v8675_v31  ;;  %v6003_v36 = vpop.eup %6002  ;;  %v3620_v16 = vand.u32 2147483647, %v8675_v31  ;;  %6010 = vpow2.f32 %v5496_v10  ;;  %vm3602_vm11 = vweird.f32 %v5999_v62 }
 0x578   :  { %v3598_v43 = vsub.f32 1.0, %v3597_v57  ;;  %6012 = vpow2.f32 %v5497_v2  ;;  %v3475_v23 = vmul.f32 %v8677_v28, %v3474_v54  ;;  %vm3478_vm12 = vweird.f32 %v8677_v28 }
 0x579   :  { %v3613_v59 = vsub.f32 1.0, %v3612_v44  ;;  %vm3616_vm13 = vweird.f32 %v8675_v31  ;;  %vm3601_vm14 = vweird.f32 %v8661_v24  ;;  %v6005_v45 = vpop.eup %6004  ;;  %vm3617_vm15 = vweird.f32 %v6001_v46  ;;  %vm8742_vm5 = vmor %vm3477_vm10, %vm3478_vm12 }
 0x57a   :  { %v3599_v15 = vmul.f32 %v5999_v62, %v3598_v43  ;;  %v8710_v55 = vadd.f32 1.0, %v6003_v36  ;;  %v6007_v38 = vpop.eup %6006  ;;  %v3623_v39 = vor.u32 1.1754944e-38, %v3622_v61  ;;  %vm3603_vm0 = vmor %vm3601_vm14, %vm3602_vm11  ;;  %vm3606_vm1 = vcmp.eq.f32.partialorder %v3605_v58, 8.507059e+37 }
 0x57b   :  { %v3614_v8 = vmul.f32 %v6001_v46, %v3613_v59  ;;  %v3608_v33 = vor.u32 1.1754944e-38, %v3607_v51  ;;  %v8712_v18 = vadd.f32 1.0, %v6005_v45  ;;  %v6009_v50 = vpop.eup %6008  ;;  %6014 = vtanh.f32 %v8702_v25  ;;  %vm3618_vm3 = vmor %vm3616_vm13, %vm3617_vm15 }
 0x57c   :  { %v3600_v1 = vadd.f32 %v5999_v62, %v3599_v15  ;;  %vm3621_vm2 = vcmp.eq.f32.partialorder %v3620_v16, 8.507059e+37  ;;  %v3431_v2 = vadd.f32 %v8645_v29, %v3430_v63  ;;  %v3476_v54 = vadd.f32 %v8677_v28, %v3475_v23  ;;  %v3552_v63 = vpop.f32.mrf.mxu3 }
 0x57d   :  { %v3615_v10 = vadd.f32 %v6001_v46, %v3614_v8  ;;  %v6011_v24 = vpop.eup %6010  ;;  %6016 = vrcp.f32 %v8712_v18  ;;  %v3436_v61 = vand.u32 2147483647, %v8590_v5  ;;  %v3481_v16 = vand.u32 2147483647, %v8632_v34 }
 0x57e   :  { %v3604_v11 = vsel %vm3603_vm0, %v5999_v62, %v3600_v1  ;;  %v6013_v58 = vpop.eup %6012  ;;  %6018 = vrcp.f32 %v8710_v55  ;;  %v8722_v62 = vadd.f32 1.0, %v6011_v24  ;;  %v3435_v45 = vsel %vm8728_vm4, %v8645_v29, %v3431_v2 }
 0x57f   :  { %v3609_v57 = vsel %vm3606_vm1, %v3608_v33, %v3604_v11  ;;  %v3619_v43 = vsel %vm3618_vm3, %v6001_v46, %v3615_v10  ;;  %v8732_v36 = vadd.f32 1.0, %v6013_v58  ;;  %v10410_v46 = vld [vmem:[#allocation95_spill] sm:$0xff]  ;;  %v3480_v8 = vsel %vm8742_vm5, %v8677_v28, %v3476_v54 }
 0x580   :  { %v3690_v44 = vmul.f32 %v6009_v50, %v3609_v57  ;;  %v3624_v51 = vsel %vm3621_vm2, %v3623_v39, %v3619_v43  ;;  %v589_v59 = vadd.f32 %v10410_v46, %v6892_v12  ;;  %6020 = vrcp.f32 %v8722_v62 }
 0x581   :  { %v3688_v23 = vmul.f32 %v3624_v51, %v8399_v7  ;;  %6022 = vrcp.f32 %v8732_v36  ;;  %v6015_v1 = vpop.eup %6014  ;;  %v3439_v34 = vor.u32 1.1754944e-38, %v3438_v20  ;;  %v3484_v39 = vor.u32 1.1754944e-38, %v3483_v6 }
 0x582   :  { %v3571_v7 = vadd.f32 %v3552_v63, %v589_v59  ;;  %vm3437_vm6 = vcmp.eq.f32.partialorder %v3436_v61, 8.507059e+37  ;;  %vm3482_vm7 = vcmp.eq.f32.partialorder %v3481_v16, 8.507059e+37  ;;  %v3652_v58 = vand.u32 2147483648, %v8712_v18 }
 0x583   :  { %v8757_v33 = vadd.f32 %v3690_v44, %v3688_v23  ;;  %v6017_v50 = vpop.eup %6016  ;;  %v3440_v29 = vsel %vm3437_vm6, %v3439_v34, %v3435_v45  ;;  %v3485_v24 = vsel %vm3482_vm7, %v3484_v39, %v3480_v8  ;;  %v3667_v63 = vand.u32 2147483648, %v8722_v62 }
 0x584   :  { %v8759_v11 = vpop.eup %6018  ;;  %v3642_v10 = vmul.f32 %v6017_v50, %v8712_v18  ;;  %v3497_v57 = vmul.f32 %v6007_v38, %v3440_v29  ;;  %v3498_v2 = vmul.f32 %v6015_v1, %v3485_v24  ;;  %6024 = vtanh.f32 %v3571_v7 }
 0x585   :  { %v3627_v20 = vmul.f32 %v8759_v11, %v8710_v55  ;;  %vm3647_vm8 = vweird.f32 %v6017_v50  ;;  %v3650_v38 = vand.u32 2147483647, %v8712_v18  ;;  %vm3646_vm9 = vweird.f32 %v8712_v18 }
 0x586   :  { %v6021_v28 = vpop.eup %6020  ;;  %v3643_v54 = vsub.f32 1.0, %v3642_v10  ;;  %v3699_v43 = vpack.c.bf16 %v3498_v2, %v3497_v57  ;;  %vm3648_vm11 = vmor %vm3646_vm9, %vm3647_vm8  ;;  %v3653_v46 = vor.u32 1.1754944e-38, %v3652_v58  ;;  %v3665_v59 = vand.u32 2147483647, %v8722_v62 }
 0x587   :  { %v8762_v5 = vpop.eup %6022  ;;  %v3657_v6 = vmul.f32 %v6021_v28, %v8722_v62  ;;  %vm3662_vm10 = vweird.f32 %v6021_v28  ;;  %v3628_v23 = vsub.f32 1.0, %v3627_v20  ;;  %vm3651_vm12 = vcmp.eq.f32.partialorder %v3650_v38, 8.507059e+37 }
 0x588   :  { %v3672_v44 = vmul.f32 %v8762_v5, %v8732_v36  ;;  %v3644_v31 = vmul.f32 %v6017_v50, %v3643_v54  ;;  %3708 = vmatmul.bf16.vlgmr.msrb.gmra.mxu0 %v3699_v43  ;;  %3722 = vmatmul.bf16.vlgmr.msrb.gmra.mxu1 %v3699_v43  ;;  %vm3661_vm13 = vweird.f32 %v8722_v62  ;;  %v3668_v34 = vor.u32 1.1754944e-38, %v3667_v63  ;;  %v10436_v54 = vld [vmem:[#allocation87_spill] sm:$0xff] }
 0x589   :  { %v3658_v51 = vsub.f32 1.0, %v3657_v6  ;;  %3736 = vmatmul.bf16.vlgmr.msrb.gmra.mxu2 %v3699_v43  ;;  %3750 = vmatmul.bf16.vlgmr.msrb.gmra.mxu3 %v3699_v43  ;;  %vm3663_vm14 = vmor %vm3661_vm13, %vm3662_vm10  ;;  %vm3666_vm15 = vcmp.eq.f32.partialorder %v3665_v59, 8.507059e+37  ;;  %vm3632_vm0 = vweird.f32 %v8759_v11  ;;  %6026 = vtanh.f32 %v8757_v33  ;;  %v10418_v59 = vld [vmem:[#allocation31_spill] sm:$0xff] }
 0x58a   :  { %v3645_v61 = vadd.f32 %v6017_v50, %v3644_v31  ;;  %3946 = vmatpush.bf16.msrb.mxu0 %v6472_v37  ;;  %3960 = vmatpush.bf16.msrb.mxu1 %v6474_v41  ;;  %v6025_v15 = vpop.eup %6024  ;;  %v3673_v45 = vsub.f32 1.0, %v3672_v44  ;;  %vm3677_vm1 = vweird.f32 %v8762_v5  ;;  %vm3631_vm2 = vweird.f32 %v8710_v55 }
 0x58b   :  { %v3659_v16 = vmul.f32 %v6021_v28, %v3658_v51  ;;  %3974 = vmatpush.bf16.msrb.mxu2 %v6476_v47  ;;  %3988 = vmatpush.bf16.msrb.mxu3 %v6479_v48  ;;  %vm8802_vm3 = vmor %vm3631_vm2, %vm3632_vm0  ;;  %v3635_v20 = vand.u32 2147483647, %v8710_v55  ;;  %vm3676_vm4 = vweird.f32 %v8732_v36  ;;  %v3680_v6 = vand.u32 2147483647, %v8732_v36 }
 0x58c   :  { %v3649_v8 = vsel %vm3648_vm11, %v6017_v50, %v3645_v61  ;;  %v3629_v50 = vmul.f32 %v8759_v11, %v3628_v23  ;;  %v3674_v10 = vmul.f32 %v8762_v5, %v3673_v45  ;;  %vm3678_vm5 = vmor %vm3676_vm4, %vm3677_vm1  ;;  %v10415_v61 = vld [vmem:[#allocation28_spill] sm:$0xff]  ;;  %v10420_v23 = vld [vmem:[#allocation33_spill] sm:$0xff] }
 0x58d   :  { %v3654_v18 = vsel %vm3651_vm12, %v3653_v46, %v3649_v8  ;;  %v3660_v1 = vadd.f32 %v6021_v28, %v3659_v16  ;;  %vm3636_vm6 = vcmp.eq.f32.partialorder %v3635_v20, 8.507059e+37  ;;  %vm3681_vm7 = vcmp.eq.f32.partialorder %v3680_v6, 8.507059e+37  ;;  %v10416_v16 = vld [vmem:[#allocation29_spill] sm:$0xff]  ;;  %v10417_v46 = vld [vmem:[#allocation30_spill] sm:$0xff]  ;;  %v10422_v8 = vld [vmem:[#allocation67_spill] sm:$0xff] }
 0x58e   :  { %v3691_v7 = vmul.f32 %v6025_v15, %v3654_v18  ;;  %3947 = vmatpush.bf16.msrb.mxu0 %v6481_v49  ;;  %3961 = vmatpush.bf16.msrb.mxu1 %v9992_v21  ;;  %v3630_v57 = vadd.f32 %v8759_v11, %v3629_v50  ;;  %v3675_v2 = vadd.f32 %v8762_v5, %v3674_v10  ;;  %v10419_v15 = vld [vmem:[#allocation32_spill] sm:$0xff]  ;;  %v10421_v45 = vld [vmem:[#allocation66_spill] sm:$0xff]  ;;  %v10428_v50 = vld [vmem:[#allocation75_spill] sm:$0xff] }
 0x58f   :  { %v3664_v39 = vsel %vm3663_vm14, %v6021_v28, %v3660_v1  ;;  %3975 = vmatpush.bf16.msrb.mxu2 %v9993_v53  ;;  %3989 = vmatpush.bf16.msrb.mxu3 %v9994_v27  ;;  %v3682_v28 = vand.u32 2147483648, %v8732_v36  ;;  %v10423_v18 = vld [vmem:[#allocation34_spill] sm:$0xff]  ;;  %v10424_v1 = vld [vmem:[#allocation35_spill] sm:$0xff]  ;;  %v10429_v10 = vld [vmem:[#allocation76_spill] sm:$0xff] }
 0x590   :  { %v3669_v29 = vsel %vm3666_vm15, %v3668_v34, %v3664_v39  ;;  %v3634_v58 = vsel %vm8802_vm3, %v8759_v11, %v3630_v57  ;;  %v3679_v43 = vsel %vm3678_vm5, %v8762_v5, %v3675_v2  ;;  %v10425_v34 = vld [vmem:[#allocation68_spill] sm:$0xff]  ;;  %v10426_v39 = vld [vmem:[#allocation69_spill] sm:$0xff]  ;;  %v10432_v57 = vld [vmem:[#allocation79_spill] sm:$0xff] }
 0x591   :  { %v3689_v62 = vmul.f32 %v3669_v29, %v8429_v52  ;;  %v3637_v52 = vand.u32 2147483648, %v8710_v55  ;;  %v6027_v55 = vpop.eup %6026  ;;  %v3683_v31 = vor.u32 1.1754944e-38, %v3682_v28  ;;  %v10430_v29 = vld [vmem:[#allocation77_spill] sm:$0xff]  ;;  %v10433_v2 = vld [vmem:[#allocation80_spill] sm:$0xff]  ;;  %v10435_v28 = vld [vmem:[#allocation86_spill] sm:$0xff] }
 0x592   :  { %3948 = vmatpush.bf16.msrb.mxu0 %v6493_v60  ;;  %3962 = vmatpush.bf16.msrb.mxu1 %v6496_v0  ;;  %v10437_v20 = vld [vmem:[#allocation88_spill] sm:$0xff]  ;;  %v10438_v6 = vld [vmem:[#allocation89_spill] sm:$0xff] }
 0x593   :  { %v8789_v24 = vadd.f32 %v3691_v7, %v3689_v62  ;;  %3976 = vmatpush.bf16.msrb.mxu2 %v6499_v3  ;;  %3990 = vmatpush.bf16.msrb.mxu3 %v6503_v4  ;;  %v3638_v44 = vor.u32 1.1754944e-38, %v3637_v52  ;;  %v3684_v51 = vsel %vm3681_vm7, %v3683_v31, %v3679_v43  ;;  %v10427_v7 = vld [vmem:[#allocation74_spill] sm:$0xff]  ;;  %v10434_v52 = vld [vmem:[#allocation81_spill] sm:$0xff]  ;;  %v10440_v43 = vld [vmem:[#allocation91_spill] sm:$0xff] }
 0x594   :  { %v10431_v62 = vld [vmem:[#allocation78_spill] sm:$0xff] }
 0x595   :  { %6028 = vtanh.f32 %v8789_v24  ;;  %v3639_v38 = vsel %vm3636_vm6, %v3638_v44, %v3634_v58  ;;  %v10439_v58 = vld [vmem:[#allocation90_spill] sm:$0xff]  ;;  %v10442_v44 = vld [vmem:[#allocation93_spill] sm:$0xff] }
 0x596   :  { %3949 = vmatpush.bf16.msrb.mxu0 %v6508_v9  ;;  %3963 = vmatpush.bf16.msrb.mxu1 %v6510_v13  ;;  %v3696_v63 = vmul.f32 %v6027_v55, %v3639_v38  ;;  %v10441_v55 = vld [vmem:[#allocation92_spill] sm:$0xff]  ;;  %v10443_v31 = vld [vmem:[#allocation98_spill] sm:$0xff] }
 0x597   :  { %3977 = vmatpush.bf16.msrb.mxu2 %v6512_v14  ;;  %3991 = vmatpush.bf16.msrb.mxu3 %v6515_v17  ;;  %v10445_v38 = vld [vmem:[#allocation100_spill] sm:$0xff] }
 0x59a   :  { %3950 = vmatpush.bf16.msrb.mxu0 %v6520_v22  ;;  %3964 = vmatpush.bf16.msrb.mxu1 %v6522_v26 }
 0x59b   :  { %v6029_v36 = vpop.eup %6028  ;;  %3978 = vmatpush.bf16.msrb.mxu2 %v9997_v56  ;;  %3992 = vmatpush.bf16.msrb.mxu3 %v6527_v30 }
 0x59c   :  { %v3697_v11 = vmul.f32 %v6029_v36, %v3684_v51  ;;  %v10444_v36 = vld [vmem:[#allocation99_spill] sm:$0xff]  ;;  %v10446_v51 = vld [vmem:[#allocation101_spill] sm:$0xff] }
 0x59e   :  { %v3698_v5 = vpack.c.bf16 %v3697_v11, %v3696_v63  ;;  %3951 = vmatpush.bf16.msrb.mxu0 %v6532_v35  ;;  %3965 = vmatpush.bf16.msrb.mxu1 %v6534_v40  ;;  %v10447_v63 = vld [vmem:[#allocation102_spill] sm:$0xff]  ;;  %v10448_v11 = vld [vmem:[#allocation103_spill] sm:$0xff] }
 0x59f   :  { %3979 = vmatpush.bf16.msrb.mxu2 %v6536_v42  ;;  %3993 = vmatpush.bf16.msrb.mxu3 %v10311_v32 }
 0x5a0   :  { %3764 = vmatmul.bf16.vlgmr.msra.gmra.mxu0 %v3698_v5  ;;  %3778 = vmatmul.bf16.vlgmr.msra.gmra.mxu1 %v3698_v5 }
 0x5a1   :  { %3792 = vmatmul.bf16.vlgmr.msra.gmra.mxu2 %v3698_v5  ;;  %3806 = vmatmul.bf16.vlgmr.msra.gmra.mxu3 %v3698_v5 }
 0x5a2   :  { %3952 = vmatpush.bf16.msrb.mxu0 %v10415_v61  ;;  %3966 = vmatpush.bf16.msrb.mxu1 %v10416_v16 }
 0x5a3   :  { %3980 = vmatpush.bf16.msrb.mxu2 %v10417_v46  ;;  %3994 = vmatpush.bf16.msrb.mxu3 %v10418_v59 }
 0x5a6   :  { %3953 = vmatpush.bf16.msrb.mxu0 %v10419_v15  ;;  %3967 = vmatpush.bf16.msrb.mxu1 %v10420_v23 }
 0x5a7   :  { %3981 = vmatpush.bf16.msrb.mxu2 %v10423_v18  ;;  %3995 = vmatpush.bf16.msrb.mxu3 %v10424_v1 }
 0x5aa   :  { %4147 = vmatpush.bf16.msra.mxu0 %v10421_v45  ;;  %4161 = vmatpush.bf16.msra.mxu1 %v10422_v8 }
 0x5ab   :  { %4175 = vmatpush.bf16.msra.mxu2 %v10425_v34  ;;  %4189 = vmatpush.bf16.msra.mxu3 %v10426_v39  ;;  %v10489_v34 = vld [vmem:[#allocation161_spill] sm:$0xff] }
 0x5ae   :  { %4148 = vmatpush.bf16.msra.mxu0 %v10427_v7  ;;  %4162 = vmatpush.bf16.msra.mxu1 %v10428_v50 }
 0x5af   :  { %4176 = vmatpush.bf16.msra.mxu2 %v10429_v10  ;;  %4190 = vmatpush.bf16.msra.mxu3 %v10430_v29 }
 0x5b0   :  { %3954 = vmatmul.bf16.vlgmr.msrb.gmra.mxu0 %v3698_v5  ;;  %3968 = vmatmul.bf16.vlgmr.msrb.gmra.mxu1 %v3698_v5 }
 0x5b1   :  { %3982 = vmatmul.bf16.vlgmr.msrb.gmra.mxu2 %v3698_v5  ;;  %3996 = vmatmul.bf16.vlgmr.msrb.gmra.mxu3 %v3698_v5  ;;  %v10449_v5 = vld [vmem:[#allocation104_spill] sm:$0xff] }
 0x5b2   :  { %4149 = vmatpush.bf16.msra.mxu0 %v10431_v62  ;;  %4163 = vmatpush.bf16.msra.mxu1 %v10432_v57 }
 0x5b3   :  { %4177 = vmatpush.bf16.msra.mxu2 %v10433_v2  ;;  %4191 = vmatpush.bf16.msra.mxu3 %v10434_v52 }
 0x5b6   :  { %4150 = vmatpush.bf16.msra.mxu0 %v10435_v28  ;;  %4164 = vmatpush.bf16.msra.mxu1 %v10436_v54 }
 0x5b7   :  { %4178 = vmatpush.bf16.msra.mxu2 %v10437_v20  ;;  %4192 = vmatpush.bf16.msra.mxu3 %v10438_v6 }
 0x5ba   :  { %4151 = vmatpush.bf16.msra.mxu0 %v10439_v58  ;;  %4165 = vmatpush.bf16.msra.mxu1 %v10440_v43  ;;  %v10450_v58 = vld [vmem:[#allocation106_spill] sm:$0xff] }
 0x5bb   :  { %4179 = vmatpush.bf16.msra.mxu2 %v10441_v55  ;;  %4193 = vmatpush.bf16.msra.mxu3 %v10442_v44  ;;  %v10451_v43 = vld [vmem:[#allocation110_spill] sm:$0xff]  ;;  %v10452_v55 = vld [vmem:[#allocation111_spill] sm:$0xff]  ;;  %v10453_v44 = vld [vmem:[#allocation112_spill] sm:$0xff] }
 0x5be   :  { %4152 = vmatpush.bf16.msra.mxu0 %v10443_v31  ;;  %4166 = vmatpush.bf16.msra.mxu1 %v10444_v36  ;;  %v10454_v31 = vld [vmem:[#allocation113_spill] sm:$0xff]  ;;  %v10455_v36 = vld [vmem:[#allocation114_spill] sm:$0xff] }
 0x5bf   :  { %4180 = vmatpush.bf16.msra.mxu2 %v10445_v38  ;;  %4194 = vmatpush.bf16.msra.mxu3 %v10446_v51  ;;  %v10456_v38 = vld [vmem:[#allocation115_spill] sm:$0xff]  ;;  %v10457_v51 = vld [vmem:[#allocation117_spill] sm:$0xff] }
 0x5c2   :  { %4153 = vmatpush.bf16.msra.mxu0 %v10447_v63  ;;  %4167 = vmatpush.bf16.msra.mxu1 %v10448_v11  ;;  %v10458_v63 = vld [vmem:[#allocation120_spill] sm:$0xff]  ;;  %v10459_v11 = vld [vmem:[#allocation122_spill] sm:$0xff] }
 0x5c3   :  { %4181 = vmatpush.bf16.msra.mxu2 %v10449_v5  ;;  %4195 = vmatpush.bf16.msra.mxu3 %v10450_v58  ;;  %v10460_v5 = vld [vmem:[#allocation123_spill] sm:$0xff]  ;;  %v10461_v58 = vld [vmem:[#allocation124_spill] sm:$0xff] }
 0x5c6   :  { %4154 = vmatpush.bf16.msra.mxu0 %v10451_v43  ;;  %4168 = vmatpush.bf16.msra.mxu1 %v10452_v55  ;;  %v10462_v43 = vld [vmem:[#allocation126_spill] sm:$0xff]  ;;  %v10463_v55 = vld [vmem:[#allocation129_spill] sm:$0xff] }
 0x5c7   :  { %4182 = vmatpush.bf16.msra.mxu2 %v10453_v44  ;;  %4196 = vmatpush.bf16.msra.mxu3 %v10454_v31  ;;  %v10464_v44 = vld [vmem:[#allocation131_spill] sm:$0xff]  ;;  %v10465_v31 = vld [vmem:[#allocation132_spill] sm:$0xff] }
 0x5ca   :  { %4203 = vmatpush.bf16.msrb.mxu0 %v10455_v36  ;;  %4217 = vmatpush.bf16.msrb.mxu1 %v10456_v38  ;;  %v10466_v36 = vld [vmem:[#allocation135_spill] sm:$0xff]  ;;  %v10467_v38 = vld [vmem:[#allocation136_spill] sm:$0xff] }
 0x5cb   :  { %4231 = vmatpush.bf16.msrb.mxu2 %v10457_v51  ;;  %4245 = vmatpush.bf16.msrb.mxu3 %v10458_v63  ;;  %v10468_v51 = vld [vmem:[#allocation137_spill] sm:$0xff]  ;;  %v10469_v63 = vld [vmem:[#allocation138_spill] sm:$0xff] }
 0x5ce   :  { %4204 = vmatpush.bf16.msrb.mxu0 %v10459_v11  ;;  %4218 = vmatpush.bf16.msrb.mxu1 %v10460_v5  ;;  %v10470_v11 = vld [vmem:[#allocation140_spill] sm:$0xff]  ;;  %v10471_v5 = vld [vmem:[#allocation142_spill] sm:$0xff] }
 0x5cf   :  { %4232 = vmatpush.bf16.msrb.mxu2 %v10461_v58  ;;  %4246 = vmatpush.bf16.msrb.mxu3 %v10462_v43  ;;  %v10472_v58 = vld [vmem:[#allocation143_spill] sm:$0xff]  ;;  %v10473_v43 = vld [vmem:[#allocation144_spill] sm:$0xff] }
 0x5d2   :  { %4205 = vmatpush.bf16.msrb.mxu0 %v10463_v55  ;;  %4219 = vmatpush.bf16.msrb.mxu1 %v10464_v44  ;;  %v10474_v55 = vld [vmem:[#allocation145_spill] sm:$0xff]  ;;  %v10475_v44 = vld [vmem:[#allocation147_spill] sm:$0xff] }
 0x5d3   :  { %4233 = vmatpush.bf16.msrb.mxu2 %v10465_v31  ;;  %4247 = vmatpush.bf16.msrb.mxu3 %v10466_v36  ;;  %v10476_v31 = vld [vmem:[#allocation148_spill] sm:$0xff]  ;;  %v10477_v36 = vld [vmem:[#allocation149_spill] sm:$0xff] }
 0x5d6   :  { %4206 = vmatpush.bf16.msrb.mxu0 %v10467_v38  ;;  %4220 = vmatpush.bf16.msrb.mxu1 %v10468_v51  ;;  %v10478_v38 = vld [vmem:[#allocation150_spill] sm:$0xff]  ;;  %v10479_v51 = vld [vmem:[#allocation151_spill] sm:$0xff] }
 0x5d7   :  { %4234 = vmatpush.bf16.msrb.mxu2 %v10469_v63  ;;  %4248 = vmatpush.bf16.msrb.mxu3 %v10470_v11  ;;  %v10480_v63 = vld [vmem:[#allocation152_spill] sm:$0xff]  ;;  %v10481_v11 = vld [vmem:[#allocation153_spill] sm:$0xff] }
 0x5da   :  { %4207 = vmatpush.bf16.msrb.mxu0 %v10471_v5  ;;  %4221 = vmatpush.bf16.msrb.mxu1 %v10472_v58  ;;  %v10482_v5 = vld [vmem:[#allocation154_spill] sm:$0xff]  ;;  %v10483_v58 = vld [vmem:[#allocation155_spill] sm:$0xff] }
 0x5db   :  { %4235 = vmatpush.bf16.msrb.mxu2 %v10473_v43  ;;  %4249 = vmatpush.bf16.msrb.mxu3 %v10474_v55  ;;  %v10484_v43 = vld [vmem:[#allocation156_spill] sm:$0xff]  ;;  %v10485_v55 = vld [vmem:[#allocation157_spill] sm:$0xff] }
 0x5de   :  { %4208 = vmatpush.bf16.msrb.mxu0 %v10475_v44  ;;  %4222 = vmatpush.bf16.msrb.mxu1 %v10476_v31  ;;  %v10486_v44 = vld [vmem:[#allocation158_spill] sm:$0xff] }
 0x5df   :  { %4236 = vmatpush.bf16.msrb.mxu2 %v10477_v36  ;;  %4250 = vmatpush.bf16.msrb.mxu3 %v10478_v38 }
 0x5e2   :  { %4209 = vmatpush.bf16.msrb.mxu0 %v10479_v51  ;;  %4223 = vmatpush.bf16.msrb.mxu1 %v10480_v63 }
 0x5e3   :  { %4237 = vmatpush.bf16.msrb.mxu2 %v10481_v11  ;;  %4251 = vmatpush.bf16.msrb.mxu3 %v10482_v5  ;;  %v10487_v5 = vld [vmem:[#allocation159_spill] sm:$0xff] }
 0x5e6   :  { %4210 = vmatpush.bf16.msrb.mxu0 %v10483_v58  ;;  %4224 = vmatpush.bf16.msrb.mxu1 %v10484_v43  ;;  %v10488_v58 = vld [vmem:[#allocation160_spill] sm:$0xff] }
 0x5e7   :  { %4238 = vmatpush.bf16.msrb.mxu2 %v10485_v55  ;;  %4252 = vmatpush.bf16.msrb.mxu3 %v10486_v44 }
 0x605   :  { %v3709_v31 = vpop.f32.mrf.mxu0  ;;  %v3723_v36 = vpop.f32.mrf.mxu1 }
 0x60c   :  { %v3737_v6 = vpop.f32.mrf.mxu2  ;;  %v3751_v51 = vpop.f32.mrf.mxu3 }
 0x60d   :  { %v3711_v38 = vpop.f32.mrf.mxu0  ;;  %v3725_v20 = vpop.f32.mrf.mxu1 }
 0x614   :  { %v3739_v54 = vpop.f32.mrf.mxu2  ;;  %v8899_v43 = vpop.f32.mrf.mxu3 }
 0x61d   :  { %v3765_v63 = vpop.f32.mrf.mxu0  ;;  %v3779_v28 = vpop.f32.mrf.mxu1 }
 0x61e   :  { %v3766_v11 = vadd.f32 %v3765_v63, %v3709_v31  ;;  %v3780_v52 = vadd.f32 %v3779_v28, %v3723_v36 }
 0x620   :  { %v3812_v2 = vadd.f32 %v3766_v11, %v10487_v5  ;;  %v3813_v57 = vadd.f32 %v3780_v52, %v10488_v58 }
 0x622   :  { %v5498_v55 = vmul.f32 -1.442695, %v3812_v2  ;;  %v5499_v62 = vmul.f32 -1.442695, %v3813_v57 }
 0x624   :  { %6030 = vpow2.f32 %v5498_v55  ;;  %v3793_v44 = vpop.f32.mrf.mxu2  ;;  %v10491_v55 = vld [vmem:[#allocation96_spill] sm:$0xff] }
 0x625   :  { %6032 = vpow2.f32 %v5499_v62  ;;  %v3794_v29 = vadd.f32 %v3793_v44, %v3737_v6  ;;  %v3767_v10 = vpop.f32.mrf.mxu0  ;;  %v3781_v50 = vpop.f32.mrf.mxu1 }
 0x626   :  { %v3768_v7 = vadd.f32 %v3767_v10, %v3711_v38  ;;  %v3782_v39 = vadd.f32 %v3781_v50, %v3725_v20  ;;  %v3807_v6 = vpop.f32.mrf.mxu3  ;;  %v10490_v20 = vld [vmem:[#allocation133_spill] sm:$0xff]  ;;  %v10492_v38 = vld [vmem:[#allocation134_spill] sm:$0xff] }
 0x627   :  { %v3814_v1 = vadd.f32 %v3794_v29, %v10489_v34  ;;  %v445_v44 = vadd.f32 %v10491_v55, %v10490_v20  ;;  %v10497_v55 = vld [vmem:[#allocation108_spill] sm:$0xff] }
 0x628   :  { %v3816_v28 = vadd.f32 %v3768_v7, %v10487_v5  ;;  %v3817_v31 = vadd.f32 %v3782_v39, %v10488_v58 }
 0x629   :  { %v5500_v36 = vmul.f32 -1.442695, %v3814_v1 }
 0x62a   :  { %v6031_v52 = vpop.eup %6030  ;;  %v5501_v63 = vmul.f32 -1.442695, %v3816_v28  ;;  %v5502_v57 = vmul.f32 -1.442695, %v3817_v31  ;;  %v10493_v28 = vld [vmem:[#allocation97_spill] sm:$0xff] }
 0x62b   :  { %v6033_v11 = vpop.eup %6032  ;;  %v8904_v2 = vadd.f32 1.0, %v6031_v52  ;;  %6034 = vpow2.f32 %v5500_v36  ;;  %v494_v31 = vadd.f32 %v10493_v28, %v10492_v38  ;;  %v10494_v36 = vld [vmem:[#allocation141_spill] sm:$0xff]  ;;  %v8931_v28 = vadd.f32 %v10497_v55, %v10490_v20 }
 0x62c   :  { %v8906_v62 = vadd.f32 1.0, %v6033_v11  ;;  %6036 = vpow2.f32 %v5501_v63  ;;  %v3795_v10 = vpop.f32.mrf.mxu2  ;;  %v10495_v52 = vld [vmem:[#allocation105_spill] sm:$0xff] }
 0x62d   :  { %6038 = vrcp.f32 %v8904_v2  ;;  %v3796_v7 = vadd.f32 %v3795_v10, %v3739_v54  ;;  %v3955_v50 = vpop.f32.mrf.mxu0  ;;  %v8917_v63 = vadd.f32 %v10495_v52, %v10494_v36  ;;  %v3969_v11 = vpop.f32.mrf.mxu1  ;;  %v10496_v54 = vld [vmem:[#allocation107_spill] sm:$0xff]  ;;  %v3808_v10 = vadd.f32 %v3807_v6, %v3751_v51  ;;  %v10498_v52 = vld [vmem:[#allocation109_spill] sm:$0xff]  ;;  %v10499_v51 = vld [vmem:[#allocation116_spill] sm:$0xff] }
 0x62e   :  { %6040 = vrcp.f32 %v8906_v62  ;;  %v8935_v18 = vadd.f32 %v10498_v52, %v10492_v38  ;;  %v4011_v45 = vadd.f32 %v3955_v50, %v445_v44  ;;  %v8941_v6 = vadd.f32 %v10499_v51, %v10494_v36  ;;  %v3809_v38 = vpop.f32.mrf.mxu3  ;;  %v10500_v50 = vld [vmem:[#allocation162_spill] sm:$0xff] }
 0x62f   :  { %6042 = vpow2.f32 %v5502_v57  ;;  %v3818_v1 = vadd.f32 %v3796_v7, %v10489_v34  ;;  %v8923_v57 = vadd.f32 %v10496_v54, %v6892_v12  ;;  %v3815_v44 = vadd.f32 %v3808_v10, %v10500_v50 }
 0x630   :  { %v3853_v15 = vand.u32 2147483647, %v8904_v2  ;;  %v3855_v51 = vand.u32 2147483648, %v8904_v2  ;;  %v3870_v36 = vand.u32 2147483648, %v8906_v62  ;;  %vm3864_vm10 = vweird.f32 %v8906_v62 }
 0x631   :  { %v6035_v39 = vpop.eup %6034  ;;  %v5503_v34 = vmul.f32 -1.442695, %v3818_v1  ;;  %vm3849_vm11 = vweird.f32 %v8904_v2 }
 0x632   :  { %v6037_v29 = vpop.eup %6036  ;;  %v8946_v20 = vadd.f32 1.0, %v6035_v39  ;;  %vm8972_vm13 = vcmp.eq.f32.partialorder %v3853_v15, 8.507059e+37 }
 0x633   :  { %v8919_v58 = vpop.eup %6038  ;;  %v8925_v7 = vadd.f32 1.0, %v6037_v29  ;;  %v4012_v29 = vadd.f32 %v3969_v11, %v494_v31  ;;  %v3810_v31 = vadd.f32 %v3809_v38, %v8899_v43  ;;  %v3856_v38 = vor.u32 1.1754944e-38, %v3855_v51 }
 0x634   :  { %v8927_v5 = vpop.eup %6040  ;;  %v3845_v8 = vmul.f32 %v8919_v58, %v8904_v2  ;;  %vm3850_vm9 = vweird.f32 %v8919_v58 }
 0x635   :  { %v6043_v54 = vpop.eup %6042  ;;  %v3860_v1 = vmul.f32 %v8927_v5, %v8906_v62  ;;  %6044 = vrcp.f32 %v8925_v7  ;;  %vm3865_vm8 = vweird.f32 %v8927_v5  ;;  %v5505_v10 = vmul.f32 -1.442695, %v4012_v29  ;;  %vm8980_vm14 = vmor %vm3849_vm11, %vm3850_vm9 }
 0x636   :  { %v3846_v55 = vsub.f32 1.0, %v3845_v8  ;;  %v8948_v52 = vadd.f32 1.0, %v6043_v54  ;;  %6046 = vpow2.f32 %v5503_v34  ;;  %v5504_v8 = vmul.f32 -1.442695, %v4011_v45  ;;  %v3983_v45 = vpop.f32.mrf.mxu2  ;;  %vm8968_vm12 = vmor %vm3864_vm10, %vm3865_vm8 }
 0x637   :  { %v3861_v23 = vsub.f32 1.0, %v3860_v1  ;;  %v3868_v34 = vand.u32 2147483647, %v8906_v62  ;;  %v3871_v62 = vor.u32 1.1754944e-38, %v3870_v36  ;;  %vm3894_vm0 = vweird.f32 %v8925_v7 }
 0x638   :  { %v3847_v59 = vmul.f32 %v8919_v58, %v3846_v55  ;;  %6048 = vrcp.f32 %v8948_v52  ;;  %v3900_v46 = vand.u32 2147483648, %v8925_v7  ;;  %vm3909_vm1 = vweird.f32 %v8948_v52 }
 0x639   :  { %v3862_v39 = vmul.f32 %v8927_v5, %v3861_v23  ;;  %6050 = vrcp.f32 %v8946_v20  ;;  %vm8984_vm15 = vcmp.eq.f32.partialorder %v3868_v34, 8.507059e+37  ;;  %vm3879_vm9 = vweird.f32 %v8946_v20 }
 0x63a   :  { %v3848_v11 = vadd.f32 %v8919_v58, %v3847_v59  ;;  %6052 = vtanh.f32 %v3815_v44  ;;  %v3819_v44 = vadd.f32 %v3810_v31, %v10500_v50  ;;  %v3915_v50 = vand.u32 2147483648, %v8948_v52 }
 0x63b   :  { %v8963_v54 = vpop.eup %6044  ;;  %v3863_v23 = vadd.f32 %v8927_v5, %v3862_v39  ;;  %6054 = vpow2.f32 %v5504_v8 }
 0x63c   :  { %v6047_v1 = vpop.eup %6046  ;;  %v3890_v29 = vmul.f32 %v8963_v54, %v8925_v7  ;;  %v3852_v8 = vsel %vm8980_vm14, %v8919_v58, %v3848_v11  ;;  %6056 = vpow2.f32 %v5505_v10  ;;  %vm3895_vm2 = vweird.f32 %v8963_v54 }
 0x63d   :  { %v8988_v15 = vadd.f32 1.0, %v6047_v1  ;;  %v3867_v36 = vsel %vm8968_vm12, %v8927_v5, %v3863_v23  ;;  %v3898_v1 = vand.u32 2147483647, %v8925_v7  ;;  %v4013_v5 = vadd.f32 %v3983_v45, %v8917_v63  ;;  %vm9022_vm4 = vmor %vm3894_vm0, %vm3895_vm2 }
 0x63e   :  { %v6049_v51 = vpop.eup %6048  ;;  %v3891_v39 = vsub.f32 1.0, %v3890_v29  ;;  %v3857_v10 = vsel %vm8972_vm13, %v3856_v38, %v3852_v8  ;;  %v3872_v23 = vsel %vm8984_vm15, %v3871_v62, %v3867_v36  ;;  %v3957_v29 = vpop.f32.mrf.mxu0  ;;  %v3916_v7 = vor.u32 1.1754944e-38, %v3915_v50 }
 0x63f   :  { %v3905_v34 = vmul.f32 %v6049_v51, %v8948_v52  ;;  %v9001_v31 = vpop.eup %6050  ;;  %6058 = vrcp.f32 %v8988_v15  ;;  %vm3910_vm3 = vweird.f32 %v6049_v51  ;;  %v3936_v62 = vmul.f32 %v3872_v23, %v8685_v19  ;;  %v3985_v19 = vpop.f32.mrf.mxu2 }
 0x640   :  { %v3892_v58 = vmul.f32 %v8963_v54, %v3891_v39  ;;  %v6053_v11 = vpop.eup %6052  ;;  %v3913_v39 = vand.u32 2147483647, %v8948_v52  ;;  %6060 = vtanh.f32 %v3819_v44  ;;  %v3875_v63 = vmul.f32 %v9001_v31, %v8946_v20  ;;  %vm3911_vm5 = vmor %vm3909_vm1, %vm3910_vm3 }
 0x641   :  { %v3906_v43 = vsub.f32 1.0, %v3905_v34  ;;  %v6055_v2 = vpop.eup %6054  ;;  %v3938_v55 = vmul.f32 %v6053_v11, %v3857_v10  ;;  %v5506_v36 = vmul.f32 -1.442695, %v4013_v5  ;;  %v4015_v44 = vadd.f32 %v3957_v29, %v8931_v28  ;;  %v3971_v34 = vpop.f32.mrf.mxu1 }
 0x642   :  { %v3893_v16 = vadd.f32 %v8963_v54, %v3892_v58  ;;  %v9017_v59 = vadd.f32 1.0, %v6055_v2  ;;  %v6057_v38 = vpop.eup %6056  ;;  %vm3899_vm6 = vcmp.eq.f32.partialorder %v3898_v1, 8.507059e+37  ;;  %v3901_v28 = vor.u32 1.1754944e-38, %v3900_v46 }
 0x643   :  { %v3907_v45 = vmul.f32 %v6049_v51, %v3906_v43  ;;  %v9031_v2 = vadd.f32 1.0, %v6057_v38  ;;  %vm3914_vm7 = vcmp.eq.f32.partialorder %v3913_v39, 8.507059e+37  ;;  %v3876_v5 = vsub.f32 1.0, %v3875_v63 }
 0x644   :  { %v3897_v58 = vsel %vm9022_vm4, %v8963_v54, %v3893_v16  ;;  %6062 = vrcp.f32 %v9017_v59  ;;  %v3997_v16 = vpop.f32.mrf.mxu3  ;;  %v4016_v54 = vadd.f32 %v3971_v34, %v8935_v18  ;;  %v5507_v38 = vmul.f32 -1.442695, %v4015_v44 }
 0x645   :  { %v3908_v43 = vadd.f32 %v6049_v51, %v3907_v45  ;;  %v9033_v11 = vpop.eup %6058  ;;  %6064 = vrcp.f32 %v9031_v2  ;;  %v3902_v29 = vsel %vm3899_vm6, %v3901_v28, %v3897_v58  ;;  %v4017_v8 = vadd.f32 %v3985_v19, %v8941_v6 }
 0x646   :  { %v6061_v23 = vpop.eup %6060  ;;  %v9041_v61 = vadd.f32 %v3938_v55, %v3936_v62  ;;  %v3920_v52 = vmul.f32 %v9033_v11, %v8988_v15  ;;  %6066 = vpow2.f32 %v5506_v36  ;;  %v4014_v46 = vadd.f32 %v3997_v16, %v8923_v57 }
 0x647   :  { %v3912_v10 = vsel %vm3911_vm5, %v6049_v51, %v3908_v43  ;;  %v3885_v51 = vand.u32 2147483648, %v8946_v20  ;;  %v3939_v18 = vmul.f32 %v6061_v23, %v3902_v29  ;;  %v5508_v39 = vmul.f32 -1.442695, %v4016_v54 }
 0x648   :  { %v3917_v45 = vsel %vm3914_vm7, %v3916_v7, %v3912_v10  ;;  %v3877_v63 = vmul.f32 %v9001_v31, %v3876_v5  ;;  %vm3880_vm8 = vweird.f32 %v9001_v31  ;;  %6068 = vpow2.f32 %v5507_v38 }
 0x649   :  { %v3937_v1 = vmul.f32 %v3917_v45, %v8702_v25  ;;  %v5509_v62 = vmul.f32 -1.442695, %v4017_v8  ;;  %6070 = vtanh.f32 %v9041_v61  ;;  %v3921_v36 = vsub.f32 1.0, %v3920_v52  ;;  %vm9084_vm4 = vmor %vm3879_vm9, %vm3880_vm8 }
 0x64a   :  { %v6063_v50 = vpop.eup %6062  ;;  %v3930_v57 = vand.u32 2147483648, %v8988_v15  ;;  %v4052_v44 = vand.u32 2147483647, %v9017_v59  ;;  %v4054_v58 = vand.u32 2147483648, %v9017_v59  ;;  %6072 = vtanh.f32 %v4014_v46 }
 0x64b   :  { %v4044_v6 = vmul.f32 %v6063_v50, %v9017_v59  ;;  %v6065_v55 = vpop.eup %6064  ;;  %vm3924_vm10 = vweird.f32 %v8988_v15  ;;  %v9058_v19 = vadd.f32 %v3939_v18, %v3937_v1  ;;  %v4069_v7 = vand.u32 2147483648, %v9031_v2 }
 0x64c   :  { %v4059_v34 = vmul.f32 %v6065_v55, %v9031_v2  ;;  %v6067_v43 = vpop.eup %6066  ;;  %v4067_v28 = vand.u32 2147483647, %v9031_v2  ;;  %6074 = vpow2.f32 %v5508_v39  ;;  %vm4049_vm11 = vweird.f32 %v6063_v50 }
 0x64d   :  { %v4045_v25 = vsub.f32 1.0, %v4044_v6  ;;  %6076 = vpow2.f32 %v5509_v62  ;;  %v3922_v16 = vmul.f32 %v9033_v11, %v3921_v36  ;;  %vm3925_vm12 = vweird.f32 %v9033_v11 }
 0x64e   :  { %v4060_v5 = vsub.f32 1.0, %v4059_v34  ;;  %vm4063_vm13 = vweird.f32 %v9031_v2  ;;  %vm4048_vm14 = vweird.f32 %v9017_v59  ;;  %v6069_v54 = vpop.eup %6068  ;;  %vm4064_vm15 = vweird.f32 %v6065_v55  ;;  %vm9098_vm5 = vmor %vm3924_vm10, %vm3925_vm12 }
 0x64f   :  { %v4046_v10 = vmul.f32 %v6063_v50, %v4045_v25  ;;  %v9066_v29 = vadd.f32 1.0, %v6067_v43  ;;  %v6071_v38 = vpop.eup %6070  ;;  %v4070_v8 = vor.u32 1.1754944e-38, %v4069_v7  ;;  %vm4050_vm0 = vmor %vm4048_vm14, %vm4049_vm11  ;;  %vm4053_vm1 = vcmp.eq.f32.partialorder %v4052_v44, 8.507059e+37 }
 0x650   :  { %v4061_v23 = vmul.f32 %v6065_v55, %v4060_v5  ;;  %v4055_v52 = vor.u32 1.1754944e-38, %v4054_v58  ;;  %v9068_v46 = vadd.f32 1.0, %v6069_v54  ;;  %v6073_v1 = vpop.eup %6072  ;;  %6078 = vtanh.f32 %v9058_v19  ;;  %vm4065_vm3 = vmor %vm4063_vm13, %vm4064_vm15 }
 0x651   :  { %v4047_v45 = vadd.f32 %v6063_v50, %v4046_v10  ;;  %vm4068_vm2 = vcmp.eq.f32.partialorder %v4067_v28, 8.507059e+37  ;;  %v3878_v62 = vadd.f32 %v9001_v31, %v3877_v63  ;;  %v3923_v36 = vadd.f32 %v9033_v11, %v3922_v16  ;;  %v3999_v63 = vpop.f32.mrf.mxu3 }
 0x652   :  { %v4062_v39 = vadd.f32 %v6065_v55, %v4061_v23  ;;  %v6075_v59 = vpop.eup %6074  ;;  %6080 = vrcp.f32 %v9068_v46  ;;  %v3883_v7 = vand.u32 2147483647, %v8946_v20  ;;  %v3928_v28 = vand.u32 2147483647, %v8988_v15 }
 0x653   :  { %v4051_v18 = vsel %vm4050_vm0, %v6063_v50, %v4047_v45  ;;  %v6077_v44 = vpop.eup %6076  ;;  %6082 = vrcp.f32 %v9066_v29  ;;  %v9078_v50 = vadd.f32 1.0, %v6075_v59  ;;  %v3882_v54 = vsel %vm9084_vm4, %v9001_v31, %v3878_v62 }
 0x654   :  { %v4056_v6 = vsel %vm4053_vm1, %v4055_v52, %v4051_v18  ;;  %v4066_v25 = vsel %vm4065_vm3, %v6065_v55, %v4062_v39  ;;  %v9088_v43 = vadd.f32 1.0, %v6077_v44  ;;  %v10513_v55 = vld [vmem:[#allocation118_spill] sm:$0xff]  ;;  %v3927_v23 = vsel %vm9098_vm5, %v9033_v11, %v3923_v36 }
 0x655   :  { %v4137_v34 = vmul.f32 %v6073_v1, %v4056_v6  ;;  %v4071_v58 = vsel %vm4068_vm2, %v4070_v8, %v4066_v25  ;;  %v594_v5 = vadd.f32 %v10513_v55, %v6892_v12  ;;  %6084 = vrcp.f32 %v9078_v50 }
 0x656   :  { %v4135_v16 = vmul.f32 %v4071_v58, %v8757_v33  ;;  %6086 = vrcp.f32 %v9088_v43  ;;  %v6079_v45 = vpop.eup %6078  ;;  %v3886_v15 = vor.u32 1.1754944e-38, %v3885_v51  ;;  %v3931_v8 = vor.u32 1.1754944e-38, %v3930_v57 }
 0x657   :  { %v4018_v33 = vadd.f32 %v3999_v63, %v594_v5  ;;  %vm3884_vm6 = vcmp.eq.f32.partialorder %v3883_v7, 8.507059e+37  ;;  %vm3929_vm7 = vcmp.eq.f32.partialorder %v3928_v28, 8.507059e+37  ;;  %v4099_v44 = vand.u32 2147483648, %v9068_v46 }
 0x658   :  { %v9113_v52 = vadd.f32 %v4137_v34, %v4135_v16  ;;  %v6081_v1 = vpop.eup %6080  ;;  %v3887_v31 = vsel %vm3884_vm6, %v3886_v15, %v3882_v54  ;;  %v3932_v59 = vsel %vm3929_vm7, %v3931_v8, %v3927_v23  ;;  %v4114_v63 = vand.u32 2147483648, %v9078_v50 }
 0x659   :  { %v9115_v18 = vpop.eup %6082  ;;  %v4089_v39 = vmul.f32 %v6081_v1, %v9068_v46  ;;  %v3944_v6 = vmul.f32 %v6071_v38, %v3887_v31  ;;  %v3945_v62 = vmul.f32 %v6079_v45, %v3932_v59  ;;  %6088 = vtanh.f32 %v4018_v33  ;;  %v10525_v59 = vld [vmem:[#allocation67_spill] sm:$0xff] }
 0x65a   :  { %v4074_v51 = vmul.f32 %v9115_v18, %v9066_v29  ;;  %vm4094_vm8 = vweird.f32 %v6081_v1  ;;  %v4097_v38 = vand.u32 2147483647, %v9068_v46  ;;  %vm4093_vm9 = vweird.f32 %v9068_v46 }
 0x65b   :  { %v6085_v11 = vpop.eup %6084  ;;  %v4090_v36 = vsub.f32 1.0, %v4089_v39  ;;  %v4146_v25 = vpack.c.bf16 %v3945_v62, %v3944_v6  ;;  %vm4095_vm11 = vmor %vm4093_vm9, %vm4094_vm8  ;;  %v4100_v55 = vor.u32 1.1754944e-38, %v4099_v44  ;;  %v4112_v5 = vand.u32 2147483647, %v9078_v50  ;;  %v10526_v6 = vld [vmem:[#allocation34_spill] sm:$0xff]  ;;  %v10529_v62 = vld [vmem:[#allocation69_spill] sm:$0xff] }
 0x65c   :  { %v9118_v20 = vpop.eup %6086  ;;  %v4104_v57 = vmul.f32 %v6085_v11, %v9078_v50  ;;  %vm4109_vm10 = vweird.f32 %v6085_v11  ;;  %v4075_v16 = vsub.f32 1.0, %v4074_v51  ;;  %vm4098_vm12 = vcmp.eq.f32.partialorder %v4097_v38, 8.507059e+37  ;;  %v10533_v51 = vld [vmem:[#allocation77_spill] sm:$0xff]  ;;  %v10535_v44 = vld [vmem:[#allocation79_spill] sm:$0xff] }
 0x65d   :  { %v4119_v34 = vmul.f32 %v9118_v20, %v9088_v43  ;;  %v4091_v2 = vmul.f32 %v6081_v1, %v4090_v36  ;;  %4155 = vmatmul.bf16.vlgmr.msra.gmra.mxu0 %v4146_v25  ;;  %4169 = vmatmul.bf16.vlgmr.msra.gmra.mxu1 %v4146_v25  ;;  %vm4108_vm13 = vweird.f32 %v9078_v50  ;;  %v4115_v15 = vor.u32 1.1754944e-38, %v4114_v63  ;;  %v10531_v36 = vld [vmem:[#allocation75_spill] sm:$0xff]  ;;  %v10541_v63 = vld [vmem:[#allocation89_spill] sm:$0xff] }
 0x65e   :  { %v4105_v58 = vsub.f32 1.0, %v4104_v57  ;;  %4183 = vmatmul.bf16.vlgmr.msra.gmra.mxu2 %v4146_v25  ;;  %4197 = vmatmul.bf16.vlgmr.msra.gmra.mxu3 %v4146_v25  ;;  %vm4110_vm14 = vmor %vm4108_vm13, %vm4109_vm10  ;;  %vm4113_vm15 = vcmp.eq.f32.partialorder %v4112_v5, 8.507059e+37  ;;  %vm4079_vm0 = vweird.f32 %v9115_v18  ;;  %6090 = vtanh.f32 %v9113_v52  ;;  %v10534_v57 = vld [vmem:[#allocation78_spill] sm:$0xff]  ;;  %v10536_v25 = vld [vmem:[#allocation80_spill] sm:$0xff] }
 0x65f   :  { %v4092_v7 = vadd.f32 %v6081_v1, %v4091_v2  ;;  %4393 = vmatpush.bf16.msra.mxu0 %v6472_v37  ;;  %4407 = vmatpush.bf16.msra.mxu1 %v6474_v41  ;;  %v6089_v10 = vpop.eup %6088  ;;  %v4120_v54 = vsub.f32 1.0, %v4119_v34  ;;  %v4076_v41 = vmul.f32 %v9115_v18, %v4075_v16  ;;  %vm4124_vm1 = vweird.f32 %v9118_v20  ;;  %v10537_v34 = vld [vmem:[#allocation81_spill] sm:$0xff]  ;;  %v10538_v2 = vld [vmem:[#allocation86_spill] sm:$0xff]  ;;  %v10539_v38 = vld [vmem:[#allocation87_spill] sm:$0xff] }
 0x660   :  { %v4106_v28 = vmul.f32 %v6085_v11, %v4105_v58  ;;  %4421 = vmatpush.bf16.msra.mxu2 %v6476_v47  ;;  %4435 = vmatpush.bf16.msra.mxu3 %v6479_v48  ;;  %vm4078_vm2 = vweird.f32 %v9066_v29  ;;  %vm4123_vm4 = vweird.f32 %v9088_v43  ;;  %v10540_v58 = vld [vmem:[#allocation88_spill] sm:$0xff]  ;;  %v10545_v5 = vld [vmem:[#allocation93_spill] sm:$0xff]  ;;  %v10547_v16 = vld [vmem:[#allocation99_spill] sm:$0xff] }
 0x661   :  { %v4096_v23 = vsel %vm4095_vm11, %v6081_v1, %v4092_v7  ;;  %v4121_v47 = vmul.f32 %v9118_v20, %v4120_v54  ;;  %vm9158_vm3 = vmor %vm4078_vm2, %vm4079_vm0  ;;  %v10542_v7 = vld [vmem:[#allocation90_spill] sm:$0xff]  ;;  %v10548_v54 = vld [vmem:[#allocation100_spill] sm:$0xff] }
 0x662   :  { %v4101_v46 = vsel %vm4098_vm12, %v4100_v55, %v4096_v23  ;;  %v4107_v45 = vadd.f32 %v6085_v11, %v4106_v28  ;;  %vm4125_vm5 = vmor %vm4123_vm4, %vm4124_vm1  ;;  %v10543_v28 = vld [vmem:[#allocation91_spill] sm:$0xff]  ;;  %v10544_v55 = vld [vmem:[#allocation92_spill] sm:$0xff] }
 0x663   :  { %v4138_v37 = vmul.f32 %v6089_v10, %v4101_v46  ;;  %4394 = vmatpush.bf16.msra.mxu0 %v6481_v49  ;;  %4408 = vmatpush.bf16.msra.mxu1 %v9992_v21  ;;  %v4077_v49 = vadd.f32 %v9115_v18, %v4076_v41  ;;  %v4122_v21 = vadd.f32 %v9118_v20, %v4121_v47  ;;  %v10546_v10 = vld [vmem:[#allocation98_spill] sm:$0xff]  ;;  %v10549_v23 = vld [vmem:[#allocation101_spill] sm:$0xff]  ;;  %v10555_v41 = vld [vmem:[#allocation111_spill] sm:$0xff] }
 0x664   :  { %v4111_v8 = vsel %vm4110_vm14, %v6085_v11, %v4107_v45  ;;  %4422 = vmatpush.bf16.msra.mxu2 %v9993_v53  ;;  %4436 = vmatpush.bf16.msra.mxu3 %v9994_v27  ;;  %v4084_v53 = vand.u32 2147483648, %v9066_v29  ;;  %v4129_v27 = vand.u32 2147483648, %v9088_v43  ;;  %v10530_v11 = vld [vmem:[#allocation74_spill] sm:$0xff]  ;;  %v10551_v45 = vld [vmem:[#allocation103_spill] sm:$0xff]  ;;  %v10556_v47 = vld [vmem:[#allocation112_spill] sm:$0xff] }
 0x665   :  { %v4116_v33 = vsel %vm4113_vm15, %v4115_v15, %v4111_v8  ;;  %v10550_v46 = vld [vmem:[#allocation102_spill] sm:$0xff]  ;;  %v10552_v15 = vld [vmem:[#allocation104_spill] sm:$0xff] }
 0x666   :  { %v4136_v48 = vmul.f32 %v4116_v33, %v8789_v24  ;;  %v4126_v24 = vsel %vm4125_vm5, %v9118_v20, %v4122_v21  ;;  %v4085_v1 = vor.u32 1.1754944e-38, %v4084_v53  ;;  %v4130_v39 = vor.u32 1.1754944e-38, %v4129_v27  ;;  %v10532_v20 = vld [vmem:[#allocation76_spill] sm:$0xff]  ;;  %v10553_v8 = vld [vmem:[#allocation106_spill] sm:$0xff]  ;;  %v10557_v33 = vld [vmem:[#allocation113_spill] sm:$0xff] }
 0x667   :  { %4395 = vmatpush.bf16.msra.mxu0 %v6493_v60  ;;  %4409 = vmatpush.bf16.msra.mxu1 %v6496_v0  ;;  %v4082_v0 = vand.u32 2147483647, %v9066_v29  ;;  %v6091_v29 = vpop.eup %6090  ;;  %v10560_v21 = vld [vmem:[#allocation117_spill] sm:$0xff]  ;;  %v10561_v53 = vld [vmem:[#allocation120_spill] sm:$0xff]  ;;  %v10562_v27 = vld [vmem:[#allocation122_spill] sm:$0xff] }
 0x668   :  { %v9145_v50 = vadd.f32 %v4138_v37, %v4136_v48  ;;  %4423 = vmatpush.bf16.msra.mxu2 %v6499_v3  ;;  %4437 = vmatpush.bf16.msra.mxu3 %v6503_v4  ;;  %v4127_v3 = vand.u32 2147483647, %v9088_v43  ;;  %v4081_v4 = vsel %vm9158_vm3, %v9115_v18, %v4077_v49  ;;  %v10554_v37 = vld [vmem:[#allocation110_spill] sm:$0xff]  ;;  %v10559_v49 = vld [vmem:[#allocation115_spill] sm:$0xff] }
 0x669   :  { %vm4083_vm6 = vcmp.eq.f32.partialorder %v4082_v0, 8.507059e+37  ;;  %v10558_v48 = vld [vmem:[#allocation114_spill] sm:$0xff]  ;;  %v10563_v60 = vld [vmem:[#allocation123_spill] sm:$0xff]  ;;  %v10564_v0 = vld [vmem:[#allocation124_spill] sm:$0xff] }
 0x66a   :  { %6092 = vtanh.f32 %v9145_v50  ;;  %vm4128_vm7 = vcmp.eq.f32.partialorder %v4127_v3, 8.507059e+37  ;;  %v4086_v31 = vsel %vm4083_vm6, %v4085_v1, %v4081_v4  ;;  %v10565_v3 = vld [vmem:[#allocation126_spill] sm:$0xff]  ;;  %v10566_v4 = vld [vmem:[#allocation129_spill] sm:$0xff]  ;;  %v10569_v1 = vld [vmem:[#allocation135_spill] sm:$0xff] }
 0x66b   :  { %4396 = vmatpush.bf16.msra.mxu0 %v6508_v9  ;;  %4410 = vmatpush.bf16.msra.mxu1 %v6510_v13  ;;  %v4131_v9 = vsel %vm4128_vm7, %v4130_v39, %v4126_v24  ;;  %v4143_v13 = vmul.f32 %v6091_v29, %v4086_v31  ;;  %v10567_v24 = vld [vmem:[#allocation131_spill] sm:$0xff]  ;;  %v10568_v29 = vld [vmem:[#allocation132_spill] sm:$0xff]  ;;  %v10572_v31 = vld [vmem:[#allocation138_spill] sm:$0xff] }
 0x66c   :  { %4424 = vmatpush.bf16.msra.mxu2 %v6512_v14  ;;  %4438 = vmatpush.bf16.msra.mxu3 %v6515_v17  ;;  %v10518_v17 = vld [vmem:[#allocation28_spill] sm:$0xff] }
 0x66d   :  { %v10570_v39 = vld [vmem:[#allocation136_spill] sm:$0xff] }
 0x66f   :  { %4397 = vmatpush.bf16.msra.mxu0 %v6520_v22  ;;  %4411 = vmatpush.bf16.msra.mxu1 %v6522_v26  ;;  %v10519_v22 = vld [vmem:[#allocation29_spill] sm:$0xff]  ;;  %v10520_v26 = vld [vmem:[#allocation30_spill] sm:$0xff] }
 0x670   :  { %v6093_v43 = vpop.eup %6092  ;;  %4425 = vmatpush.bf16.msra.mxu2 %v9997_v56  ;;  %4439 = vmatpush.bf16.msra.mxu3 %v6527_v30  ;;  %v10521_v30 = vld [vmem:[#allocation31_spill] sm:$0xff]  ;;  %v10522_v56 = vld [vmem:[#allocation32_spill] sm:$0xff] }
 0x671   :  { %v4144_v18 = vmul.f32 %v6093_v43, %v4131_v9  ;;  %v10571_v43 = vld [vmem:[#allocation137_spill] sm:$0xff]  ;;  %v10573_v9 = vld [vmem:[#allocation140_spill] sm:$0xff] }
 0x673   :  { %v4145_v14 = vpack.c.bf16 %v4144_v18, %v4143_v13  ;;  %4398 = vmatpush.bf16.msra.mxu0 %v6532_v35  ;;  %4412 = vmatpush.bf16.msra.mxu1 %v6534_v40  ;;  %v10523_v35 = vld [vmem:[#allocation33_spill] sm:$0xff]  ;;  %v10524_v40 = vld [vmem:[#allocation66_spill] sm:$0xff]  ;;  %v10575_v18 = vld [vmem:[#allocation143_spill] sm:$0xff] }
 0x674   :  { %4426 = vmatpush.bf16.msra.mxu2 %v6536_v42  ;;  %4440 = vmatpush.bf16.msra.mxu3 %v10311_v32  ;;  %v10527_v42 = vld [vmem:[#allocation35_spill] sm:$0xff]  ;;  %v10528_v32 = vld [vmem:[#allocation68_spill] sm:$0xff]  ;;  %v10574_v13 = vld [vmem:[#allocation142_spill] sm:$0xff] }
 0x675   :  { %4211 = vmatmul.bf16.vlgmr.msrb.gmra.mxu0 %v4145_v14  ;;  %4225 = vmatmul.bf16.vlgmr.msrb.gmra.mxu1 %v4145_v14 }
 0x676   :  { %4239 = vmatmul.bf16.vlgmr.msrb.gmra.mxu2 %v4145_v14  ;;  %4253 = vmatmul.bf16.vlgmr.msrb.gmra.mxu3 %v4145_v14 }
 0x677   :  { %4399 = vmatpush.bf16.msra.mxu0 %v10518_v17  ;;  %4413 = vmatpush.bf16.msra.mxu1 %v10519_v22  ;;  %v10577_v17 = vld [vmem:[#allocation145_spill] sm:$0xff]  ;;  %v10578_v22 = vld [vmem:[#allocation147_spill] sm:$0xff] }
 0x678   :  { %4427 = vmatpush.bf16.msra.mxu2 %v10520_v26  ;;  %4441 = vmatpush.bf16.msra.mxu3 %v10521_v30  ;;  %v10579_v26 = vld [vmem:[#allocation148_spill] sm:$0xff]  ;;  %v10580_v30 = vld [vmem:[#allocation149_spill] sm:$0xff] }
 0x67b   :  { %4400 = vmatpush.bf16.msra.mxu0 %v10522_v56  ;;  %4414 = vmatpush.bf16.msra.mxu1 %v10523_v35  ;;  %v10581_v56 = vld [vmem:[#allocation150_spill] sm:$0xff]  ;;  %v10582_v35 = vld [vmem:[#allocation151_spill] sm:$0xff] }
 0x67c   :  { %4428 = vmatpush.bf16.msra.mxu2 %v10526_v6  ;;  %4442 = vmatpush.bf16.msra.mxu3 %v10527_v42  ;;  %v10585_v6 = vld [vmem:[#allocation154_spill] sm:$0xff]  ;;  %v10586_v42 = vld [vmem:[#allocation155_spill] sm:$0xff] }
 0x67f   :  { %4594 = vmatpush.bf16.msrb.mxu0 %v10524_v40  ;;  %4608 = vmatpush.bf16.msrb.mxu1 %v10525_v59  ;;  %v10583_v40 = vld [vmem:[#allocation152_spill] sm:$0xff]  ;;  %v10584_v59 = vld [vmem:[#allocation153_spill] sm:$0xff] }
 0x680   :  { %4622 = vmatpush.bf16.msrb.mxu2 %v10528_v32  ;;  %4636 = vmatpush.bf16.msrb.mxu3 %v10529_v62  ;;  %v10587_v32 = vld [vmem:[#allocation156_spill] sm:$0xff]  ;;  %v10588_v62 = vld [vmem:[#allocation157_spill] sm:$0xff] }
 0x683   :  { %4595 = vmatpush.bf16.msrb.mxu0 %v10530_v11  ;;  %4609 = vmatpush.bf16.msrb.mxu1 %v10531_v36  ;;  %v10589_v11 = vld [vmem:[#allocation158_spill] sm:$0xff] }
 0x684   :  { %4623 = vmatpush.bf16.msrb.mxu2 %v10532_v20  ;;  %4637 = vmatpush.bf16.msrb.mxu3 %v10533_v51 }
 0x685   :  { %4401 = vmatmul.bf16.vlgmr.msra.gmra.mxu0 %v4145_v14  ;;  %4415 = vmatmul.bf16.vlgmr.msra.gmra.mxu1 %v4145_v14 }
 0x686   :  { %4429 = vmatmul.bf16.vlgmr.msra.gmra.mxu2 %v4145_v14  ;;  %4443 = vmatmul.bf16.vlgmr.msra.gmra.mxu3 %v4145_v14  ;;  %v10576_v14 = vld [vmem:[#allocation144_spill] sm:$0xff] }
 0x687   :  { %4596 = vmatpush.bf16.msrb.mxu0 %v10534_v57  ;;  %4610 = vmatpush.bf16.msrb.mxu1 %v10535_v44 }
 0x688   :  { %4624 = vmatpush.bf16.msrb.mxu2 %v10536_v25  ;;  %4638 = vmatpush.bf16.msrb.mxu3 %v10537_v34 }
 0x68b   :  { %4597 = vmatpush.bf16.msrb.mxu0 %v10538_v2  ;;  %4611 = vmatpush.bf16.msrb.mxu1 %v10539_v38 }
 0x68c   :  { %4625 = vmatpush.bf16.msrb.mxu2 %v10540_v58  ;;  %4639 = vmatpush.bf16.msrb.mxu3 %v10541_v63 }
 0x68f   :  { %4598 = vmatpush.bf16.msrb.mxu0 %v10542_v7  ;;  %4612 = vmatpush.bf16.msrb.mxu1 %v10543_v28  ;;  %v10590_v28 = vld [vmem:[#allocation159_spill] sm:$0xff] }
 0x690   :  { %4626 = vmatpush.bf16.msrb.mxu2 %v10544_v55  ;;  %4640 = vmatpush.bf16.msrb.mxu3 %v10545_v5  ;;  %v10591_v5 = vld [vmem:[#allocation160_spill] sm:$0xff] }
 0x693   :  { %4599 = vmatpush.bf16.msrb.mxu0 %v10546_v10  ;;  %4613 = vmatpush.bf16.msrb.mxu1 %v10547_v16 }
 0x694   :  { %4627 = vmatpush.bf16.msrb.mxu2 %v10548_v54  ;;  %4641 = vmatpush.bf16.msrb.mxu3 %v10549_v23 }
 0x697   :  { %4600 = vmatpush.bf16.msrb.mxu0 %v10550_v46  ;;  %4614 = vmatpush.bf16.msrb.mxu1 %v10551_v45 }
 0x698   :  { %4628 = vmatpush.bf16.msrb.mxu2 %v10552_v15  ;;  %4642 = vmatpush.bf16.msrb.mxu3 %v10553_v8 }
 0x69b   :  { %4601 = vmatpush.bf16.msrb.mxu0 %v10554_v37  ;;  %4615 = vmatpush.bf16.msrb.mxu1 %v10555_v41  ;;  %v10592_v41 = vld [vmem:[#allocation161_spill] sm:$0xff] }
 0x69c   :  { %4629 = vmatpush.bf16.msrb.mxu2 %v10556_v47  ;;  %4643 = vmatpush.bf16.msrb.mxu3 %v10557_v33 }
 0x69f   :  { %4650 = vmatpush.bf16.msra.mxu0 %v10558_v48  ;;  %4664 = vmatpush.bf16.msra.mxu1 %v10559_v49 }
 0x6a0   :  { %4678 = vmatpush.bf16.msra.mxu2 %v10560_v21  ;;  %4692 = vmatpush.bf16.msra.mxu3 %v10561_v53 }
 0x6a3   :  { %4651 = vmatpush.bf16.msra.mxu0 %v10562_v27  ;;  %4665 = vmatpush.bf16.msra.mxu1 %v10563_v60 }
 0x6a4   :  { %4679 = vmatpush.bf16.msra.mxu2 %v10564_v0  ;;  %4693 = vmatpush.bf16.msra.mxu3 %v10565_v3 }
 0x6a7   :  { %4652 = vmatpush.bf16.msra.mxu0 %v10566_v4  ;;  %4666 = vmatpush.bf16.msra.mxu1 %v10567_v24 }
 0x6a8   :  { %4680 = vmatpush.bf16.msra.mxu2 %v10568_v29  ;;  %4694 = vmatpush.bf16.msra.mxu3 %v10569_v1 }
 0x6ab   :  { %4653 = vmatpush.bf16.msra.mxu0 %v10570_v39  ;;  %4667 = vmatpush.bf16.msra.mxu1 %v10571_v43  ;;  %v10593_v39 = vld [vmem:[#allocation162_spill] sm:$0xff] }
 0x6ac   :  { %4681 = vmatpush.bf16.msra.mxu2 %v10572_v31  ;;  %4695 = vmatpush.bf16.msra.mxu3 %v10573_v9 }
 0x6af   :  { %4654 = vmatpush.bf16.msra.mxu0 %v10574_v13  ;;  %4668 = vmatpush.bf16.msra.mxu1 %v10575_v18 }
 0x6b0   :  { %4682 = vmatpush.bf16.msra.mxu2 %v10576_v14  ;;  %4696 = vmatpush.bf16.msra.mxu3 %v10577_v17  ;;  %v10594_v14 = vld [vmem:[#allocation133_spill] sm:$0xff]  ;;  %v10595_v17 = vld [vmem:[#allocation119_spill] sm:$0xff] }
 0x6b3   :  { %4655 = vmatpush.bf16.msra.mxu0 %v10578_v22  ;;  %4669 = vmatpush.bf16.msra.mxu1 %v10579_v26  ;;  %v450_v22 = vadd.f32 %v10595_v17, %v10594_v14  ;;  %v10596_v26 = vld [vmem:[#allocation134_spill] sm:$0xff] }
 0x6b4   :  { %4683 = vmatpush.bf16.msra.mxu2 %v10580_v30  ;;  %4697 = vmatpush.bf16.msra.mxu3 %v10581_v56  ;;  %v10597_v30 = vld [vmem:[#allocation121_spill] sm:$0xff] }
 0x6b5   :  { %v499_v56 = vadd.f32 %v10597_v30, %v10596_v26 }
 0x6b7   :  { %4656 = vmatpush.bf16.msra.mxu0 %v10582_v35  ;;  %4670 = vmatpush.bf16.msra.mxu1 %v10583_v40  ;;  %v10598_v35 = vld [vmem:[#allocation141_spill] sm:$0xff] }
 0x6b8   :  { %4684 = vmatpush.bf16.msra.mxu2 %v10584_v59  ;;  %4698 = vmatpush.bf16.msra.mxu3 %v10585_v6  ;;  %v10599_v40 = vld [vmem:[#allocation125_spill] sm:$0xff] }
 0x6b9   :  { %v548_v59 = vadd.f32 %v10599_v40, %v10598_v35 }
 0x6bb   :  { %4657 = vmatpush.bf16.msra.mxu0 %v10586_v42  ;;  %4671 = vmatpush.bf16.msra.mxu1 %v10587_v32  ;;  %v10600_v32 = vld [vmem:[#allocation130_spill] sm:$0xff] }
 0x6bc   :  { %4685 = vmatpush.bf16.msra.mxu2 %v10588_v62  ;;  %4699 = vmatpush.bf16.msra.mxu3 %v10589_v11  ;;  %v9273_v62 = vadd.f32 %v10600_v32, %v6892_v12  ;;  %v10601_v11 = vld [vmem:[#allocation127_spill] sm:$0xff] }
 0x6da   :  { %v4156_v36 = vpop.f32.mrf.mxu0  ;;  %v4170_v20 = vpop.f32.mrf.mxu1 }
 0x6e1   :  { %v4184_v51 = vpop.f32.mrf.mxu2  ;;  %v4198_v25 = vpop.f32.mrf.mxu3 }
 0x6e2   :  { %v4158_v57 = vpop.f32.mrf.mxu0  ;;  %v4172_v44 = vpop.f32.mrf.mxu1 }
 0x6e9   :  { %v4186_v34 = vpop.f32.mrf.mxu2  ;;  %v9253_v7 = vpop.f32.mrf.mxu3 }
 0x6f2   :  { %v4212_v2 = vpop.f32.mrf.mxu0  ;;  %v4226_v38 = vpop.f32.mrf.mxu1 }
 0x6f3   :  { %v4213_v58 = vadd.f32 %v4212_v2, %v4156_v36  ;;  %v4227_v63 = vadd.f32 %v4226_v38, %v4170_v20  ;;  %v9277_v36 = vadd.f32 %v10601_v11, %v10594_v14 }
 0x6f5   :  { %v4259_v55 = vadd.f32 %v4213_v58, %v10590_v28  ;;  %v4260_v10 = vadd.f32 %v4227_v63, %v10591_v5  ;;  %v10603_v58 = vld [vmem:[#allocation139_spill] sm:$0xff] }
 0x6f6   :  { %v9287_v63 = vadd.f32 %v10603_v58, %v10598_v35 }
 0x6f7   :  { %v5510_v16 = vmul.f32 -1.442695, %v4259_v55  ;;  %v5511_v54 = vmul.f32 -1.442695, %v4260_v10 }
 0x6f9   :  { %6094 = vpow2.f32 %v5510_v16  ;;  %v4240_v23 = vpop.f32.mrf.mxu2  ;;  %v4254_v21 = vpop.f32.mrf.mxu3 }
 0x6fa   :  { %6096 = vpow2.f32 %v5511_v54  ;;  %v4241_v46 = vadd.f32 %v4240_v23, %v4184_v51  ;;  %v4214_v45 = vpop.f32.mrf.mxu0  ;;  %v4228_v15 = vpop.f32.mrf.mxu1  ;;  %v4255_v24 = vadd.f32 %v4254_v21, %v4198_v25 }
 0x6fb   :  { %v4215_v8 = vadd.f32 %v4214_v45, %v4158_v57  ;;  %v4229_v37 = vadd.f32 %v4228_v15, %v4172_v44  ;;  %v10602_v44 = vld [vmem:[#allocation128_spill] sm:$0xff] }
 0x6fc   :  { %v4261_v47 = vadd.f32 %v4241_v46, %v10592_v41  ;;  %v4262_v43 = vadd.f32 %v4255_v24, %v10593_v39  ;;  %v9283_v25 = vadd.f32 %v10602_v44, %v10596_v26 }
 0x6fd   :  { %v4263_v33 = vadd.f32 %v4215_v8, %v10590_v28  ;;  %v4264_v48 = vadd.f32 %v4229_v37, %v10591_v5 }
 0x6fe   :  { %v5512_v49 = vmul.f32 -1.442695, %v4261_v47 }
 0x6ff   :  { %v6095_v53 = vpop.eup %6094  ;;  %v5513_v27 = vmul.f32 -1.442695, %v4263_v33  ;;  %v5514_v3 = vmul.f32 -1.442695, %v4264_v48 }
 0x700   :  { %v6097_v60 = vpop.eup %6096  ;;  %v4285_v0 = vadd.f32 1.0, %v6095_v53  ;;  %6098 = vpow2.f32 %v5512_v49 }
 0x701   :  { %v9260_v4 = vadd.f32 1.0, %v6097_v60  ;;  %6100 = vpow2.f32 %v5513_v27  ;;  %v4242_v29 = vpop.f32.mrf.mxu2  ;;  %v4256_v37 = vpop.f32.mrf.mxu3 }
 0x702   :  { %6102 = vrcp.f32 %v4285_v0  ;;  %v4243_v1 = vadd.f32 %v4242_v29, %v4186_v34  ;;  %v4402_v13 = vpop.f32.mrf.mxu0  ;;  %v4416_v6 = vpop.f32.mrf.mxu1  ;;  %v4300_v15 = vand.u32 2147483647, %v4285_v0  ;;  %v4302_v8 = vand.u32 2147483648, %v4285_v0 }
 0x703   :  { %6104 = vrcp.f32 %v9260_v4  ;;  %v4458_v2 = vadd.f32 %v4402_v13, %v450_v22  ;;  %v4459_v10 = vadd.f32 %v4416_v6, %v499_v56  ;;  %v4317_v45 = vand.u32 2147483648, %v9260_v4 }
 0x704   :  { %6106 = vpow2.f32 %v5514_v3  ;;  %v4265_v9 = vadd.f32 %v4243_v1, %v10592_v41  ;;  %vm4296_vm10 = vweird.f32 %v4285_v0  ;;  %v4315_v49 = vand.u32 2147483647, %v9260_v4 }
 0x705   :  { %6108 = vtanh.f32 %v4262_v43  ;;  %v5516_v33 = vmul.f32 -1.442695, %v4458_v2  ;;  %v4257_v27 = vadd.f32 %v4256_v37, %v9253_v7  ;;  %v5517_v60 = vmul.f32 -1.442695, %v4459_v10 }
 0x706   :  { %v6099_v31 = vpop.eup %6098  ;;  %v5515_v51 = vmul.f32 -1.442695, %v4265_v9  ;;  %vm4311_vm11 = vweird.f32 %v9260_v4  ;;  %vm9308_vm13 = vcmp.eq.f32.partialorder %v4300_v15, 8.507059e+37  ;;  %v4303_v1 = vor.u32 1.1754944e-38, %v4302_v8 }
 0x707   :  { %v6101_v18 = vpop.eup %6100  ;;  %v9291_v54 = vadd.f32 1.0, %v6099_v31  ;;  %v4318_v9 = vor.u32 1.1754944e-38, %v4317_v45  ;;  %vm4316_vm15 = vcmp.eq.f32.partialorder %v4315_v49, 8.507059e+37  ;;  %v4266_v30 = vadd.f32 %v4257_v27, %v10593_v39 }
 0x708   :  { %v6103_v42 = vpop.eup %6102  ;;  %v9279_v20 = vadd.f32 1.0, %v6101_v18 }
 0x709   :  { %v6105_v57 = vpop.eup %6104  ;;  %v4292_v34 = vmul.f32 %v6103_v42, %v4285_v0  ;;  %vm4297_vm8 = vweird.f32 %v6103_v42  ;;  %v4430_v3 = vpop.f32.mrf.mxu2 }
 0x70a   :  { %v6107_v38 = vpop.eup %6106  ;;  %v4307_v55 = vmul.f32 %v6105_v57, %v9260_v4  ;;  %6110 = vrcp.f32 %v9279_v20  ;;  %vm4312_vm9 = vweird.f32 %v6105_v57  ;;  %vm9304_vm12 = vmor %vm4296_vm10, %vm4297_vm8  ;;  %v4460_v17 = vadd.f32 %v4430_v3, %v548_v59  ;;  %v4418_v37 = vpop.f32.mrf.mxu1 }
 0x70b   :  { %v4293_v16 = vsub.f32 1.0, %v4292_v34  ;;  %v9293_v23 = vadd.f32 1.0, %v6107_v38  ;;  %6112 = vpow2.f32 %v5515_v51  ;;  %v6109_v21 = vpop.eup %6108  ;;  %vm9313_vm14 = vmor %vm4311_vm11, %vm4312_vm9  ;;  %vm4341_vm0 = vweird.f32 %v9279_v20  ;;  %v4404_v34 = vpop.f32.mrf.mxu0 }
 0x70c   :  { %v4308_v46 = vsub.f32 1.0, %v4307_v55  ;;  %v4345_v6 = vand.u32 2147483647, %v9279_v20  ;;  %v4347_v11 = vand.u32 2147483648, %v9279_v20  ;;  %v5518_v44 = vmul.f32 -1.442695, %v4460_v17 }
 0x70d   :  { %v4294_v47 = vmul.f32 %v6103_v42, %v4293_v16  ;;  %6114 = vrcp.f32 %v9293_v23  ;;  %v4362_v32 = vand.u32 2147483648, %v9293_v23  ;;  %vm4356_vm3 = vweird.f32 %v9293_v23 }
 0x70e   :  { %v4309_v48 = vmul.f32 %v6105_v57, %v4308_v46  ;;  %6116 = vrcp.f32 %v9291_v54  ;;  %vm9354_vm5 = vcmp.eq.f32.partialorder %v4345_v6, 8.507059e+37  ;;  %v4462_v8 = vadd.f32 %v4404_v34, %v9277_v36  ;;  %v4444_v36 = vpop.f32.mrf.mxu3 }
 0x70f   :  { %v4295_v53 = vadd.f32 %v6103_v42, %v4294_v47  ;;  %6118 = vpow2.f32 %v5516_v33  ;;  %v4463_v3 = vadd.f32 %v4418_v37, %v9283_v25  ;;  %v4461_v7 = vadd.f32 %v4444_v36, %v9273_v62 }
 0x710   :  { %v9300_v24 = vpop.eup %6110  ;;  %v4310_v43 = vadd.f32 %v6105_v57, %v4309_v48  ;;  %6120 = vpow2.f32 %v5517_v60  ;;  %vm4326_vm9 = vweird.f32 %v9291_v54 }
 0x711   :  { %v6113_v31 = vpop.eup %6112  ;;  %v4299_v4 = vsel %vm9304_vm12, %v6103_v42, %v4295_v53  ;;  %v4337_v13 = vmul.f32 %v9300_v24, %v9279_v20  ;;  %vm4342_vm1 = vweird.f32 %v9300_v24  ;;  %v4432_v33 = vpop.f32.mrf.mxu2  ;;  %v4348_v53 = vor.u32 1.1754944e-38, %v4347_v11 }
 0x712   :  { %v4314_v18 = vsel %vm9313_vm14, %v6105_v57, %v4310_v43  ;;  %v9323_v14 = vadd.f32 1.0, %v6113_v31  ;;  %v4304_v56 = vsel %vm9308_vm13, %v4303_v1, %v4299_v4  ;;  %v4360_v57 = vand.u32 2147483647, %v9293_v23  ;;  %vm9350_vm4 = vmor %vm4341_vm0, %vm4342_vm1 }
 0x713   :  { %v6115_v22 = vpop.eup %6114  ;;  %v4338_v26 = vsub.f32 1.0, %v4337_v13  ;;  %v4319_v35 = vsel %vm4316_vm15, %v4318_v9, %v4314_v18  ;;  %v4385_v58 = vmul.f32 %v6109_v21, %v4304_v56  ;;  %v4363_v21 = vor.u32 1.1754944e-38, %v4362_v32 }
 0x714   :  { %v4352_v40 = vmul.f32 %v6115_v22, %v9293_v23  ;;  %v9331_v42 = vpop.eup %6116  ;;  %6122 = vrcp.f32 %v9323_v14  ;;  %v4383_v38 = vmul.f32 %v4319_v35, %v9041_v61  ;;  %vm4357_vm2 = vweird.f32 %v6115_v22 }
 0x715   :  { %v4339_v59 = vmul.f32 %v9300_v24, %v4338_v26  ;;  %v6119_v2 = vpop.eup %6118  ;;  %6124 = vtanh.f32 %v4266_v30  ;;  %v4322_v10 = vmul.f32 %v9331_v42, %v9291_v54  ;;  %vm4358_vm6 = vmor %vm4356_vm3, %vm4357_vm2  ;;  %vm4361_vm7 = vcmp.eq.f32.partialorder %v4360_v57, 8.507059e+37 }
 0x716   :  { %v4353_v51 = vsub.f32 1.0, %v4352_v40  ;;  %v9343_v46 = vadd.f32 1.0, %v6119_v2  ;;  %v6121_v45 = vpop.eup %6120  ;;  %6126 = vpow2.f32 %v5518_v44  ;;  %v9367_v49 = vadd.f32 %v4385_v58, %v4383_v38 }
 0x717   :  { %v4340_v55 = vadd.f32 %v9300_v24, %v4339_v59  ;;  %v9363_v20 = vadd.f32 1.0, %v6121_v45  ;;  %v4323_v27 = vsub.f32 1.0, %v4322_v10  ;;  %v5519_v1 = vmul.f32 -1.442695, %v4462_v8 }
 0x718   :  { %v4354_v16 = vmul.f32 %v6115_v22, %v4353_v51  ;;  %6128 = vrcp.f32 %v9343_v46  ;;  %v4464_v43 = vadd.f32 %v4432_v33, %v9287_v63  ;;  %v4332_v4 = vand.u32 2147483648, %v9291_v54 }
 0x719   :  { %v4344_v23 = vsel %vm9350_vm4, %v9300_v24, %v4340_v55  ;;  %6130 = vrcp.f32 %v9363_v20  ;;  %v4324_v26 = vmul.f32 %v9331_v42, %v4323_v27  ;;  %vm4327_vm8 = vweird.f32 %v9331_v42 }
 0x71a   :  { %v4355_v47 = vadd.f32 %v6115_v22, %v4354_v16  ;;  %v9365_v48 = vpop.eup %6122  ;;  %v4349_v29 = vsel %vm9354_vm5, %v4348_v53, %v4344_v23  ;;  %6132 = vtanh.f32 %v9367_v49  ;;  %v5521_v62 = vmul.f32 -1.442695, %v4464_v43  ;;  %vm9427_vm4 = vmor %vm4326_vm9, %vm4327_vm8  ;;  %v4446_v43 = vpop.f32.mrf.mxu3 }
 0x71b   :  { %v6125_v24 = vpop.eup %6124  ;;  %v4367_v31 = vmul.f32 %v9365_v48, %v9323_v14  ;;  %6134 = vpow2.f32 %v5519_v1  ;;  %v4377_v35 = vand.u32 2147483648, %v9323_v14  ;;  %v4499_v40 = vand.u32 2147483647, %v9343_v46 }
 0x71c   :  { %v4359_v60 = vsel %vm4358_vm6, %v6115_v22, %v4355_v47  ;;  %v6127_v9 = vpop.eup %6126  ;;  %v4386_v18 = vmul.f32 %v6125_v24, %v4349_v29  ;;  %v5520_v22 = vmul.f32 -1.442695, %v4463_v3  ;;  %6136 = vtanh.f32 %v4461_v7  ;;  %v10618_v7 = vld [vmem:[#allocation146_spill] sm:$0xff] }
 0x71d   :  { %v4364_v0 = vsel %vm4361_vm7, %v4363_v21, %v4359_v60  ;;  %v9381_v17 = vadd.f32 1.0, %v6127_v9  ;;  %v4368_v56 = vsub.f32 1.0, %v4367_v31  ;;  %v4501_v32 = vand.u32 2147483648, %v9343_v46 }
 0x71e   :  { %v6129_v13 = vpop.eup %6128  ;;  %v4384_v25 = vmul.f32 %v4364_v0, %v9058_v19  ;;  %vm4371_vm10 = vweird.f32 %v9323_v14  ;;  %v4516_v11 = vand.u32 2147483648, %v9363_v20  ;;  %v4514_v51 = vand.u32 2147483647, %v9363_v20 }
 0x71f   :  { %v4491_v63 = vmul.f32 %v6129_v13, %v9343_v46  ;;  %v6131_v30 = vpop.eup %6130  ;;  %6138 = vrcp.f32 %v9381_v17  ;;  %vm4496_vm11 = vweird.f32 %v6129_v13  ;;  %v4369_v2 = vmul.f32 %v9365_v48, %v4368_v56 }
 0x720   :  { %v4506_v6 = vmul.f32 %v6131_v30, %v9363_v20  ;;  %v9393_v59 = vadd.f32 %v4386_v18, %v4384_v25  ;;  %6140 = vpow2.f32 %v5520_v22  ;;  %v9397_v57 = vpop.eup %6132  ;;  %vm4372_vm12 = vweird.f32 %v9365_v48 }
 0x721   :  { %v4492_v19 = vsub.f32 1.0, %v4491_v63  ;;  %6142 = vpow2.f32 %v5521_v62  ;;  %vm4510_vm13 = vweird.f32 %v9363_v20  ;;  %vm4495_vm14 = vweird.f32 %v9343_v46  ;;  %v6135_v38 = vpop.eup %6134  ;;  %vm9444_vm5 = vmor %vm4371_vm10, %vm4372_vm12 }
 0x722   :  { %v4507_v44 = vsub.f32 1.0, %v4506_v6  ;;  %vm4511_vm15 = vweird.f32 %v6131_v30  ;;  %vm4500_vm0 = vcmp.eq.f32.partialorder %v4499_v40, 8.507059e+37  ;;  %v6137_v10 = vpop.eup %6136  ;;  %v4517_v16 = vor.u32 1.1754944e-38, %v4516_v11  ;;  %vm4497_vm1 = vmor %vm4495_vm14, %vm4496_vm11 }
 0x723   :  { %v4493_v34 = vmul.f32 %v6129_v13, %v4492_v19  ;;  %v4502_v45 = vor.u32 1.1754944e-38, %v4501_v32  ;;  %vm9403_vm2 = vcmp.eq.f32.partialorder %v4514_v51, 8.507059e+37  ;;  %v9407_v15 = vadd.f32 1.0, %v6135_v38  ;;  %vm4512_vm3 = vmor %vm4510_vm13, %vm4511_vm15 }
 0x724   :  { %v4508_v58 = vmul.f32 %v6131_v30, %v4507_v44  ;;  %6144 = vtanh.f32 %v9393_v59  ;;  %v4325_v23 = vadd.f32 %v9331_v42, %v4324_v26  ;;  %v4370_v53 = vadd.f32 %v9365_v48, %v4369_v2 }
 0x725   :  { %v4494_v55 = vadd.f32 %v6129_v13, %v4493_v34  ;;  %v9409_v8 = vpop.eup %6138  ;;  %6146 = vrcp.f32 %v9407_v15  ;;  %v4330_v24 = vand.u32 2147483647, %v9291_v54  ;;  %v4375_v31 = vand.u32 2147483647, %v9323_v14 }
 0x726   :  { %v4509_v37 = vadd.f32 %v6131_v30, %v4508_v58  ;;  %v6141_v47 = vpop.eup %6140  ;;  %v4521_v33 = vmul.f32 %v9409_v8, %v9381_v17  ;;  %v599_v9 = vadd.f32 %v10618_v7, %v6892_v12  ;;  %v4329_v12 = vsel %vm9427_vm4, %v9331_v42, %v4325_v23 }
 0x727   :  { %v4498_v46 = vsel %vm4497_vm1, %v6129_v13, %v4494_v55  ;;  %v6143_v36 = vpop.eup %6142  ;;  %v9420_v3 = vadd.f32 1.0, %v6141_v47  ;;  %v4333_v13 = vor.u32 1.1754944e-38, %v4332_v4  ;;  %v4374_v54 = vsel %vm9444_vm5, %v9365_v48, %v4370_v53 }
 0x728   :  { %v4503_v21 = vsel %vm4500_vm0, %v4502_v45, %v4498_v46  ;;  %v4513_v27 = vsel %vm4512_vm3, %v6131_v30, %v4509_v37  ;;  %v4522_v29 = vsub.f32 1.0, %v4521_v33  ;;  %v9433_v1 = vadd.f32 1.0, %v6143_v36 }
 0x729   :  { %v4584_v60 = vmul.f32 %v6137_v10, %v4503_v21  ;;  %v4518_v0 = vsel %vm9403_vm2, %v4517_v16, %v4513_v27  ;;  %6148 = vrcp.f32 %v9420_v3  ;;  %v4378_v26 = vor.u32 1.1754944e-38, %v4377_v35 }
 0x72a   :  { %v4582_v18 = vmul.f32 %v4518_v0, %v9113_v52  ;;  %v4523_v22 = vmul.f32 %v9409_v8, %v4522_v29  ;;  %6150 = vrcp.f32 %v9433_v1  ;;  %v6145_v4 = vpop.eup %6144  ;;  %v4531_v52 = vand.u32 2147483648, %v9381_v17 }
 0x72b   :  { %v4465_v62 = vadd.f32 %v4446_v43, %v599_v9  ;;  %v6147_v30 = vpop.eup %6146  ;;  %vm4526_vm6 = vweird.f32 %v9409_v8  ;;  %vm4331_vm7 = vcmp.eq.f32.partialorder %v4330_v24, 8.507059e+37  ;;  %vm4376_vm8 = vcmp.eq.f32.partialorder %v4375_v31, 8.507059e+37 }
 0x72c   :  { %v4586_v63 = vadd.f32 %v4584_v60, %v4582_v18  ;;  %v4524_v56 = vadd.f32 %v9409_v8, %v4523_v22  ;;  %v4536_v42 = vmul.f32 %v6147_v30, %v9407_v15  ;;  %v4334_v48 = vsel %vm4331_vm7, %v4333_v13, %v4329_v12 }
 0x72d   :  { %v4379_v40 = vsel %vm4376_vm8, %v4378_v26, %v4374_v54  ;;  %vm4525_vm9 = vweird.f32 %v9381_v17  ;;  %v4529_v14 = vand.u32 2147483647, %v9381_v17  ;;  %v4391_v35 = vmul.f32 %v9397_v57, %v4334_v48 }
 0x72e   :  { %6152 = vtanh.f32 %v4586_v63  ;;  %4842 = vst [vmem:[#allocation15] sm:$0xff] %v4586_v63  ;;  %v4392_v19 = vmul.f32 %v6145_v4, %v4379_v40  ;;  %vm9467_vm10 = vmor %vm4525_vm9, %vm4526_vm6  ;;  %v4532_v11 = vor.u32 1.1754944e-38, %v4531_v52  ;;  %v4537_v51 = vsub.f32 1.0, %v4536_v42 }
 0x72f   :  { %v6149_v6 = vpop.eup %6148  ;;  %6154 = vtanh.f32 %v4465_v62  ;;  %v4546_v2 = vand.u32 2147483648, %v9407_v15  ;;  %v4528_v17 = vsel %vm9467_vm10, %v9409_v8, %v4524_v56  ;;  %vm4541_vm11 = vweird.f32 %v6147_v30 }
 0x730   :  { %v6151_v44 = vpop.eup %6150  ;;  %v4551_v34 = vmul.f32 %v6149_v6, %v9420_v3  ;;  %v4593_v38 = vpack.c.bf16 %v4392_v19, %v4391_v35  ;;  %v4538_v58 = vmul.f32 %v6147_v30, %v4537_v51  ;;  %v4544_v55 = vand.u32 2147483647, %v9407_v15 }
 0x731   :  { %v4566_v57 = vmul.f32 %v6151_v44, %v9433_v1  ;;  %vm4530_vm12 = vcmp.eq.f32.partialorder %v4529_v14, 8.507059e+37  ;;  %vm4540_vm13 = vweird.f32 %v9407_v15  ;;  %v4561_v45 = vand.u32 2147483648, %v9420_v3 }
 0x732   :  { %v4552_v10 = vsub.f32 1.0, %v4551_v34  ;;  %4602 = vmatmul.bf16.vlgmr.msrb.gmra.mxu0 %v4593_v38  ;;  %4616 = vmatmul.bf16.vlgmr.msrb.gmra.mxu1 %v4593_v38  ;;  %v4539_v61 = vadd.f32 %v6147_v30, %v4538_v58  ;;  %v4559_v46 = vand.u32 2147483647, %v9420_v3  ;;  %v4533_v8 = vsel %vm4530_vm12, %v4532_v11, %v4528_v17  ;;  %vm4542_vm15 = vmor %vm4540_vm13, %vm4541_vm11 }
 0x733   :  { %4630 = vmatmul.bf16.vlgmr.msrb.gmra.mxu2 %v4593_v38  ;;  %4644 = vmatmul.bf16.vlgmr.msrb.gmra.mxu3 %v4593_v38  ;;  %vm4556_vm14 = vweird.f32 %v6149_v6  ;;  %v4547_v23 = vor.u32 1.1754944e-38, %v4546_v2  ;;  %v4567_v21 = vsub.f32 1.0, %v4566_v57  ;;  %vm4545_vm0 = vcmp.eq.f32.partialorder %v4544_v55, 8.507059e+37 }
 0x734   :  { %v6153_v16 = vpop.eup %6152  ;;  %v4553_v37 = vmul.f32 %v6149_v6, %v4552_v10  ;;  %v4543_v15 = vsel %vm4542_vm15, %v6147_v30, %v4539_v61  ;;  %vm4555_vm1 = vweird.f32 %v9420_v3  ;;  %v4562_v27 = vor.u32 1.1754944e-38, %v4561_v45 }
 0x735   :  { %v4590_v47 = vmul.f32 %v6153_v16, %v4533_v8  ;;  %v6155_v33 = vpop.eup %6154  ;;  %v4548_v53 = vsel %vm4545_vm0, %v4547_v23, %v4543_v15  ;;  %vm4557_vm2 = vmor %vm4555_vm1, %vm4556_vm14  ;;  %vm4560_vm3 = vcmp.eq.f32.partialorder %v4559_v46, 8.507059e+37  ;;  %v4568_v20 = vmul.f32 %v6151_v44, %v4567_v21 }
 0x736   :  { %v4554_v36 = vadd.f32 %v6149_v6, %v4553_v37  ;;  %v4585_v24 = vmul.f32 %v6155_v33, %v4548_v53  ;;  %vm4571_vm4 = vweird.f32 %v6151_v44  ;;  %v4576_v7 = vand.u32 2147483648, %v9433_v1 }
 0x737   :  { %4840 = vst [vmem:[#allocation14] sm:$0xff] %v4590_v47  ;;  %v4569_v31 = vadd.f32 %v6151_v44, %v4568_v20  ;;  %vm4570_vm5 = vweird.f32 %v9433_v1  ;;  %v4574_v3 = vand.u32 2147483647, %v9433_v1 }
 0x738   :  { %v4558_v60 = vsel %vm4557_vm2, %v6149_v6, %v4554_v36  ;;  %vm4572_vm6 = vmor %vm4570_vm5, %vm4571_vm4  ;;  %v4577_v13 = vor.u32 1.1754944e-38, %v4576_v7 }
 0x739   :  { %v4563_v29 = vsel %vm4560_vm3, %v4562_v27, %v4558_v60  ;;  %v4573_v9 = vsel %vm4572_vm6, %v6151_v44, %v4569_v31  ;;  %vm4575_vm7 = vcmp.eq.f32.partialorder %v4574_v3, 8.507059e+37 }
 0x73a   :  { %v4583_v0 = vmul.f32 %v4563_v29, %v9145_v50  ;;  %v4578_v18 = vsel %vm4575_vm7, %v4577_v13, %v4573_v9 }
 0x73c   :  { %v4587_v43 = vadd.f32 %v4585_v24, %v4583_v0 }
 0x73e   :  { %6156 = vtanh.f32 %v4587_v43  ;;  %4843 = vst [vmem:[#allocation15 + $0x8] sm:$0xff] %v4587_v43 }
 0x744   :  { %v6157_v25 = vpop.eup %6156 }
 0x745   :  { %v4591_v22 = vmul.f32 %v6157_v25, %v4578_v18 }
 0x747   :  { %v4592_v12 = vpack.c.bf16 %v4591_v22, %v4590_v47  ;;  %4841 = vst [vmem:[#allocation14 + $0x8] sm:$0xff] %v4591_v22 }
 0x749   :  { %4658 = vmatmul.bf16.vlgmr.msra.gmra.mxu0 %v4592_v12  ;;  %4672 = vmatmul.bf16.vlgmr.msra.gmra.mxu1 %v4592_v12 }
 0x74a   :  { %4686 = vmatmul.bf16.vlgmr.msra.gmra.mxu2 %v4592_v12  ;;  %4700 = vmatmul.bf16.vlgmr.msra.gmra.mxu3 %v4592_v12 }
 0x7af   :  { %v4603_v50 = vpop.f32.mrf.mxu0  ;;  %v4617_v54 = vpop.f32.mrf.mxu1 }
 0x7b6   :  { %v4631_v4 = vpop.f32.mrf.mxu2  ;;  %v4645_v63 = vpop.f32.mrf.mxu3 }
 0x7b7   :  { %v4605_v26 = vpop.f32.mrf.mxu0  ;;  %v4619_v52 = vpop.f32.mrf.mxu1 }
 0x7be   :  { %v4633_v1 = vpop.f32.mrf.mxu2  ;;  %v4647_v48 = vpop.f32.mrf.mxu3 }
 0x7c6   :  { %v4659_v62 = vpop.f32.mrf.mxu0  ;;  %v4673_v30 = vpop.f32.mrf.mxu1 }
 0x7c7   :  { %v4660_v56 = vadd.f32 %v4659_v62, %v4603_v50  ;;  %v4674_v42 = vadd.f32 %v4673_v30, %v4617_v54 }
 0x7c9   :  { %v4706_v40 = vadd.f32 %v4660_v56, %v10590_v28  ;;  %v4707_v14 = vadd.f32 %v4674_v42, %v10591_v5 }
 0x7cb   :  { %v5522_v35 = vmul.f32 -1.442695, %v4706_v40  ;;  %v5523_v19 = vmul.f32 -1.442695, %v4707_v14 }
 0x7cd   :  { %6158 = vpow2.f32 %v5522_v35  ;;  %v4687_v6 = vpop.f32.mrf.mxu2  ;;  %v4701_v55 = vpop.f32.mrf.mxu3 }
 0x7ce   :  { %6160 = vpow2.f32 %v5523_v19  ;;  %v4688_v32 = vadd.f32 %v4687_v6, %v4631_v4  ;;  %v4661_v11 = vpop.f32.mrf.mxu0  ;;  %v4675_v51 = vpop.f32.mrf.mxu1  ;;  %v4702_v37 = vadd.f32 %v4701_v55, %v4645_v63 }
 0x7cf   :  { %v4662_v44 = vadd.f32 %v4661_v11, %v4605_v26  ;;  %v4676_v34 = vadd.f32 %v4675_v51, %v4619_v52 }
 0x7d0   :  { %v4708_v2 = vadd.f32 %v4688_v32, %v10592_v41 }
 0x7d1   :  { %v4710_v38 = vadd.f32 %v4662_v44, %v10590_v28  ;;  %v4711_v17 = vadd.f32 %v4676_v34, %v10591_v5  ;;  %v4709_v28 = vadd.f32 %v4702_v37, %v10593_v39 }
 0x7d2   :  { %v5524_v57 = vmul.f32 -1.442695, %v4708_v2 }
 0x7d3   :  { %v6159_v58 = vpop.eup %6158  ;;  %v5525_v10 = vmul.f32 -1.442695, %v4710_v38  ;;  %v5526_v61 = vmul.f32 -1.442695, %v4711_v17 }
 0x7d4   :  { %v6161_v16 = vpop.eup %6160  ;;  %v4732_v45 = vadd.f32 1.0, %v6159_v58  ;;  %6162 = vpow2.f32 %v5524_v57 }
 0x7d5   :  { %v4733_v46 = vadd.f32 1.0, %v6161_v16  ;;  %6164 = vpow2.f32 %v5525_v10  ;;  %v4689_v8 = vpop.f32.mrf.mxu2  ;;  %v4703_v0 = vpop.f32.mrf.mxu3 }
 0x7d6   :  { %6166 = vrcp.f32 %v4732_v45  ;;  %v4690_v23 = vadd.f32 %v4689_v8, %v4633_v1  ;;  %v4747_v29 = vand.u32 2147483647, %v4732_v45  ;;  %v4749_v31 = vand.u32 2147483648, %v4732_v45 }
 0x7d7   :  { %6168 = vrcp.f32 %v4733_v46  ;;  %v4764_v3 = vand.u32 2147483648, %v4733_v46  ;;  %v4762_v9 = vand.u32 2147483647, %v4733_v46  ;;  %v4704_v25 = vadd.f32 %v4703_v0, %v4647_v48 }
 0x7d8   :  { %6170 = vpow2.f32 %v5526_v61  ;;  %v4712_v5 = vadd.f32 %v4690_v23, %v10592_v41  ;;  %vm4758_vm10 = vweird.f32 %v4733_v46  ;;  %vm4743_vm11 = vweird.f32 %v4732_v45 }
 0x7d9   :  { %vm4748_vm13 = vcmp.eq.f32.partialorder %v4747_v29, 8.507059e+37  ;;  %v4750_v4 = vor.u32 1.1754944e-38, %v4749_v31  ;;  %v4765_v63 = vor.u32 1.1754944e-38, %v4764_v3  ;;  %vm4763_vm15 = vcmp.eq.f32.partialorder %v4762_v9, 8.507059e+37 }
 0x7da   :  { %v6163_v47 = vpop.eup %6162  ;;  %v5527_v36 = vmul.f32 -1.442695, %v4712_v5  ;;  %v4713_v62 = vadd.f32 %v4704_v25, %v10593_v39 }
 0x7db   :  { %v6165_v33 = vpop.eup %6164  ;;  %v9494_v21 = vadd.f32 1.0, %v6163_v47 }
 0x7dc   :  { %v6167_v15 = vpop.eup %6166  ;;  %v9496_v53 = vadd.f32 1.0, %v6165_v33 }
 0x7dd   :  { %v6169_v27 = vpop.eup %6168  ;;  %v4739_v60 = vmul.f32 %v6167_v15, %v4732_v45  ;;  %6172 = vrcp.f32 %v9494_v21  ;;  %vm4744_vm8 = vweird.f32 %v6167_v15  ;;  %vm4773_vm0 = vweird.f32 %v9494_v21 }
 0x7de   :  { %v6171_v24 = vpop.eup %6170  ;;  %v4754_v20 = vmul.f32 %v6169_v27, %v4733_v46  ;;  %6174 = vtanh.f32 %v4709_v28  ;;  %vm4759_vm9 = vweird.f32 %v6169_v27  ;;  %vm4745_vm12 = vmor %vm4743_vm11, %vm4744_vm8  ;;  %v4779_v44 = vand.u32 2147483648, %v9494_v21 }
 0x7df   :  { %v4740_v43 = vsub.f32 1.0, %v4739_v60  ;;  %6176 = vrcp.f32 %v9496_v53  ;;  %v9500_v41 = vadd.f32 1.0, %v6171_v24  ;;  %vm4760_vm14 = vmor %vm4758_vm10, %vm4759_vm9  ;;  %v4794_v2 = vand.u32 2147483648, %v9496_v53 }
 0x7e0   :  { %v4755_v7 = vsub.f32 1.0, %v4754_v20  ;;  %6178 = vpow2.f32 %v5527_v36  ;;  %v4777_v45 = vand.u32 2147483647, %v9494_v21  ;;  %vm4788_vm5 = vweird.f32 %v9496_v53 }
 0x7e1   :  { %v4741_v13 = vmul.f32 %v6167_v15, %v4740_v43  ;;  %6180 = vrcp.f32 %v9500_v41  ;;  %v4809_v34 = vand.u32 2147483648, %v9500_v41  ;;  %v4807_v10 = vand.u32 2147483647, %v9500_v41 }
 0x7e2   :  { %v4756_v18 = vmul.f32 %v6169_v27, %v4755_v7  ;;  %v4780_v46 = vor.u32 1.1754944e-38, %v4779_v44  ;;  %vm4803_vm6 = vweird.f32 %v9500_v41  ;;  %v4795_v8 = vor.u32 1.1754944e-38, %v4794_v2 }
 0x7e3   :  { %v9503_v22 = vpop.eup %6172  ;;  %v4742_v12 = vadd.f32 %v6167_v15, %v4741_v13  ;;  %v4810_v28 = vor.u32 1.1754944e-38, %v4809_v34  ;;  %vm4808_vm10 = vcmp.eq.f32.partialorder %v4807_v10, 8.507059e+37  ;;  %vm4778_vm11 = vcmp.eq.f32.partialorder %v4777_v45, 8.507059e+37 }
 0x7e4   :  { %v6175_v50 = vpop.eup %6174  ;;  %v4769_v54 = vmul.f32 %v9503_v22, %v9494_v21  ;;  %v4757_v26 = vadd.f32 %v6169_v27, %v4756_v18  ;;  %vm4774_vm1 = vweird.f32 %v9503_v22 }
 0x7e5   :  { %v6177_v52 = vpop.eup %6176  ;;  %v4746_v1 = vsel %vm4745_vm12, %v6167_v15, %v4742_v12  ;;  %vm9525_vm4 = vmor %vm4773_vm0, %vm4774_vm1 }
 0x7e6   :  { %v6179_v30 = vpop.eup %6178  ;;  %v4770_v56 = vsub.f32 1.0, %v4769_v54  ;;  %v4751_v42 = vsel %vm4748_vm13, %v4750_v4, %v4746_v1  ;;  %v4761_v48 = vsel %vm4760_vm14, %v6169_v27, %v4757_v26  ;;  %v4784_v40 = vmul.f32 %v6177_v52, %v9496_v53 }
 0x7e7   :  { %v6181_v14 = vpop.eup %6180  ;;  %v4766_v35 = vsel %vm4763_vm15, %v4765_v63, %v4761_v48  ;;  %v4832_v19 = vmul.f32 %v6175_v50, %v4751_v42  ;;  %v9510_v6 = vadd.f32 1.0, %v6179_v30  ;;  %vm4789_vm2 = vweird.f32 %v6177_v52 }
 0x7e8   :  { %v4771_v32 = vmul.f32 %v9503_v22, %v4770_v56  ;;  %v4830_v11 = vmul.f32 %v4766_v35, %v9367_v49  ;;  %v4785_v51 = vsub.f32 1.0, %v4784_v40  ;;  %v4799_v39 = vmul.f32 %v6181_v14, %v9500_v41  ;;  %vm4790_vm7 = vmor %vm4788_vm5, %vm4789_vm2 }
 0x7e9   :  { %6182 = vrcp.f32 %v9510_v6  ;;  %v4792_v49 = vand.u32 2147483647, %v9496_v53  ;;  %vm4804_vm3 = vweird.f32 %v6181_v14  ;;  %v4824_v7 = vand.u32 2147483648, %v9510_v6 }
 0x7ea   :  { %v4834_v38 = vadd.f32 %v4832_v19, %v4830_v11  ;;  %v4800_v17 = vsub.f32 1.0, %v4799_v39  ;;  %6184 = vtanh.f32 %v4713_v62  ;;  %v4772_v57 = vadd.f32 %v9503_v22, %v4771_v32  ;;  %vm4805_vm8 = vmor %vm4803_vm6, %vm4804_vm3 }
 0x7eb   :  { %v4786_v58 = vmul.f32 %v6177_v52, %v4785_v51  ;;  %vm4793_vm9 = vcmp.eq.f32.partialorder %v4792_v49, 8.507059e+37  ;;  %vm4818_vm13 = vweird.f32 %v9510_v6  ;;  %v4822_v3 = vand.u32 2147483647, %v9510_v6 }
 0x7ec   :  { %6186 = vtanh.f32 %v4834_v38  ;;  %4846 = vst [vmem:[#allocation15 + $0x10] sm:$0xff] %v4834_v38  ;;  %v4801_v55 = vmul.f32 %v6181_v14, %v4800_v17  ;;  %v4776_v47 = vsel %vm9525_vm4, %v9503_v22, %v4772_v57  ;;  %v4825_v9 = vor.u32 1.1754944e-38, %v4824_v7 }
 0x7ed   :  { %v4787_v61 = vadd.f32 %v6177_v52, %v4786_v58  ;;  %v4781_v24 = vsel %vm4778_vm11, %v4780_v46, %v4776_v47  ;;  %vm4823_vm15 = vcmp.eq.f32.partialorder %v4822_v3, 8.507059e+37 }
 0x7ee   :  { %v4802_v37 = vadd.f32 %v6181_v14, %v4801_v55 }
 0x7ef   :  { %v6183_v23 = vpop.eup %6182  ;;  %v4791_v5 = vsel %vm4790_vm7, %v6177_v52, %v4787_v61 }
 0x7f0   :  { %v6185_v33 = vpop.eup %6184  ;;  %v4814_v21 = vmul.f32 %v6183_v23, %v9510_v6  ;;  %v4796_v15 = vsel %vm4793_vm9, %v4795_v8, %v4791_v5  ;;  %v4806_v53 = vsel %vm4805_vm8, %v6181_v14, %v4802_v37  ;;  %vm4819_vm12 = vweird.f32 %v6183_v23 }
 0x7f1   :  { %v4811_v36 = vsel %vm4808_vm10, %v4810_v28, %v4806_v53  ;;  %v4833_v27 = vmul.f32 %v6185_v33, %v4796_v15  ;;  %vm4820_vm14 = vmor %vm4818_vm13, %vm4819_vm12 }
 0x7f2   :  { %v6187_v60 = vpop.eup %6186  ;;  %v4815_v20 = vsub.f32 1.0, %v4814_v21  ;;  %v4831_v29 = vmul.f32 %v4811_v36, %v9393_v59 }
 0x7f3   :  { %v4838_v0 = vmul.f32 %v6187_v60, %v4781_v24 }
 0x7f4   :  { %v4816_v43 = vmul.f32 %v6183_v23, %v4815_v20  ;;  %v4835_v31 = vadd.f32 %v4833_v27, %v4831_v29 }
 0x7f5   :  { %4844 = vst [vmem:[#allocation14 + $0x10] sm:$0xff] %v4838_v0 }
 0x7f6   :  { %v4817_v41 = vadd.f32 %v6183_v23, %v4816_v43  ;;  %6188 = vtanh.f32 %v4835_v31  ;;  %4847 = vst [vmem:[#allocation15 + $0x18] sm:$0xff] %v4835_v31 }
 0x7f7   :  { %4873 = dma.vmem_to_hbm [thread:$0]  %s4866_s5, 512, %s4868_s13, [#allocation16], %s6395_s9, %s6395_s9, %s6396_s10  }
 0x7f8   :  { %v4821_v59 = vsel %vm4820_vm14, %v6183_v23, %v4817_v41 }
 0x7f9   :  { %v4826_v25 = vsel %vm4823_vm15, %v4825_v9, %v4821_v59 }
 0x7fc   :  { %v6189_v13 = vpop.eup %6188 }
 0x7fd   :  { %v4839_v18 = vmul.f32 %v6189_v13, %v4826_v25 }
 0x7ff   :  { %4845 = vst [vmem:[#allocation14 + $0x18] sm:$0xff] %v4839_v18 }
 0x800   :  { %4860 = dma.vmem_to_hbm [thread:$0]  %s4853_s14, 512, %s4855_s17, [#allocation5], %s6395_s9, %s6395_s9, %s6396_s10  }
 0x801   :  { %6390 = dma.done.wait [#allocation5], 512  }
 0x802   :  { %6391 = vsyncadd [#allocation5], 4294966784 }
 0x803   :  { %6392 = dma.done.wait [#allocation16], 512  }
 0x804   :  { %6393 = vsyncadd [#allocation16], 4294966784 }
 0x805   :  { %4882 = vsyncpa [#allocation4], 1 }
 0x806   :  { %4883 = vsyncpa [#allocation7], 1 }
 0x807   :  { %4884 = vsyncpa [#allocation10], 1 }
 0x808   :  { %4885 = vsyncpa [#allocation13], 1 }
 0x809   :  { %4886 = vsyncpa [#allocation5], 1 }
 0x80a   :  { %4887 = vsyncpa [#allocation16], 1 }

</bundles_post_ra>
